<compile_context>
chip_gen: v7x
topology: tpu7x:2x2x1
jax: 0.10.0
libtpu: 0.0.40
codegen_flags: <defaults>
</compile_context>

<pallas_src>
import math

import jax
import jax.numpy as jnp
from jax.experimental import pallas as pl
from jax.experimental.pallas import tpu as pltpu

# Small, lane-dense stand-ins for (d_model=768, heads=8, ff=2048).
D_MODEL = 128
NUM_HEADS = 4
HEAD_DIM = D_MODEL // NUM_HEADS          # 32
FF_HIDDEN = 256
TQ = 128                                 # q-tile (rows per grid step)
LN_EPS = 1e-5
MM_DTYPE = jnp.bfloat16                  # MXU input dtype (f32 accumulation)

PARAM_ORDER = ('wq_t', 'bq', 'wkv_t', 'bkv', 'wo_t', 'bo', 'g1', 'b1',
               'w1_t', 'bf1', 'w2_t', 'bf2', 'g2', 'b2')


def _layernorm(x, gamma, beta):
    # PyTorch LayerNorm: biased variance, eps inside rsqrt.  f32 math.
    mean = jnp.mean(x, axis=-1, keepdims=True)
    var = jnp.mean(jnp.square(x - mean), axis=-1, keepdims=True)
    return (x - mean) * jax.lax.rsqrt(var + LN_EPS) * gamma + beta


def transformer_block_kernel(xq_ref, xkv_ref, wq_ref, bq_ref, wkv_ref, bkv_ref,
                             wo_ref, bo_ref, g1_ref, b1_ref, w1_ref, bf1_ref,
                             w2_ref, bf2_ref, g2_ref, b2_ref,
                             o_ref, kv_scr, oh_scr):
    E, H, Dh = D_MODEL, NUM_HEADS, HEAD_DIM

    xq = xq_ref[0].astype(jnp.float32)                      # (TQ, E) residual/LN in f32

    # ---- K/V projection over the full sequence, staged bf16 in VMEM -------
    kv = jnp.dot(xkv_ref[0].astype(MM_DTYPE), wkv_ref[...],
                 preferred_element_type=jnp.float32) + bkv_ref[...]
    kv_scr[...] = kv.astype(MM_DTYPE)                       # consume f32 kv immediately

    # ---- Q projection for this q-tile (1/sqrt(Dh) pre-folded) -------------
    q = (jnp.dot(xq.astype(MM_DTYPE), wq_ref[...],
                 preferred_element_type=jnp.float32) + bq_ref[...]).astype(MM_DTYPE)

    # ---- per-head attention; head outputs land in lane slices of oh_scr ---
    for h in range(H):                                      # static unroll (toy H=4)
        qh = q[:, h * Dh:(h + 1) * Dh]                      # (TQ, Dh), scale pre-folded
        kh = kv_scr[:, h * Dh:(h + 1) * Dh]                 # (L, Dh)
        vh = kv_scr[:, E + h * Dh:E + (h + 1) * Dh]         # (L, Dh)
        s = jnp.einsum('ld,md->lm', qh, kh,
                       preferred_element_type=jnp.float32)  # (TQ, L) f32 acc
        s = s - jnp.max(s, axis=-1, keepdims=True)
        p = jnp.exp(s)
        p = p * pl.reciprocal(jnp.sum(p, axis=-1, keepdims=True), approx=True)
        oh = jnp.dot(p.astype(MM_DTYPE), vh,
                     preferred_element_type=jnp.float32)    # (TQ, Dh)
        oh_scr[:, h * Dh:(h + 1) * Dh] = oh.astype(MM_DTYPE)  # column-slice store

    # ---- ONE (TQ,E) x (E,E) out-projection (was H small K=32 matmuls) -----
    attn = jnp.dot(oh_scr[...], wo_ref[...],
                   preferred_element_type=jnp.float32) + bo_ref[...]

    # ---- residual + norm1 (dropout = identity in eval) ---------------------
    h1 = _layernorm(xq + attn, g1_ref[...], b1_ref[...])

    # ---- feed-forward: Linear -> ReLU -> Linear (weights pre-transposed) ---
    ff = jnp.dot(h1.astype(MM_DTYPE), w1_ref[...],
                 preferred_element_type=jnp.float32) + bf1_ref[...]
    ff = jnp.maximum(ff, 0.0)
    ff = jnp.dot(ff.astype(MM_DTYPE), w2_ref[...],
                 preferred_element_type=jnp.float32) + bf2_ref[...]

    # ---- residual + norm2 --------------------------------------------------
    o_ref[0] = _layernorm(h1 + ff, g2_ref[...], b2_ref[...]).astype(o_ref.dtype)


def _invariant_spec(shape):
    nd = len(shape)
    return pl.BlockSpec(shape, lambda n, q: (0,) * nd)


def prepare_params(p):
    """One-time host-side layout work (HBM plumbing, not kernel compute):
    pre-transpose every weight so the kernel only does x @ W, split the fused
    in-projection into Q and KV, fold the 1/sqrt(head_dim) query scale into the
    Q weight+bias, and cast matmul weights to bf16 (biases/LN params f32)."""
    E, FF = D_MODEL, FF_HIDDEN
    scale = 1.0 / math.sqrt(HEAD_DIM)

    w_in = jnp.asarray(p['in_proj_weight'], jnp.float32)    # (3E, E)
    b_in = jnp.asarray(p['in_proj_bias'], jnp.float32)      # (3E,)
    wq_t = w_in[:E].T * scale                                # (E, E), q-scale folded
    wkv_t = w_in[E:].T                                       # (E, 2E)

    return {
        'wq_t':  wq_t.astype(MM_DTYPE),
        'bq':    (b_in[:E] * scale).reshape(1, E),
        'wkv_t': wkv_t.astype(MM_DTYPE),
        'bkv':   b_in[E:].reshape(1, 2 * E),
        'wo_t':  jnp.asarray(p['out_proj_weight'], jnp.float32).T.astype(MM_DTYPE),
        'bo':    jnp.asarray(p['out_proj_bias'], jnp.float32).reshape(1, E),
        'g1':    jnp.asarray(p['norm1_weight'], jnp.float32).reshape(1, E),
        'b1':    jnp.asarray(p['norm1_bias'], jnp.float32).reshape(1, E),
        'w1_t':  jnp.asarray(p['lin1_weight'], jnp.float32).T.astype(MM_DTYPE),
        'bf1':   jnp.asarray(p['lin1_bias'], jnp.float32).reshape(1, FF),
        'w2_t':  jnp.asarray(p['lin2_weight'], jnp.float32).T.astype(MM_DTYPE),
        'bf2':   jnp.asarray(p['lin2_bias'], jnp.float32).reshape(1, E),
        'g2':    jnp.asarray(p['norm2_weight'], jnp.float32).reshape(1, E),
        'b2':    jnp.asarray(p['norm2_bias'], jnp.float32).reshape(1, E),
    }


@jax.jit
def transformer_block(x_nle, prepped):
    """x_nle: (N, L, E) batch-first activations (== PyTorch batch_first=True).
    Seq-first (L, N, E) callers transpose once at their boundary; no transposes
    are performed here."""
    N, L, E = x_nle.shape
    assert E == D_MODEL and L % TQ == 0 and TQ % 8 == 0
    plist = [prepped[k] for k in PARAM_ORDER]
    return pl.pallas_call(
        transformer_block_kernel,
        out_shape=jax.ShapeDtypeStruct((N, L, E), jnp.float32),
        grid=(N, L // TQ),
        in_specs=[pl.BlockSpec((1, TQ, E), lambda n, q: (n, q, 0)),   # q-tile rows
                  pl.BlockSpec((1, L, E), lambda n, q: (n, 0, 0))]    # full seq for K/V
                 + [_invariant_spec(p.shape) for p in plist],
        out_specs=pl.BlockSpec((1, TQ, E), lambda n, q: (n, q, 0)),
        scratch_shapes=[pltpu.VMEM((L, 2 * E), MM_DTYPE),    # staged K|V (post-bias, bf16)
                        pltpu.VMEM((TQ, E), MM_DTYPE)],      # per-head outputs, lane slices
        compiler_params=pltpu.CompilerParams(
            dimension_semantics=("parallel", "parallel"),    # both TCs on v7x get work
            vmem_limit_bytes=32 * 1024 * 1024),
    )(x_nle, x_nle, *plist)


def reference(x_nle, p):
    """Pure-JAX f32 reference (eval-mode dropout, mask=None), (N, L, E) layout."""
    E, H, Dh = D_MODEL, NUM_HEADS, HEAD_DIM

    def one(x):
        L = x.shape[0]
        qkv = x @ p['in_proj_weight'].T + p['in_proj_bias']
        q = qkv[:, :E] / math.sqrt(Dh)
        k = qkv[:, E:2 * E]
        v = qkv[:, 2 * E:]
        qh = q.reshape(L, H, Dh).transpose(1, 0, 2)
        kh = k.reshape(L, H, Dh).transpose(1, 0, 2)
        vh = v.reshape(L, H, Dh).transpose(1, 0, 2)
        s = jnp.einsum('hld,hmd->hlm', qh, kh)
        pw = jax.nn.softmax(s, axis=-1)
        o = jnp.einsum('hlm,hmd->hld', pw, vh).transpose(1, 0, 2).reshape(L, E)
        attn = o @ p['out_proj_weight'].T + p['out_proj_bias']
        h1 = _layernorm(x + attn, p['norm1_weight'], p['norm1_bias'])
        ff = jax.nn.relu(h1 @ p['lin1_weight'].T + p['lin1_bias'])
        ff = ff @ p['lin2_weight'].T + p['lin2_bias']
        return _layernorm(h1 + ff, p['norm2_weight'], p['norm2_bias'])

    return jax.vmap(one)(x_nle)


if __name__ == "__main__":
    N, L = 2, 256
    E, FF = D_MODEL, FF_HIDDEN

    key = jax.random.PRNGKey(0)
    ks = jax.random.split(key, 13)
    raw = {
        'in_proj_weight':  0.02 * jax.random.normal(ks[0], (3 * E, E), jnp.float32),
        'in_proj_bias':    0.02 * jax.random.normal(ks[1], (3 * E,), jnp.float32),
        'out_proj_weight': 0.02 * jax.random.normal(ks[2], (E, E), jnp.float32),
        'out_proj_bias':   0.02 * jax.random.normal(ks[3], (E,), jnp.float32),
        'norm1_weight':    1.0 + 0.1 * jax.random.normal(ks[4], (E,), jnp.float32),
        'norm1_bias':      0.05 * jax.random.normal(ks[5], (E,), jnp.float32),
        'lin1_weight':     0.02 * jax.random.normal(ks[6], (FF, E), jnp.float32),
        'lin1_bias':       0.02 * jax.random.normal(ks[7], (FF,), jnp.float32),
        'lin2_weight':     0.02 * jax.random.normal(ks[8], (E, FF), jnp.float32),
        'lin2_bias':       0.02 * jax.random.normal(ks[9], (E,), jnp.float32),
        'norm2_weight':    1.0 + 0.1 * jax.random.normal(ks[10], (E,), jnp.float32),
        'norm2_bias':      0.05 * jax.random.normal(ks[11], (E,), jnp.float32),
    }
    x = jax.random.normal(ks[12], (N, L, E), jnp.float32)   # batch-first (N, L, E)

    prepped = prepare_params(raw)
    out = transformer_block(x, prepped)
    jax.block_until_ready(out)

    ref = reference(x, raw)
    assert out.shape == x.shape
    max_err = float(jnp.max(jnp.abs(out - ref)))
    assert jnp.allclose(out, ref, atol=2e-2, rtol=2e-2), (
        f"mismatch vs JAX reference (max abs err {max_err})")

    print("KERNEL_OK")
</pallas_src>

<mosaic_0001>
module attributes {stable_mosaic.version = 11 : i64} {
  func.func @transformer_block_kernel(%arg0: i32, %arg1: i32, %arg2: memref<1x128x128xf32, #tpu.memory_space<vmem>>, %arg3: memref<1x256x128xf32, #tpu.memory_space<vmem>>, %arg4: memref<128x128xbf16, #tpu.memory_space<vmem>>, %arg5: memref<1x128xf32, #tpu.memory_space<vmem>>, %arg6: memref<128x256xbf16, #tpu.memory_space<vmem>>, %arg7: memref<1x256xf32, #tpu.memory_space<vmem>>, %arg8: memref<128x128xbf16, #tpu.memory_space<vmem>>, %arg9: memref<1x128xf32, #tpu.memory_space<vmem>>, %arg10: memref<1x128xf32, #tpu.memory_space<vmem>>, %arg11: memref<1x128xf32, #tpu.memory_space<vmem>>, %arg12: memref<128x256xbf16, #tpu.memory_space<vmem>>, %arg13: memref<1x256xf32, #tpu.memory_space<vmem>>, %arg14: memref<256x128xbf16, #tpu.memory_space<vmem>>, %arg15: memref<1x128xf32, #tpu.memory_space<vmem>>, %arg16: memref<1x128xf32, #tpu.memory_space<vmem>>, %arg17: memref<1x128xf32, #tpu.memory_space<vmem>>, %arg18: memref<1x128x128xf32, #tpu.memory_space<vmem>>, %arg19: memref<256x256xbf16, #tpu.memory_space<vmem>>, %arg20: memref<128x128xbf16, #tpu.memory_space<vmem>>) attributes {dimension_semantics = [#tpu.dimension_semantics<parallel>, #tpu.dimension_semantics<parallel>], iteration_bounds = array<i64: 2, 2>, scalar_prefetch = 0 : i64, scratch_operands = 2 : i64, tpu.core_type = #tpu.core_type<tc>, window_params = [{transform_indices = @transform_0, window_bounds = array<i64: 1, 128, 128>}, {transform_indices = @transform_1, window_bounds = array<i64: 1, 256, 128>}, {pipeline_mode = #tpu.pipeline_mode<synchronous>, transform_indices = @transform_2, window_bounds = array<i64: 128, 128>}, {pipeline_mode = #tpu.pipeline_mode<synchronous>, transform_indices = @transform_3, window_bounds = array<i64: 1, 128>}, {pipeline_mode = #tpu.pipeline_mode<synchronous>, transform_indices = @transform_4, window_bounds = array<i64: 128, 256>}, {pipeline_mode = #tpu.pipeline_mode<synchronous>, transform_indices = @transform_5, window_bounds = array<i64: 1, 256>}, {pipeline_mode = #tpu.pipeline_mode<synchronous>, transform_indices = @transform_6, window_bounds = array<i64: 128, 128>}, {pipeline_mode = #tpu.pipeline_mode<synchronous>, transform_indices = @transform_7, window_bounds = array<i64: 1, 128>}, {pipeline_mode = #tpu.pipeline_mode<synchronous>, transform_indices = @transform_8, window_bounds = array<i64: 1, 128>}, {pipeline_mode = #tpu.pipeline_mode<synchronous>, transform_indices = @transform_9, window_bounds = array<i64: 1, 128>}, {pipeline_mode = #tpu.pipeline_mode<synchronous>, transform_indices = @transform_10, window_bounds = array<i64: 128, 256>}, {pipeline_mode = #tpu.pipeline_mode<synchronous>, transform_indices = @transform_11, window_bounds = array<i64: 1, 256>}, {pipeline_mode = #tpu.pipeline_mode<synchronous>, transform_indices = @transform_12, window_bounds = array<i64: 256, 128>}, {pipeline_mode = #tpu.pipeline_mode<synchronous>, transform_indices = @transform_13, window_bounds = array<i64: 1, 128>}, {pipeline_mode = #tpu.pipeline_mode<synchronous>, transform_indices = @transform_14, window_bounds = array<i64: 1, 128>}, {pipeline_mode = #tpu.pipeline_mode<synchronous>, transform_indices = @transform_15, window_bounds = array<i64: 1, 128>}, {transform_indices = @transform_16, window_bounds = array<i64: 1, 128, 128>}]} {
    %c0 = arith.constant 0 : index
    %c0_0 = arith.constant 0 : index
    %c0_1 = arith.constant 0 : index
    %0 = vector.load %arg2[%c0, %c0_0, %c0_1] : memref<1x128x128xf32, #tpu.memory_space<vmem>>, vector<1x128x128xf32>
    %1 = vector.shape_cast %0 : vector<1x128x128xf32> to vector<128x128xf32>
    %c0_2 = arith.constant 0 : index
    %c0_3 = arith.constant 0 : index
    %c0_4 = arith.constant 0 : index
    %2 = vector.load %arg3[%c0_2, %c0_3, %c0_4] : memref<1x256x128xf32, #tpu.memory_space<vmem>>, vector<1x256x128xf32>
    %3 = vector.shape_cast %2 : vector<1x256x128xf32> to vector<256x128xf32>
    %4 = arith.truncf %3 : vector<256x128xf32> to vector<256x128xbf16>
    %c0_5 = arith.constant 0 : index
    %c0_6 = arith.constant 0 : index
    %5 = vector.load %arg6[%c0_5, %c0_6] : memref<128x256xbf16, #tpu.memory_space<vmem>>, vector<128x256xbf16>
    %cst = arith.constant dense<0.000000e+00> : vector<256x256xf32>
    %6 = tpu.matmul %4, %5, %cst {dimension_numbers = #tpu.dot_dimension_numbers<[1], [0], [0], [1], [0, 0, 1, 1], [], []>} : vector<256x128xbf16>, vector<128x256xbf16>, vector<256x256xf32> -> vector<256x256xf32>
    %c0_7 = arith.constant 0 : index
    %c0_8 = arith.constant 0 : index
    %7 = vector.load %arg7[%c0_7, %c0_8] : memref<1x256xf32, #tpu.memory_space<vmem>>, vector<1x256xf32>
    %8 = vector.broadcast %7 : vector<1x256xf32> to vector<256x256xf32>
    %9 = arith.addf %6, %8 : vector<256x256xf32>
    %10 = arith.truncf %9 : vector<256x256xf32> to vector<256x256xbf16>
    %c0_9 = arith.constant 0 : index
    %c0_10 = arith.constant 0 : index
    %11 = vector.load %arg19[%c0_9, %c0_10] : memref<256x256xbf16, #tpu.memory_space<vmem>>, vector<256x256xbf16>
    tpu.vector_store %arg19[%c0_9, %c0_10], %10 {strides = array<i32>} : memref<256x256xbf16, #tpu.memory_space<vmem>>, vector<256x256xbf16>,
    %12 = arith.truncf %1 : vector<128x128xf32> to vector<128x128xbf16>
    %c0_11 = arith.constant 0 : index
    %c0_12 = arith.constant 0 : index
    %13 = vector.load %arg4[%c0_11, %c0_12] : memref<128x128xbf16, #tpu.memory_space<vmem>>, vector<128x128xbf16>
    %cst_13 = arith.constant dense<0.000000e+00> : vector<128x128xf32>
    %14 = tpu.matmul %12, %13, %cst_13 {dimension_numbers = #tpu.dot_dimension_numbers<[1], [0], [0], [1], [0, 0, 1, 1], [], []>} : vector<128x128xbf16>, vector<128x128xbf16>, vector<128x128xf32> -> vector<128x128xf32>
    %c0_14 = arith.constant 0 : index
    %c0_15 = arith.constant 0 : index
    %15 = vector.load %arg5[%c0_14, %c0_15] : memref<1x128xf32, #tpu.memory_space<vmem>>, vector<1x128xf32>
    %16 = vector.broadcast %15 : vector<1x128xf32> to vector<128x128xf32>
    %17 = arith.addf %14, %16 : vector<128x128xf32>
    %18 = arith.truncf %17 : vector<128x128xf32> to vector<128x128xbf16>
    %19 = vector.extract_strided_slice %18 {offsets = [0, 0], sizes = [128, 32], strides = [1, 1]} : vector<128x128xbf16> to vector<128x32xbf16>
    %c0_16 = arith.constant 0 : index
    %c0_17 = arith.constant 0 : index
    %20 = vector.load %arg19[%c0_16, %c0_17] : memref<256x256xbf16, #tpu.memory_space<vmem>>, vector<256x32xbf16>
    %c0_18 = arith.constant 0 : index
    %c128 = arith.constant 128 : index
    %21 = vector.load %arg19[%c0_18, %c128] : memref<256x256xbf16, #tpu.memory_space<vmem>>, vector<256x32xbf16>
    "tpu.trace_start"() <{level = 10 : i32, message = "ld,md->lm"}> : () -> ()
    %cst_19 = arith.constant dense<0.000000e+00> : vector<128x256xf32>
    %22 = tpu.matmul %19, %20, %cst_19 {dimension_numbers = #tpu.dot_dimension_numbers<[1], [1], [0], [0], [0, 0, 1, 0], [], []>} : vector<128x32xbf16>, vector<256x32xbf16>, vector<128x256xf32> -> vector<128x256xf32>
    "tpu.trace_stop"() : () -> ()
    %cst_20 = arith.constant dense<0xFF800000> : vector<128xf32>
    %23 = vector.multi_reduction <maximumf>, %22, %cst_20 [1] : vector<128x256xf32> to vector<128xf32>
    %24 = vector.shape_cast %23 : vector<128xf32> to vector<128x1xf32>
    %25 = vector.broadcast %24 : vector<128x1xf32> to vector<128x256xf32>
    %26 = arith.subf %22, %25 : vector<128x256xf32>
    %27 = math.exp %26 : vector<128x256xf32>
    %cst_21 = arith.constant dense<0.000000e+00> : vector<128xf32>
    %28 = vector.multi_reduction <add>, %27, %cst_21 [1] : vector<128x256xf32> to vector<128xf32>
    %29 = vector.shape_cast %28 : vector<128xf32> to vector<128x1xf32>
    %30 = tpu.reciprocal %29 {approx = true} : vector<128x1xf32> -> vector<128x1xf32>
    %31 = vector.broadcast %30 : vector<128x1xf32> to vector<128x256xf32>
    %32 = arith.mulf %27, %31 : vector<128x256xf32>
    %33 = arith.truncf %32 : vector<128x256xf32> to vector<128x256xbf16>
    %cst_22 = arith.constant dense<0.000000e+00> : vector<128x32xf32>
    %34 = tpu.matmul %33, %21, %cst_22 {dimension_numbers = #tpu.dot_dimension_numbers<[1], [0], [0], [1], [0, 0, 1, 1], [], []>} : vector<128x256xbf16>, vector<256x32xbf16>, vector<128x32xf32> -> vector<128x32xf32>
    %35 = arith.truncf %34 : vector<128x32xf32> to vector<128x32xbf16>
    %c0_23 = arith.constant 0 : index
    %c0_24 = arith.constant 0 : index
    %36 = vector.load %arg20[%c0_23, %c0_24] : memref<128x128xbf16, #tpu.memory_space<vmem>>, vector<128x32xbf16>
    tpu.vector_store %arg20[%c0_23, %c0_24], %35 {strides = array<i32>} : memref<128x128xbf16, #tpu.memory_space<vmem>>, vector<128x32xbf16>,
    %37 = vector.extract_strided_slice %18 {offsets = [0, 32], sizes = [128, 32], strides = [1, 1]} : vector<128x128xbf16> to vector<128x32xbf16>
    %c0_25 = arith.constant 0 : index
    %c32 = arith.constant 32 : index
    %38 = vector.load %arg19[%c0_25, %c32] : memref<256x256xbf16, #tpu.memory_space<vmem>>, vector<256x32xbf16>
    %c0_26 = arith.constant 0 : index
    %c160 = arith.constant 160 : index
    %39 = vector.load %arg19[%c0_26, %c160] : memref<256x256xbf16, #tpu.memory_space<vmem>>, vector<256x32xbf16>
    "tpu.trace_start"() <{level = 10 : i32, message = "ld,md->lm"}> : () -> ()
    %cst_27 = arith.constant dense<0.000000e+00> : vector<128x256xf32>
    %40 = tpu.matmul %37, %38, %cst_27 {dimension_numbers = #tpu.dot_dimension_numbers<[1], [1], [0], [0], [0, 0, 1, 0], [], []>} : vector<128x32xbf16>, vector<256x32xbf16>, vector<128x256xf32> -> vector<128x256xf32>
    "tpu.trace_stop"() : () -> ()
    %cst_28 = arith.constant dense<0xFF800000> : vector<128xf32>
    %41 = vector.multi_reduction <maximumf>, %40, %cst_28 [1] : vector<128x256xf32> to vector<128xf32>
    %42 = vector.shape_cast %41 : vector<128xf32> to vector<128x1xf32>
    %43 = vector.broadcast %42 : vector<128x1xf32> to vector<128x256xf32>
    %44 = arith.subf %40, %43 : vector<128x256xf32>
    %45 = math.exp %44 : vector<128x256xf32>
    %cst_29 = arith.constant dense<0.000000e+00> : vector<128xf32>
    %46 = vector.multi_reduction <add>, %45, %cst_29 [1] : vector<128x256xf32> to vector<128xf32>
    %47 = vector.shape_cast %46 : vector<128xf32> to vector<128x1xf32>
    %48 = tpu.reciprocal %47 {approx = true} : vector<128x1xf32> -> vector<128x1xf32>
    %49 = vector.broadcast %48 : vector<128x1xf32> to vector<128x256xf32>
    %50 = arith.mulf %45, %49 : vector<128x256xf32>
    %51 = arith.truncf %50 : vector<128x256xf32> to vector<128x256xbf16>
    %cst_30 = arith.constant dense<0.000000e+00> : vector<128x32xf32>
    %52 = tpu.matmul %51, %39, %cst_30 {dimension_numbers = #tpu.dot_dimension_numbers<[1], [0], [0], [1], [0, 0, 1, 1], [], []>} : vector<128x256xbf16>, vector<256x32xbf16>, vector<128x32xf32> -> vector<128x32xf32>
    %53 = arith.truncf %52 : vector<128x32xf32> to vector<128x32xbf16>
    %c0_31 = arith.constant 0 : index
    %c32_32 = arith.constant 32 : index
    %54 = vector.load %arg20[%c0_31, %c32_32] : memref<128x128xbf16, #tpu.memory_space<vmem>>, vector<128x32xbf16>
    tpu.vector_store %arg20[%c0_31, %c32_32], %53 {strides = array<i32>} : memref<128x128xbf16, #tpu.memory_space<vmem>>, vector<128x32xbf16>,
    %55 = vector.extract_strided_slice %18 {offsets = [0, 64], sizes = [128, 32], strides = [1, 1]} : vector<128x128xbf16> to vector<128x32xbf16>
    %c0_33 = arith.constant 0 : index
    %c64 = arith.constant 64 : index
    %56 = vector.load %arg19[%c0_33, %c64] : memref<256x256xbf16, #tpu.memory_space<vmem>>, vector<256x32xbf16>
    %c0_34 = arith.constant 0 : index
    %c192 = arith.constant 192 : index
    %57 = vector.load %arg19[%c0_34, %c192] : memref<256x256xbf16, #tpu.memory_space<vmem>>, vector<256x32xbf16>
    "tpu.trace_start"() <{level = 10 : i32, message = "ld,md->lm"}> : () -> ()
    %cst_35 = arith.constant dense<0.000000e+00> : vector<128x256xf32>
    %58 = tpu.matmul %55, %56, %cst_35 {dimension_numbers = #tpu.dot_dimension_numbers<[1], [1], [0], [0], [0, 0, 1, 0], [], []>} : vector<128x32xbf16>, vector<256x32xbf16>, vector<128x256xf32> -> vector<128x256xf32>
    "tpu.trace_stop"() : () -> ()
    %cst_36 = arith.constant dense<0xFF800000> : vector<128xf32>
    %59 = vector.multi_reduction <maximumf>, %58, %cst_36 [1] : vector<128x256xf32> to vector<128xf32>
    %60 = vector.shape_cast %59 : vector<128xf32> to vector<128x1xf32>
    %61 = vector.broadcast %60 : vector<128x1xf32> to vector<128x256xf32>
    %62 = arith.subf %58, %61 : vector<128x256xf32>
    %63 = math.exp %62 : vector<128x256xf32>
    %cst_37 = arith.constant dense<0.000000e+00> : vector<128xf32>
    %64 = vector.multi_reduction <add>, %63, %cst_37 [1] : vector<128x256xf32> to vector<128xf32>
    %65 = vector.shape_cast %64 : vector<128xf32> to vector<128x1xf32>
    %66 = tpu.reciprocal %65 {approx = true} : vector<128x1xf32> -> vector<128x1xf32>
    %67 = vector.broadcast %66 : vector<128x1xf32> to vector<128x256xf32>
    %68 = arith.mulf %63, %67 : vector<128x256xf32>
    %69 = arith.truncf %68 : vector<128x256xf32> to vector<128x256xbf16>
    %cst_38 = arith.constant dense<0.000000e+00> : vector<128x32xf32>
    %70 = tpu.matmul %69, %57, %cst_38 {dimension_numbers = #tpu.dot_dimension_numbers<[1], [0], [0], [1], [0, 0, 1, 1], [], []>} : vector<128x256xbf16>, vector<256x32xbf16>, vector<128x32xf32> -> vector<128x32xf32>
    %71 = arith.truncf %70 : vector<128x32xf32> to vector<128x32xbf16>
    %c0_39 = arith.constant 0 : index
    %c64_40 = arith.constant 64 : index
    %72 = vector.load %arg20[%c0_39, %c64_40] : memref<128x128xbf16, #tpu.memory_space<vmem>>, vector<128x32xbf16>
    tpu.vector_store %arg20[%c0_39, %c64_40], %71 {strides = array<i32>} : memref<128x128xbf16, #tpu.memory_space<vmem>>, vector<128x32xbf16>,
    %73 = vector.extract_strided_slice %18 {offsets = [0, 96], sizes = [128, 32], strides = [1, 1]} : vector<128x128xbf16> to vector<128x32xbf16>
    %c0_41 = arith.constant 0 : index
    %c96 = arith.constant 96 : index
    %74 = vector.load %arg19[%c0_41, %c96] : memref<256x256xbf16, #tpu.memory_space<vmem>>, vector<256x32xbf16>
    %c0_42 = arith.constant 0 : index
    %c224 = arith.constant 224 : index
    %75 = vector.load %arg19[%c0_42, %c224] : memref<256x256xbf16, #tpu.memory_space<vmem>>, vector<256x32xbf16>
    "tpu.trace_start"() <{level = 10 : i32, message = "ld,md->lm"}> : () -> ()
    %cst_43 = arith.constant dense<0.000000e+00> : vector<128x256xf32>
    %76 = tpu.matmul %73, %74, %cst_43 {dimension_numbers = #tpu.dot_dimension_numbers<[1], [1], [0], [0], [0, 0, 1, 0], [], []>} : vector<128x32xbf16>, vector<256x32xbf16>, vector<128x256xf32> -> vector<128x256xf32>
    "tpu.trace_stop"() : () -> ()
    %cst_44 = arith.constant dense<0xFF800000> : vector<128xf32>
    %77 = vector.multi_reduction <maximumf>, %76, %cst_44 [1] : vector<128x256xf32> to vector<128xf32>
    %78 = vector.shape_cast %77 : vector<128xf32> to vector<128x1xf32>
    %79 = vector.broadcast %78 : vector<128x1xf32> to vector<128x256xf32>
    %80 = arith.subf %76, %79 : vector<128x256xf32>
    %81 = math.exp %80 : vector<128x256xf32>
    %cst_45 = arith.constant dense<0.000000e+00> : vector<128xf32>
    %82 = vector.multi_reduction <add>, %81, %cst_45 [1] : vector<128x256xf32> to vector<128xf32>
    %83 = vector.shape_cast %82 : vector<128xf32> to vector<128x1xf32>
    %84 = tpu.reciprocal %83 {approx = true} : vector<128x1xf32> -> vector<128x1xf32>
    %85 = vector.broadcast %84 : vector<128x1xf32> to vector<128x256xf32>
    %86 = arith.mulf %81, %85 : vector<128x256xf32>
    %87 = arith.truncf %86 : vector<128x256xf32> to vector<128x256xbf16>
    %cst_46 = arith.constant dense<0.000000e+00> : vector<128x32xf32>
    %88 = tpu.matmul %87, %75, %cst_46 {dimension_numbers = #tpu.dot_dimension_numbers<[1], [0], [0], [1], [0, 0, 1, 1], [], []>} : vector<128x256xbf16>, vector<256x32xbf16>, vector<128x32xf32> -> vector<128x32xf32>
    %89 = arith.truncf %88 : vector<128x32xf32> to vector<128x32xbf16>
    %c0_47 = arith.constant 0 : index
    %c96_48 = arith.constant 96 : index
    %90 = vector.load %arg20[%c0_47, %c96_48] : memref<128x128xbf16, #tpu.memory_space<vmem>>, vector<128x32xbf16>
    tpu.vector_store %arg20[%c0_47, %c96_48], %89 {strides = array<i32>} : memref<128x128xbf16, #tpu.memory_space<vmem>>, vector<128x32xbf16>,
    %c0_49 = arith.constant 0 : index
    %c0_50 = arith.constant 0 : index
    %91 = vector.load %arg20[%c0_49, %c0_50] : memref<128x128xbf16, #tpu.memory_space<vmem>>, vector<128x128xbf16>
    %c0_51 = arith.constant 0 : index
    %c0_52 = arith.constant 0 : index
    %92 = vector.load %arg8[%c0_51, %c0_52] : memref<128x128xbf16, #tpu.memory_space<vmem>>, vector<128x128xbf16>
    %cst_53 = arith.constant dense<0.000000e+00> : vector<128x128xf32>
    %93 = tpu.matmul %91, %92, %cst_53 {dimension_numbers = #tpu.dot_dimension_numbers<[1], [0], [0], [1], [0, 0, 1, 1], [], []>} : vector<128x128xbf16>, vector<128x128xbf16>, vector<128x128xf32> -> vector<128x128xf32>
    %c0_54 = arith.constant 0 : index
    %c0_55 = arith.constant 0 : index
    %94 = vector.load %arg9[%c0_54, %c0_55] : memref<1x128xf32, #tpu.memory_space<vmem>>, vector<1x128xf32>
    %95 = vector.broadcast %94 : vector<1x128xf32> to vector<128x128xf32>
    %96 = arith.addf %93, %95 : vector<128x128xf32>
    %97 = arith.addf %1, %96 : vector<128x128xf32>
    %c0_56 = arith.constant 0 : index
    %c0_57 = arith.constant 0 : index
    %98 = vector.load %arg10[%c0_56, %c0_57] : memref<1x128xf32, #tpu.memory_space<vmem>>, vector<1x128xf32>
    %c0_58 = arith.constant 0 : index
    %c0_59 = arith.constant 0 : index
    %99 = vector.load %arg11[%c0_58, %c0_59] : memref<1x128xf32, #tpu.memory_space<vmem>>, vector<1x128xf32>
    %cst_60 = arith.constant dense<0.000000e+00> : vector<128xf32>
    %100 = vector.multi_reduction <add>, %97, %cst_60 [1] : vector<128x128xf32> to vector<128xf32>
    %101 = vector.shape_cast %100 : vector<128xf32> to vector<128x1xf32>
    %cst_61 = arith.constant 1.280000e+02 : f32
    %102 = vector.broadcast %cst_61 : f32 to vector<128x1xf32>
    %103 = arith.divf %101, %102 : vector<128x1xf32>
    %104 = vector.broadcast %103 : vector<128x1xf32> to vector<128x128xf32>
    %105 = arith.subf %97, %104 : vector<128x128xf32>
    %106 = arith.mulf %105, %105 : vector<128x128xf32>
    %cst_62 = arith.constant dense<0.000000e+00> : vector<128xf32>
    %107 = vector.multi_reduction <add>, %106, %cst_62 [1] : vector<128x128xf32> to vector<128xf32>
    %108 = vector.shape_cast %107 : vector<128xf32> to vector<128x1xf32>
    %cst_63 = arith.constant 1.280000e+02 : f32
    %109 = vector.broadcast %cst_63 : f32 to vector<128x1xf32>
    %110 = arith.divf %108, %109 : vector<128x1xf32>
    %111 = vector.broadcast %103 : vector<128x1xf32> to vector<128x128xf32>
    %112 = arith.subf %97, %111 : vector<128x128xf32>
    %cst_64 = arith.constant 9.99999974E-6 : f32
    %113 = vector.broadcast %cst_64 : f32 to vector<128x1xf32>
    %114 = arith.addf %110, %113 : vector<128x1xf32>
    %115 = math.rsqrt %114 : vector<128x1xf32>
    %116 = vector.broadcast %115 : vector<128x1xf32> to vector<128x128xf32>
    %117 = arith.mulf %112, %116 : vector<128x128xf32>
    %118 = vector.broadcast %98 : vector<1x128xf32> to vector<128x128xf32>
    %119 = arith.mulf %117, %118 : vector<128x128xf32>
    %120 = vector.broadcast %99 : vector<1x128xf32> to vector<128x128xf32>
    %121 = arith.addf %119, %120 : vector<128x128xf32>
    %122 = arith.truncf %121 : vector<128x128xf32> to vector<128x128xbf16>
    %c0_65 = arith.constant 0 : index
    %c0_66 = arith.constant 0 : index
    %123 = vector.load %arg12[%c0_65, %c0_66] : memref<128x256xbf16, #tpu.memory_space<vmem>>, vector<128x256xbf16>
    %cst_67 = arith.constant dense<0.000000e+00> : vector<128x256xf32>
    %124 = tpu.matmul %122, %123, %cst_67 {dimension_numbers = #tpu.dot_dimension_numbers<[1], [0], [0], [1], [0, 0, 1, 1], [], []>} : vector<128x128xbf16>, vector<128x256xbf16>, vector<128x256xf32> -> vector<128x256xf32>
    %c0_68 = arith.constant 0 : index
    %c0_69 = arith.constant 0 : index
    %125 = vector.load %arg13[%c0_68, %c0_69] : memref<1x256xf32, #tpu.memory_space<vmem>>, vector<1x256xf32>
    %126 = vector.broadcast %125 : vector<1x256xf32> to vector<128x256xf32>
    %127 = arith.addf %124, %126 : vector<128x256xf32>
    %cst_70 = arith.constant 0.000000e+00 : f32
    %128 = vector.broadcast %cst_70 : f32 to vector<128x256xf32>
    %129 = arith.maximumf %127, %128 : vector<128x256xf32>
    %130 = arith.truncf %129 : vector<128x256xf32> to vector<128x256xbf16>
    %c0_71 = arith.constant 0 : index
    %c0_72 = arith.constant 0 : index
    %131 = vector.load %arg14[%c0_71, %c0_72] : memref<256x128xbf16, #tpu.memory_space<vmem>>, vector<256x128xbf16>
    %cst_73 = arith.constant dense<0.000000e+00> : vector<128x128xf32>
    %132 = tpu.matmul %130, %131, %cst_73 {dimension_numbers = #tpu.dot_dimension_numbers<[1], [0], [0], [1], [0, 0, 1, 1], [], []>} : vector<128x256xbf16>, vector<256x128xbf16>, vector<128x128xf32> -> vector<128x128xf32>
    %c0_74 = arith.constant 0 : index
    %c0_75 = arith.constant 0 : index
    %133 = vector.load %arg15[%c0_74, %c0_75] : memref<1x128xf32, #tpu.memory_space<vmem>>, vector<1x128xf32>
    %134 = vector.broadcast %133 : vector<1x128xf32> to vector<128x128xf32>
    %135 = arith.addf %132, %134 : vector<128x128xf32>
    %136 = arith.addf %121, %135 : vector<128x128xf32>
    %c0_76 = arith.constant 0 : index
    %c0_77 = arith.constant 0 : index
    %137 = vector.load %arg16[%c0_76, %c0_77] : memref<1x128xf32, #tpu.memory_space<vmem>>, vector<1x128xf32>
    %c0_78 = arith.constant 0 : index
    %c0_79 = arith.constant 0 : index
    %138 = vector.load %arg17[%c0_78, %c0_79] : memref<1x128xf32, #tpu.memory_space<vmem>>, vector<1x128xf32>
    %cst_80 = arith.constant dense<0.000000e+00> : vector<128xf32>
    %139 = vector.multi_reduction <add>, %136, %cst_80 [1] : vector<128x128xf32> to vector<128xf32>
    %140 = vector.shape_cast %139 : vector<128xf32> to vector<128x1xf32>
    %cst_81 = arith.constant 1.280000e+02 : f32
    %141 = vector.broadcast %cst_81 : f32 to vector<128x1xf32>
    %142 = arith.divf %140, %141 : vector<128x1xf32>
    %143 = vector.broadcast %142 : vector<128x1xf32> to vector<128x128xf32>
    %144 = arith.subf %136, %143 : vector<128x128xf32>
    %145 = arith.mulf %144, %144 : vector<128x128xf32>
    %cst_82 = arith.constant dense<0.000000e+00> : vector<128xf32>
    %146 = vector.multi_reduction <add>, %145, %cst_82 [1] : vector<128x128xf32> to vector<128xf32>
    %147 = vector.shape_cast %146 : vector<128xf32> to vector<128x1xf32>
    %cst_83 = arith.constant 1.280000e+02 : f32
    %148 = vector.broadcast %cst_83 : f32 to vector<128x1xf32>
    %149 = arith.divf %147, %148 : vector<128x1xf32>
    %150 = vector.broadcast %142 : vector<128x1xf32> to vector<128x128xf32>
    %151 = arith.subf %136, %150 : vector<128x128xf32>
    %cst_84 = arith.constant 9.99999974E-6 : f32
    %152 = vector.broadcast %cst_84 : f32 to vector<128x1xf32>
    %153 = arith.addf %149, %152 : vector<128x1xf32>
    %154 = math.rsqrt %153 : vector<128x1xf32>
    %155 = vector.broadcast %154 : vector<128x1xf32> to vector<128x128xf32>
    %156 = arith.mulf %151, %155 : vector<128x128xf32>
    %157 = vector.broadcast %137 : vector<1x128xf32> to vector<128x128xf32>
    %158 = arith.mulf %156, %157 : vector<128x128xf32>
    %159 = vector.broadcast %138 : vector<1x128xf32> to vector<128x128xf32>
    %160 = arith.addf %158, %159 : vector<128x128xf32>
    %c0_85 = arith.constant 0 : index
    %c0_86 = arith.constant 0 : index
    %c0_87 = arith.constant 0 : index
    %161 = vector.load %arg18[%c0_85, %c0_86, %c0_87] : memref<1x128x128xf32, #tpu.memory_space<vmem>>, vector<1x128x128xf32>
    %162 = vector.shape_cast %161 : vector<1x128x128xf32> to vector<128x128xf32>
    %163 = vector.shape_cast %160 : vector<128x128xf32> to vector<1x128x128xf32>
    tpu.vector_store %arg18[%c0_85, %c0_86, %c0_87], %163 {strides = array<i32>} : memref<1x128x128xf32, #tpu.memory_space<vmem>>, vector<1x128x128xf32>,
    return
  }
  func.func @transform_0(%arg0: i32, %arg1: i32) -> (i32, i32, i32) {
    %c0_i32 = arith.constant 0 : i32
    %c0_i32_0 = arith.constant 0 : i32
    return %arg0, %arg1, %c0_i32 : i32, i32, i32
  }
  func.func @transform_1(%arg0: i32, %arg1: i32) -> (i32, i32, i32) {
    %c0_i32 = arith.constant 0 : i32
    %c0_i32_0 = arith.constant 0 : i32
    %c0_i32_1 = arith.constant 0 : i32
    return %arg0, %c0_i32, %c0_i32_0 : i32, i32, i32
  }
  func.func @transform_2(%arg0: i32, %arg1: i32) -> (i32, i32) {
    %c0_i32 = arith.constant 0 : i32
    %c0_i32_0 = arith.constant 0 : i32
    %c0_i32_1 = arith.constant 0 : i32
    return %c0_i32, %c0_i32_0 : i32, i32
  }
  func.func @transform_3(%arg0: i32, %arg1: i32) -> (i32, i32) {
    %c0_i32 = arith.constant 0 : i32
    %c0_i32_0 = arith.constant 0 : i32
    %c0_i32_1 = arith.constant 0 : i32
    return %c0_i32, %c0_i32_0 : i32, i32
  }
  func.func @transform_4(%arg0: i32, %arg1: i32) -> (i32, i32) {
    %c0_i32 = arith.constant 0 : i32
    %c0_i32_0 = arith.constant 0 : i32
    %c0_i32_1 = arith.constant 0 : i32
    return %c0_i32, %c0_i32_0 : i32, i32
  }
  func.func @transform_5(%arg0: i32, %arg1: i32) -> (i32, i32) {
    %c0_i32 = arith.constant 0 : i32
    %c0_i32_0 = arith.constant 0 : i32
    %c0_i32_1 = arith.constant 0 : i32
    return %c0_i32, %c0_i32_0 : i32, i32
  }
  func.func @transform_6(%arg0: i32, %arg1: i32) -> (i32, i32) {
    %c0_i32 = arith.constant 0 : i32
    %c0_i32_0 = arith.constant 0 : i32
    %c0_i32_1 = arith.constant 0 : i32
    return %c0_i32, %c0_i32_0 : i32, i32
  }
  func.func @transform_7(%arg0: i32, %arg1: i32) -> (i32, i32) {
    %c0_i32 = arith.constant 0 : i32
    %c0_i32_0 = arith.constant 0 : i32
    %c0_i32_1 = arith.constant 0 : i32
    return %c0_i32, %c0_i32_0 : i32, i32
  }
  func.func @transform_8(%arg0: i32, %arg1: i32) -> (i32, i32) {
    %c0_i32 = arith.constant 0 : i32
    %c0_i32_0 = arith.constant 0 : i32
    %c0_i32_1 = arith.constant 0 : i32
    return %c0_i32, %c0_i32_0 : i32, i32
  }
  func.func @transform_9(%arg0: i32, %arg1: i32) -> (i32, i32) {
    %c0_i32 = arith.constant 0 : i32
    %c0_i32_0 = arith.constant 0 : i32
    %c0_i32_1 = arith.constant 0 : i32
    return %c0_i32, %c0_i32_0 : i32, i32
  }
  func.func @transform_10(%arg0: i32, %arg1: i32) -> (i32, i32) {
    %c0_i32 = arith.constant 0 : i32
    %c0_i32_0 = arith.constant 0 : i32
    %c0_i32_1 = arith.constant 0 : i32
    return %c0_i32, %c0_i32_0 : i32, i32
  }
  func.func @transform_11(%arg0: i32, %arg1: i32) -> (i32, i32) {
    %c0_i32 = arith.constant 0 : i32
    %c0_i32_0 = arith.constant 0 : i32
    %c0_i32_1 = arith.constant 0 : i32
    return %c0_i32, %c0_i32_0 : i32, i32
  }
  func.func @transform_12(%arg0: i32, %arg1: i32) -> (i32, i32) {
    %c0_i32 = arith.constant 0 : i32
    %c0_i32_0 = arith.constant 0 : i32
    %c0_i32_1 = arith.constant 0 : i32
    return %c0_i32, %c0_i32_0 : i32, i32
  }
  func.func @transform_13(%arg0: i32, %arg1: i32) -> (i32, i32) {
    %c0_i32 = arith.constant 0 : i32
    %c0_i32_0 = arith.constant 0 : i32
    %c0_i32_1 = arith.constant 0 : i32
    return %c0_i32, %c0_i32_0 : i32, i32
  }
  func.func @transform_14(%arg0: i32, %arg1: i32) -> (i32, i32) {
    %c0_i32 = arith.constant 0 : i32
    %c0_i32_0 = arith.constant 0 : i32
    %c0_i32_1 = arith.constant 0 : i32
    return %c0_i32, %c0_i32_0 : i32, i32
  }
  func.func @transform_15(%arg0: i32, %arg1: i32) -> (i32, i32) {
    %c0_i32 = arith.constant 0 : i32
    %c0_i32_0 = arith.constant 0 : i32
    %c0_i32_1 = arith.constant 0 : i32
    return %c0_i32, %c0_i32_0 : i32, i32
  }
  func.func @transform_16(%arg0: i32, %arg1: i32) -> (i32, i32, i32) {
    %c0_i32 = arith.constant 0 : i32
    %c0_i32_0 = arith.constant 0 : i32
    return %arg0, %arg1, %c0_i32 : i32, i32, i32
  }
}

</mosaic_0001>

<bundles_post_ra>
// kernel: transformer_block.1
= control target key start
LH: loop header
LB: loop body
LE: loop exit
PB: predicated region body
PF: predicated region fallthrough
CT: control target
= control target key end

     0   :  { %s10983_s0 = inlined_call_operand.hbm [shape: f32[2,256,128], index: 0, kind: input, shape index: {}, may-alias: {0,1}]   ;;  %s10984_s1 = inlined_call_operand.hbm [shape: f32[2,256,128], index: 1, kind: input, shape index: {}, may-alias: {0,1}]   ;;  %s10985_s2 = inlined_call_operand.hbm [shape: bf16[128,128], index: 2, kind: input, shape index: {}]   ;;  %s10986_s3 = inlined_call_operand.vmem [shape: f32[1,128], index: 3, kind: input, shape index: {}]   ;;  %s10987_s4 = inlined_call_operand.hbm [shape: bf16[128,256], index: 4, kind: input, shape index: {}]   ;;  %s10988_s5 = inlined_call_operand.vmem [shape: f32[1,256], index: 5, kind: input, shape index: {}]   ;;  %s10989_s6 = inlined_call_operand.hbm [shape: bf16[128,128], index: 6, kind: input, shape index: {}]   ;;  %s10990_s7 = inlined_call_operand.vmem [shape: f32[1,128], index: 7, kind: input, shape index: {}]   ;;  %s10991_s8 = inlined_call_operand.vmem [shape: f32[1,128], index: 8, kind: input, shape index: {}]   ;;  %s10992_s9 = inlined_call_operand.hbm [shape: f32[1,128], index: 9, kind: input, shape index: {}]   ;;  %s10993_s10 = inlined_call_operand.hbm [shape: bf16[128,256], index: 10, kind: input, shape index: {}]   ;;  %s10994_s11 = inlined_call_operand.vmem [shape: f32[1,256], index: 11, kind: input, shape index: {}]   ;;  %s10995_s12 = inlined_call_operand.hbm [shape: bf16[256,128], index: 12, kind: input, shape index: {}]   ;;  %s10996_s13 = inlined_call_operand.vmem [shape: f32[1,128], index: 13, kind: input, shape index: {}]   ;;  %s10997_s14 = inlined_call_operand.vmem [shape: f32[1,128], index: 14, kind: input, shape index: {}]   ;;  %s10998_s15 = inlined_call_operand.hbm [shape: f32[1,128], index: 15, kind: input, shape index: {}]   ;;  %s10999_s16 = inlined_call_operand.hbm [shape: f32[2,256,128], index: 16, kind: output, shape index: {}]  }
   0x1   :  { %11165 = sst [smem:[#allocation170_spill]] %s10983_s0 }
   0x2   :  { %11166 = sst [smem:[#allocation171_spill]] %s10984_s1 }
   0x3   :  { %11167 = sst [smem:[#allocation172_spill]] %s10985_s2 }
   0x4   :  { %11168 = sst [smem:[#allocation173_spill]] %s10986_s3 }
   0x5   :  { %11169 = sst [smem:[#allocation174_spill]] %s10987_s4 }
   0x6   :  { %11170 = sst [smem:[#allocation175_spill]] %s10988_s5 }
   0x7   :  { %11171 = sst [smem:[#allocation176_spill]] %s10989_s6 }
   0x8   :  { %11172 = sst [smem:[#allocation177_spill]] %s10990_s7 }
   0x9   :  { %11173 = sst [smem:[#allocation178_spill]] %s10991_s8 }
   0xa   :  { %11174 = sst [smem:[#allocation179_spill]] %s10992_s9 }
   0xb   :  { %11175 = sst [smem:[#allocation180_spill]] %s10993_s10 }
   0xc   :  { %11176 = sst [smem:[#allocation181_spill]] %s10994_s11 }
   0xd   :  { %11177 = sst [smem:[#allocation182_spill]] %s10995_s12 }
   0xe   :  { %11178 = sst [smem:[#allocation183_spill]] %s10996_s13 }
   0xf   :  { %11179 = sst [smem:[#allocation184_spill]] %s10997_s14 }
  0x10   :  { %11180 = sst [smem:[#allocation185_spill]] %s10998_s15 }
  0x11   :  { %11181 = sst [smem:[#allocation186_spill]] %s10999_s16 }
  0x12   :  { %21 = vsyncpa [#allocation5], 0 }
  0x13   :  { %23 = vsyncpa [#allocation5 + $0x1], 0 }
  0x14   :  { %24 = vsyncpa [#allocation8], 0 }
  0x15   :  { %26 = vsyncpa [#allocation8 + $0x1], 0 }
  0x16   :  { %27 = vsyncpa [#allocation11], 0 }
  0x17   :  { %28 = vsyncpa [#allocation14], 0 }
  0x18   :  { %29 = vsyncpa [#allocation17], 0 }
  0x19   :  { %30 = vsyncpa [#allocation6], 0 }
  0x1a   :  { %32 = vsyncpa [#allocation6 + $0x1], 0  ;;  %s7488_s21 = smov 0   ;;  %s7490_s22 = smov 0  }
  0x1b   :  { %s7492_s23 = smov 0   ;;  %s7494_s24 = smov 0  }
  0x1c   :  { %s7496_s25 = smov 0   ;;  %s7498_s26 = smov 0  }
  0x1d   :  { %s7500_s27 = smov 0   ;;  %s7502_s28 = smov 0  }
  0x1e   :  { %s7504_s29 = smov 0   ;;  %s7506_s30 = smov 0  }
  0x1f   :  { %s7508_s0 = smov 0  }
  0x20 LB: > { %11182 = sst [smem:[#allocation27_spill]] %s7341_s21  ;;  %s7544_s17 = sadd.s32 4294967295, %s7381_s0   ;;  %s7381_s0 = sphi %s7508_s0, %s38_s0   ;;  %s7377_s30 = sphi %s7506_s30, %s11599_s30   ;;  %s7373_s29 = sphi %s7504_s29, %s11598_s29   ;;  %s7369_s28 = sphi %s7502_s28, %s11597_s28   ;;  %s7365_s27 = sphi %s7500_s27, %s11596_s27   ;;  %s7361_s26 = sphi %s7498_s26, %s11595_s26   ;;  %s7357_s25 = sphi %s7496_s25, %s11594_s25   ;;  %s7353_s24 = sphi %s7494_s24, %s11593_s24   ;;  %s7349_s23 = sphi %s7492_s23, %s11592_s23   ;;  %s7345_s22 = sphi %s7490_s22, %s11591_s22   ;;  %s7341_s21 = sphi %s7488_s21, %s11590_s21  }
  0x21   : > { %11183 = sst [smem:[#allocation28_spill]] %s7365_s27  ;;  %p5522_p0 = scmp.ge.s32.totalorder %s7381_s0, 1 }
  0x22   : > { %11184 = sst [smem:[#allocation29_spill]] %s7369_s28  ;;  %p11002_p1 = scmp.eq.s32.totalorder %s7544_s17, 0 }
  0x23   : > { %p431_p2 = scmp.lt.s32.totalorder %s7381_s0, 5  ;;  %s7383_s19 = smov [#allocation9]  }
  0x24   : > { %s443_s20 = sshll.u32 %s7383_s19, 4  ;;  %s7384_s28 = smov [#allocation10]   ;;  %s444_s20 = int_to_ptr.vmem [resolvable:$true] %s443_s20 }
  0x25   : > { %p7549_p3 = pnand %p5522_p0, %p431_p2  ;;  %s459_s27 = sshll.u32 %s7384_s28, 4  ;;  %s7561_s27 = int_to_ptr.vmem [resolvable:$true] %s459_s27 }
  0x26   : > { %s11188_s2 = sld [smem:[#allocation172_spill]] }
  0x27   : > { %s11185_s18 = scalar_select %p7549_p3, 1, 0 }
  0x28   : > { %p6285_p4 = pneg %p7549_p3 }
  0x29   : > { %11186 = sst [smem:[#allocation30_spill]] %s11185_s18 }
  0x2a   : > { %p7557_p5 = pnand %p6285_p4, %p11002_p1 }
  0x2c   : > { %s6983_s11 = scalar_lea.hbm %s11188_s2, 1024  ;;  %p7571_p7 = pneg %p7557_p5 }
  0x2d   : > { %p6984_p6 = scmp.ne.s32.totalorder %s11188_s2, %s6983_s11  ;;  %p6990_p10 = scmp.lt.u32.totalorder %s6983_s11, %s11188_s2 }
  0x2f   : > { %p6986_p8 = pnand %p7571_p7, %p6984_p6 }
  0x31   : > { %p6987_p9 = pneg %p6986_p8 }
  0x33   : > { %p6992_p11 = pnand %p6990_p10, %p6987_p9 }
  0x35   : > { %6995 = shalt.err (!%p6992_p11)
}
  0x36   : > { %s6996_s13 = scalar_lea.vmem %s444_s20, 1024  ;;  %p7004_p2 = scmp.lt.s32.totalorder %s444_s20, %s444_s20 }
  0x37   : > { %p6997_p12 = scmp.ne.s32.totalorder %s444_s20, %s6996_s13  ;;  %p7005_p4 = scmp.lt.s32.totalorder %s6996_s13, %s6996_s13 }
  0x39   : > { %p6999_p13 = pnand %p6997_p12, %p7571_p7  ;;  %p7006_p1 = por %p7005_p4, %p7004_p2 }
  0x3b   : > { %p7000_p0 = pneg %p6999_p13 }
  0x3d   : > { %p7007_p3 = pnand %p7006_p1, %p7000_p0 }
  0x3f   : > { %7010 = shalt.err (!%p7007_p3)
}
  0x40   : > { %s11006_s7 = smov 64   ;;  %s11008_s8 = smov 4  }
  0x41   : > { %6288 = dma.hbm_to_vmem [thread:$0]  (!%p7557_p5), %s11188_s2, 1024, %s444_s20, [#allocation8], %s11006_s7, %s11006_s7, %s11008_s8  }
  0x42   : > { %s11190_s4 = sld [smem:[#allocation174_spill]] }
  0x48   : > { %s7011_s5 = scalar_lea.hbm %s11190_s4, 2048 }
  0x49   : > { %p7012_p1 = scmp.ne.s32.totalorder %s11190_s4, %s7011_s5  ;;  %p7018_p8 = scmp.lt.u32.totalorder %s7011_s5, %s11190_s4 }
  0x4b   : > { %p7014_p3 = pnand %p7012_p1, %p7571_p7 }
  0x4d   : > { %p7015_p6 = pneg %p7014_p3 }
  0x4f   : > { %p7020_p9 = pnand %p7018_p8, %p7015_p6 }
  0x51   : > { %7023 = shalt.err (!%p7020_p9)
}
  0x52   : > { %s7024_s20 = scalar_lea.vmem %s7561_s27, 2048  ;;  %p7032_p13 = scmp.lt.s32.totalorder %s7561_s27, %s7561_s27 }
  0x53   : > { %p7025_p10 = scmp.ne.s32.totalorder %s7561_s27, %s7024_s20  ;;  %p7033_p0 = scmp.lt.s32.totalorder %s7024_s20, %s7024_s20 }
  0x55   : > { %p7027_p11 = pnand %p7025_p10, %p7571_p7  ;;  %p7034_p2 = por %p7033_p0, %p7032_p13 }
  0x57   : > { %p7028_p12 = pneg %p7027_p11 }
  0x59   : > { %p7035_p4 = pnand %p7034_p2, %p7028_p12 }
  0x5b   : > { %7038 = shalt.err (!%p7035_p4)
}
  0x5c   : > { %s11010_s18 = smov 128   ;;  %s11012_s1 = smov 8  }
  0x5d   : > { %6291 = dma.hbm_to_vmem [thread:$0]  (!%p7557_p5), %s11190_s4, 2048, %s7561_s27, [#allocation11], %s11010_s18, %s11010_s18, %s11012_s1  }
  0x5e   : > { %s7389_s3 = smov [#allocation13]   ;;  %s7390_s14 = smov [#allocation16]  }
  0x5f   : > { %s495_s11 = sshll.u32 %s7389_s3, 4  ;;  %s521_s28 = sshll.u32 %s7390_s14, 4  ;;  %s496_s11 = int_to_ptr.vmem [resolvable:$true] %s495_s11  ;;  %s7616_s28 = int_to_ptr.vmem [resolvable:$true] %s521_s28 }
  0x60   : > { %s11191_s9 = sld [smem:[#allocation179_spill]] }
  0x66   : > { %s7039_s7 = scalar_lea.hbm %s11191_s9, 16 }
  0x67   : > { %p7040_p1 = scmp.ne.s32.totalorder %s11191_s9, %s7039_s7  ;;  %p7046_p8 = scmp.lt.u32.totalorder %s7039_s7, %s11191_s9 }
  0x69   : > { %p7042_p3 = pnand %p7040_p1, %p7571_p7 }
  0x6b   : > { %p7043_p6 = pneg %p7042_p3 }
  0x6d   : > { %p7048_p9 = pnand %p7046_p8, %p7043_p6 }
  0x6f   : > { %7051 = shalt.err (!%p7048_p9)
}
  0x70   : > { %s7052_s21 = scalar_lea.vmem %s496_s11, 16  ;;  %s7059_s3 = scalar_lea.vmem %s496_s11, 32 }
  0x71   : > { %p7053_p10 = scmp.ne.s32.totalorder %s496_s11, %s7052_s21  ;;  %p7060_p13 = scmp.lt.s32.totalorder %s496_s11, %s496_s11 }
  0x72   : > { %p7061_p0 = scmp.lt.s32.totalorder %s7059_s3, %s7052_s21 }
  0x73   : > { %p7055_p11 = pnand %p7053_p10, %p7571_p7 }
  0x74   : > { %p7062_p2 = por %p7061_p0, %p7060_p13 }
  0x75   : > { %p7056_p12 = pneg %p7055_p11 }
  0x77   : > { %p7063_p4 = pnand %p7062_p2, %p7056_p12 }
  0x79   : > { %7066 = shalt.err (!%p7063_p4)
}
  0x7a   : > { %6297 = dma.hbm_to_vmem [thread:$0]  (!%p7557_p5), %s11191_s9, 16, %s496_s11, [#allocation14]  }
  0x7b   : > { %s11192_s12 = sld [smem:[#allocation182_spill]] }
  0x81   : > { %s7067_s13 = scalar_lea.hbm %s11192_s12, 2048 }
  0x82   : > { %p7068_p1 = scmp.ne.s32.totalorder %s11192_s12, %s7067_s13  ;;  %p7074_p8 = scmp.lt.u32.totalorder %s7067_s13, %s11192_s12 }
  0x84   : > { %p7070_p3 = pnand %p7068_p1, %p7571_p7 }
  0x86   : > { %p7071_p6 = pneg %p7070_p3 }
  0x88   : > { %p7076_p9 = pnand %p7074_p8, %p7071_p6 }
  0x8a   : > { %7079 = shalt.err (!%p7076_p9)
}
  0x8b   : > { %s7080_s11 = scalar_lea.vmem %s7616_s28, 2048  ;;  %p7088_p13 = scmp.lt.s32.totalorder %s7616_s28, %s7616_s28 }
  0x8c   : > { %p7081_p10 = scmp.ne.s32.totalorder %s7616_s28, %s7080_s11  ;;  %p7089_p0 = scmp.lt.s32.totalorder %s7080_s11, %s7080_s11 }
  0x8e   : > { %p7083_p11 = pnand %p7081_p10, %p7571_p7  ;;  %p7090_p2 = por %p7089_p0, %p7088_p13 }
  0x90   : > { %p7084_p12 = pneg %p7083_p11 }
  0x92   : > { %p7091_p4 = pnand %p7090_p2, %p7084_p12 }
  0x94   : > { %7094 = shalt.err (!%p7091_p4)
}
  0x95   : > { %s11193_s3 = smov 4   ;;  %s11194_s2 = smov 64  }
  0x96   : > { %6303 = dma.hbm_to_vmem [thread:$0]  (!%p7557_p5), %s11192_s12, 2048, %s7616_s28, [#allocation17], %s11194_s2, %s11194_s2, %s11193_s3  }
  0x97   : > { %s7391_s14 = smov [#allocation12]   ;;  %s7392_s20 = smov [#allocation15]  }
  0x98   : > { %s475_s13 = sshll.u32 %s7391_s14, 4  ;;  %s505_s5 = sshll.u32 %s7392_s20, 4  ;;  %s476_s13 = int_to_ptr.vmem [resolvable:$true] %s475_s13  ;;  %s7662_s5 = int_to_ptr.vmem [resolvable:$true] %s505_s5 }
  0x99   : > { %s11195_s6 = sld [smem:[#allocation176_spill]] }
  0x9f   : > { %s7095_s11 = scalar_lea.hbm %s11195_s6, 1024 }
  0xa0   : > { %p7096_p1 = scmp.ne.s32.totalorder %s11195_s6, %s7095_s11  ;;  %p7102_p8 = scmp.lt.u32.totalorder %s7095_s11, %s11195_s6 }
  0xa2   : > { %p7098_p3 = pnand %p7096_p1, %p7571_p7 }
  0xa4   : > { %p7099_p6 = pneg %p7098_p3 }
  0xa6   : > { %p7104_p9 = pnand %p7102_p8, %p7099_p6 }
  0xa8   : > { %7107 = shalt.err (!%p7104_p9)
}
  0xa9   : > { %s7108_s7 = scalar_lea.vmem %s476_s13, 1024  ;;  %p7116_p13 = scmp.lt.s32.totalorder %s476_s13, %s476_s13 }
  0xaa   : > { %p7109_p10 = scmp.ne.s32.totalorder %s476_s13, %s7108_s7  ;;  %p7117_p0 = scmp.lt.s32.totalorder %s7108_s7, %s7108_s7 }
  0xac   : > { %p7111_p11 = pnand %p7109_p10, %p7571_p7  ;;  %p7118_p2 = por %p7117_p0, %p7116_p13 }
  0xae   : > { %p7112_p12 = pneg %p7111_p11 }
  0xb0   : > { %p7119_p4 = pnand %p7118_p2, %p7112_p12 }
  0xb2   : > { %7122 = shalt.err (!%p7119_p4)
}
  0xb3   : > { %6294 = dma.hbm_to_vmem [thread:$0]  (!%p7557_p5), %s11195_s6, 1024, %s476_s13, [#allocation11], %s11194_s2, %s11194_s2, %s11193_s3  }
  0xb4   : > { %s11196_s10 = sld [smem:[#allocation180_spill]] }
  0xba   : > { %s7123_s27 = scalar_lea.hbm %s11196_s10, 2048 }
  0xbb   : > { %p7124_p1 = scmp.ne.s32.totalorder %s11196_s10, %s7123_s27  ;;  %p7130_p8 = scmp.lt.u32.totalorder %s7123_s27, %s11196_s10 }
  0xbd   : > { %p7126_p3 = pnand %p7124_p1, %p7571_p7 }
  0xbf   : > { %p7127_p6 = pneg %p7126_p3 }
  0xc1   : > { %p7132_p9 = pnand %p7130_p8, %p7127_p6 }
  0xc3   : > { %7135 = shalt.err (!%p7132_p9)
}
  0xc4   : > { %s7136_s3 = scalar_lea.vmem %s7662_s5, 2048  ;;  %p7144_p13 = scmp.lt.s32.totalorder %s7662_s5, %s7662_s5 }
  0xc5   : > { %p7137_p10 = scmp.ne.s32.totalorder %s7662_s5, %s7136_s3  ;;  %p7145_p0 = scmp.lt.s32.totalorder %s7136_s3, %s7136_s3 }
  0xc7   : > { %p7139_p11 = pnand %p7137_p10, %p7571_p7  ;;  %p7146_p2 = por %p7145_p0, %p7144_p13 }
  0xc9   : > { %p7140_p12 = pneg %p7139_p11 }
  0xcb   : > { %p7147_p4 = pnand %p7146_p2, %p7140_p12 }
  0xcd   : > { %7150 = shalt.err (!%p7147_p4)
}
  0xce   : > { %s11197_s2 = smov 8   ;;  %s11198_s13 = smov 128  }
  0xcf   : > { %6300 = dma.hbm_to_vmem [thread:$0]  (!%p7557_p5), %s11196_s10, 2048, %s7662_s5, [#allocation14], %s11198_s13, %s11198_s13, %s11197_s2  }
  0xd0   : > { %s7393_s1 = smov [#allocation18]   ;;  %s11199_s15 = sld [smem:[#allocation185_spill]] }
  0xd1   : > { %s541_s14 = sshll.u32 %s7393_s1, 4  ;;  %s542_s14 = int_to_ptr.vmem [resolvable:$true] %s541_s14 }
  0xd6   : > { %s7151_s21 = scalar_lea.hbm %s11199_s15, 16 }
  0xd7   : > { %p7152_p1 = scmp.ne.s32.totalorder %s11199_s15, %s7151_s21  ;;  %p7158_p8 = scmp.lt.u32.totalorder %s7151_s21, %s11199_s15 }
  0xd9   : > { %p7154_p3 = pnand %p7152_p1, %p7571_p7 }
  0xdb   : > { %p7155_p6 = pneg %p7154_p3 }
  0xdd   : > { %p7160_p9 = pnand %p7158_p8, %p7155_p6 }
  0xdf   : > { %7163 = shalt.err (!%p7160_p9)
}
  0xe0   : > { %s7164_s5 = scalar_lea.vmem %s542_s14, 16  ;;  %s7171_s7 = scalar_lea.vmem %s542_s14, 32 }
  0xe1   : > { %p7165_p10 = scmp.ne.s32.totalorder %s542_s14, %s7164_s5  ;;  %p7172_p13 = scmp.lt.s32.totalorder %s542_s14, %s542_s14 }
  0xe2   : > { %p7173_p0 = scmp.lt.s32.totalorder %s7171_s7, %s7164_s5 }
  0xe3   : > { %p7167_p11 = pnand %p7165_p10, %p7571_p7 }
  0xe4   : > { %p7174_p2 = por %p7173_p0, %p7172_p13 }
  0xe5   : > { %p7168_p12 = pneg %p7167_p11 }
  0xe7   : > { %p7175_p4 = pnand %p7174_p2, %p7168_p12 }
  0xe9   : > { %7178 = shalt.err (!%p7175_p4)
}
  0xea   : > { %6306 = dma.hbm_to_vmem [thread:$0]  (!%p7557_p5), %s11199_s15, 16, %s542_s14, [#allocation17]  }
  0xeb   : > { %s5521_s19 = sadd.s32 4294967294, %s7381_s0   ;;  %s47_s16 = sadd.s32 1, %s7373_s29 }
  0xec   : > { %s50_s20 = sadd.s32 1, %s7377_s30  ;;  %p48_p7 = scmp.ge.s32.totalorder %s47_s16, 2 }
  0xed   : > { %s59_s27 = sadd.s32 1, %s7361_s26  ;;  %p66_p1 = scmp.ne.s32.totalorder %s7361_s26, %s7357_s25 }
  0xee   : > { %p11018_p3 = scmp.eq.s32.totalorder %s7381_s0, 0  ;;  %s11601_s16 = smov (%p48_p7, %s47_s16), 0 }
  0xef   : > { %11200 = sst [smem:[#allocation31_spill]] %s11601_s16  ;;  %s11603_s20 = smov (!%p48_p7, %s50_s20), %s7377_s30 }
  0xf0   : > { %s55_s21 = ssub.s32 %s7373_s29, %s11601_s16  ;;  %p7743_p6 = por %p11018_p3, %p66_p1 }
  0xf1   : > { %p52_p5 = scmp.ge.s32.totalorder %s11603_s20, 2  ;;  %p72_p8 = scmp.ne.s32.totalorder %s7357_s25, %s7353_s24 }
  0xf2   : > { %p418_p9 = scmp.eq.s32.totalorder %s7544_s17, 3  ;;  %p424_p10 = scmp.eq.s32.totalorder %s5521_s19, 3 }
  0xf3   : > { %s11605_s20 = smov (%p52_p5, %s11603_s20), 0  ;;  %p11203_p11 = scmp.eq.s32.totalorder %s7544_s17, 0 }
  0xf4   : > { %11202 = sst [smem:[#allocation32_spill]] %s11605_s20  ;;  %p7758_p13 = por %p418_p9, %p66_p1 }
  0xf5   : > { %p7754_p12 = por %p11203_p11, %p72_p8  ;;  %s7764_s28 = ssub.s32 %s7377_s30, %s11605_s20 }
  0xf6   : > { %s11205_s8 = scalar_select %p7758_p13, 1, 0 }
  0xf7   : > { %p7766_p0 = por %p424_p10, %p72_p8  ;;  %s56_s5 = sor.u32 %s55_s21, %s7764_s28 }
  0xf8   : > { %p57_p4 = scmp.eq.s32.totalorder %s56_s5, 0  ;;  %p11017_p7 = scmp.lt.s32.totalorder %s7381_s0, 4 }
  0xf9   : > { %s11206_s3 = scalar_select %p7766_p0, 1, 0 }
  0xfa   : > { %s552_s7 = sand.u32 1, %s7361_s26   ;;  %s5532_s18 = sshll.u32 %s7373_s29, 4 }
  0xfb   : > { %11207 = sst [smem:[#allocation33_spill]] %s11206_s3  ;;  %s5531_s19 = sshll.u32 %s552_s7, 7 }
  0xfc   : > { %s7776_s1 = scalar_select %p57_p4, %s7361_s26, %s59_s27  }
  0xfd   : > { %s5533_s4 = sshll.u32 %s7377_s30, 5  ;;  %s556_s9 = scalar_lea.vmem [#allocation4], %s5531_s19 }
  0xfe   : > { %s562_s6 = sadd.s32 %s5533_s4, %s5532_s18  ;;  %s565_s10 = sshll.u32 %s556_s9, 4  ;;  %s7779_s10 = int_to_ptr.vmem [resolvable:$true] %s565_s10 }
  0xff   : > { %s5534_s12 = sshll.u32 %s562_s6, 7  ;;  %s11208_s16 = sld [smem:[#allocation170_spill]] }
 0x100   : > { %p7790_p1 = pnand %p11017_p7, %p7743_p6  ;;  %s7794_s4 = scalar_lea.sflag [#allocation5], %s552_s7 }
 0x102   : > { %p7181_p8 = pneg %p7790_p1 }
 0x105   : > { %s7784_s3 = scalar_lea.hbm %s11208_s16, %s5534_s12  ;;  %s7184_s15 = scalar_lea.hbm %s11208_s16, 8192 }
 0x106   : > { %s7179_s6 = scalar_lea.hbm %s7784_s3, 2048  ;;  %p7185_p6 = scmp.lt.u32.totalorder %s7784_s3, %s11208_s16 }
 0x107   : > { %p7180_p5 = scmp.ne.s32.totalorder %s7784_s3, %s7179_s6  ;;  %p7186_p11 = scmp.lt.u32.totalorder %s7184_s15, %s7179_s6 }
 0x108   : > { %p7188_p7 = scmp.lt.u32.totalorder %s7179_s6, %s7784_s3 }
 0x109   : > { %p7182_p9 = pnand %p7181_p8, %p7180_p5  ;;  %p7187_p4 = por %p7186_p11, %p7185_p6 }
 0x10b   : > { %p7183_p10 = pneg %p7182_p9  ;;  %p7189_p3 = por %p7188_p7, %p7187_p4 }
 0x10d   : > { %p7190_p2 = pnand %p7189_p3, %p7183_p10 }
 0x10f   : > { %7193 = shalt.err (!%p7190_p2)
}
 0x110   : > { %s7194_s14 = scalar_lea.vmem %s7779_s10, 2048  ;;  %s7394_s5 = smov [#allocation4]  }
 0x111   : > { %p7195_p5 = scmp.ne.s32.totalorder %s7779_s10, %s7194_s14  ;;  %s7199_s7 = sshll.u32 %s7394_s5, 4  ;;  %s7200_s7 = int_to_ptr.vmem [resolvable:$false] %s7199_s7 }
 0x112   : > { %s7201_s18 = scalar_lea.vmem %s7200_s7, 4096  ;;  %p7202_p13 = scmp.lt.s32.totalorder %s7779_s10, %s7200_s7 }
 0x113   : > { %p7197_p9 = pnand %p7195_p5, %p7181_p8  ;;  %p7203_p6 = scmp.lt.s32.totalorder %s7201_s18, %s7194_s14 }
 0x115   : > { %p7198_p0 = pneg %p7197_p9  ;;  %p7204_p11 = por %p7203_p6, %p7202_p13 }
 0x117   : > { %p7205_p7 = pnand %p7204_p11, %p7198_p0 }
 0x119   : > { %7208 = shalt.err (!%p7205_p7)
}
 0x11a   : > { %s11210_s19 = sld [smem:[#allocation27_spill]]  ;;  %s85_s27 = sadd.s32 1, %s7349_s23 }
 0x11b   : > { %6310 = dma.hbm_to_vmem [thread:$0]  (!%p7790_p1), %s7784_s3, 2048, %s7779_s10, %s7794_s4, %s11198_s13, %s11198_s13, %s11197_s2  }
 0x11c   : > { %p11211_p3 = scmp.eq.s32.totalorder %s7764_s28, 0  ;;  %p92_p13 = scmp.ne.s32.totalorder %s7349_s23, %s7345_s22 }
 0x11d   : > { %s575_s9 = sand.u32 1, %s7381_s0   ;;  %s577_s12 = sand.u32 1, %s7349_s23  }
 0x11e   : > { %s7829_s6 = scalar_select %p11211_p3, %s7349_s23, %s85_s27  }
 0x11f   : > { %p11212_p2 = scmp.eq.s32.totalorder %s7381_s0, 0  ;;  %p11213_p10 = scmp.eq.s32.totalorder %s7544_s17, 0 }
 0x120   : > { %p98_p0 = scmp.ne.s32.totalorder %s7345_s22, %s11210_s19  ;;  %s5535_s20 = sshll.u32 %s577_s12, 8 }
 0x121   : > { %p94_p8 = por %p92_p13, %p11212_p2  ;;  %s5658_s21 = sshll.u32 %s7377_s30, 12 }
 0x122   : > { %p7841_p4 = por %p98_p0, %p11213_p10  ;;  %s11215_s10 = sld [smem:[#allocation171_spill]] }
 0x123   : > { %s579_s28 = scalar_lea.vmem [#allocation7], %s5535_s20  ;;  %p11216_p1 = scmp.lt.s32.totalorder %s7381_s0, 4 }
 0x124   : > { %s11214_s15 = scalar_select %p7841_p4, 1, 0 }
 0x125   : > { %s586_s4 = sshll.u32 %s579_s28, 4  ;;  %p7855_p5 = pnand %p11216_p1, %p94_p8  ;;  %s7851_s4 = int_to_ptr.vmem [resolvable:$true] %s586_s4 }
 0x126   : > { %s7859_s18 = scalar_lea.sflag [#allocation8], %s575_s9 }
 0x127   : > { %p7211_p6 = pneg %p7855_p5 }
 0x128   : > { %s7849_s3 = scalar_lea.hbm %s11215_s10, %s5658_s21  ;;  %s7214_s20 = scalar_lea.hbm %s11215_s10, 8192 }
 0x129   : > { %s7209_s19 = scalar_lea.hbm %s7849_s3, 4096  ;;  %p7215_p3 = scmp.lt.u32.totalorder %s7849_s3, %s11215_s10 }
 0x12a   : > { %p7210_p9 = scmp.ne.s32.totalorder %s7849_s3, %s7209_s19  ;;  %p7216_p13 = scmp.lt.u32.totalorder %s7214_s20, %s7209_s19 }
 0x12b   : > { %p7218_p2 = scmp.lt.u32.totalorder %s7209_s19, %s7849_s3 }
 0x12c   : > { %p7212_p11 = pnand %p7211_p6, %p7210_p9  ;;  %p7217_p0 = por %p7216_p13, %p7215_p3 }
 0x12e   : > { %p7213_p7 = pneg %p7212_p11  ;;  %p7219_p8 = por %p7218_p2, %p7217_p0 }
 0x130   : > { %p7220_p10 = pnand %p7219_p8, %p7213_p7 }
 0x132   : > { %7223 = shalt.err (!%p7220_p10)
}
 0x133   : > { %s7224_s9 = scalar_lea.vmem %s7851_s4, 4096  ;;  %s7395_s5 = smov [#allocation7]  }
 0x134   : > { %p7225_p1 = scmp.ne.s32.totalorder %s7851_s4, %s7224_s9  ;;  %s7229_s28 = sshll.u32 %s7395_s5, 4  ;;  %s7230_s28 = int_to_ptr.vmem [resolvable:$false] %s7229_s28 }
 0x135   : > { %s7231_s27 = scalar_lea.vmem %s7230_s28, 8192  ;;  %p7232_p4 = scmp.lt.s32.totalorder %s7851_s4, %s7230_s28 }
 0x136   : > { %p7227_p9 = pnand %p7225_p1, %p7211_p6  ;;  %p7233_p3 = scmp.lt.s32.totalorder %s7231_s27, %s7224_s9 }
 0x138   : > { %p7228_p11 = pneg %p7227_p9  ;;  %p7234_p13 = por %p7233_p3, %p7232_p4 }
 0x13a   : > { %p7235_p0 = pnand %p7234_p13, %p7228_p11 }
 0x13c   : > { %7238 = shalt.err (!%p7235_p0)
}
 0x13d   : > { %6313 = dma.hbm_to_vmem [thread:$0]  (!%p7855_p5), %s7849_s3, 4096, %s7851_s4, %s7859_s18, %s11198_s13, %s11198_s13, %s11197_s2  }
 0x13e   : > { %s11218_s19 = sld [smem:[#allocation30_spill]] }
 0x144   : > { %p11219_p6 = scmp.ne.s32.totalorder %s11218_s19, 0 }
 0x146   : > { %598 = sbr.rel (%p11219_p6) target bundleno = 3535 (0xdcf), region = 84 }
 0x14d   : > { %s7893_s12 = sand.u32 1, %s7357_s25  }
 0x14e   : > { %s5539_s20 = sshll.u32 %s7893_s12, 7  ;;  %s601_s21 = scalar_lea.sflag [#allocation5], %s7893_s12 }
 0x14f   : > { %s7899_s7 = scalar_lea.vmem [#allocation4], %s5539_s20 }
 0x150   : > { %7312 = dma.done.wait (%p7754_p12), %s601_s21, 2048  }
 0x151   : > { %7314 = vsyncadd (%p7754_p12), %s601_s21, 4294965248  ;;  %s609_s2 = sand.u32 1, %s7544_s17   ;;  %s611_s13 = sand.u32 1, %s7345_s22  }
 0x152   : > { %s5540_s3 = sshll.u32 %s611_s13, 8  ;;  %s610_s4 = scalar_lea.sflag [#allocation8], %s609_s2 }
 0x153   : > { %s7907_s18 = scalar_lea.vmem [#allocation7], %s5540_s3  ;;  %p11220_p4 = scmp.ne.s32.totalorder %s11214_s15, 0 }
 0x155   : > { %7316 = dma.done.wait (%p11220_p4), %s610_s4, 4096  }
 0x156   : > { %7318 = vsyncadd (%p11220_p4), %s610_s4, 4294963200  ;;  %p11221_p5 = scmp.eq.s32.totalorder %s7544_s17, 0 }
 0x158   : > { %7320 = dma.done.wait (%p11221_p5), [#allocation8], 1024   ;;  %p11222_p7 = pmov %p11221_p5 }
 0x159   : > { %p11223_p12 = pmov %p11221_p5 }
 0x15a   : > { %7322 = vsyncadd (%p11222_p7), [#allocation8], 4294966272 }
 0x15b   : > { %7324 = dma.done.wait (%p11223_p12), [#allocation11], 3072   ;;  %p11224_p2 = pmov %p11221_p5 }
 0x15d   : > { %7326 = vsyncadd (%p11224_p2), [#allocation11], 4294964224  ;;  %p11225_p8 = pmov %p11224_p2 }
 0x15e   : > { %p11226_p10 = pmov %p11224_p2 }
 0x15f   : > { %7328 = dma.done.wait (%p11225_p8), [#allocation14], 2064  }
 0x160   : > { %7330 = vsyncadd (%p11226_p10), [#allocation14], 4294965232  ;;  %p11227_p1 = pmov %p11224_p2 }
 0x162   : > { %7332 = dma.done.wait (%p11227_p1), [#allocation17], 2064   ;;  %p11228_p9 = pmov %p11227_p1 }
 0x163   : > { %v11023_v0 = vmov 0   ;;  %v6439_v1 = vld [vmem:[#allocation10 + $0x4] ss:$8 sps:$4 sm:$0xff]   ;;  %v6441_v2 = vld [vmem:[#allocation10] ss:$8 sps:$4 sm:$0xff]   ;;  %v6450_v8 = vld [vmem:[#allocation9 + $0x10] sm:$0xff]  }
 0x164   : > { %7334 = vsyncadd (%p11228_p9), [#allocation17], 4294965232  ;;  %902 = vmatprep.mubr.bf16.mxu0 %v11023_v0  ;;  %870 = vmatprep.subr.bf16.mxu0 %v6439_v1  ;;  %v6442_v3 = vld [vmem:[#allocation9] sm:$0xff]   ;;  %v6443_v4 = vld [vmem:[#allocation10 + $0x14] ss:$8 sps:$4 sm:$0xff]   ;;  %s11230_s15 = sld [smem:[#allocation175_spill]] }
 0x165   : > { %871 = vmatpush1.bf16.msra.mxu0 %v6441_v2  ;;  %v6445_v5 = vld [vmem:[#allocation10 + $0x10] ss:$8 sps:$4 sm:$0xff]   ;;  %6139 = vmatprep.subr.bf16.mxu1 %v6442_v3  ;;  %v6446_v6 = vld [vmem:[#allocation9 + $0x8] sm:$0xff]   ;;  %v6451_v10 = vld [vmem:[#allocation10 + $0x34] ss:$8 sps:$4 sm:$0xff]   ;;  %s11231_s5 = sld [smem:[#allocation173_spill]] }
 0x166   : > { %6140 = vmatpush3.bf16.msra.mxu1 %v6442_v3  ;;  %872 = vmatprep.subr.bf16.mxu0 %v6443_v4  ;;  %v6447_v7 = vld [vmem:[#allocation10 + $0x24] ss:$8 sps:$4 sm:$0xff]   ;;  %v6449_v9 = vld [vmem:[#allocation10 + $0x20] ss:$8 sps:$4 sm:$0xff]   ;;  %v6454_v11 = vld [vmem:[#allocation9 + $0x18] sm:$0xff]   ;;  %s7397_s28 = smov 64  }
 0x167   : > { %6141 = vmatprep.subr.bf16.mxu1 %v6446_v6  ;;  %v6453_v12 = vld [vmem:[#allocation10 + $0x30] ss:$8 sps:$4 sm:$0xff]   ;;  %v6455_v13 = vld [vmem:[#allocation10 + $0x44] ss:$8 sps:$4 sm:$0xff]   ;;  %v6457_v15 = vld [vmem:[#allocation10 + $0x40] ss:$8 sps:$4 sm:$0xff]  }
 0x168   : > { %v6458_v14 = vld [vmem:[#allocation9 + $0x20] sm:$0xff]   ;;  %v6459_v16 = vld [vmem:[#allocation10 + $0x54] ss:$8 sps:$4 sm:$0xff]   ;;  %v6462_v17 = vld [vmem:[#allocation9 + $0x28] sm:$0xff]   ;;  %s7398_s27 = smov 96   ;;  %vm1343_vm0 = vcmask 261120  }
 0x169   : > { %873 = vmatpush1.bf16.msra.mxu0 %v6445_v5  ;;  %v6461_v18 = vld [vmem:[#allocation10 + $0x50] ss:$8 sps:$4 sm:$0xff]   ;;  %v698_v19 = vld [vmem:[%s7899_s7] sm:$0xff]  ;;  %v699_v20 = vld [vmem:[%s7899_s7 + $0x8] sm:$0xff]  ;;  %s7399_s19 = smov 32   ;;  %vm2644_vm1 = vcmask 523520  }
 0x16a   : > { %874 = vmatprep.subr.bf16.mxu0 %v6447_v7  ;;  %6142 = vmatpush3.bf16.msra.mxu1 %v6446_v6  ;;  %v6463_v21 = vld [vmem:[#allocation10 + $0x64] ss:$8 sps:$4 sm:$0xff]   ;;  %v1127_v22 = vpack.c.bf16 %v699_v20, %v698_v19  ;;  %v6466_v23 = vld [vmem:[#allocation9 + $0x30] sm:$0xff]   ;;  %v6465_v24 = vld [vmem:[#allocation10 + $0x60] ss:$8 sps:$4 sm:$0xff]   ;;  %vm3391_vm2 = vcmask 785920  }
 0x16b   : > { %6143 = vmatprep.subr.bf16.mxu1 %v6450_v8  ;;  %v6467_v25 = vld [vmem:[#allocation10 + $0x74] ss:$8 sps:$4 sm:$0xff]   ;;  %v6469_v27 = vld [vmem:[#allocation10 + $0x70] ss:$8 sps:$4 sm:$0xff]   ;;  %v714_v28 = vld [vmem:[%s7907_s18] sm:$0xff]  ;;  %vm4138_vm3 = vcmask 1048320  }
 0x16c   : > { %6155 = vmatprep.mubr.bf16.mxu1 %v1127_v22  ;;  %v6470_v26 = vld [vmem:[#allocation9 + $0x38] sm:$0xff]   ;;  %v715_v29 = vld [vmem:[%s7907_s18 + $0x8] sm:$0xff]  ;;  %v700_v30 = vld [vmem:[%s7899_s7 + $0x10] sm:$0xff]  ;;  %s11574_s13 = sld [smem:[#allocation177_spill]]  ;;  %s11575_s4 = sld [smem:[#allocation178_spill]] }
 0x16d   : > { %875 = vmatpush1.bf16.msra.mxu0 %v6449_v9  ;;  %v701_v31 = vld [vmem:[%s7899_s7 + $0x18] sm:$0xff]  ;;  %v746_v32 = vpack.c.bf16 %v715_v29, %v714_v28  ;;  %v702_v33 = vld [vmem:[%s7899_s7 + $0x20] sm:$0xff]  ;;  %v703_v34 = vld [vmem:[%s7899_s7 + $0x28] sm:$0xff]  ;;  %s11576_s11 = sld [smem:[#allocation181_spill]]  ;;  %s11580_s9 = sld [smem:[#allocation183_spill]] }
 0x16e   : > { %876 = vmatprep.subr.bf16.mxu0 %v6451_v10  ;;  %6144 = vmatpush3.bf16.msra.mxu1 %v6450_v8  ;;  %v1128_v35 = vpack.c.bf16 %v701_v31, %v700_v30  ;;  %v1129_v36 = vpack.c.bf16 %v703_v34, %v702_v33  ;;  %v716_v37 = vld [vmem:[%s7907_s18 + $0x10] sm:$0xff]  ;;  %v717_v38 = vld [vmem:[%s7907_s18 + $0x18] sm:$0xff]  ;;  %v706_v41 = vld [vmem:[%s7899_s7 + $0x40] sm:$0xff]  ;;  %v780_v34 = vlaneseq  ;;  %s11583_s21 = sld [smem:[#allocation29_spill]]  ;;  %s5326_s14 = scalar_lea.sflag [#allocation6], %s7893_s12 }
 0x16f   : > { %6145 = vmatprep.subr.bf16.mxu1 %v6454_v11  ;;  %v704_v39 = vld [vmem:[%s7899_s7 + $0x30] sm:$0xff]  ;;  %v705_v40 = vld [vmem:[%s7899_s7 + $0x38] sm:$0xff]  ;;  %v707_v42 = vld [vmem:[%s7899_s7 + $0x48] sm:$0xff]  ;;  %v747_v43 = vpack.c.bf16 %v717_v38, %v716_v37  ;;  %p11585_p3 = scmp.ne.s32.totalorder %s11205_s8, 0 }
 0x170   : > { %v1130_v44 = vpack.c.bf16 %v705_v40, %v704_v39  ;;  %v718_v45 = vld [vmem:[%s7907_s18 + $0x20] sm:$0xff]  ;;  %v719_v46 = vld [vmem:[%s7907_s18 + $0x28] sm:$0xff]  ;;  %v1131_v47 = vpack.c.bf16 %v707_v42, %v706_v41  ;;  %v708_v48 = vld [vmem:[%s7899_s7 + $0x50] sm:$0xff] }
 0x171   : > { %877 = vmatpush1.bf16.msra.mxu0 %v6453_v12  ;;  %v709_v49 = vld [vmem:[%s7899_s7 + $0x58] sm:$0xff]  ;;  %v710_v50 = vld [vmem:[%s7899_s7 + $0x60] sm:$0xff]  ;;  %v711_v51 = vld [vmem:[%s7899_s7 + $0x68] sm:$0xff]  ;;  %v748_v52 = vpack.c.bf16 %v719_v46, %v718_v45 }
 0x172   : > { %878 = vmatprep.subr.bf16.mxu0 %v6455_v13  ;;  %6146 = vmatpush3.bf16.msra.mxu1 %v6454_v11  ;;  %v1132_v53 = vpack.c.bf16 %v709_v49, %v708_v48  ;;  %v720_v54 = vld [vmem:[%s7907_s18 + $0x30] sm:$0xff]  ;;  %v721_v55 = vld [vmem:[%s7907_s18 + $0x38] sm:$0xff]  ;;  %v1133_v56 = vpack.c.bf16 %v711_v51, %v710_v50  ;;  %v722_v61 = vld [vmem:[%s7907_s18 + $0x40] sm:$0xff] }
 0x173   : > { %6147 = vmatprep.subr.bf16.mxu1 %v6458_v14  ;;  %v712_v57 = vld [vmem:[%s7899_s7 + $0x70] sm:$0xff]  ;;  %v713_v58 = vld [vmem:[%s7899_s7 + $0x78] sm:$0xff]  ;;  %v749_v59 = vpack.c.bf16 %v721_v55, %v720_v54  ;;  %v723_v62 = vld [vmem:[%s7907_s18 + $0x48] sm:$0xff] }
 0x174   : > { %v1134_v60 = vpack.c.bf16 %v713_v58, %v712_v57  ;;  %v750_v63 = vpack.c.bf16 %v723_v62, %v722_v61  ;;  %v724_v1 = vld [vmem:[%s7907_s18 + $0x50] sm:$0xff]  ;;  %v725_v2 = vld [vmem:[%s7907_s18 + $0x58] sm:$0xff]  ;;  %v726_v4 = vld [vmem:[%s7907_s18 + $0x60] sm:$0xff] }
 0x175   : > { %879 = vmatpush1.bf16.msra.mxu0 %v6457_v15  ;;  %v751_v3 = vpack.c.bf16 %v725_v2, %v724_v1  ;;  %v727_v5 = vld [vmem:[%s7907_s18 + $0x68] sm:$0xff]  ;;  %v728_v7 = vld [vmem:[%s7907_s18 + $0x70] sm:$0xff]  ;;  %v729_v8 = vld [vmem:[%s7907_s18 + $0x78] sm:$0xff] }
 0x176   : > { %880 = vmatprep.subr.bf16.mxu0 %v6459_v16  ;;  %6148 = vmatpush3.bf16.msra.mxu1 %v6458_v14  ;;  %v752_v6 = vpack.c.bf16 %v727_v5, %v726_v4  ;;  %v753_v9 = vpack.c.bf16 %v729_v8, %v728_v7  ;;  %v730_v10 = vld [vmem:[%s7907_s18 + $0x80] sm:$0xff]  ;;  %v731_v11 = vld [vmem:[%s7907_s18 + $0x88] sm:$0xff]  ;;  %v732_v13 = vld [vmem:[%s7907_s18 + $0x90] sm:$0xff] }
 0x177   : > { %6149 = vmatprep.subr.bf16.mxu1 %v6462_v17  ;;  %v754_v12 = vpack.c.bf16 %v731_v11, %v730_v10  ;;  %v733_v14 = vld [vmem:[%s7907_s18 + $0x98] sm:$0xff]  ;;  %v734_v16 = vld [vmem:[%s7907_s18 + $0xa0] sm:$0xff]  ;;  %v736_v19 = vld [vmem:[%s7907_s18 + $0xb0] sm:$0xff] }
 0x178   : > { %v755_v15 = vpack.c.bf16 %v733_v14, %v732_v13  ;;  %v737_v20 = vld [vmem:[%s7907_s18 + $0xb8] sm:$0xff]  ;;  %v738_v22 = vld [vmem:[%s7907_s18 + $0xc0] sm:$0xff]  ;;  %v743_v29 = vld [vmem:[%s7907_s18 + $0xe8] sm:$0xff] }
 0x179   : > { %881 = vmatpush1.bf16.msra.mxu0 %v6461_v18  ;;  %v742_v28 = vld [vmem:[%s7907_s18 + $0xe0] sm:$0xff]  ;;  %v744_v31 = vld [vmem:[%s7907_s18 + $0xf0] sm:$0xff] }
 0x17a   : > { %882 = vmatprep.subr.bf16.mxu0 %v6463_v21  ;;  %6150 = vmatpush3.bf16.msra.mxu1 %v6462_v17  ;;  %v735_v17 = vld [vmem:[%s7907_s18 + $0xa8] sm:$0xff]  ;;  %v757_v21 = vpack.c.bf16 %v737_v20, %v736_v19  ;;  %v760_v30 = vpack.c.bf16 %v743_v29, %v742_v28  ;;  %v778_v37 = vld [vmem:[%s11230_s15] sm:$0x3] }
 0x17b   : > { %6151 = vmatprep.subr.bf16.mxu1 %v6466_v23  ;;  %v756_v18 = vpack.c.bf16 %v735_v17, %v734_v16  ;;  %v8011_v42 = vld [vmem:[%s11231_s5] ss:$0 sm:$0xff]  ;;  %s7400_s5 = smov [#allocation19]  }
 0x17d   : > { %883 = vmatpush1.bf16.msra.mxu0 %v6465_v24 }
 0x17e   : > { %884 = vmatprep.subr.bf16.mxu0 %v6467_v25  ;;  %6152 = vmatpush3.bf16.msra.mxu1 %v6466_v23  ;;  %v739_v23 = vld [vmem:[%s7907_s18 + $0xc8] sm:$0xff]  ;;  %v740_v25 = vld [vmem:[%s7907_s18 + $0xd0] sm:$0xff] }
 0x17f   : > { %6153 = vmatprep.subr.bf16.mxu1 %v6470_v26  ;;  %v758_v24 = vpack.c.bf16 %v739_v23, %v738_v22 }
 0x181   : > { %885 = vmatpush1.bf16.msra.mxu0 %v6469_v27 }
 0x182   : > { %6154 = vmatpush3.bf16.msra.mxu1 %v6470_v26  ;;  %v741_v26 = vld [vmem:[%s7907_s18 + $0xd8] sm:$0xff] }
 0x183   : > { %v759_v27 = vpack.c.bf16 %v741_v26, %v740_v25 }
 0x184   : > { %903 = vmatmul.mubr.bf16.vlgmr.msra.gmra.mrb[0].mxu0 %v746_v32  ;;  %v745_v32 = vld [vmem:[%s7907_s18 + $0xf8] sm:$0xff] }
 0x185   : > { %912 = vmatprep.mubr.bf16.mxu0 %v11023_v0  ;;  %6156 = vmatmul.mubr.bf16.vlgmr.msra.gmra.mrb[0].mxu1 %v1128_v35  ;;  %v761_v33 = vpack.c.bf16 %v745_v32, %v744_v31  ;;  %v7993_v35 = vshrl.u32 %v780_v34, 7 }
 0x186   : > { %6159 = vmatprep.mubr.bf16.mxu1 %v1129_v36 }
 0x187   : > { %11229 = vst [vmem:[#allocation34_spill] sm:$0xff] %v7993_v35  ;;  %v11022_v36 = vsub.s32 0, %v7993_v35  ;;  %v11021_v38 = vsub.s32 1, %v7993_v35 }
 0x189   : > { %v8002_v39 = vrot.slane %v778_v37, %v11022_v36  ;;  %v8006_v41 = vrot.slane %v778_v37, %v11021_v38 }
 0x18c   : > { %913 = vmatmul.mubr.bf16.gmra.mrb[4].mxu0 %v747_v43 }
 0x18d   : > { %922 = vmatprep.mubr.bf16.mxu0 %v11023_v0  ;;  %6160 = vmatmul.mubr.bf16.gmra.mrb[4].mxu1 %v1130_v44 }
 0x18e   : > { %6163 = vmatprep.mubr.bf16.mxu1 %v1131_v47 }
 0x194   : > { %923 = vmatmul.mubr.bf16.gmra.mrb[8].mxu0 %v748_v52 }
 0x195   : > { %932 = vmatprep.mubr.bf16.mxu0 %v11023_v0  ;;  %6164 = vmatmul.mubr.bf16.gmra.mrb[8].mxu1 %v1132_v53 }
 0x196   : > { %6167 = vmatprep.mubr.bf16.mxu1 %v1133_v56 }
 0x19c   : > { %933 = vmatmul.mubr.bf16.gmra.mrb[12].mxu0 %v749_v59 }
 0x19d   : > { %942 = vmatprep.mubr.bf16.mxu0 %v11023_v0  ;;  %6168 = vmatmul.mubr.bf16.gmra.mrb[12].mxu1 %v1134_v60 }
 0x1a4   : > { %943 = vmatmul.mubr.bf16.gmra.mrb[16].mxu0 %v750_v63 }
 0x1a5   : > { %952 = vmatprep.mubr.bf16.mxu0 %v11023_v0 }
 0x1ac   : > { %953 = vmatmul.mubr.bf16.gmra.mrb[20].mxu0 %v751_v3 }
 0x1ad   : > { %962 = vmatprep.mubr.bf16.mxu0 %v11023_v0 }
 0x1b4   : > { %963 = vmatmul.mubr.bf16.gmra.mrb[24].mxu0 %v752_v6 }
 0x1b5   : > { %972 = vmatprep.mubr.bf16.mxu0 %v11023_v0 }
 0x1bc   : > { %973 = vmatmul.mubr.bf16.gmra.mrb[28].mxu0 %v753_v9 }
 0x1bd   : > { %982 = vmatprep.mubr.bf16.mxu0 %v11023_v0 }
 0x1c4   : > { %983 = vmatmul.mubr.bf16.gmra.mrb[32].mxu0 %v754_v12 }
 0x1c5   : > { %992 = vmatprep.mubr.bf16.mxu0 %v11023_v0 }
 0x1cc   : > { %993 = vmatmul.mubr.bf16.gmra.mrb[36].mxu0 %v755_v15 }
 0x1cd   : > { %1002 = vmatprep.mubr.bf16.mxu0 %v11023_v0 }
 0x1d4   : > { %1003 = vmatmul.mubr.bf16.gmra.mrb[40].mxu0 %v756_v18 }
 0x1d5   : > { %1012 = vmatprep.mubr.bf16.mxu0 %v11023_v0 }
 0x1dc   : > { %1013 = vmatmul.mubr.bf16.gmra.mrb[44].mxu0 %v757_v21 }
 0x1dd   : > { %1022 = vmatprep.mubr.bf16.mxu0 %v11023_v0 }
 0x1e4   : > { %1023 = vmatmul.mubr.bf16.gmra.mrb[48].mxu0 %v758_v24 }
 0x1e5   : > { %1032 = vmatprep.mubr.bf16.mxu0 %v11023_v0 }
 0x1ec   : > { %1033 = vmatmul.mubr.bf16.gmra.mrb[52].mxu0 %v759_v27 }
 0x1ed   : > { %1042 = vmatprep.mubr.bf16.mxu0 %v11023_v0 }
 0x1f4   : > { %1043 = vmatmul.mubr.bf16.gmra.mrb[56].mxu0 %v760_v30 }
 0x1f5   : > { %1052 = vmatprep.mubr.bf16.mxu0 %v11023_v0 }
 0x1fc   : > { %1053 = vmatmul.mubr.bf16.gmra.mrb[60].mxu0 %v761_v33 }
 0x257   : > { %v904_v40 = vpop.f32.mrb[0].mxu0 }
 0x258   : > { %v906_v43 = vpop.f32.mrb[1].mxu0  ;;  %v6157_v44 = vpop.f32.mrb[0].mxu1  ;;  %v905_v46 = vadd.f32 %v904_v40, %v8002_v39 }
 0x259   : > { %v908_v45 = vpop.f32.mrb[2].mxu0  ;;  %v1249_v47 = vadd.f32 %v6157_v44, %v8011_v42  ;;  %v1240_v49 = vpop.f32.mrb[1].mxu1  ;;  %v907_v51 = vadd.f32 %v906_v43, %v8006_v41 }
 0x25a   : > { %v909_v48 = vadd.f32 %v908_v45, %v8002_v39  ;;  %v910_v50 = vpop.f32.mrb[3].mxu0  ;;  %v1241_v52 = vadd.f32 %v8011_v42, %v1240_v49  ;;  %v6158_v54 = vpop.f32.mrb[2].mxu1 }
 0x25b   : > { %v911_v53 = vadd.f32 %v910_v50, %v8006_v41  ;;  %v1252_v56 = vadd.f32 %v6158_v54, %v8011_v42  ;;  %v1243_v57 = vpop.f32.mrb[3].mxu1 }
 0x25c   : > { %v8019_v55 = vpack.c.bf16 %v909_v48, %v905_v46  ;;  %v1244_v59 = vadd.f32 %v8011_v42, %v1243_v57 }
 0x25d   : > { %v8022_v58 = vpack.c.bf16 %v911_v53, %v907_v51  ;;  %v8025_v60 = vpack.c.bf16 %v1252_v56, %v1249_v47 }
 0x25e   : > { %2717 = vrot.lane.b32.xlu1 %v8019_v55, %s7397_s28  ;;  %1970 = vrot.lane.b32.xlu0 %v8019_v55, %s7398_s27  ;;  %v8031_v61 = vpack.c.bf16 %v1244_v59, %v1241_v52 }
 0x25f   : > { %v914_v62 = vpop.f32.mrb[4].mxu0 }
 0x260   : > { %v915_v63 = vadd.f32 %v914_v62, %v8002_v39  ;;  %v916_v1 = vpop.f32.mrb[5].mxu0  ;;  %5691 = vmatprep.mubr.msk.bf16.mxu1 %vm1343_vm0, %v8031_v61  ;;  %v6161_v4 = vpop.f32.mrb[4].mxu1 }
 0x261   : > { %v917_v2 = vadd.f32 %v916_v1, %v8006_v41  ;;  %v918_v3 = vpop.f32.mrb[6].mxu0  ;;  %v1265_v7 = vadd.f32 %v6161_v4, %v8011_v42  ;;  %v1256_v8 = vpop.f32.mrb[5].mxu1 }
 0x262   : > { %1940 = vrot.lane.b32.xlu1 %v8025_v60, %s7398_s27  ;;  %1938 = vrot.lane.b32.xlu0 %v8031_v61, %s7398_s27  ;;  %v919_v5 = vadd.f32 %v918_v3, %v8002_v39  ;;  %v920_v6 = vpop.f32.mrb[7].mxu0  ;;  %v1257_v10 = vadd.f32 %v8011_v42, %v1256_v8  ;;  %v6162_v11 = vpop.f32.mrb[6].mxu1 }
 0x263   : > { %v921_v9 = vadd.f32 %v920_v6, %v8006_v41  ;;  %v1268_v13 = vadd.f32 %v6162_v11, %v8011_v42  ;;  %v1259_v14 = vpop.f32.mrb[7].mxu1 }
 0x264   : > { %v8045_v12 = vpack.c.bf16 %v919_v5, %v915_v63  ;;  %v1260_v16 = vadd.f32 %v8011_v42, %v1259_v14 }
 0x265   : > { %v8048_v15 = vpack.c.bf16 %v921_v9, %v917_v2  ;;  %v8055_v17 = vpack.c.bf16 %v1268_v13, %v1265_v7 }
 0x266   : > { %3464 = vrot.lane.b32.xlu1 %v8019_v55, %s7399_s19  ;;  %2685 = vrot.lane.b32.xlu0 %v8031_v61, %s7397_s28  ;;  %v8057_v18 = vpack.c.bf16 %v1260_v16, %v1257_v10 }
 0x267   : > { %11232 = vst [vmem:[#allocation35_spill] sm:$0xff] %v8048_v15  ;;  %v924_v19 = vpop.f32.mrb[8].mxu0 }
 0x268   : > { %v925_v20 = vadd.f32 %v924_v19, %v8002_v39  ;;  %v926_v21 = vpop.f32.mrb[9].mxu0  ;;  %v6165_v24 = vpop.f32.mrb[8].mxu1 }
 0x269   : > { %v927_v22 = vadd.f32 %v926_v21, %v8006_v41  ;;  %v928_v23 = vpop.f32.mrb[10].mxu0  ;;  %v1281_v27 = vadd.f32 %v6165_v24, %v8011_v42  ;;  %v1272_v28 = vpop.f32.mrb[9].mxu1 }
 0x26a   : > { %2687 = vrot.lane.b32.xlu1 %v8025_v60, %s7397_s28  ;;  %2719 = vrot.lane.b32.xlu0 %v8045_v12, %s7397_s28  ;;  %v929_v25 = vadd.f32 %v928_v23, %v8002_v39  ;;  %v930_v26 = vpop.f32.mrb[11].mxu0  ;;  %v1273_v30 = vadd.f32 %v8011_v42, %v1272_v28  ;;  %v6166_v31 = vpop.f32.mrb[10].mxu1 }
 0x26b   : > { %v931_v29 = vadd.f32 %v930_v26, %v8006_v41  ;;  %v1284_v33 = vadd.f32 %v6166_v31, %v8011_v42  ;;  %v1275_v34 = vpop.f32.mrb[11].mxu1 }
 0x26c   : > { %v8069_v32 = vpack.c.bf16 %v929_v25, %v925_v20  ;;  %v1276_v40 = vadd.f32 %v8011_v42, %v1275_v34 }
 0x26d   : > { %v8072_v37 = vpack.c.bf16 %v931_v29, %v927_v22  ;;  %v8079_v43 = vpack.c.bf16 %v1284_v33, %v1281_v27 }
 0x26e   : > { %1972 = vrot.lane.b32.xlu1 %v8045_v12, %s7398_s27  ;;  %3466 = vrot.lane.b32.xlu0 %v8045_v12, %s7399_s19  ;;  %v8081_v44 = vpack.c.bf16 %v1276_v40, %v1273_v30 }
 0x26f   : > { %11233 = vst [vmem:[#allocation36_spill] sm:$0xff] %v8072_v37  ;;  %v934_v45 = vpop.f32.mrb[12].mxu0 }
 0x270   : > { %v935_v46 = vadd.f32 %v934_v45, %v8002_v39  ;;  %v936_v47 = vpop.f32.mrb[13].mxu0  ;;  %v6169_v50 = vpop.f32.mrb[12].mxu1 }
 0x271   : > { %v937_v48 = vadd.f32 %v936_v47, %v8006_v41  ;;  %v938_v49 = vpop.f32.mrb[14].mxu0  ;;  %v1297_v53 = vadd.f32 %v6169_v50, %v8011_v42  ;;  %v1288_v54 = vpop.f32.mrb[13].mxu1 }
 0x272   : > { %1944 = vrot.lane.b32.xlu1 %v8055_v17, %s7398_s27  ;;  %1942 = vrot.lane.b32.xlu0 %v8057_v18, %s7398_s27  ;;  %v939_v51 = vadd.f32 %v938_v49, %v8002_v39  ;;  %v940_v52 = vpop.f32.mrb[15].mxu0  ;;  %v1289_v57 = vadd.f32 %v8011_v42, %v1288_v54  ;;  %v6170_v59 = vpop.f32.mrb[14].mxu1 }
 0x273   : > { %v941_v56 = vadd.f32 %v940_v52, %v8006_v41  ;;  %v1300_v63 = vadd.f32 %v6170_v59, %v8011_v42  ;;  %v1291_v1 = vpop.f32.mrb[15].mxu1 }
 0x274   : > { %v8093_v62 = vpack.c.bf16 %v939_v51, %v935_v46  ;;  %v1292_v3 = vadd.f32 %v8011_v42, %v1291_v1 }
 0x275   : > { %v8096_v2 = vpack.c.bf16 %v941_v56, %v937_v48  ;;  %v8103_v4 = vpack.c.bf16 %v1300_v63, %v1297_v53 }
 0x276   : > { %2691 = vrot.lane.b32.xlu1 %v8055_v17, %s7397_s28  ;;  %2689 = vrot.lane.b32.xlu0 %v8057_v18, %s7397_s28  ;;  %v8105_v6 = vpack.c.bf16 %v1292_v3, %v1289_v57 }
 0x277   : > { %11234 = vst [vmem:[#allocation37_spill] sm:$0xff] %v8096_v2  ;;  %v944_v5 = vpop.f32.mrb[16].mxu0 }
 0x278   : > { %v945_v7 = vadd.f32 %v944_v5, %v8002_v39  ;;  %v946_v8 = vpop.f32.mrb[17].mxu0 }
 0x279   : > { %v947_v9 = vadd.f32 %v946_v8, %v8006_v41  ;;  %v948_v10 = vpop.f32.mrb[18].mxu0 }
 0x27a   : > { %2721 = vrot.lane.b32.xlu1 %v8069_v32, %s7397_s28  ;;  %1974 = vrot.lane.b32.xlu0 %v8069_v32, %s7398_s27  ;;  %v949_v42 = vadd.f32 %v948_v10, %v8002_v39  ;;  %v950_v11 = vpop.f32.mrb[19].mxu0 }
 0x27b   : > { %v951_v13 = vadd.f32 %v950_v11, %v8006_v41 }
 0x27c   : > { %v8115_v14 = vpack.c.bf16 %v949_v42, %v945_v7 }
 0x27d   : > { %v8117_v16 = vpack.c.bf16 %v951_v13, %v947_v9 }
 0x27e   : > { %1948 = vrot.lane.b32.xlu1 %v8079_v43, %s7398_s27  ;;  %1946 = vrot.lane.b32.xlu0 %v8081_v44, %s7398_s27 }
 0x27f   : > { %11235 = vst [vmem:[#allocation38_spill] sm:$0xff] %v8117_v16  ;;  %v954_v19 = vpop.f32.mrb[20].mxu0 }
 0x280   : > { %v955_v20 = vadd.f32 %v954_v19, %v8002_v39  ;;  %v956_v21 = vpop.f32.mrb[21].mxu0  ;;  %v1369_v19 = vsel %vm1343_vm0, %v8019_v55, 0 }
 0x281   : > { %v957_v22 = vadd.f32 %v956_v21, %v8006_v41  ;;  %v958_v23 = vpop.f32.mrb[22].mxu0 }
 0x282   : > { %3468 = vrot.lane.b32.xlu1 %v8069_v32, %s7399_s19  ;;  %2693 = vrot.lane.b32.xlu0 %v8081_v44, %s7397_s28  ;;  %v959_v24 = vadd.f32 %v958_v23, %v8002_v39  ;;  %v960_v25 = vpop.f32.mrb[23].mxu0 }
 0x283   : > { %v961_v26 = vadd.f32 %v960_v25, %v8006_v41 }
 0x284   : > { %v8131_v27 = vpack.c.bf16 %v959_v24, %v955_v20 }
 0x285   : > { %v8133_v28 = vpack.c.bf16 %v961_v26, %v957_v22 }
 0x286   : > { %2695 = vrot.lane.b32.xlu1 %v8079_v43, %s7397_s28  ;;  %1976 = vrot.lane.b32.xlu0 %v8093_v62, %s7398_s27 }
 0x287   : > { %11236 = vst [vmem:[#allocation39_spill] sm:$0xff] %v8133_v28  ;;  %v964_v29 = vpop.f32.mrb[24].mxu0 }
 0x288   : > { %v965_v30 = vadd.f32 %v964_v29, %v8002_v39  ;;  %v966_v31 = vpop.f32.mrb[25].mxu0 }
 0x289   : > { %v967_v33 = vadd.f32 %v966_v31, %v8006_v41  ;;  %v968_v34 = vpop.f32.mrb[26].mxu0  ;;  %v1372_v31 = vsel %vm1343_vm0, %v8045_v12, 0 }
 0x28a   : > { %1952 = vrot.lane.b32.xlu1 %v8103_v4, %s7398_s27  ;;  %2723 = vrot.lane.b32.xlu0 %v8093_v62, %s7397_s28  ;;  %v969_v40 = vadd.f32 %v968_v34, %v8002_v39  ;;  %v970_v45 = vpop.f32.mrb[27].mxu0 }
 0x28b   : > { %v971_v46 = vadd.f32 %v970_v45, %v8006_v41 }
 0x28c   : > { %v8147_v47 = vpack.c.bf16 %v969_v40, %v965_v30 }
 0x28d   : > { %v8149_v48 = vpack.c.bf16 %v971_v46, %v967_v33 }
 0x28e   : > { %2699 = vrot.lane.b32.xlu1 %v8103_v4, %s7397_s28  ;;  %3470 = vrot.lane.b32.xlu0 %v8093_v62, %s7399_s19 }
 0x28f   : > { %11237 = vst [vmem:[#allocation40_spill] sm:$0xff] %v8149_v48  ;;  %v974_v49 = vpop.f32.mrb[28].mxu0 }
 0x290   : > { %v975_v50 = vadd.f32 %v974_v49, %v8002_v39  ;;  %v976_v51 = vpop.f32.mrb[29].mxu0 }
 0x291   : > { %v977_v52 = vadd.f32 %v976_v51, %v8006_v41  ;;  %v978_v53 = vpop.f32.mrb[30].mxu0 }
 0x292   : > { %2725 = vrot.lane.b32.xlu1 %v8115_v14, %s7397_s28  ;;  %1950 = vrot.lane.b32.xlu0 %v8105_v6, %s7398_s27  ;;  %v979_v54 = vadd.f32 %v978_v53, %v8002_v39  ;;  %v980_v56 = vpop.f32.mrb[31].mxu0  ;;  %v1375_v53 = vsel %vm1343_vm0, %v8069_v32, 0 }
 0x293   : > { %v981_v57 = vadd.f32 %v980_v56, %v8006_v41 }
 0x294   : > { %v8163_v59 = vpack.c.bf16 %v979_v54, %v975_v50 }
 0x295   : > { %v8165_v63 = vpack.c.bf16 %v981_v57, %v977_v52 }
 0x296   : > { %3472 = vrot.lane.b32.xlu1 %v8115_v14, %s7399_s19  ;;  %2697 = vrot.lane.b32.xlu0 %v8105_v6, %s7397_s28 }
 0x297   : > { %11238 = vst [vmem:[#allocation41_spill] sm:$0xff] %v8165_v63  ;;  %v984_v1 = vpop.f32.mrb[32].mxu0 }
 0x298   : > { %v985_v3 = vadd.f32 %v984_v1, %v8002_v39  ;;  %v986_v5 = vpop.f32.mrb[33].mxu0 }
 0x299   : > { %v987_v7 = vadd.f32 %v986_v5, %v8006_v41  ;;  %v988_v8 = vpop.f32.mrb[34].mxu0 }
 0x29a   : > { %v989_v9 = vadd.f32 %v988_v8, %v8002_v39  ;;  %v990_v10 = vpop.f32.mrb[35].mxu0  ;;  %2729 = vrot.lane.b32.xlu1 %v8147_v47, %s7397_s28  ;;  %1978 = vrot.lane.b32.xlu0 %v8115_v14, %s7398_s27 }
 0x29b   : > { %v991_v42 = vadd.f32 %v990_v10, %v8006_v41  ;;  %v1378_v10 = vsel %vm1343_vm0, %v8093_v62, 0 }
 0x29c   : > { %v8179_v11 = vpack.c.bf16 %v989_v9, %v985_v3 }
 0x29d   : > { %v8181_v13 = vpack.c.bf16 %v991_v42, %v987_v7 }
 0x29e   : > { %6219 = vmatprep.subr.msk.bf16.mxu1 %vm1343_vm0, %v8179_v11  ;;  %3476 = vrot.lane.b32.xlu1 %v8147_v47, %s7399_s19 }
 0x29f   : > { %1980 = vrot.lane.b32.xlu0 %v8131_v27, %s7398_s27  ;;  %v994_v20 = vpop.f32.mrb[36].mxu0  ;;  %5676 = vmatpush3.bf16.xpose.msra.mxu1 %v1369_v19 }
 0x2a0   : > { %v995_v21 = vadd.f32 %v994_v20, %v8002_v39  ;;  %5707 = vmatprep.subr.bf16.mxu0 %v8181_v13  ;;  %v996_v22 = vpop.f32.mrb[37].mxu0 }
 0x2a1   : > { %v997_v23 = vadd.f32 %v996_v22, %v8006_v41  ;;  %5708 = vmatpush3.bf16.msra.mxu0 %v8022_v58  ;;  %v998_v24 = vpop.f32.mrb[38].mxu0 }
 0x2a2   : > { %v999_v25 = vadd.f32 %v998_v24, %v8002_v39  ;;  %v1000_v26 = vpop.f32.mrb[39].mxu0  ;;  %3434 = vrot.lane.b32.xlu1 %v8025_v60, %s7399_s19 }
 0x2a3   : > { %v1001_v55 = vadd.f32 %v1000_v26, %v8006_v41  ;;  %2727 = vrot.lane.b32.xlu0 %v8131_v27, %s7397_s28 }
 0x2a4   : > { %v8201_v29 = vpack.c.bf16 %v999_v25, %v995_v21 }
 0x2a5   : > { %v8203_v30 = vpack.c.bf16 %v1001_v55, %v997_v23  ;;  %v1381_v55 = vsel %vm1343_vm0, %v8115_v14, 0 }
 0x2a6   : > { %6220 = vmatprep.subr.msk.bf16.mxu1 %vm1343_vm0, %v8201_v29  ;;  %3438 = vrot.lane.b32.xlu1 %v8055_v17, %s7399_s19 }
 0x2a7   : > { %11239 = vst [vmem:[#allocation42_spill] sm:$0xff] %v8203_v30  ;;  %3474 = vrot.lane.b32.xlu0 %v8131_v27, %s7399_s19  ;;  %v1004_v33 = vpop.f32.mrb[40].mxu0  ;;  %5678 = vmatpush3.bf16.xpose.msra.mxu1 %v1372_v31 }
 0x2a8   : > { %v1005_v34 = vadd.f32 %v1004_v33, %v8002_v39  ;;  %5709 = vmatprep.subr.bf16.mxu0 %v8203_v30  ;;  %v1006_v40 = vpop.f32.mrb[41].mxu0 }
 0x2a9   : > { %v1007_v45 = vadd.f32 %v1006_v40, %v8006_v41  ;;  %5710 = vmatpush3.bf16.msra.mxu0 %v8048_v15  ;;  %v1008_v46 = vpop.f32.mrb[42].mxu0 }
 0x2aa   : > { %v1009_v49 = vadd.f32 %v1008_v46, %v8002_v39  ;;  %v1010_v50 = vpop.f32.mrb[43].mxu0  ;;  %3442 = vrot.lane.b32.xlu1 %v8079_v43, %s7399_s19 }
 0x2ab   : > { %v1011_v12 = vadd.f32 %v1010_v50, %v8006_v41  ;;  %1982 = vrot.lane.b32.xlu0 %v8147_v47, %s7398_s27 }
 0x2ac   : > { %v8223_v51 = vpack.c.bf16 %v1009_v49, %v1005_v34 }
 0x2ad   : > { %v8225_v52 = vpack.c.bf16 %v1011_v12, %v1007_v45 }
 0x2ae   : > { %6221 = vmatprep.subr.msk.bf16.mxu1 %vm1343_vm0, %v8223_v51  ;;  %3446 = vrot.lane.b32.xlu1 %v8103_v4, %s7399_s19 }
 0x2af   : > { %11240 = vst [vmem:[#allocation43_spill] sm:$0xff] %v8225_v52  ;;  %1984 = vrot.lane.b32.xlu0 %v8163_v59, %s7398_s27  ;;  %v1014_v54 = vpop.f32.mrb[44].mxu0  ;;  %5680 = vmatpush3.bf16.xpose.msra.mxu1 %v1375_v53  ;;  %v1384_v53 = vsel %vm1343_vm0, %v8131_v27, 0 }
 0x2b0   : > { %v1015_v56 = vadd.f32 %v1014_v54, %v8002_v39  ;;  %5711 = vmatprep.subr.bf16.mxu0 %v8225_v52  ;;  %v1016_v57 = vpop.f32.mrb[45].mxu0 }
 0x2b1   : > { %v1017_v1 = vadd.f32 %v1016_v57, %v8006_v41  ;;  %5712 = vmatpush3.bf16.msra.mxu0 %v8072_v37  ;;  %v1018_v3 = vpop.f32.mrb[46].mxu0 }
 0x2b2   : > { %v1019_v5 = vadd.f32 %v1018_v3, %v8002_v39  ;;  %v1020_v7 = vpop.f32.mrb[47].mxu0  ;;  %2463 = vrot.lane.b32.xlu1 %v8072_v37, %s7398_s27 }
 0x2b3   : > { %v1021_v32 = vadd.f32 %v1020_v7, %v8006_v41  ;;  %2731 = vrot.lane.b32.xlu0 %v8163_v59, %s7397_s28 }
 0x2b4   : > { %v8245_v8 = vpack.c.bf16 %v1019_v5, %v1015_v56 }
 0x2b5   : > { %v8247_v9 = vpack.c.bf16 %v1021_v32, %v1017_v1 }
 0x2b6   : > { %6222 = vmatprep.subr.msk.bf16.mxu1 %vm1343_vm0, %v8245_v8  ;;  %2467 = vrot.lane.b32.xlu1 %v8117_v16, %s7398_s27 }
 0x2b7   : > { %11241 = vst [vmem:[#allocation44_spill] sm:$0xff] %v8247_v9  ;;  %1986 = vrot.lane.b32.xlu0 %v8179_v11, %s7398_s27  ;;  %v1024_v42 = vpop.f32.mrb[48].mxu0  ;;  %5682 = vmatpush3.bf16.xpose.msra.mxu1 %v1378_v10 }
 0x2b8   : > { %v1025_v19 = vadd.f32 %v1024_v42, %v8002_v39  ;;  %5713 = vmatprep.subr.bf16.mxu0 %v8247_v9  ;;  %v1026_v20 = vpop.f32.mrb[49].mxu0  ;;  %v1387_v42 = vsel %vm1343_vm0, %v8147_v47, 0 }
 0x2b9   : > { %v1027_v21 = vadd.f32 %v1026_v20, %v8006_v41  ;;  %5714 = vmatpush3.bf16.msra.mxu0 %v8096_v2  ;;  %v1028_v22 = vpop.f32.mrb[50].mxu0 }
 0x2ba   : > { %v1029_v23 = vadd.f32 %v1028_v22, %v8002_v39  ;;  %v1030_v24 = vpop.f32.mrb[51].mxu0  ;;  %2471 = vrot.lane.b32.xlu1 %v8149_v48, %s7398_s27 }
 0x2bb   : > { %v1031_v62 = vadd.f32 %v1030_v24, %v8006_v41  ;;  %3478 = vrot.lane.b32.xlu0 %v8163_v59, %s7399_s19 }
 0x2bc   : > { %v8267_v25 = vpack.c.bf16 %v1029_v23, %v1025_v19 }
 0x2bd   : > { %v8269_v26 = vpack.c.bf16 %v1031_v62, %v1027_v21 }
 0x2be   : > { %6223 = vmatprep.subr.msk.bf16.mxu1 %vm1343_vm0, %v8267_v25  ;;  %3210 = vrot.lane.b32.xlu1 %v8072_v37, %s7397_s28 }
 0x2bf   : > { %11242 = vst [vmem:[#allocation45_spill] sm:$0xff] %v8269_v26  ;;  %3432 = vrot.lane.b32.xlu0 %v8031_v61, %s7399_s19  ;;  %v1034_v31 = vpop.f32.mrb[52].mxu0  ;;  %5684 = vmatpush3.bf16.xpose.msra.mxu1 %v1381_v55 }
 0x2c0   : > { %v1035_v33 = vadd.f32 %v1034_v31, %v8002_v39  ;;  %5715 = vmatprep.subr.bf16.mxu0 %v8269_v26  ;;  %v1036_v34 = vpop.f32.mrb[53].mxu0 }
 0x2c1   : > { %v1037_v40 = vadd.f32 %v1036_v34, %v8006_v41  ;;  %5716 = vmatpush3.bf16.msra.mxu0 %v8117_v16  ;;  %v1038_v45 = vpop.f32.mrb[54].mxu0 }
 0x2c2   : > { %v1039_v46 = vadd.f32 %v1038_v45, %v8002_v39  ;;  %v1040_v49 = vpop.f32.mrb[55].mxu0  ;;  %3214 = vrot.lane.b32.xlu1 %v8117_v16, %s7397_s28 }
 0x2c3   : > { %v1041_v14 = vadd.f32 %v1040_v49, %v8006_v41  ;;  %3436 = vrot.lane.b32.xlu0 %v8057_v18, %s7399_s19 }
 0x2c4   : > { %v8289_v50 = vpack.c.bf16 %v1039_v46, %v1035_v33 }
 0x2c5   : > { %v8291_v12 = vpack.c.bf16 %v1041_v14, %v1037_v40 }
 0x2c6   : > { %6224 = vmatprep.subr.msk.bf16.mxu1 %vm1343_vm0, %v8289_v50  ;;  %3218 = vrot.lane.b32.xlu1 %v8149_v48, %s7397_s28 }
 0x2c7   : > { %11243 = vst [vmem:[#allocation46_spill] sm:$0xff] %v8291_v12  ;;  %3440 = vrot.lane.b32.xlu0 %v8081_v44, %s7399_s19  ;;  %v1044_v54 = vpop.f32.mrb[56].mxu0  ;;  %5686 = vmatpush3.bf16.xpose.msra.mxu1 %v1384_v53 }
 0x2c8   : > { %v1045_v56 = vadd.f32 %v1044_v54, %v8002_v39  ;;  %5717 = vmatprep.subr.bf16.mxu0 %v8291_v12  ;;  %v1046_v57 = vpop.f32.mrb[57].mxu0 }
 0x2c9   : > { %v1047_v1 = vadd.f32 %v1046_v57, %v8006_v41  ;;  %5718 = vmatpush3.bf16.msra.mxu0 %v8133_v28  ;;  %v1048_v3 = vpop.f32.mrb[58].mxu0 }
 0x2ca   : > { %v1049_v5 = vadd.f32 %v1048_v3, %v8002_v39  ;;  %v1050_v7 = vpop.f32.mrb[59].mxu0  ;;  %2475 = vrot.lane.b32.xlu1 %v8181_v13, %s7398_s27 }
 0x2cb   : > { %v1051_v27 = vadd.f32 %v1050_v7, %v8006_v41  ;;  %3444 = vrot.lane.b32.xlu0 %v8105_v6, %s7399_s19 }
 0x2cc   : > { %v8311_v32 = vpack.c.bf16 %v1049_v5, %v1045_v56 }
 0x2cd   : > { %v8313_v10 = vpack.c.bf16 %v1051_v27, %v1047_v1 }
 0x2ce   : > { %6225 = vmatprep.subr.msk.bf16.mxu1 %vm1343_vm0, %v8311_v32  ;;  %3222 = vrot.lane.b32.xlu1 %v8181_v13, %s7397_s28 }
 0x2cf   : > { %11244 = vst [vmem:[#allocation47_spill] sm:$0xff] %v8313_v10  ;;  %2459 = vrot.lane.b32.xlu0 %v8022_v58, %s7398_s27  ;;  %v1054_v19 = vpop.f32.mrb[60].mxu0  ;;  %5688 = vmatpush3.bf16.xpose.msra.mxu1 %v1387_v42 }
 0x2d0   : > { %v1055_v20 = vadd.f32 %v1054_v19, %v8002_v39  ;;  %5719 = vmatprep.subr.bf16.mxu0 %v8313_v10  ;;  %v1056_v21 = vpop.f32.mrb[61].mxu0  ;;  %v8325_v22 = vpop.permute.xlu1 %2717 }
 0x2d1   : > { %v1057_v23 = vadd.f32 %v1056_v21, %v8006_v41  ;;  %5720 = vmatpush3.bf16.msra.mxu0 %v8149_v48  ;;  %v8329_v24 = vpop.permute.xlu0 %1970  ;;  %v1058_v62 = vpop.f32.mrb[62].mxu0 }
 0x2d2   : > { %v1059_v47 = vadd.f32 %v1058_v62, %v8002_v39  ;;  %v1060_v55 = vpop.f32.mrb[63].mxu0  ;;  %1988 = vrot.lane.b32.xlu1 %v8201_v29, %s7398_s27  ;;  %v1390_v39 = vsel %vm1343_vm0, %v8163_v59, 0 }
 0x2d3   : > { %v1061_v31 = vadd.f32 %v1060_v55, %v8006_v41  ;;  %2461 = vrot.lane.b32.xlu0 %v8048_v15, %s7398_s27 }
 0x2d4   : > { %v8337_v33 = vpack.c.bf16 %v1059_v47, %v1055_v20  ;;  %v8339_v34 = vpop.permute.xlu1 %1940 }
 0x2d5   : > { %v8341_v40 = vpack.c.bf16 %v1061_v31, %v1057_v23  ;;  %v8343_v45 = vpop.permute.xlu0 %1938 }
 0x2d6   : > { %6226 = vmatprep.subr.msk.bf16.mxu1 %vm1343_vm0, %v8337_v33  ;;  %2735 = vrot.lane.b32.xlu1 %v8201_v29, %s7397_s28 }
 0x2d7   : > { %11245 = vst [vmem:[#allocation48_spill] sm:$0xff] %v8341_v40  ;;  %2465 = vrot.lane.b32.xlu0 %v8096_v2, %s7398_s27  ;;  %5690 = vmatpush3.bf16.xpose.msra.mxu1 %v1390_v39 }
 0x2d8   : > { %5721 = vmatprep.subr.bf16.mxu0 %v8341_v40  ;;  %v8354_v41 = vpop.permute.xlu1 %3464 }
 0x2d9   : > { %5722 = vmatpush3.bf16.msra.mxu0 %v8165_v63  ;;  %v8357_v46 = vpop.permute.xlu0 %2685 }
 0x2da   : > { %3482 = vrot.lane.b32.xlu1 %v8201_v29, %s7399_s19 }
 0x2db   : > { %2469 = vrot.lane.b32.xlu0 %v8133_v28, %s7398_s27 }
 0x2dc   : > { %v8363_v49 = vpop.permute.xlu1 %2687 }
 0x2dd   : > { %v8365_v59 = vpop.permute.xlu0 %2719 }
 0x2de   : > { %2477 = vrot.lane.b32.xlu1 %v8203_v30, %s7398_s27  ;;  %5692 = vmatmul.mubr.msk.bf16.vlgmr.msra.gmra.mrb[16].mxu1 %vm1343_vm0, %v8031_v61 }
 0x2df   : > { %2473 = vrot.lane.b32.xlu0 %v8165_v63, %s7398_s27  ;;  %5693 = vmatprep.mubr.msk.bf16.mxu1 %vm1343_vm0, %v8025_v60 }
 0x2e0   : > { %v8375_v29 = vpop.permute.xlu1 %1972 }
 0x2e1   : > { %v8377_v14 = vpop.permute.xlu0 %3466 }
 0x2e2   : > { %3224 = vrot.lane.b32.xlu1 %v8203_v30, %s7397_s28 }
 0x2e3   : > { %3206 = vrot.lane.b32.xlu0 %v8022_v58, %s7397_s28 }
 0x2e4   : > { %v8383_v53 = vpop.permute.xlu1 %1944 }
 0x2e5   : > { %v8385_v54 = vpop.permute.xlu0 %1942 }
 0x2e6   : > { %1990 = vrot.lane.b32.xlu1 %v8223_v51, %s7398_s27  ;;  %5694 = vmatmul.mubr.msk.bf16.gmra.mrb[20].mxu1 %vm1343_vm0, %v8025_v60 }
 0x2e7   : > { %3208 = vrot.lane.b32.xlu0 %v8048_v15, %s7397_s28  ;;  %5695 = vmatprep.mubr.msk.bf16.mxu1 %vm1343_vm0, %v8057_v18 }
 0x2e8   : > { %v8395_v61 = vpop.permute.xlu1 %2691 }
 0x2e9   : > { %v8397_v56 = vpop.permute.xlu0 %2689 }
 0x2ea   : > { %3969 = vrot.lane.b32.xlu1 %v8181_v13, %s7399_s19 }
 0x2eb   : > { %3212 = vrot.lane.b32.xlu0 %v8096_v2, %s7397_s28 }
 0x2ec   : > { %v8403_v57 = vpop.permute.xlu1 %2721 }
 0x2ed   : > { %v8405_v1 = vpop.permute.xlu0 %1974 }
 0x2ee   : > { %2479 = vrot.lane.b32.xlu1 %v8225_v52, %s7398_s27  ;;  %5696 = vmatmul.mubr.msk.bf16.gmra.mrb[24].mxu1 %vm1343_vm0, %v8057_v18 }
 0x2ef   : > { %3216 = vrot.lane.b32.xlu0 %v8133_v28, %s7397_s28  ;;  %5697 = vmatprep.mubr.msk.bf16.mxu1 %vm1343_vm0, %v8055_v17  ;;  %v2030_v28 = vsel %vm1343_vm0, %v8375_v29, 0  ;;  %v2033_v29 = vsel %vm1343_vm0, %v8405_v1, 0 }
 0x2f0   : > { %v8415_v60 = vpop.permute.xlu1 %1948 }
 0x2f1   : > { %v8417_v13 = vpop.permute.xlu0 %1946 }
 0x2f2   : > { %3226 = vrot.lane.b32.xlu1 %v8225_v52, %s7397_s28 }
 0x2f3   : > { %2733 = vrot.lane.b32.xlu0 %v8179_v11, %s7397_s28 }
 0x2f4   : > { %v8423_v3 = vpop.permute.xlu1 %3468 }
 0x2f5   : > { %v8425_v5 = vpop.permute.xlu0 %2693 }
 0x2f6   : > { %1992 = vrot.lane.b32.xlu1 %v8245_v8, %s7398_s27  ;;  %5698 = vmatmul.mubr.msk.bf16.gmra.mrb[28].mxu1 %vm1343_vm0, %v8055_v17 }
 0x2f7   : > { %3480 = vrot.lane.b32.xlu0 %v8179_v11, %s7399_s19  ;;  %5699 = vmatprep.mubr.msk.bf16.mxu1 %vm1343_vm0, %v8081_v44 }
 0x2f8   : > { %v8435_v18 = vpop.permute.xlu1 %2695 }
 0x2f9   : > { %v8437_v7 = vpop.permute.xlu0 %1976 }
 0x2fa   : > { %2739 = vrot.lane.b32.xlu1 %v8245_v8, %s7397_s28 }
 0x2fb   : > { %2737 = vrot.lane.b32.xlu0 %v8223_v51, %s7397_s28 }
 0x2fc   : > { %v8443_v27 = vpop.permute.xlu1 %1952 }
 0x2fd   : > { %v8445_v42 = vpop.permute.xlu0 %2723 }
 0x2fe   : > { %3486 = vrot.lane.b32.xlu1 %v8245_v8, %s7399_s19  ;;  %5700 = vmatmul.mubr.msk.bf16.gmra.mrb[32].mxu1 %vm1343_vm0, %v8081_v44 }
 0x2ff   : > { %3484 = vrot.lane.b32.xlu0 %v8223_v51, %s7399_s19  ;;  %5701 = vmatprep.mubr.msk.bf16.mxu1 %vm1343_vm0, %v8079_v43 }
 0x300   : > { %v8455_v17 = vpop.permute.xlu1 %2699 }
 0x301   : > { %v8457_v11 = vpop.permute.xlu0 %3470 }
 0x302   : > { %2481 = vrot.lane.b32.xlu1 %v8247_v9, %s7398_s27 }
 0x303   : > { %3220 = vrot.lane.b32.xlu0 %v8165_v63, %s7397_s28 }
 0x304   : > { %v8463_v8 = vpop.permute.xlu1 %2725 }
 0x305   : > { %v8465_v19 = vpop.permute.xlu0 %1950 }
 0x306   : > { %3228 = vrot.lane.b32.xlu1 %v8247_v9, %s7397_s28  ;;  %5702 = vmatmul.mubr.msk.bf16.gmra.mrb[36].mxu1 %vm1343_vm0, %v8079_v43 }
 0x307   : > { %2741 = vrot.lane.b32.xlu0 %v8267_v25, %s7397_s28  ;;  %5703 = vmatprep.mubr.msk.bf16.mxu1 %vm1343_vm0, %v8105_v6 }
 0x308   : > { %v8475_v44 = vpop.permute.xlu1 %3472 }
 0x309   : > { %v8477_v51 = vpop.permute.xlu0 %2697 }
 0x30a   : > { %1994 = vrot.lane.b32.xlu1 %v8267_v25, %s7398_s27 }
 0x30b   : > { %3488 = vrot.lane.b32.xlu0 %v8267_v25, %s7399_s19 }
 0x30c   : > { %v8483_v20 = vpop.permute.xlu1 %2729 }
 0x30d   : > { %v8485_v21 = vpop.permute.xlu0 %1978 }
 0x30e   : > { %2483 = vrot.lane.b32.xlu1 %v8269_v26, %s7398_s27  ;;  %5704 = vmatmul.mubr.msk.bf16.gmra.mrb[40].mxu1 %vm1343_vm0, %v8105_v6 }
 0x30f   : > { %2745 = vrot.lane.b32.xlu0 %v8311_v32, %s7397_s28  ;;  %5705 = vmatprep.mubr.msk.bf16.mxu1 %vm1343_vm0, %v8103_v4 }
 0x310   : > { %v8495_v43 = vpop.permute.xlu1 %3476 }
 0x311   : > { %v8497_v23 = vpop.permute.xlu0 %1980 }
 0x312   : > { %3230 = vrot.lane.b32.xlu1 %v8269_v26, %s7397_s28 }
 0x313   : > { %3492 = vrot.lane.b32.xlu0 %v8311_v32, %s7399_s19 }
 0x314   : > { %v8503_v25 = vpop.permute.xlu1 %3434 }
 0x315   : > { %v8505_v62 = vpop.permute.xlu0 %2727 }
 0x316   : > { %1996 = vrot.lane.b32.xlu1 %v8289_v50, %s7398_s27  ;;  %5706 = vmatmul.mubr.msk.bf16.gmra.mrb[44].mxu1 %vm1343_vm0, %v8103_v4 }
 0x317   : > { %3953 = vrot.lane.b32.xlu0 %v8022_v58, %s7399_s19  ;;  %5787 = vmatprep.mubr.msk.bf16.mxu1 %vm1343_vm0, %v8343_v45 }
 0x318   : > { %v8515_v6 = vpop.permute.xlu1 %3438 }
 0x319   : > { %v8517_v47 = vpop.permute.xlu0 %3474 }
 0x31a   : > { %2743 = vrot.lane.b32.xlu1 %v8289_v50, %s7397_s28 }
 0x31c   : > { %v8521_v55 = vpop.permute.xlu1 %3442 }
 0x31d   : > { %v8523_v31 = vpop.permute.xlu0 %1982 }
 0x31e   : > { %3490 = vrot.lane.b32.xlu1 %v8289_v50, %s7399_s19  ;;  %v2027_v50 = vsel %vm1343_vm0, %v8329_v24, 0 }
 0x320   : > { %v8527_v4 = vpop.permute.xlu1 %3446 }
 0x321   : > { %v8529_v58 = vpop.permute.xlu0 %1984 }
 0x322   : > { %2485 = vrot.lane.b32.xlu1 %v8291_v12, %s7398_s27 }
 0x324   : > { %v8533_v39 = vpop.permute.xlu1 %2463 }
 0x325   : > { %11246 = vst [vmem:[#allocation49_spill] sm:$0xff] %v8533_v39  ;;  %v8535_v38 = vpop.permute.xlu0 %2731 }
 0x326   : > { %3232 = vrot.lane.b32.xlu1 %v8291_v12, %s7397_s28 }
 0x328   : > { %v8539_v36 = vpop.permute.xlu1 %2467 }
 0x329   : > { %11247 = vst [vmem:[#allocation50_spill] sm:$0xff] %v8539_v36  ;;  %v1987_v0 = vpop.permute.xlu0 %1986 }
 0x32a   : > { %6227 = vmatprep.subr.msk.bf16.mxu1 %vm1343_vm0, %v1987_v0  ;;  %1998 = vrot.lane.b32.xlu1 %v8311_v32, %s7398_s27 }
 0x32b   : > { %5772 = vmatpush3.bf16.xpose.msra.mxu1 %v2027_v50 }
 0x32c   : > { %v8546_v35 = vpop.permute.xlu1 %2471 }
 0x32d   : > { %11248 = vst [vmem:[#allocation51_spill] sm:$0xff] %v8546_v35  ;;  %v8581_v12 = vpop.permute.xlu0 %3478 }
 0x32e   : > { %2487 = vrot.lane.b32.xlu1 %v8313_v10, %s7398_s27 }
 0x330   : > { %v8550_v63 = vpop.permute.xlu1 %3210 }
 0x331   : > { %11249 = vst [vmem:[#allocation52_spill] sm:$0xff] %v8550_v63  ;;  %v2036_v63 = vsel %vm1343_vm0, %v8437_v7, 0  ;;  %v2039_v7 = vsel %vm1343_vm0, %v8485_v21, 0 }
 0x332   : > { %3234 = vrot.lane.b32.xlu1 %v8313_v10, %s7397_s28 }
 0x334   : > { %v8554_v48 = vpop.permute.xlu1 %3214 }
 0x335   : > { %11250 = vst [vmem:[#allocation53_spill] sm:$0xff] %v8554_v48 }
 0x336   : > { %2000 = vrot.lane.b32.xlu1 %v8337_v33, %s7398_s27 }
 0x338   : > { %v8558_v0 = vpop.permute.xlu1 %3218 }
 0x339   : > { %11251 = vst [vmem:[#allocation54_spill] sm:$0xff] %v8558_v0 }
 0x33a   : > { %2747 = vrot.lane.b32.xlu1 %v8337_v33, %s7397_s28 }
 0x33c   : > { %v2476_v32 = vpop.permute.xlu1 %2475 }
 0x33d   : > { %5803 = vmatprep.subr.bf16.mxu0 %v2476_v32 }
 0x33e   : > { %3494 = vrot.lane.b32.xlu1 %v8337_v33, %s7399_s19 }
 0x340   : > { %v8564_v24 = vpop.permute.xlu1 %3222 }
 0x341   : > { %11252 = vst [vmem:[#allocation55_spill] sm:$0xff] %v8564_v24 }
 0x342   : > { %2489 = vrot.lane.b32.xlu1 %v8341_v40, %s7398_s27 }
 0x344   : > { %v1989_v50 = vpop.permute.xlu1 %1988 }
 0x345   : > { %6228 = vmatprep.subr.msk.bf16.mxu1 %vm1343_vm0, %v1989_v50  ;;  %v8586_v50 = vpop.permute.xlu0 %3432 }
 0x346   : > { %3236 = vrot.lane.b32.xlu1 %v8341_v40, %s7397_s28  ;;  %5774 = vmatpush3.bf16.xpose.msra.mxu1 %v2030_v28 }
 0x348   : > { %v8573_v10 = vpop.permute.xlu1 %2735 }
 0x349   : > { %v8592_v0 = vpop.permute.xlu0 %3436 }
 0x34c   : > { %v8575_v32 = vpop.permute.xlu1 %3482 }
 0x34d   : > { %v8596_v48 = vpop.permute.xlu0 %3440 }
 0x350   : > { %v8577_v33 = vpop.permute.xlu1 %2477 }
 0x351   : > { %11253 = vst [vmem:[#allocation56_spill] sm:$0xff] %v8577_v33  ;;  %v8603_v1 = vpop.permute.xlu0 %3444 }
 0x354   : > { %v8579_v16 = vpop.permute.xlu1 %3224 }
 0x355   : > { %11254 = vst [vmem:[#allocation57_spill] sm:$0xff] %v8579_v16 }
 0x358   : > { %v1991_v2 = vpop.permute.xlu1 %1990 }
 0x359   : > { %6229 = vmatprep.subr.msk.bf16.mxu1 %vm1343_vm0, %v1991_v2 }
 0x35a   : > { %5776 = vmatpush3.bf16.xpose.msra.mxu1 %v2033_v29 }
 0x35c   : > { %v8588_v28 = vpop.permute.xlu1 %3969 }
 0x35d   : > { %11255 = vst [vmem:[#allocation58_spill] sm:$0xff] %v8588_v28  ;;  %v8607_v28 = vpop.permute.xlu0 %2459 }
 0x35e   : > { %11258 = vst [vmem:[#allocation61_spill] sm:$0xff] %v8607_v28 }
 0x360   : > { %v8590_v40 = vpop.permute.xlu1 %2479 }
 0x361   : > { %11256 = vst [vmem:[#allocation59_spill] sm:$0xff] %v8590_v40  ;;  %v8613_v37 = vpop.permute.xlu0 %2461 }
 0x362   : > { %11261 = vst [vmem:[#allocation64_spill] sm:$0xff] %v8613_v37 }
 0x364   : > { %v8594_v26 = vpop.permute.xlu1 %3226 }
 0x365   : > { %11257 = vst [vmem:[#allocation60_spill] sm:$0xff] %v8594_v26 }
 0x368   : > { %v1993_v9 = vpop.permute.xlu1 %1992 }
 0x369   : > { %6230 = vmatprep.subr.msk.bf16.mxu1 %vm1343_vm0, %v1993_v9 }
 0x36a   : > { %5778 = vmatpush3.bf16.xpose.msra.mxu1 %v2036_v63  ;;  %v8618_v63 = vpop.permute.xlu0 %2465 }
 0x36b   : > { %11262 = vst [vmem:[#allocation65_spill] sm:$0xff] %v8618_v63 }
 0x36c   : > { %v8601_v2 = vpop.permute.xlu1 %2739 }
 0x36e   : > { %v8624_v35 = vpop.permute.xlu0 %2469 }
 0x36f   : > { %11265 = vst [vmem:[#allocation68_spill] sm:$0xff] %v8624_v35 }
 0x370   : > { %v8605_v29 = vpop.permute.xlu1 %3486 }
 0x374   : > { %v8609_v16 = vpop.permute.xlu1 %2481 }
 0x375   : > { %11259 = vst [vmem:[#allocation62_spill] sm:$0xff] %v8609_v16  ;;  %v8629_v16 = vpop.permute.xlu0 %2473 }
 0x376   : > { %11266 = vst [vmem:[#allocation69_spill] sm:$0xff] %v8629_v16 }
 0x378   : > { %v8611_v26 = vpop.permute.xlu1 %3228 }
 0x379   : > { %11260 = vst [vmem:[#allocation63_spill] sm:$0xff] %v8611_v26  ;;  %v2042_v26 = vsel %vm1343_vm0, %v8497_v23, 0  ;;  %v2045_v23 = vsel %vm1343_vm0, %v8523_v31, 0  ;;  %v2774_v31 = vsel %vm1343_vm0, %v8325_v22, 0 }
 0x37c   : > { %v1995_v52 = vpop.permute.xlu1 %1994 }
 0x37d   : > { %6231 = vmatprep.subr.msk.bf16.mxu1 %vm1343_vm0, %v1995_v52 }
 0x37e   : > { %5780 = vmatpush3.bf16.xpose.msra.mxu1 %v2039_v7  ;;  %v8635_v7 = vpop.permute.xlu0 %3206 }
 0x37f   : > { %11267 = vst [vmem:[#allocation70_spill] sm:$0xff] %v8635_v7 }
 0x380   : > { %v8620_v9 = vpop.permute.xlu1 %2483 }
 0x381   : > { %11263 = vst [vmem:[#allocation66_spill] sm:$0xff] %v8620_v9 }
 0x384   : > { %v8622_v24 = vpop.permute.xlu1 %3230 }
 0x385   : > { %11264 = vst [vmem:[#allocation67_spill] sm:$0xff] %v8622_v24  ;;  %v8639_v24 = vpop.permute.xlu0 %3208 }
 0x386   : > { %11269 = vst [vmem:[#allocation72_spill] sm:$0xff] %v8639_v24  ;;  %v2048_v24 = vsel %vm1343_vm0, %v8529_v58, 0 }
 0x388   : > { %v1997_v36 = vpop.permute.xlu1 %1996 }
 0x389   : > { %6232 = vmatprep.subr.msk.bf16.mxu1 %vm1343_vm0, %v1997_v36  ;;  %v8646_v36 = vpop.permute.xlu0 %3212 }
 0x38a   : > { %5782 = vmatpush3.bf16.xpose.msra.mxu1 %v2042_v26  ;;  %11271 = vst [vmem:[#allocation74_spill] sm:$0xff] %v8646_v36  ;;  %v2780_v36 = vsel %vm1343_vm0, %v8403_v57, 0 }
 0x38c   : > { %v8631_v21 = vpop.permute.xlu1 %2743 }
 0x38d   : > { %v8650_v16 = vpop.permute.xlu0 %3216 }
 0x38e   : > { %11273 = vst [vmem:[#allocation76_spill] sm:$0xff] %v8650_v16 }
 0x390   : > { %v8633_v52 = vpop.permute.xlu1 %3490 }
 0x394   : > { %v8637_v9 = vpop.permute.xlu1 %2485 }
 0x395   : > { %11268 = vst [vmem:[#allocation71_spill] sm:$0xff] %v8637_v9 }
 0x398   : > { %v8641_v35 = vpop.permute.xlu1 %3232 }
 0x399   : > { %11270 = vst [vmem:[#allocation73_spill] sm:$0xff] %v8641_v35  ;;  %v2734_v35 = vpop.permute.xlu0 %2733 }
 0x39c   : > { %v1999_v63 = vpop.permute.xlu1 %1998 }
 0x39d   : > { %6233 = vmatprep.subr.msk.bf16.mxu1 %vm1343_vm0, %v1999_v63 }
 0x39e   : > { %5784 = vmatpush3.bf16.xpose.msra.mxu1 %v2045_v23  ;;  %v8664_v23 = vpop.permute.xlu0 %3480 }
 0x3a0   : > { %v8648_v26 = vpop.permute.xlu1 %2487 }
 0x3a1   : > { %11272 = vst [vmem:[#allocation75_spill] sm:$0xff] %v8648_v26 }
 0x3a4   : > { %v8652_v7 = vpop.permute.xlu1 %3234 }
 0x3a5   : > { %11274 = vst [vmem:[#allocation77_spill] sm:$0xff] %v8652_v7 }
 0x3a8   : > { %v2001_v9 = vpop.permute.xlu1 %2000 }
 0x3a9   : > { %6234 = vmatprep.subr.msk.bf16.mxu1 %vm1343_vm0, %v2001_v9  ;;  %v2777_v9 = vsel %vm1343_vm0, %v8365_v59, 0 }
 0x3aa   : > { %5786 = vmatpush3.bf16.xpose.msra.mxu1 %v2048_v24  ;;  %v2738_v24 = vpop.permute.xlu0 %2737 }
 0x3ab   : > { %6235 = vmatprep.subr.msk.bf16.mxu1 %vm1343_vm0, %v2734_v35 }
 0x3b1   : > { %v8660_v63 = vpop.f32.mrb[16].mxu1  ;;  %5788 = vmatmul.mubr.msk.bf16.vlgmr.msra.gmra.mrb[48].mxu1 %vm1343_vm0, %v8343_v45 }
 0x3b2   : > { %v8666_v7 = vpop.f32.mrb[17].mxu1  ;;  %5789 = vmatprep.mubr.msk.bf16.mxu1 %vm1343_vm0, %v8339_v34  ;;  %5868 = vmatpush3.bf16.xpose.msra.mxu1 %v2774_v31 }
 0x3b3   : > { %v8670_v58 = vpop.f32.mrb[18].mxu1  ;;  %6236 = vmatprep.subr.msk.bf16.mxu1 %vm1343_vm0, %v8573_v10  ;;  %v1529_v35 = vmax.f32 %v8660_v63, %v8666_v7 }
 0x3b4   : > { %v8676_v22 = vpop.f32.mrb[19].mxu1 }
 0x3b5   : > { %v1532_v45 = vmax.f32 %v8670_v58, %v8676_v22  ;;  %1530 = vmax.xlane.f32.xlu0 %v1529_v35 }
 0x3b7   : > { %1533 = vmax.xlane.f32.xlu1 %v1532_v45 }
 0x3b9   : > { %v8682_v31 = vpop.f32.mrb[20].mxu1  ;;  %5790 = vmatmul.mubr.msk.bf16.gmra.mrb[52].mxu1 %vm1343_vm0, %v8339_v34  ;;  %v8699_v34 = vpop.permute.xlu0 %3484 }
 0x3ba   : > { %v8686_v10 = vpop.f32.mrb[21].mxu1  ;;  %5791 = vmatprep.mubr.msk.bf16.mxu1 %vm1343_vm0, %v8385_v54  ;;  %5870 = vmatpush3.bf16.xpose.msra.mxu1 %v2777_v9 }
 0x3bb   : > { %v8690_v16 = vpop.f32.mrb[22].mxu1  ;;  %6237 = vmatprep.subr.msk.bf16.mxu1 %vm1343_vm0, %v2738_v24  ;;  %v1535_v35 = vmax.f32 %v8682_v31, %v8686_v10 }
 0x3bc   : > { %v8695_v45 = vpop.f32.mrb[23].mxu1 }
 0x3bd   : > { %v1538_v59 = vmax.f32 %v8690_v16, %v8695_v45  ;;  %1536 = vmax.xlane.f32.xlu0 %v1535_v35  ;;  %v8717_v57 = vpop.permute.xlu0 %3220 }
 0x3be   : > { %11275 = vst [vmem:[#allocation78_spill] sm:$0xff] %v8717_v57 }
 0x3c1   : > { %5792 = vmatmul.mubr.msk.bf16.gmra.mrb[56].mxu1 %vm1343_vm0, %v8385_v54  ;;  %1539 = vmax.xlane.f32.xlu0 %v1538_v59  ;;  %v8705_v9 = vpop.f32.mrb[24].mxu1  ;;  %v2742_v15 = vpop.permute.xlu0 %2741 }
 0x3c2   : > { %v8707_v24 = vpop.f32.mrb[25].mxu1  ;;  %5793 = vmatprep.mubr.msk.bf16.mxu1 %vm1343_vm0, %v8383_v53  ;;  %5872 = vmatpush3.bf16.xpose.msra.mxu1 %v2780_v36  ;;  %v2783_v36 = vsel %vm1343_vm0, %v8445_v42, 0 }
 0x3c3   : > { %v1541_v35 = vmax.f32 %v8705_v9, %v8707_v24  ;;  %v8713_v26 = vpop.f32.mrb[26].mxu1  ;;  %6238 = vmatprep.subr.msk.bf16.mxu1 %vm1343_vm0, %v8601_v2 }
 0x3c4   : > { %v8719_v54 = vpop.f32.mrb[27].mxu1 }
 0x3c5   : > { %v1544_v59 = vmax.f32 %v8713_v26, %v8719_v54  ;;  %1542 = vmax.xlane.f32.xlu1 %v1541_v35 }
 0x3c7   : > { %1545 = vmax.xlane.f32.xlu0 %v1544_v59 }
 0x3c9   : > { %v8725_v39 = vpop.f32.mrb[28].mxu1  ;;  %5794 = vmatmul.mubr.msk.bf16.gmra.mrb[60].mxu1 %vm1343_vm0, %v8383_v53  ;;  %v2786_v53 = vsel %vm1343_vm0, %v8463_v8, 0  ;;  %v8758_v8 = vpop.permute.xlu0 %3488 }
 0x3ca   : > { %v8729_v40 = vpop.f32.mrb[29].mxu1  ;;  %5795 = vmatprep.mubr.msk.bf16.mxu1 %vm1343_vm0, %v8417_v13  ;;  %5874 = vmatpush3.bf16.xpose.msra.mxu1 %v2783_v36 }
 0x3cb   : > { %v1547_v2 = vmax.f32 %v8725_v39, %v8729_v40  ;;  %v8735_v35 = vpop.f32.mrb[30].mxu1  ;;  %6239 = vmatprep.subr.msk.bf16.mxu1 %vm1343_vm0, %v2742_v15 }
 0x3cc   : > { %v8738_v42 = vpop.f32.mrb[31].mxu1 }
 0x3cd   : > { %v1550_v59 = vmax.f32 %v8735_v35, %v8738_v42  ;;  %1548 = vmax.xlane.f32.xlu1 %v1547_v2  ;;  %v2746_v33 = vpop.permute.xlu0 %2745 }
 0x3cf   : > { %1551 = vmax.xlane.f32.xlu0 %v1550_v59  ;;  %v2789_v59 = vsel %vm1343_vm0, %v8505_v62, 0 }
 0x3d1   : > { %v8744_v57 = vpop.f32.mrb[32].mxu1  ;;  %5796 = vmatmul.mubr.msk.bf16.gmra.mrb[64].mxu1 %vm1343_vm0, %v8417_v13 }
 0x3d2   : > { %v8748_v36 = vpop.f32.mrb[33].mxu1  ;;  %5797 = vmatprep.mubr.msk.bf16.mxu1 %vm1343_vm0, %v8415_v60  ;;  %5876 = vmatpush3.bf16.xpose.msra.mxu1 %v2786_v53 }
 0x3d3   : > { %v1553_v15 = vmax.f32 %v8744_v57, %v8748_v36  ;;  %v8754_v37 = vpop.f32.mrb[34].mxu1  ;;  %6240 = vmatprep.subr.msk.bf16.mxu1 %vm1343_vm0, %v8631_v21 }
 0x3d4   : > { %v8760_v2 = vpop.f32.mrb[35].mxu1 }
 0x3d5   : > { %v1556_v13 = vmax.f32 %v8754_v37, %v8760_v2  ;;  %1554 = vmax.xlane.f32.xlu1 %v1553_v15 }
 0x3d7   : > { %1557 = vmax.xlane.f32.xlu0 %v1556_v13 }
 0x3d9   : > { %v8766_v53 = vpop.f32.mrb[36].mxu1  ;;  %5798 = vmatmul.mubr.msk.bf16.gmra.mrb[68].mxu1 %vm1343_vm0, %v8415_v60  ;;  %v2792_v60 = vsel %vm1343_vm0, %v8483_v20, 0 }
 0x3da   : > { %v8770_v28 = vpop.f32.mrb[37].mxu1  ;;  %5799 = vmatprep.mubr.msk.bf16.mxu1 %vm1343_vm0, %v8465_v19  ;;  %5878 = vmatpush3.bf16.xpose.msra.mxu1 %v2789_v59  ;;  %v2748_v59 = vpop.permute.xlu1 %2747 }
 0x3db   : > { %11276 = vst [vmem:[#allocation79_spill] sm:$0xff] %v8770_v28  ;;  %v1559_v21 = vmax.f32 %v8766_v53, %v8770_v28  ;;  %v8776_v15 = vpop.f32.mrb[38].mxu1  ;;  %6241 = vmatprep.subr.msk.bf16.mxu1 %vm1343_vm0, %v2746_v33 }
 0x3dc   : > { %v8779_v62 = vpop.f32.mrb[39].mxu1 }
 0x3dd   : > { %11277 = vst [vmem:[#allocation80_spill] sm:$0xff] %v8779_v62  ;;  %v1562_v13 = vmax.f32 %v8776_v15, %v8779_v62  ;;  %1560 = vmax.xlane.f32.xlu1 %v1559_v21 }
 0x3df   : > { %1563 = vmax.xlane.f32.xlu0 %v1562_v13 }
 0x3e1   : > { %v8785_v30 = vpop.f32.mrb[40].mxu1  ;;  %5800 = vmatmul.mubr.msk.bf16.gmra.mrb[72].mxu1 %vm1343_vm0, %v8465_v19  ;;  %v2795_v19 = vsel %vm1343_vm0, %v8535_v38, 0 }
 0x3e2   : > { %v8789_v28 = vpop.f32.mrb[41].mxu1  ;;  %5801 = vmatprep.mubr.msk.bf16.mxu1 %vm1343_vm0, %v8443_v27  ;;  %5880 = vmatpush3.bf16.xpose.msra.mxu1 %v2792_v60 }
 0x3e3   : > { %v1565_v33 = vmax.f32 %v8785_v30, %v8789_v28  ;;  %v8795_v21 = vpop.f32.mrb[42].mxu1  ;;  %6242 = vmatprep.subr.msk.bf16.mxu1 %vm1343_vm0, %v2748_v59 }
 0x3e4   : > { %v8798_v20 = vpop.f32.mrb[43].mxu1 }
 0x3e5   : > { %11278 = vst [vmem:[#allocation81_spill] sm:$0xff] %v8798_v20  ;;  %v1568_v13 = vmax.f32 %v8795_v21, %v8798_v20  ;;  %1566 = vmax.xlane.f32.xlu1 %v1565_v33 }
 0x3e7   : > { %1569 = vmax.xlane.f32.xlu0 %v1568_v13 }
 0x3e9   : > { %v8804_v62 = vpop.f32.mrb[44].mxu1  ;;  %5802 = vmatmul.mubr.msk.bf16.gmra.mrb[76].mxu1 %vm1343_vm0, %v8443_v27  ;;  %v3521_v27 = vsel %vm1343_vm0, %v8354_v41, 0  ;;  %v3527_v41 = vsel %vm1343_vm0, %v8423_v3, 0  ;;  %v3495_v3 = vpop.permute.xlu1 %3494 }
 0x3ea   : > { %v8808_v60 = vpop.f32.mrb[45].mxu1  ;;  %5882 = vmatpush3.bf16.xpose.msra.mxu1 %v2795_v19  ;;  %5883 = vmatprep.mubr.msk.bf16.mxu1 %vm1343_vm0, %v8357_v46 }
 0x3eb   : > { %v1571_v59 = vmax.f32 %v8804_v62, %v8808_v60  ;;  %v8814_v20 = vpop.f32.mrb[46].mxu1  ;;  %6243 = vmatprep.subr.msk.bf16.mxu1 %vm1343_vm0, %v8664_v23  ;;  %v3524_v23 = vsel %vm1343_vm0, %v8377_v14, 0  ;;  %v3536_v14 = vsel %vm1343_vm0, %v8517_v47, 0 }
 0x3ec   : > { %v8818_v38 = vpop.f32.mrb[47].mxu1 }
 0x3ed   : > { %v1574_v33 = vmax.f32 %v8814_v20, %v8818_v38  ;;  %1572 = vmax.xlane.f32.xlu1 %v1571_v59 }
 0x3ef   : > { %1575 = vmax.xlane.f32.xlu0 %v1574_v33 }
 0x3f1   : > { %5884 = vmatmul.mubr.msk.bf16.vlgmr.msra.gmra.mrb[80].mxu1 %vm1343_vm0, %v8357_v46  ;;  %v3530_v46 = vsel %vm1343_vm0, %v8457_v11, 0 }
 0x3f2   : > { %5885 = vmatprep.mubr.msk.bf16.mxu1 %vm1343_vm0, %v8363_v49  ;;  %5964 = vmatpush3.bf16.xpose.msra.mxu1 %v3521_v27 }
 0x3f3   : > { %6244 = vmatprep.subr.msk.bf16.mxu1 %vm1343_vm0, %v8575_v32 }
 0x3f9   : > { %5886 = vmatmul.mubr.msk.bf16.gmra.mrb[84].mxu1 %vm1343_vm0, %v8363_v49  ;;  %v3533_v49 = vsel %vm1343_vm0, %v8475_v44, 0 }
 0x3fa   : > { %5887 = vmatprep.mubr.msk.bf16.mxu1 %vm1343_vm0, %v8397_v56  ;;  %5966 = vmatpush3.bf16.xpose.msra.mxu1 %v3524_v23 }
 0x3fb   : > { %6245 = vmatprep.subr.msk.bf16.mxu1 %vm1343_vm0, %v8699_v34 }
 0x401   : > { %5888 = vmatmul.mubr.msk.bf16.gmra.mrb[88].mxu1 %vm1343_vm0, %v8397_v56  ;;  %v3539_v56 = vsel %vm1343_vm0, %v8495_v43, 0 }
 0x402   : > { %5889 = vmatprep.mubr.msk.bf16.mxu1 %vm1343_vm0, %v8395_v61  ;;  %5968 = vmatpush3.bf16.xpose.msra.mxu1 %v3527_v41 }
 0x403   : > { %6246 = vmatprep.subr.msk.bf16.mxu1 %vm1343_vm0, %v8605_v29 }
 0x409   : > { %5890 = vmatmul.mubr.msk.bf16.gmra.mrb[92].mxu1 %vm1343_vm0, %v8395_v61  ;;  %v3493_v61 = vpop.permute.xlu0 %3492 }
 0x40a   : > { %5891 = vmatprep.mubr.msk.bf16.mxu1 %vm1343_vm0, %v8425_v5  ;;  %5970 = vmatpush3.bf16.xpose.msra.mxu1 %v3530_v46 }
 0x40b   : > { %6247 = vmatprep.subr.msk.bf16.mxu1 %vm1343_vm0, %v8758_v8 }
 0x40d   : > { %v8940_v32 = vpop.permute.xlu0 %3953 }
 0x40e   : > { %11279 = vst [vmem:[#allocation82_spill] sm:$0xff] %v8940_v32 }
 0x411   : > { %5892 = vmatmul.mubr.msk.bf16.gmra.mrb[96].mxu1 %vm1343_vm0, %v8425_v5  ;;  %v3542_v5 = vsel %vm1343_vm0, %v8581_v12, 0 }
 0x412   : > { %5893 = vmatprep.mubr.msk.bf16.mxu1 %vm1343_vm0, %v8435_v18  ;;  %5972 = vmatpush3.bf16.xpose.msra.mxu1 %v3533_v49 }
 0x413   : > { %6248 = vmatprep.subr.msk.bf16.mxu1 %vm1343_vm0, %v8633_v52 }
 0x419   : > { %5894 = vmatmul.mubr.msk.bf16.gmra.mrb[100].mxu1 %vm1343_vm0, %v8435_v18 }
 0x41a   : > { %5895 = vmatprep.mubr.msk.bf16.mxu1 %vm1343_vm0, %v8477_v51  ;;  %5974 = vmatpush3.bf16.xpose.msra.mxu1 %v3536_v14 }
 0x41b   : > { %6249 = vmatprep.subr.msk.bf16.mxu1 %vm1343_vm0, %v3493_v61 }
 0x421   : > { %5896 = vmatmul.mubr.msk.bf16.gmra.mrb[104].mxu1 %vm1343_vm0, %v8477_v51 }
 0x422   : > { %5897 = vmatprep.mubr.msk.bf16.mxu1 %vm1343_vm0, %v8455_v17  ;;  %5976 = vmatpush3.bf16.xpose.msra.mxu1 %v3539_v56 }
 0x423   : > { %6250 = vmatprep.subr.msk.bf16.mxu1 %vm1343_vm0, %v3495_v3 }
 0x429   : > { %5898 = vmatmul.mubr.msk.bf16.gmra.mrb[108].mxu1 %vm1343_vm0, %v8455_v17 }
 0x42a   : > { %5978 = vmatpush3.bf16.xpose.msra.mxu1 %v3542_v5  ;;  %5979 = vmatprep.mubr.msk.bf16.mxu1 %vm1343_vm0, %v8586_v50 }
 0x431   : > { %5980 = vmatmul.mubr.msk.bf16.vlgmr.msra.gmra.mrb[112].mxu1 %vm1343_vm0, %v8586_v50 }
 0x432   : > { %5981 = vmatprep.mubr.msk.bf16.mxu1 %vm1343_vm0, %v8503_v25 }
 0x439   : > { %5982 = vmatmul.mubr.msk.bf16.gmra.mrb[116].mxu1 %vm1343_vm0, %v8503_v25 }
 0x43a   : > { %5983 = vmatprep.mubr.msk.bf16.mxu1 %vm1343_vm0, %v8592_v0 }
 0x441   : > { %5984 = vmatmul.mubr.msk.bf16.gmra.mrb[120].mxu1 %vm1343_vm0, %v8592_v0 }
 0x442   : > { %5985 = vmatprep.mubr.msk.bf16.mxu1 %vm1343_vm0, %v8515_v6  ;;  %v1531_v13 = vpop.xlane.xlu0 %1530 }
 0x443   : > { %v1577_v59 = vsub.f32 %v8660_v63, %v1531_v13  ;;  %v1578_v27 = vsub.f32 %v8666_v7, %v1531_v13 }
 0x445   : > { %v1609_v3 = vmul.f32 1.442695, %v1577_v59  ;;  %v1611_v7 = vmul.f32 1.442695, %v1578_v27 }
 0x447   : > { %6519 = vpow2.f32 %v1609_v3 }
 0x448   : > { %6521 = vpow2.f32 %v1611_v7 }
 0x449   : > { %5986 = vmatmul.mubr.msk.bf16.gmra.mrb[124].mxu1 %vm1343_vm0, %v8515_v6 }
 0x44a   : > { %5987 = vmatprep.mubr.msk.bf16.mxu1 %vm1343_vm0, %v8596_v48  ;;  %v1537_v23 = vpop.xlane.xlu0 %1536 }
 0x451   : > { %5988 = vmatmul.mubr.msk.bf16.gmra.mrb[128].mxu1 %vm1343_vm0, %v8596_v48  ;;  %v8992_v7 = vpop.eup %6519 }
 0x452   : > { %5989 = vmatprep.mubr.msk.bf16.mxu1 %vm1343_vm0, %v8521_v55 }
 0x459   : > { %5990 = vmatmul.mubr.msk.bf16.gmra.mrb[132].mxu1 %vm1343_vm0, %v8521_v55 }
 0x45a   : > { %5991 = vmatprep.mubr.msk.bf16.mxu1 %vm1343_vm0, %v8603_v1 }
 0x461   : > { %5992 = vmatmul.mubr.msk.bf16.gmra.mrb[136].mxu1 %vm1343_vm0, %v8603_v1 }
 0x462   : > { %5993 = vmatprep.mubr.msk.bf16.mxu1 %vm1343_vm0, %v8527_v4 }
 0x469   : > { %5994 = vmatmul.mubr.msk.bf16.gmra.mrb[140].mxu1 %vm1343_vm0, %v8527_v4  ;;  %v8936_v4 = vpop.permute.xlu1 %2489 }
 0x46d   : > { %v8948_v52 = vpop.permute.xlu1 %3236 }
 0x46e   : > { %11280 = vst [vmem:[#allocation83_spill] sm:$0xff] %v8948_v52 }
 0x471   : > { %v1534_v19 = vpop.xlane.xlu1 %1533 }
 0x472   : > { %v1579_v46 = vsub.f32 %v8670_v58, %v1534_v19  ;;  %v1580_v61 = vsub.f32 %v8676_v22, %v1534_v19  ;;  %v1581_v58 = vsub.f32 %v8682_v31, %v1537_v23  ;;  %v1582_v22 = vsub.f32 %v8686_v10, %v1537_v23 }
 0x474   : > { %v1613_v5 = vmul.f32 1.442695, %v1579_v46  ;;  %v1617_v31 = vmul.f32 1.442695, %v1581_v58  ;;  %v1619_v10 = vmul.f32 1.442695, %v1582_v22  ;;  %v8999_v58 = vpop.eup %6521 }
 0x475   : > { %v1543_v23 = vpop.xlane.xlu1 %1542 }
 0x476   : > { %6523 = vpow2.f32 %v1613_v5 }
 0x484   : > { %v8912_v12 = vpop.f32.mrb[48].mxu1 }
 0x485   : > { %v8914_v48 = vpop.f32.mrb[49].mxu1 }
 0x486   : > { %v2187_v18 = vmax.f32 %v8912_v12, %v8914_v48  ;;  %v8918_v17 = vpop.f32.mrb[50].mxu1 }
 0x487   : > { %v8920_v11 = vpop.f32.mrb[51].mxu1 }
 0x488   : > { %v2190_v44 = vmax.f32 %v8918_v17, %v8920_v11  ;;  %2188 = vmax.xlane.f32.xlu1 %v2187_v18  ;;  %v1615_v18 = vmul.f32 1.442695, %v1580_v61  ;;  %v1585_v61 = vsub.f32 %v8705_v9, %v1543_v23 }
 0x48a   : > { %2191 = vmax.xlane.f32.xlu0 %v2190_v44  ;;  %v1540_v44 = vpop.xlane.xlu0 %1539  ;;  %6525 = vpow2.f32 %v1615_v18 }
 0x48b   : > { %v1584_v19 = vsub.f32 %v8695_v45, %v1540_v44  ;;  %6527 = vpow2.f32 %v1617_v31  ;;  %v1586_v45 = vsub.f32 %v8707_v24, %v1543_v23  ;;  %v9004_v24 = vpop.eup %6523  ;;  %v1549_v31 = vpop.xlane.xlu1 %1548 }
 0x48c   : > { %v8924_v51 = vpop.f32.mrb[52].mxu1  ;;  %6529 = vpow2.f32 %v1619_v10  ;;  %v1673_v10 = vadd.f32 %v8999_v58, %v8992_v7 }
 0x48d   : > { %v8926_v43 = vpop.f32.mrb[53].mxu1 }
 0x48e   : > { %v2193_v25 = vmax.f32 %v8924_v51, %v8926_v43  ;;  %v8930_v6 = vpop.f32.mrb[54].mxu1 }
 0x48f   : > { %v8932_v47 = vpop.f32.mrb[55].mxu1  ;;  %v1555_v32 = vpop.xlane.xlu1 %1554 }
 0x490   : > { %v2196_v55 = vmax.f32 %v8930_v6, %v8932_v47  ;;  %2194 = vmax.xlane.f32.xlu1 %v2193_v25 }
 0x492   : > { %2197 = vmax.xlane.f32.xlu0 %v2196_v55 }
 0x494   : > { %v8938_v0 = vpop.f32.mrb[56].mxu1 }
 0x495   : > { %v8942_v50 = vpop.f32.mrb[57].mxu1 }
 0x496   : > { %v2199_v1 = vmax.f32 %v8938_v0, %v8942_v50  ;;  %v8946_v29 = vpop.f32.mrb[58].mxu1 }
 0x497   : > { %v8950_v34 = vpop.f32.mrb[59].mxu1 }
 0x498   : > { %v2202_v8 = vmax.f32 %v8946_v29, %v8950_v34  ;;  %2200 = vmax.xlane.f32.xlu1 %v2199_v1  ;;  %v1583_v1 = vsub.f32 %v8690_v16, %v1540_v44  ;;  %v1623_v16 = vmul.f32 1.442695, %v1584_v19  ;;  %v1627_v19 = vmul.f32 1.442695, %v1586_v45 }
 0x49a   : > { %2203 = vmax.xlane.f32.xlu0 %v2202_v8  ;;  %v1621_v46 = vmul.f32 1.442695, %v1583_v1  ;;  %v1625_v1 = vmul.f32 1.442695, %v1585_v61  ;;  %v1590_v61 = vsub.f32 %v8729_v40, %v1549_v31 }
 0x49c   : > { %v8955_v33 = vpop.f32.mrb[60].mxu1  ;;  %6531 = vpow2.f32 %v1621_v46  ;;  %v1589_v46 = vsub.f32 %v8725_v39, %v1549_v31 }
 0x49d   : > { %v8958_v41 = vpop.f32.mrb[61].mxu1  ;;  %6533 = vpow2.f32 %v1623_v16 }
 0x49e   : > { %v2205_v49 = vmax.f32 %v8955_v33, %v8958_v41  ;;  %v8963_v14 = vpop.f32.mrb[62].mxu1  ;;  %6535 = vpow2.f32 %v1625_v1  ;;  %v1633_v31 = vmul.f32 1.442695, %v1589_v46 }
 0x49f   : > { %v8966_v56 = vpop.f32.mrb[63].mxu1  ;;  %6537 = vpow2.f32 %v1627_v19 }
 0x4a0   : > { %v2208_v63 = vmax.f32 %v8963_v14, %v8966_v56  ;;  %2206 = vmax.xlane.f32.xlu1 %v2205_v49  ;;  %v1546_v49 = vpop.xlane.xlu0 %1545 }
 0x4a1   : > { %v1587_v5 = vsub.f32 %v8713_v26, %v1546_v49  ;;  %v1588_v9 = vsub.f32 %v8719_v54, %v1546_v49  ;;  %v9008_v26 = vpop.eup %6525 }
 0x4a2   : > { %2209 = vmax.xlane.f32.xlu0 %v2208_v63  ;;  %v1676_v49 = vadd.f32 %v9008_v26, %v9004_v24 }
 0x4a3   : > { %v1631_v23 = vmul.f32 1.442695, %v1588_v9 }
 0x4a4   : > { %v8971_v25 = vpop.f32.mrb[64].mxu1  ;;  %v1552_v54 = vpop.xlane.xlu0 %1551 }
 0x4a5   : > { %v8974_v55 = vpop.f32.mrb[65].mxu1 }
 0x4a6   : > { %v2211_v8 = vmax.f32 %v8971_v25, %v8974_v55  ;;  %v8979_v13 = vpop.f32.mrb[66].mxu1 }
 0x4a7   : > { %v8982_v59 = vpop.f32.mrb[67].mxu1 }
 0x4a8   : > { %v2214_v27 = vmax.f32 %v8979_v13, %v8982_v59  ;;  %2212 = vmax.xlane.f32.xlu1 %v2211_v8 }
 0x4aa   : > { %2215 = vmax.xlane.f32.xlu0 %v2214_v27  ;;  %v1629_v27 = vmul.f32 1.442695, %v1587_v5  ;;  %v9020_v5 = vpop.eup %6527 }
 0x4ab   : > { %v9027_v1 = vpop.eup %6529 }
 0x4ac   : > { %v8987_v3 = vpop.f32.mrb[68].mxu1  ;;  %6539 = vpow2.f32 %v1629_v27  ;;  %v9032_v40 = vpop.eup %6531 }
 0x4ad   : > { %11281 = vst [vmem:[#allocation84_spill] sm:$0xff] %v8987_v3  ;;  %v8990_v63 = vpop.f32.mrb[69].mxu1  ;;  %6541 = vpow2.f32 %v1631_v23  ;;  %v1679_v23 = vadd.f32 %v9027_v1, %v9020_v5 }
 0x4ae   : > { %11282 = vst [vmem:[#allocation85_spill] sm:$0xff] %v8990_v63  ;;  %v2217_v18 = vmax.f32 %v8987_v3, %v8990_v63  ;;  %v8997_v44 = vpop.f32.mrb[70].mxu1  ;;  %6543 = vpow2.f32 %v1633_v31  ;;  %v11291_v63 = vld [vmem:[#allocation79_spill] sm:$0xff] }
 0x4af   : > { %v9002_v22 = vpop.f32.mrb[71].mxu1 }
 0x4b0   : > { %v2220_v8 = vmax.f32 %v8997_v44, %v9002_v22  ;;  %2218 = vmax.xlane.f32.xlu1 %v2217_v18  ;;  %v1591_v18 = vsub.f32 %v8735_v35, %v1552_v54  ;;  %v9036_v35 = vpop.eup %6533 }
 0x4b2   : > { %2221 = vmax.xlane.f32.xlu0 %v2220_v8  ;;  %v1592_v8 = vsub.f32 %v8738_v42, %v1552_v54  ;;  %v1637_v52 = vmul.f32 1.442695, %v1591_v18  ;;  %v1558_v42 = vpop.xlane.xlu0 %1557  ;;  %v1593_v54 = vsub.f32 %v8744_v57, %v1555_v32  ;;  %v9048_v18 = vpop.eup %6535 }
 0x4b4   : > { %1674 = vadd.xlane.f32.xlu1 %v1673_v10  ;;  %v9013_v16 = vpop.f32.mrb[72].mxu1  ;;  %v1635_v10 = vmul.f32 1.442695, %v1590_v61  ;;  %v1594_v61 = vsub.f32 %v8748_v36, %v1555_v32  ;;  %v1641_v32 = vmul.f32 1.442695, %v1593_v54 }
 0x4b5   : > { %11283 = vst [vmem:[#allocation86_spill] sm:$0xff] %v9013_v16  ;;  %v9018_v45 = vpop.f32.mrb[73].mxu1 }
 0x4b6   : > { %11284 = vst [vmem:[#allocation87_spill] sm:$0xff] %v9018_v45  ;;  %v2223_v9 = vmax.f32 %v9013_v16, %v9018_v45  ;;  %v9025_v39 = vpop.f32.mrb[74].mxu1  ;;  %1677 = vadd.xlane.f32.xlu0 %v1676_v49  ;;  %v1639_v49 = vmul.f32 1.442695, %v1592_v8  ;;  %6545 = vpow2.f32 %v1635_v10  ;;  %v1595_v8 = vsub.f32 %v8754_v37, %v1558_v42 }
 0x4b7   : > { %v9030_v19 = vpop.f32.mrb[75].mxu1  ;;  %6547 = vpow2.f32 %v1637_v52  ;;  %v1596_v10 = vsub.f32 %v8760_v2, %v1558_v42  ;;  %v1564_v2 = vpop.xlane.xlu0 %1563 }
 0x4b8   : > { %11285 = vst [vmem:[#allocation88_spill] sm:$0xff] %v9030_v19  ;;  %v2226_v27 = vmax.f32 %v9025_v39, %v9030_v19  ;;  %2224 = vmax.xlane.f32.xlu1 %v2223_v9  ;;  %v1682_v9 = vadd.f32 %v9036_v35, %v9032_v40  ;;  %6549 = vpow2.f32 %v1639_v49  ;;  %v1645_v16 = vmul.f32 1.442695, %v1595_v8 }
 0x4b9   : > { %6551 = vpow2.f32 %v1641_v32 }
 0x4ba   : > { %2227 = vmax.xlane.f32.xlu0 %v2226_v27  ;;  %v9055_v27 = vpop.eup %6537 }
 0x4bb   : > { %v9060_v36 = vpop.eup %6539  ;;  %v1685_v49 = vadd.f32 %v9055_v27, %v9048_v18 }
 0x4bc   : > { %1680 = vadd.xlane.f32.xlu1 %v1679_v23  ;;  %v9041_v46 = vpop.f32.mrb[76].mxu1  ;;  %v9064_v37 = vpop.eup %6541 }
 0x4bd   : > { %11286 = vst [vmem:[#allocation89_spill] sm:$0xff] %v9041_v46  ;;  %v9046_v45 = vpop.f32.mrb[77].mxu1  ;;  %v9076_v8 = vpop.eup %6543 }
 0x4be   : > { %11287 = vst [vmem:[#allocation90_spill] sm:$0xff] %v9046_v45  ;;  %v2229_v31 = vmax.f32 %v9041_v46, %v9046_v45  ;;  %v9053_v57 = vpop.f32.mrb[78].mxu1  ;;  %1683 = vadd.xlane.f32.xlu0 %v1682_v9  ;;  %v1643_v45 = vmul.f32 1.442695, %v1594_v61  ;;  %v1561_v46 = vpop.xlane.xlu1 %1560  ;;  %v1647_v9 = vmul.f32 1.442695, %v1596_v10  ;;  %v1599_v10 = vsub.f32 %v8776_v15, %v1564_v2 }
 0x4bf   : > { %11288 = vst [vmem:[#allocation91_spill] sm:$0xff] %v9053_v57  ;;  %v9058_v23 = vpop.f32.mrb[79].mxu1  ;;  %v1597_v42 = vsub.f32 %v8766_v53, %v1561_v46  ;;  %v1598_v61 = vsub.f32 %v11291_v63, %v1561_v46 }
 0x4c0   : > { %11289 = vst [vmem:[#allocation92_spill] sm:$0xff] %v9058_v23  ;;  %v2232_v52 = vmax.f32 %v9053_v57, %v9058_v23  ;;  %2230 = vmax.xlane.f32.xlu1 %v2229_v31  ;;  %v1688_v31 = vadd.f32 %v9064_v37, %v9060_v36  ;;  %6553 = vpow2.f32 %v1643_v45  ;;  %v1653_v57 = vmul.f32 1.442695, %v1599_v10 }
 0x4c1   : > { %6555 = vpow2.f32 %v1645_v16  ;;  %v1649_v46 = vmul.f32 1.442695, %v1597_v42 }
 0x4c2   : > { %2233 = vmax.xlane.f32.xlu0 %v2232_v52  ;;  %v9083_v52 = vpop.eup %6545  ;;  %6557 = vpow2.f32 %v1647_v9 }
 0x4c3   : > { %v9088_v63 = vpop.eup %6547  ;;  %v1691_v9 = vadd.f32 %v9083_v52, %v9076_v8  ;;  %6559 = vpow2.f32 %v1649_v46 }
 0x4c4   : > { %1686 = vadd.xlane.f32.xlu1 %v1685_v49  ;;  %v9069_v54 = vpop.f32.mrb[80].mxu1  ;;  %v11294_v49 = vld [vmem:[#allocation80_spill] sm:$0xff]  ;;  %v9092_v15 = vpop.eup %6549 }
 0x4c5   : > { %11290 = vst [vmem:[#allocation93_spill] sm:$0xff] %v9069_v54  ;;  %v9074_v3 = vpop.f32.mrb[81].mxu1  ;;  %v1600_v45 = vsub.f32 %v11294_v49, %v1564_v2  ;;  %v1570_v2 = vpop.xlane.xlu0 %1569 }
 0x4c6   : > { %11292 = vst [vmem:[#allocation79_spill] sm:$0xff] %v9074_v3  ;;  %v2934_v32 = vmax.f32 %v9069_v54, %v9074_v3  ;;  %v9081_v53 = vpop.f32.mrb[82].mxu1  ;;  %1689 = vadd.xlane.f32.xlu0 %v1688_v31  ;;  %v1651_v3 = vmul.f32 1.442695, %v1598_v61  ;;  %v1567_v54 = vpop.xlane.xlu1 %1566 }
 0x4c7   : > { %11293 = vst [vmem:[#allocation94_spill] sm:$0xff] %v9081_v53  ;;  %v9086_v23 = vpop.f32.mrb[83].mxu1  ;;  %v1655_v31 = vmul.f32 1.442695, %v1600_v45  ;;  %v1601_v49 = vsub.f32 %v8785_v30, %v1567_v54  ;;  %v1602_v61 = vsub.f32 %v8789_v28, %v1567_v54  ;;  %v9104_v10 = vpop.eup %6551  ;;  %v1603_v45 = vsub.f32 %v8795_v21, %v1570_v2 }
 0x4c8   : > { %11295 = vst [vmem:[#allocation80_spill] sm:$0xff] %v9086_v23  ;;  %v2937_v16 = vmax.f32 %v9081_v53, %v9086_v23  ;;  %2935 = vmax.xlane.f32.xlu1 %v2934_v32  ;;  %v1694_v32 = vadd.f32 %v9092_v15, %v9088_v63  ;;  %6561 = vpow2.f32 %v1651_v3 }
 0x4c9   : > { %6563 = vpow2.f32 %v1653_v57  ;;  %v1657_v54 = vmul.f32 1.442695, %v1601_v49  ;;  %v1661_v19 = vmul.f32 1.442695, %v1603_v45 }
 0x4ca   : > { %2938 = vmax.xlane.f32.xlu0 %v2937_v16  ;;  %v9111_v16 = vpop.eup %6553  ;;  %6565 = vpow2.f32 %v1655_v31 }
 0x4cb   : > { %v9116_v28 = vpop.eup %6555  ;;  %v1697_v31 = vadd.f32 %v9111_v16, %v9104_v10  ;;  %6567 = vpow2.f32 %v1657_v54 }
 0x4cc   : > { %1692 = vadd.xlane.f32.xlu1 %v1691_v9  ;;  %v9097_v42 = vpop.f32.mrb[84].mxu1  ;;  %v11299_v9 = vld [vmem:[#allocation81_spill] sm:$0xff]  ;;  %v9120_v21 = vpop.eup %6557 }
 0x4cd   : > { %11296 = vst [vmem:[#allocation95_spill] sm:$0xff] %v9097_v42  ;;  %v9102_v23 = vpop.f32.mrb[85].mxu1  ;;  %v1604_v3 = vsub.f32 %v11299_v9, %v1570_v2  ;;  %v1576_v2 = vpop.xlane.xlu0 %1575 }
 0x4ce   : > { %11297 = vst [vmem:[#allocation96_spill] sm:$0xff] %v9102_v23  ;;  %v2940_v46 = vmax.f32 %v9097_v42, %v9102_v23  ;;  %v9109_v30 = vpop.f32.mrb[86].mxu1  ;;  %1695 = vadd.xlane.f32.xlu0 %v1694_v32  ;;  %v1659_v23 = vmul.f32 1.442695, %v1602_v61  ;;  %v1573_v42 = vpop.xlane.xlu1 %1572 }
 0x4cf   : > { %11298 = vst [vmem:[#allocation97_spill] sm:$0xff] %v9109_v30  ;;  %v9114_v53 = vpop.f32.mrb[87].mxu1  ;;  %v1663_v32 = vmul.f32 1.442695, %v1604_v3  ;;  %v1605_v9 = vsub.f32 %v8804_v62, %v1573_v42  ;;  %v1606_v61 = vsub.f32 %v8808_v60, %v1573_v42  ;;  %v9132_v45 = vpop.eup %6559  ;;  %v1607_v3 = vsub.f32 %v8814_v20, %v1576_v2 }
 0x4d0   : > { %11300 = vst [vmem:[#allocation81_spill] sm:$0xff] %v9114_v53  ;;  %v2943_v57 = vmax.f32 %v9109_v30, %v9114_v53  ;;  %2941 = vmax.xlane.f32.xlu1 %v2940_v46  ;;  %v1700_v46 = vadd.f32 %v9120_v21, %v9116_v28  ;;  %6569 = vpow2.f32 %v1659_v23  ;;  %v1608_v23 = vsub.f32 %v8818_v38, %v1576_v2 }
 0x4d1   : > { %6571 = vpow2.f32 %v1661_v19  ;;  %v1665_v42 = vmul.f32 1.442695, %v1605_v9 }
 0x4d2   : > { %2944 = vmax.xlane.f32.xlu0 %v2943_v57  ;;  %v9139_v57 = vpop.eup %6561  ;;  %6573 = vpow2.f32 %v1663_v32  ;;  %v1671_v32 = vmul.f32 1.442695, %v1608_v23 }
 0x4d3   : > { %v9144_v60 = vpop.eup %6563  ;;  %6575 = vpow2.f32 %v1665_v42 }
 0x4d4   : > { %1698 = vadd.xlane.f32.xlu1 %v1697_v31  ;;  %v9125_v49 = vpop.f32.mrb[88].mxu1  ;;  %v9148_v20 = vpop.eup %6565 }
 0x4d5   : > { %11301 = vst [vmem:[#allocation98_spill] sm:$0xff] %v9125_v49  ;;  %v9130_v53 = vpop.f32.mrb[89].mxu1  ;;  %v1706_v2 = vadd.f32 %v9148_v20, %v9144_v60 }
 0x4d6   : > { %11302 = vst [vmem:[#allocation99_spill] sm:$0xff] %v9130_v53  ;;  %v2946_v54 = vmax.f32 %v9125_v49, %v9130_v53  ;;  %v9137_v62 = vpop.f32.mrb[90].mxu1  ;;  %1701 = vadd.xlane.f32.xlu0 %v1700_v46  ;;  %v1667_v53 = vmul.f32 1.442695, %v1606_v61  ;;  %v1669_v49 = vmul.f32 1.442695, %v1607_v3  ;;  %v1703_v46 = vadd.f32 %v9139_v57, %v9132_v45 }
 0x4d7   : > { %11303 = vst [vmem:[#allocation100_spill] sm:$0xff] %v9137_v62  ;;  %v9142_v31 = vpop.f32.mrb[91].mxu1 }
 0x4d8   : > { %11304 = vst [vmem:[#allocation101_spill] sm:$0xff] %v9142_v31  ;;  %v2949_v19 = vmax.f32 %v9137_v62, %v9142_v31  ;;  %2947 = vmax.xlane.f32.xlu1 %v2946_v54  ;;  %6577 = vpow2.f32 %v1667_v53  ;;  %v9158_v54 = vpop.eup %6567 }
 0x4d9   : > { %11307 = vst [vmem:[#allocation104_spill] sm:$0xff] %v9158_v54  ;;  %6579 = vpow2.f32 %v1669_v49 }
 0x4da   : > { %2950 = vmax.xlane.f32.xlu0 %v2949_v19  ;;  %v9164_v23 = vpop.eup %6569  ;;  %6581 = vpow2.f32 %v1671_v32 }
 0x4db   : > { %v9168_v19 = vpop.eup %6571  ;;  %v1709_v49 = vadd.f32 %v9164_v23, %v9158_v54 }
 0x4dc   : > { %1704 = vadd.xlane.f32.xlu1 %v1703_v46  ;;  %v9152_v38 = vpop.f32.mrb[92].mxu1  ;;  %11310 = vst [vmem:[#allocation107_spill] sm:$0xff] %v9168_v19  ;;  %v9172_v46 = vpop.eup %6573 }
 0x4dd   : > { %11305 = vst [vmem:[#allocation102_spill] sm:$0xff] %v9152_v38  ;;  %v9156_v9 = vpop.f32.mrb[93].mxu1  ;;  %v1712_v32 = vadd.f32 %v9172_v46, %v9168_v19 }
 0x4de   : > { %11306 = vst [vmem:[#allocation103_spill] sm:$0xff] %v9156_v9  ;;  %v2952_v61 = vmax.f32 %v9152_v38, %v9156_v9  ;;  %v9162_v3 = vpop.f32.mrb[94].mxu1  ;;  %1707 = vadd.xlane.f32.xlu0 %v1706_v2  ;;  %v9182_v38 = vpop.eup %6575 }
 0x4df   : > { %11308 = vst [vmem:[#allocation105_spill] sm:$0xff] %v9162_v3  ;;  %v9166_v42 = vpop.f32.mrb[95].mxu1  ;;  %11313 = vst [vmem:[#allocation110_spill] sm:$0xff] %v9182_v38 }
 0x4e0   : > { %11309 = vst [vmem:[#allocation106_spill] sm:$0xff] %v9166_v42  ;;  %v2955_v53 = vmax.f32 %v9162_v3, %v9166_v42  ;;  %2953 = vmax.xlane.f32.xlu1 %v2952_v61 }
 0x4e2   : > { %2956 = vmax.xlane.f32.xlu0 %v2955_v53  ;;  %v9188_v53 = vpop.eup %6577 }
 0x4e4   : > { %1710 = vadd.xlane.f32.xlu1 %v1709_v49  ;;  %v9176_v9 = vpop.f32.mrb[96].mxu1  ;;  %v9192_v49 = vpop.eup %6579 }
 0x4e5   : > { %11311 = vst [vmem:[#allocation108_spill] sm:$0xff] %v9176_v9  ;;  %v9180_v2 = vpop.f32.mrb[97].mxu1  ;;  %11316 = vst [vmem:[#allocation113_spill] sm:$0xff] %v9192_v49  ;;  %v9196_v62 = vpop.eup %6581 }
 0x4e6   : > { %11312 = vst [vmem:[#allocation109_spill] sm:$0xff] %v9180_v2  ;;  %v2958_v42 = vmax.f32 %v9176_v9, %v9180_v2  ;;  %v9186_v61 = vpop.f32.mrb[98].mxu1  ;;  %1713 = vadd.xlane.f32.xlu0 %v1712_v32  ;;  %11317 = vst [vmem:[#allocation114_spill] sm:$0xff] %v9196_v62  ;;  %v1715_v2 = vadd.f32 %v9188_v53, %v9182_v38  ;;  %v1718_v32 = vadd.f32 %v9196_v62, %v9192_v49 }
 0x4e7   : > { %11314 = vst [vmem:[#allocation111_spill] sm:$0xff] %v9186_v61  ;;  %v9190_v3 = vpop.f32.mrb[99].mxu1 }
 0x4e8   : > { %11315 = vst [vmem:[#allocation112_spill] sm:$0xff] %v9190_v3  ;;  %v2961_v31 = vmax.f32 %v9186_v61, %v9190_v3 }
 0x4ea   : > { %2962 = vmax.xlane.f32.xlu1 %v2961_v31  ;;  %2959 = vmax.xlane.f32.xlu0 %v2958_v42 }
 0x4ec   : > { %v9198_v30 = vpop.f32.mrb[100].mxu1 }
 0x4ed   : > { %11318 = vst [vmem:[#allocation115_spill] sm:$0xff] %v9198_v30  ;;  %v9204_v9 = vpop.f32.mrb[101].mxu1 }
 0x4ee   : > { %11319 = vst [vmem:[#allocation116_spill] sm:$0xff] %v9204_v9  ;;  %v2964_v19 = vmax.f32 %v9198_v30, %v9204_v9  ;;  %1716 = vadd.xlane.f32.xlu1 %v1715_v2  ;;  %v9208_v54 = vpop.f32.mrb[102].mxu1  ;;  %1719 = vadd.xlane.f32.xlu0 %v1718_v32 }
 0x4ef   : > { %11320 = vst [vmem:[#allocation117_spill] sm:$0xff] %v9208_v54  ;;  %v9210_v3 = vpop.f32.mrb[103].mxu1 }
 0x4f0   : > { %11321 = vst [vmem:[#allocation118_spill] sm:$0xff] %v9210_v3  ;;  %v2967_v31 = vmax.f32 %v9208_v54, %v9210_v3 }
 0x4f2   : > { %2968 = vmax.xlane.f32.xlu1 %v2967_v31  ;;  %2965 = vmax.xlane.f32.xlu0 %v2964_v19 }
 0x4f4   : > { %v9214_v42 = vpop.f32.mrb[104].mxu1 }
 0x4f5   : > { %11322 = vst [vmem:[#allocation119_spill] sm:$0xff] %v9214_v42  ;;  %v9216_v61 = vpop.f32.mrb[105].mxu1 }
 0x4f6   : > { %11323 = vst [vmem:[#allocation120_spill] sm:$0xff] %v9216_v61  ;;  %v2970_v49 = vmax.f32 %v9214_v42, %v9216_v61  ;;  %v9220_v62 = vpop.f32.mrb[106].mxu1 }
 0x4f7   : > { %11324 = vst [vmem:[#allocation121_spill] sm:$0xff] %v9220_v62  ;;  %v9222_v2 = vpop.f32.mrb[107].mxu1 }
 0x4f8   : > { %11325 = vst [vmem:[#allocation122_spill] sm:$0xff] %v9222_v2  ;;  %v2973_v32 = vmax.f32 %v9220_v62, %v9222_v2  ;;  %2971 = vmax.xlane.f32.xlu0 %v2970_v49 }
 0x4fa   : > { %2974 = vmax.xlane.f32.xlu1 %v2973_v32 }
 0x4fc   : > { %v9226_v9 = vpop.f32.mrb[108].mxu1 }
 0x4fd   : > { %11326 = vst [vmem:[#allocation123_spill] sm:$0xff] %v9226_v9  ;;  %v9228_v31 = vpop.f32.mrb[109].mxu1 }
 0x4fe   : > { %11327 = vst [vmem:[#allocation124_spill] sm:$0xff] %v9228_v31  ;;  %v2976_v19 = vmax.f32 %v9226_v9, %v9228_v31  ;;  %v9232_v30 = vpop.f32.mrb[110].mxu1 }
 0x4ff   : > { %11328 = vst [vmem:[#allocation125_spill] sm:$0xff] %v9232_v30  ;;  %v9234_v3 = vpop.f32.mrb[111].mxu1 }
 0x500   : > { %11329 = vst [vmem:[#allocation126_spill] sm:$0xff] %v9234_v3  ;;  %v2979_v61 = vmax.f32 %v9232_v30, %v9234_v3  ;;  %2977 = vmax.xlane.f32.xlu1 %v2976_v19 }
 0x502   : > { %2980 = vmax.xlane.f32.xlu0 %v2979_v61 }
 0x504   : > { %v9238_v42 = vpop.f32.mrb[112].mxu1 }
 0x505   : > { %11330 = vst [vmem:[#allocation127_spill] sm:$0xff] %v9238_v42  ;;  %v9240_v49 = vpop.f32.mrb[113].mxu1 }
 0x506   : > { %11331 = vst [vmem:[#allocation128_spill] sm:$0xff] %v9240_v49  ;;  %v3681_v32 = vmax.f32 %v9238_v42, %v9240_v49  ;;  %v9244_v2 = vpop.f32.mrb[114].mxu1 }
 0x507   : > { %11332 = vst [vmem:[#allocation129_spill] sm:$0xff] %v9244_v2  ;;  %v9246_v62 = vpop.f32.mrb[115].mxu1 }
 0x508   : > { %11333 = vst [vmem:[#allocation130_spill] sm:$0xff] %v9246_v62  ;;  %v3684_v31 = vmax.f32 %v9244_v2, %v9246_v62  ;;  %3682 = vmax.xlane.f32.xlu1 %v3681_v32 }
 0x50a   : > { %3685 = vmax.xlane.f32.xlu0 %v3684_v31 }
 0x50c   : > { %v9250_v9 = vpop.f32.mrb[116].mxu1 }
 0x50d   : > { %11334 = vst [vmem:[#allocation131_spill] sm:$0xff] %v9250_v9  ;;  %v9252_v19 = vpop.f32.mrb[117].mxu1 }
 0x50e   : > { %11335 = vst [vmem:[#allocation132_spill] sm:$0xff] %v9252_v19  ;;  %v3687_v61 = vmax.f32 %v9250_v9, %v9252_v19  ;;  %v9256_v3 = vpop.f32.mrb[118].mxu1 }
 0x50f   : > { %11336 = vst [vmem:[#allocation133_spill] sm:$0xff] %v9256_v3  ;;  %v9258_v30 = vpop.f32.mrb[119].mxu1 }
 0x510   : > { %11337 = vst [vmem:[#allocation134_spill] sm:$0xff] %v9258_v30  ;;  %v3690_v49 = vmax.f32 %v9256_v3, %v9258_v30  ;;  %3688 = vmax.xlane.f32.xlu1 %v3687_v61 }
 0x512   : > { %3691 = vmax.xlane.f32.xlu0 %v3690_v49 }
 0x514   : > { %v9262_v42 = vpop.f32.mrb[120].mxu1 }
 0x515   : > { %11338 = vst [vmem:[#allocation135_spill] sm:$0xff] %v9262_v42  ;;  %v2189_v32 = vpop.xlane.xlu1 %2188  ;;  %v9264_v31 = vpop.f32.mrb[121].mxu1 }
 0x516   : > { %11339 = vst [vmem:[#allocation136_spill] sm:$0xff] %v9264_v31  ;;  %v2235_v62 = vsub.f32 %v8912_v12, %v2189_v32  ;;  %v2236_v2 = vsub.f32 %v8914_v48, %v2189_v32  ;;  %v3693_v19 = vmax.f32 %v9262_v42, %v9264_v31  ;;  %v9270_v9 = vpop.f32.mrb[122].mxu1 }
 0x517   : > { %11340 = vst [vmem:[#allocation137_spill] sm:$0xff] %v9270_v9  ;;  %v9272_v54 = vpop.f32.mrb[123].mxu1  ;;  %v2192_v38 = vpop.xlane.xlu0 %2191 }
 0x518   : > { %11341 = vst [vmem:[#allocation138_spill] sm:$0xff] %v9272_v54  ;;  %v2267_v30 = vmul.f32 1.442695, %v2235_v62  ;;  %v2269_v61 = vmul.f32 1.442695, %v2236_v2  ;;  %v3696_v49 = vmax.f32 %v9270_v9, %v9272_v54  ;;  %v2237_v3 = vsub.f32 %v8918_v17, %v2192_v38  ;;  %3694 = vmax.xlane.f32.xlu1 %v3693_v19 }
 0x519   : > { %v2238_v12 = vsub.f32 %v8920_v11, %v2192_v38 }
 0x51a   : > { %6583 = vpow2.f32 %v2267_v30  ;;  %v2271_v48 = vmul.f32 1.442695, %v2237_v3  ;;  %3697 = vmax.xlane.f32.xlu0 %v3696_v49 }
 0x51b   : > { %6585 = vpow2.f32 %v2269_v61  ;;  %v2273_v32 = vmul.f32 1.442695, %v2238_v12 }
 0x51c   : > { %6587 = vpow2.f32 %v2271_v48  ;;  %v9278_v31 = vpop.f32.mrb[124].mxu1 }
 0x51d   : > { %11342 = vst [vmem:[#allocation139_spill] sm:$0xff] %v9278_v31  ;;  %6589 = vpow2.f32 %v2273_v32  ;;  %v2195_v42 = vpop.xlane.xlu1 %2194  ;;  %v9280_v62 = vpop.f32.mrb[125].mxu1 }
 0x51e   : > { %11343 = vst [vmem:[#allocation140_spill] sm:$0xff] %v9280_v62  ;;  %v2239_v2 = vsub.f32 %v8924_v51, %v2195_v42  ;;  %v2240_v54 = vsub.f32 %v8926_v43, %v2195_v42  ;;  %v3699_v17 = vmax.f32 %v9278_v31, %v9280_v62  ;;  %v9286_v11 = vpop.f32.mrb[126].mxu1 }
 0x51f   : > { %11344 = vst [vmem:[#allocation141_spill] sm:$0xff] %v9286_v11  ;;  %v9288_v30 = vpop.f32.mrb[127].mxu1  ;;  %v2198_v38 = vpop.xlane.xlu0 %2197 }
 0x520   : > { %11345 = vst [vmem:[#allocation142_spill] sm:$0xff] %v9288_v30  ;;  %v2275_v3 = vmul.f32 1.442695, %v2239_v2  ;;  %v2277_v19 = vmul.f32 1.442695, %v2240_v54  ;;  %v3702_v61 = vmax.f32 %v9286_v11, %v9288_v30  ;;  %v2241_v49 = vsub.f32 %v8930_v6, %v2198_v38  ;;  %3700 = vmax.xlane.f32.xlu1 %v3699_v17 }
 0x521   : > { %v2242_v51 = vsub.f32 %v8932_v47, %v2198_v38 }
 0x522   : > { %6591 = vpow2.f32 %v2275_v3  ;;  %3703 = vmax.xlane.f32.xlu0 %v3702_v61  ;;  %v2279_v42 = vmul.f32 1.442695, %v2241_v49 }
 0x523   : > { %6593 = vpow2.f32 %v2277_v19  ;;  %v2281_v32 = vmul.f32 1.442695, %v2242_v51 }
 0x524   : > { %v9294_v43 = vpop.eup %6583  ;;  %v9296_v12 = vpop.f32.mrb[128].mxu1  ;;  %6595 = vpow2.f32 %v2279_v42 }
 0x525   : > { %11346 = vst [vmem:[#allocation143_spill] sm:$0xff] %v9296_v12  ;;  %v9298_v48 = vpop.eup %6585  ;;  %v2201_v54 = vpop.xlane.xlu1 %2200  ;;  %6597 = vpow2.f32 %v2281_v32 }
 0x526   : > { %11347 = vst [vmem:[#allocation144_spill] sm:$0xff] %v9298_v48  ;;  %v9300_v2 = vpop.f32.mrb[129].mxu1  ;;  %v9302_v30 = vpop.eup %6587  ;;  %v2243_v6 = vsub.f32 %v8938_v0, %v2201_v54  ;;  %v2244_v47 = vsub.f32 %v8942_v50, %v2201_v54  ;;  %v2331_v3 = vadd.f32 %v9298_v48, %v9294_v43  ;;  %v11375_v48 = vld [vmem:[#allocation56_spill] sm:$0xff] }
 0x527   : > { %11348 = vst [vmem:[#allocation145_spill] sm:$0xff] %v9300_v2  ;;  %v3705_v17 = vmax.f32 %v9296_v12, %v9300_v2  ;;  %v9308_v38 = vpop.f32.mrb[130].mxu1  ;;  %v9312_v19 = vpop.eup %6589 }
 0x528   : > { %11349 = vst [vmem:[#allocation146_spill] sm:$0xff] %v9308_v38  ;;  %11350 = vst [vmem:[#allocation147_spill] sm:$0xff] %v9312_v19  ;;  %v9314_v61 = vpop.f32.mrb[131].mxu1  ;;  %v2283_v49 = vmul.f32 1.442695, %v2243_v6  ;;  %2332 = vadd.xlane.f32.xlu1 %v2331_v3  ;;  %v2204_v51 = vpop.xlane.xlu0 %2203  ;;  %v2334_v54 = vadd.f32 %v9312_v19, %v9302_v30 }
 0x529   : > { %11351 = vst [vmem:[#allocation148_spill] sm:$0xff] %v9314_v61  ;;  %v3708_v0 = vmax.f32 %v9308_v38, %v9314_v61  ;;  %3706 = vmax.xlane.f32.xlu0 %v3705_v17  ;;  %v2285_v50 = vmul.f32 1.442695, %v2244_v47  ;;  %v2245_v2 = vsub.f32 %v8946_v29, %v2204_v51  ;;  %v2246_v6 = vsub.f32 %v8950_v34, %v2204_v51 }
 0x52a   : > { %6599 = vpow2.f32 %v2283_v49 }
 0x52b   : > { %6601 = vpow2.f32 %v2285_v50  ;;  %v2289_v34 = vmul.f32 1.442695, %v2246_v6 }
 0x52c   : > { %v9320_v11 = vpop.eup %6591  ;;  %3709 = vmax.xlane.f32.xlu1 %v3708_v0  ;;  %v9323_v12 = vpop.f32.mrb[132].mxu1  ;;  %v2287_v0 = vmul.f32 1.442695, %v2245_v2 }
 0x52d   : > { %11352 = vst [vmem:[#allocation149_spill] sm:$0xff] %v9320_v11  ;;  %11353 = vst [vmem:[#allocation150_spill] sm:$0xff] %v9323_v12  ;;  %2335 = vadd.xlane.f32.xlu0 %v2334_v54  ;;  %v9325_v42 = vpop.eup %6593  ;;  %v2207_v32 = vpop.xlane.xlu1 %2206 }
 0x52e   : > { %11354 = vst [vmem:[#allocation151_spill] sm:$0xff] %v9325_v42  ;;  %v9328_v47 = vpop.f32.mrb[133].mxu1  ;;  %v2337_v29 = vadd.f32 %v9325_v42, %v9320_v11  ;;  %v2247_v54 = vsub.f32 %v8955_v33, %v2207_v32  ;;  %v2248_v51 = vsub.f32 %v8958_v41, %v2207_v32  ;;  %v9342_v61 = vpop.eup %6595  ;;  %6603 = vpow2.f32 %v2287_v0 }
 0x52f   : > { %11355 = vst [vmem:[#allocation152_spill] sm:$0xff] %v9328_v47  ;;  %v3711_v17 = vmax.f32 %v9323_v12, %v9328_v47  ;;  %v9332_v3 = vpop.f32.mrb[134].mxu1  ;;  %11358 = vst [vmem:[#allocation155_spill] sm:$0xff] %v9342_v61  ;;  %v9344_v38 = vpop.eup %6597  ;;  %6605 = vpow2.f32 %v2289_v34 }
 0x530   : > { %11356 = vst [vmem:[#allocation153_spill] sm:$0xff] %v9332_v3  ;;  %v9336_v49 = vpop.f32.mrb[135].mxu1  ;;  %11359 = vst [vmem:[#allocation156_spill] sm:$0xff] %v9344_v38  ;;  %v2291_v47 = vmul.f32 1.442695, %v2247_v54  ;;  %v2340_v32 = vadd.f32 %v9344_v38, %v9342_v61  ;;  %v9360_v0 = vpop.xlane.xlu0 %2209 }
 0x531   : > { %11357 = vst [vmem:[#allocation154_spill] sm:$0xff] %v9336_v49  ;;  %v3714_v50 = vmax.f32 %v9332_v3, %v9336_v49  ;;  %2338 = vadd.xlane.f32.xlu0 %v2337_v29  ;;  %v2293_v2 = vmul.f32 1.442695, %v2248_v51 }
 0x532   : > { %6607 = vpow2.f32 %v2291_v47 }
 0x533   : > { %3715 = vmax.xlane.f32.xlu1 %v3714_v50  ;;  %6609 = vpow2.f32 %v2293_v2 }
 0x534   : > { %v9346_v12 = vpop.f32.mrb[136].mxu1  ;;  %v9350_v62 = vpop.eup %6599 }
 0x535   : > { %11360 = vst [vmem:[#allocation157_spill] sm:$0xff] %v9346_v12  ;;  %3712 = vmax.xlane.f32.xlu0 %v3711_v17  ;;  %v9348_v33 = vpop.f32.mrb[137].mxu1  ;;  %11362 = vst [vmem:[#allocation159_spill] sm:$0xff] %v9350_v62  ;;  %v9358_v29 = vpop.eup %6601 }
 0x536   : > { %11361 = vst [vmem:[#allocation158_spill] sm:$0xff] %v9348_v33  ;;  %v3717_v6 = vmax.f32 %v9346_v12, %v9348_v33  ;;  %v9354_v41 = vpop.f32.mrb[138].mxu1  ;;  %11364 = vst [vmem:[#allocation161_spill] sm:$0xff] %v9358_v29  ;;  %v9366_v50 = vpop.xlane.xlu1 %2212  ;;  %v2343_v34 = vadd.f32 %v9358_v29, %v9350_v62 }
 0x537   : > { %11363 = vst [vmem:[#allocation160_spill] sm:$0xff] %v9354_v41  ;;  %v9362_v54 = vpop.f32.mrb[139].mxu1  ;;  %v9370_v51 = vpop.xlane.xlu0 %2215 }
 0x538   : > { %11365 = vst [vmem:[#allocation162_spill] sm:$0xff] %v9362_v54  ;;  %v3720_v17 = vmax.f32 %v9354_v41, %v9362_v54  ;;  %v9378_v47 = vpop.eup %6603 }
 0x539   : > { %2341 = vadd.xlane.f32.xlu0 %v2340_v32  ;;  %11368 = vst [vmem:[#allocation165_spill] sm:$0xff] %v9378_v47 }
 0x53a   : > { %3721 = vmax.xlane.f32.xlu1 %v3720_v17  ;;  %v9384_v17 = vpop.eup %6605 }
 0x53b   : > { %11369 = vst [vmem:[#allocation166_spill] sm:$0xff] %v9384_v17  ;;  %v2346_v9 = vadd.f32 %v9384_v17, %v9378_v47 }
 0x53c   : > { %v9372_v33 = vpop.f32.mrb[140].mxu1  ;;  %v9392_v31 = vpop.eup %6607 }
 0x53d   : > { %11366 = vst [vmem:[#allocation163_spill] sm:$0xff] %v9372_v33  ;;  %2344 = vadd.xlane.f32.xlu0 %v2343_v34  ;;  %v9374_v12 = vpop.xlane.xlu1 %2218  ;;  %v9376_v49 = vpop.f32.mrb[141].mxu1  ;;  %11370 = vst [vmem:[#allocation167_spill] sm:$0xff] %v9392_v31 }
 0x53e   : > { %11367 = vst [vmem:[#allocation164_spill] sm:$0xff] %v9376_v49  ;;  %v3723_v2 = vmax.f32 %v9372_v33, %v9376_v49  ;;  %v9382_v32 = vpop.f32.mrb[142].mxu1  ;;  %v9396_v49 = vpop.eup %6609 }
 0x53f   : > { %v9386_v54 = vpop.f32.mrb[143].mxu1  ;;  %v9388_v41 = vpop.xlane.xlu0 %2221  ;;  %11371 = vst [vmem:[#allocation168_spill] sm:$0xff] %v9396_v49  ;;  %v2349_v29 = vadd.f32 %v9396_v49, %v9392_v31 }
 0x540   : > { %3724 = vmax.xlane.f32.xlu1 %v3723_v2 }
 0x541   : > { %3718 = vmax.xlane.f32.xlu0 %v3717_v6  ;;  %v1675_v3 = vpop.xlane.xlu1 %1674 }
 0x542   : > { %6611 = vrcp.f32 %v1675_v3  ;;  %v11373_v3 = vld [vmem:[#allocation42_spill] sm:$0xff] }
 0x543   : > { %v1678_v33 = vpop.xlane.xlu0 %1677 }
 0x544   : > { %6613 = vrcp.f32 %v1678_v33 }
 0x545   : > { %2347 = vadd.xlane.f32.xlu0 %v2346_v9  ;;  %v9398_v62 = vpop.xlane.xlu1 %2224 }
 0x547   : > { %v9402_v34 = vpop.xlane.xlu0 %2227 }
 0x549   : > { %2350 = vadd.xlane.f32.xlu0 %v2349_v29  ;;  %v1681_v6 = vpop.xlane.xlu1 %1680 }
 0x54a   : > { %6615 = vrcp.f32 %v1681_v6 }
 0x54b   : > { %v1684_v2 = vpop.xlane.xlu0 %1683 }
 0x54c   : > { %6617 = vrcp.f32 %v1684_v2  ;;  %v6612_v17 = vpop.eup %6611 }
 0x54d   : > { %v9404_v61 = vpop.xlane.xlu1 %2230  ;;  %v1737_v31 = vmul.f32 %v6612_v17, %v8992_v7  ;;  %v1738_v29 = vmul.f32 %v6612_v17, %v8999_v58  ;;  %v11374_v7 = vld [vmem:[#allocation61_spill] sm:$0xff] }
 0x54e   : > { %11372 = vst [vmem:[#allocation169_spill] sm:$0xff] %v9404_v61  ;;  %v6614_v9 = vpop.eup %6613 }
 0x54f   : > { %v9406_v47 = vpop.xlane.xlu0 %2233  ;;  %v1739_v33 = vmul.f32 %v6614_v9, %v9004_v24  ;;  %v1740_v49 = vmul.f32 %v6614_v9, %v9008_v26  ;;  %v11376_v9 = vld [vmem:[#allocation64_spill] sm:$0xff] }
 0x551   : > { %v1687_v11 = vpop.xlane.xlu1 %1686  ;;  %3971 = vrot.lane.b32.xlu1 %v11373_v3, %s7399_s19  ;;  %v1769_v42 = vpack.c.bf16 %v1739_v33, %v1737_v31  ;;  %v1770_v6 = vpack.c.bf16 %v1740_v49, %v1738_v29 }
 0x552   : > { %6619 = vrcp.f32 %v1687_v11 }
 0x553   : > { %v1690_v38 = vpop.xlane.xlu0 %1689  ;;  %1817 = vmatprep.mubr.bf16.mxu0 %v1770_v6  ;;  %v11380_v6 = vld [vmem:[#allocation62_spill] sm:$0xff] }
 0x554   : > { %6621 = vrcp.f32 %v1690_v38  ;;  %v6616_v19 = vpop.eup %6615  ;;  %1818 = vmatmul.mubr.bf16.vlgmr.msra.gmra.mrb[64].mxu0 %v1769_v42  ;;  %v2251_v38 = vsub.f32 %v8971_v25, %v9366_v50  ;;  %v2252_v42 = vsub.f32 %v8974_v55, %v9366_v50  ;;  %v11379_v50 = vld [vmem:[#allocation49_spill] sm:$0xff] }
 0x555   : > { %v9414_v2 = vpop.xlane.xlu1 %2935  ;;  %5804 = vmatpush3.bf16.msra.mxu0 %v11374_v7  ;;  %v1742_v58 = vmul.f32 %v6616_v19, %v9027_v1  ;;  %v1741_v49 = vmul.f32 %v6616_v19, %v9020_v5  ;;  %v11377_v1 = vld [vmem:[#allocation59_spill] sm:$0xff] }
 0x556   : > { %v6618_v3 = vpop.eup %6617  ;;  %5805 = vmatprep.subr.bf16.mxu0 %v11375_v48  ;;  %v11378_v5 = vld [vmem:[#allocation35_spill] sm:$0xff]  ;;  %v2301_v55 = vmul.f32 1.442695, %v2252_v42 }
 0x557   : > { %v9416_v61 = vpop.xlane.xlu0 %2938  ;;  %v1744_v26 = vmul.f32 %v6618_v3, %v9036_v35  ;;  %v1743_v11 = vmul.f32 %v6618_v3, %v9032_v40  ;;  %v2299_v35 = vmul.f32 1.442695, %v2251_v38  ;;  %v11381_v38 = vld [vmem:[#allocation65_spill] sm:$0xff] }
 0x559   : > { %v1693_v24 = vpop.xlane.xlu1 %1692  ;;  %v1772_v17 = vpack.c.bf16 %v1744_v26, %v1742_v58  ;;  %5806 = vmatpush3.bf16.msra.mxu0 %v11376_v9  ;;  %v1771_v33 = vpack.c.bf16 %v1743_v11, %v1741_v49  ;;  %v2250_v11 = vsub.f32 %v8966_v56, %v9360_v0 }
 0x55a   : > { %6623 = vrcp.f32 %v1693_v24  ;;  %5807 = vmatprep.subr.bf16.mxu0 %v11377_v1 }
 0x55b   : > { %v1696_v31 = vpop.xlane.xlu0 %1695  ;;  %1825 = vmatprep.mubr.bf16.mxu0 %v1772_v17  ;;  %v2297_v9 = vmul.f32 1.442695, %v2250_v11  ;;  %v2258_v11 = vsub.f32 %v9002_v22, %v9388_v41 }
 0x55c   : > { %6625 = vrcp.f32 %v1696_v31  ;;  %v6620_v25 = vpop.eup %6619  ;;  %1826 = vmatmul.mubr.bf16.gmra.mrb[68].mxu0 %v1771_v33  ;;  %v2249_v31 = vsub.f32 %v8963_v14, %v9360_v0  ;;  %v11383_v33 = vld [vmem:[#allocation50_spill] sm:$0xff]  ;;  %v11384_v0 = vld [vmem:[#allocation71_spill] sm:$0xff] }
 0x55d   : > { %v9429_v48 = vpop.xlane.xlu1 %2941  ;;  %5808 = vmatpush3.bf16.msra.mxu0 %v11379_v50  ;;  %v1746_v3 = vmul.f32 %v6620_v25, %v9055_v27  ;;  %v1745_v58 = vmul.f32 %v6620_v25, %v9048_v18  ;;  %6627 = vpow2.f32 %v2299_v35 }
 0x55e   : > { %v6622_v19 = vpop.eup %6621  ;;  %5809 = vmatprep.subr.bf16.mxu0 %v11380_v6  ;;  %6629 = vpow2.f32 %v2301_v55  ;;  %v2295_v14 = vmul.f32 1.442695, %v2249_v31  ;;  %v2253_v55 = vsub.f32 %v8979_v13, %v9370_v51  ;;  %v11385_v6 = vld [vmem:[#allocation68_spill] sm:$0xff] }
 0x55f   : > { %3955 = vrot.lane.b32.xlu0 %v11378_v5, %s7399_s19  ;;  %v9434_v40 = vpop.xlane.xlu0 %2944  ;;  %v1748_v7 = vmul.f32 %v6622_v19, %v9064_v37  ;;  %v1747_v26 = vmul.f32 %v6622_v19, %v9060_v36  ;;  %v11382_v37 = vld [vmem:[#allocation66_spill] sm:$0xff] }
 0x561   : > { %v1699_v29 = vpop.xlane.xlu1 %1698  ;;  %v1774_v49 = vpack.c.bf16 %v1748_v7, %v1746_v3  ;;  %5810 = vmatpush3.bf16.msra.mxu0 %v11381_v38  ;;  %v1773_v17 = vpack.c.bf16 %v1747_v26, %v1745_v58  ;;  %v11387_v58 = vld [vmem:[#allocation51_spill] sm:$0xff]  ;;  %v2257_v26 = vsub.f32 %v8997_v44, %v9388_v41 }
 0x562   : > { %6631 = vrcp.f32 %v1699_v29  ;;  %5811 = vmatprep.subr.bf16.mxu0 %v11382_v37  ;;  %v2254_v29 = vsub.f32 %v8982_v59, %v9370_v51 }
 0x563   : > { %v1702_v24 = vpop.xlane.xlu0 %1701  ;;  %1833 = vmatprep.mubr.bf16.mxu0 %v1774_v49 }
 0x564   : > { %6633 = vrcp.f32 %v1702_v24  ;;  %v6624_v36 = vpop.eup %6623  ;;  %1834 = vmatmul.mubr.bf16.gmra.mrb[72].mxu0 %v1773_v17  ;;  %v2303_v24 = vmul.f32 1.442695, %v2253_v55  ;;  %v2305_v51 = vmul.f32 1.442695, %v2254_v29 }
 0x565   : > { %v9447_v27 = vpop.xlane.xlu1 %2947  ;;  %5812 = vmatpush3.bf16.msra.mxu0 %v11383_v33  ;;  %v1750_v1 = vmul.f32 %v6624_v36, %v9083_v52  ;;  %v1749_v35 = vmul.f32 %v6624_v36, %v9076_v8  ;;  %6635 = vpow2.f32 %v2295_v14  ;;  %v11386_v8 = vld [vmem:[#allocation75_spill] sm:$0xff] }
 0x566   : > { %v6626_v42 = vpop.eup %6625  ;;  %5813 = vmatprep.subr.bf16.mxu0 %v11384_v0  ;;  %6637 = vpow2.f32 %v2297_v9  ;;  %v11391_v33 = vld [vmem:[#allocation55_spill] sm:$0xff]  ;;  %v11392_v0 = vld [vmem:[#allocation92_spill] sm:$0xff] }
 0x567   : > { %v9450_v18 = vpop.xlane.xlu0 %2950  ;;  %v1752_v5 = vmul.f32 %v6626_v42, %v9092_v15  ;;  %v1751_v19 = vmul.f32 %v6626_v42, %v9088_v63  ;;  %v9465_v15 = vpop.eup %6627  ;;  %v11389_v42 = vld [vmem:[#allocation69_spill] sm:$0xff] }
 0x568   : > { %v9468_v63 = vpop.eup %6629 }
 0x569   : > { %v1705_v56 = vpop.xlane.xlu1 %1704  ;;  %v1776_v50 = vpack.c.bf16 %v1752_v5, %v1750_v1  ;;  %5814 = vmatpush3.bf16.msra.mxu0 %v11385_v6  ;;  %v1775_v3 = vpack.c.bf16 %v1751_v19, %v1749_v35  ;;  %v2355_v14 = vadd.f32 %v9468_v63, %v9465_v15 }
 0x56a   : > { %6639 = vrcp.f32 %v1705_v56  ;;  %5815 = vmatprep.subr.bf16.mxu0 %v11386_v8  ;;  %v2313_v56 = vmul.f32 1.442695, %v2258_v11 }
 0x56b   : > { %v1708_v25 = vpop.xlane.xlu0 %1707  ;;  %1841 = vmatprep.mubr.bf16.mxu0 %v1776_v50 }
 0x56c   : > { %6641 = vrcp.f32 %v1708_v25  ;;  %v6632_v7 = vpop.eup %6631  ;;  %1842 = vmatmul.mubr.bf16.gmra.mrb[76].mxu0 %v1775_v3 }
 0x56d   : > { %v9463_v52 = vpop.xlane.xlu1 %2953  ;;  %5816 = vmatpush3.bf16.msra.mxu0 %v11387_v58  ;;  %v1754_v31 = vmul.f32 %v6632_v7, %v9111_v16  ;;  %v1753_v37 = vmul.f32 %v6632_v7, %v9104_v10  ;;  %6643 = vpow2.f32 %v2303_v24  ;;  %v11388_v16 = vld [vmem:[#allocation88_spill] sm:$0xff]  ;;  %v2311_v10 = vmul.f32 1.442695, %v2257_v26 }
 0x56e   : > { %v6634_v59 = vpop.eup %6633  ;;  %5817 = vmatprep.subr.bf16.mxu0 %v8936_v4  ;;  %v2261_v4 = vsub.f32 %v9025_v39, %v9402_v34  ;;  %6645 = vpow2.f32 %v2305_v51 }
 0x56f   : > { %v9470_v13 = vpop.xlane.xlu0 %2956  ;;  %v1756_v49 = vmul.f32 %v6634_v59, %v9120_v21  ;;  %v1755_v36 = vmul.f32 %v6634_v59, %v9116_v28  ;;  %v2262_v21 = vsub.f32 %v11388_v16, %v9402_v34  ;;  %v9489_v41 = vpop.eup %6635  ;;  %v11390_v28 = vld [vmem:[#allocation91_spill] sm:$0xff]  ;;  %v2266_v34 = vsub.f32 %v11392_v0, %v9406_v47 }
 0x570   : > { %v2265_v9 = vsub.f32 %v11390_v28, %v9406_v47  ;;  %v9494_v39 = vpop.eup %6637  ;;  %v2319_v25 = vmul.f32 1.442695, %v2261_v4 }
 0x571   : > { %v1711_v38 = vpop.xlane.xlu1 %1710  ;;  %v1778_v44 = vpack.c.bf16 %v1756_v49, %v1754_v31  ;;  %5818 = vmatpush3.bf16.msra.mxu0 %v11389_v42  ;;  %v1777_v22 = vpack.c.bf16 %v1755_v36, %v1753_v37  ;;  %v2321_v55 = vmul.f32 1.442695, %v2262_v21  ;;  %v2329_v3 = vmul.f32 1.442695, %v2266_v34  ;;  %v11398_v21 = vld [vmem:[#allocation104_spill] sm:$0xff] }
 0x572   : > { %6647 = vrcp.f32 %v1711_v38  ;;  %5899 = vmatprep.subr.bf16.mxu0 %v11391_v33  ;;  %v2327_v50 = vmul.f32 1.442695, %v2265_v9  ;;  %v2352_v24 = vadd.f32 %v9494_v39, %v9489_v41  ;;  %v11396_v36 = vmax.f32 %v9382_v32, %v9386_v54 }
 0x573   : > { %v1714_v17 = vpop.xlane.xlu0 %1713  ;;  %1849 = vmatprep.mubr.bf16.mxu0 %v1778_v44 }
 0x574   : > { %6649 = vrcp.f32 %v1714_v17  ;;  %v6640_v5 = vpop.eup %6639  ;;  %1850 = vmatmul.mubr.bf16.gmra.mrb[80].mxu0 %v1777_v22  ;;  %v11395_v17 = vld [vmem:[#allocation95_spill] sm:$0xff] }
 0x575   : > { %2356 = vadd.xlane.f32.xlu1 %v2355_v14  ;;  %6651 = vpow2.f32 %v2311_v10  ;;  %v1758_v29 = vmul.f32 %v6640_v5, %v9139_v57  ;;  %v1757_v47 = vmul.f32 %v6640_v5, %v9132_v45  ;;  %v11393_v57 = vld [vmem:[#allocation94_spill] sm:$0xff]  ;;  %v2986_v37 = vsub.f32 %v11395_v17, %v9429_v48  ;;  %v11399_v22 = vld [vmem:[#allocation107_spill] sm:$0xff]  ;;  %v11401_v5 = vld [vmem:[#allocation81_spill] sm:$0xff] }
 0x576   : > { %v6642_v19 = vpop.eup %6641  ;;  %6653 = vpow2.f32 %v2313_v56 }
 0x577   : > { %v9498_v1 = vpop.xlane.xlu1 %2962  ;;  %v9500_v35 = vpop.xlane.xlu0 %2959  ;;  %v1760_v6 = vmul.f32 %v6642_v19, %v9148_v20  ;;  %v1759_v8 = vmul.f32 %v6642_v19, %v9144_v60  ;;  %6655 = vpow2.f32 %v2319_v25  ;;  %v2984_v20 = vsub.f32 %v11393_v57, %v9416_v61  ;;  %v11394_v60 = vld [vmem:[#allocation80_spill] sm:$0xff] }
 0x578   : > { %6657 = vpow2.f32 %v2321_v55  ;;  %v9508_v58 = vpop.eup %6643  ;;  %v2985_v31 = vsub.f32 %v11394_v60, %v9416_v61  ;;  %v11397_v61 = vld [vmem:[#allocation96_spill] sm:$0xff]  ;;  %v2989_v25 = vsub.f32 %v11401_v5, %v9434_v40  ;;  %v11413_v5 = vld [vmem:[#allocation85_spill] sm:$0xff] }
 0x579   : > { %v1780_v7 = vpack.c.bf16 %v1760_v6, %v1758_v29  ;;  %v1779_v51 = vpack.c.bf16 %v1759_v8, %v1757_v47  ;;  %6659 = vpow2.f32 %v2327_v50  ;;  %v9512_v45 = vpop.eup %6645  ;;  %v3018_v38 = vmul.f32 1.442695, %v2984_v20  ;;  %v11402_v50 = vld [vmem:[#allocation43_spill] sm:$0xff] }
 0x57a   : > { %6661 = vpow2.f32 %v2329_v3  ;;  %v3020_v44 = vmul.f32 1.442695, %v2985_v31  ;;  %v2987_v16 = vsub.f32 %v11397_v61, %v9429_v48  ;;  %v2358_v33 = vadd.f32 %v9512_v45, %v9508_v58  ;;  %v11406_v31 = vld [vmem:[#allocation114_spill] sm:$0xff] }
 0x57b   : > { %v1717_v59 = vpop.xlane.xlu1 %1716  ;;  %1857 = vmatprep.mubr.bf16.mxu0 %v1780_v7  ;;  %v1720_v26 = vpop.xlane.xlu0 %1719  ;;  %v3022_v48 = vmul.f32 1.442695, %v2986_v37  ;;  %v11403_v7 = vld [vmem:[#allocation98_spill] sm:$0xff] }
 0x57c   : > { %v6648_v49 = vpop.eup %6647  ;;  %6663 = vrcp.f32 %v1717_v59  ;;  %1858 = vmatmul.mubr.bf16.gmra.mrb[84].mxu0 %v1779_v51  ;;  %v3024_v55 = vmul.f32 1.442695, %v2987_v16  ;;  %v11404_v51 = vld [vmem:[#allocation99_spill] sm:$0xff] }
 0x57d   : > { %6665 = vrcp.f32 %v1720_v26  ;;  %v1762_v14 = vmul.f32 %v6648_v49, %v9164_v23  ;;  %v1761_v42 = vmul.f32 %v6648_v49, %v11398_v21  ;;  %v11400_v23 = vld [vmem:[#allocation97_spill] sm:$0xff]  ;;  %v2991_v57 = vsub.f32 %v11404_v51, %v9447_v27  ;;  %v11405_v26 = vld [vmem:[#allocation110_spill] sm:$0xff] }
 0x57e   : > { %2353 = vadd.xlane.f32.xlu0 %v2352_v24  ;;  %v6650_v11 = vpop.eup %6649  ;;  %v2988_v0 = vsub.f32 %v11400_v23, %v9434_v40  ;;  %6667 = vpow2.f32 %v3018_v38  ;;  %v3028_v40 = vmul.f32 1.442695, %v2989_v25  ;;  %v2990_v24 = vsub.f32 %v11403_v7, %v9447_v27 }
 0x57f   : > { %v1764_v4 = vmul.f32 %v6650_v11, %v9172_v46  ;;  %v1763_v10 = vmul.f32 %v6650_v11, %v11399_v22  ;;  %v9527_v28 = vpop.eup %6651  ;;  %6669 = vpow2.f32 %v3020_v44  ;;  %v11407_v11 = vld [vmem:[#allocation113_spill] sm:$0xff]  ;;  %v3032_v27 = vmul.f32 1.442695, %v2991_v57  ;;  %v11410_v22 = vld [vmem:[#allocation84_spill] sm:$0xff] }
 0x580   : > { %v9531_v56 = vpop.eup %6653  ;;  %v3026_v47 = vmul.f32 1.442695, %v2988_v0  ;;  %6671 = vpow2.f32 %v3022_v48  ;;  %v3030_v37 = vmul.f32 1.442695, %v2990_v24  ;;  %v11412_v0 = vld [vmem:[#allocation103_spill] sm:$0xff]  ;;  %v2256_v25 = vsub.f32 %v11413_v5, %v9374_v12  ;;  %v11415_v24 = vld [vmem:[#allocation106_spill] sm:$0xff] }
 0x581   : > { %v1782_v9 = vpack.c.bf16 %v1764_v4, %v1762_v14  ;;  %v1781_v46 = vpack.c.bf16 %v1763_v10, %v1761_v42  ;;  %v9535_v34 = vpop.eup %6655  ;;  %v2364_v6 = vadd.f32 %v9531_v56, %v9527_v28  ;;  %6673 = vpow2.f32 %v3024_v55 }
 0x582   : > { %3727 = vmax.xlane.f32.xlu0 %v11396_v36  ;;  %v9539_v19 = vpop.eup %6657  ;;  %6675 = vpow2.f32 %v3026_v47  ;;  %v11408_v36 = vld [vmem:[#allocation100_spill] sm:$0xff]  ;;  %v2255_v10 = vsub.f32 %v11410_v22, %v9374_v12  ;;  %v2309_v12 = vmul.f32 1.442695, %v2256_v25  ;;  %v11421_v25 = vld [vmem:[#allocation122_spill] sm:$0xff] }
 0x583   : > { %1865 = vmatprep.mubr.bf16.mxu0 %v1782_v9  ;;  %v9543_v29 = vpop.eup %6659  ;;  %v2370_v17 = vadd.f32 %v9539_v19, %v9535_v34  ;;  %v2992_v14 = vsub.f32 %v11408_v36, %v9450_v18  ;;  %6677 = vpow2.f32 %v3028_v40 }
 0x584   : > { %1866 = vmatmul.mubr.bf16.gmra.mrb[88].mxu0 %v1781_v46  ;;  %v9547_v3 = vpop.eup %6661  ;;  %6679 = vpow2.f32 %v3030_v37  ;;  %v2995_v46 = vsub.f32 %v11412_v0, %v9463_v52 }
 0x585   : > { %v2376_v21 = vadd.f32 %v9547_v3, %v9543_v29  ;;  %v3034_v9 = vmul.f32 1.442695, %v2992_v14  ;;  %6681 = vpow2.f32 %v3032_v27 }
 0x586   : > { %2359 = vadd.xlane.f32.xlu0 %v2358_v33  ;;  %3973 = vrot.lane.b32.xlu1 %v11402_v50, %s7399_s19  ;;  %v6664_v8 = vpop.eup %6663  ;;  %v11411_v33 = vld [vmem:[#allocation102_spill] sm:$0xff] }
 0x587   : > { %v6666_v59 = vpop.eup %6665  ;;  %v1766_v20 = vmul.f32 %v6664_v8, %v9188_v53  ;;  %v1765_v60 = vmul.f32 %v6664_v8, %v11405_v26  ;;  %v11409_v53 = vld [vmem:[#allocation101_spill] sm:$0xff]  ;;  %v2994_v23 = vsub.f32 %v11411_v33, %v9463_v52  ;;  %6683 = vpow2.f32 %v3034_v9 }
 0x588   : > { %v1768_v49 = vmul.f32 %v6666_v59, %v11406_v31  ;;  %v1767_v38 = vmul.f32 %v6666_v59, %v11407_v11  ;;  %v2993_v61 = vsub.f32 %v11409_v53, %v9450_v18  ;;  %v9563_v16 = vpop.eup %6667  ;;  %v11414_v8 = vld [vmem:[#allocation105_spill] sm:$0xff]  ;;  %v3040_v52 = vmul.f32 1.442695, %v2995_v46  ;;  %v11417_v11 = vld [vmem:[#allocation112_spill] sm:$0xff] }
 0x589   : > { %v9567_v42 = vpop.eup %6669  ;;  %v3038_v47 = vmul.f32 1.442695, %v2994_v23  ;;  %v2996_v40 = vsub.f32 %v11414_v8, %v9470_v13  ;;  %v2997_v59 = vsub.f32 %v11415_v24, %v9470_v13  ;;  %v3001_v13 = vsub.f32 %v11417_v11, %v9498_v1 }
 0x58a   : > { %2365 = vadd.xlane.f32.xlu0 %v2364_v6  ;;  %v1784_v4 = vpack.c.bf16 %v1768_v49, %v1766_v20  ;;  %v1783_v44 = vpack.c.bf16 %v1767_v38, %v1765_v60  ;;  %v3036_v18 = vmul.f32 1.442695, %v2993_v61  ;;  %v9575_v48 = vpop.eup %6671  ;;  %v3081_v55 = vadd.f32 %v9567_v42, %v9563_v16  ;;  %v9593_v20 = vpop.xlane.xlu0 %2965  ;;  %v11416_v60 = vld [vmem:[#allocation111_spill] sm:$0xff]  ;;  %v11419_v61 = vld [vmem:[#allocation118_spill] sm:$0xff] }
 0x58b   : > { %v9581_v50 = vpop.eup %6673  ;;  %v2307_v6 = vmul.f32 1.442695, %v2255_v10  ;;  %v3042_v26 = vmul.f32 1.442695, %v2996_v40  ;;  %v3000_v31 = vsub.f32 %v11416_v60, %v9498_v1  ;;  %v3044_v49 = vmul.f32 1.442695, %v2997_v59  ;;  %v2969_v38 = vpop.xlane.xlu1 %2968 }
 0x58c   : > { %1873 = vmatprep.mubr.bf16.mxu0 %v1784_v4  ;;  %v9585_v7 = vpop.eup %6675  ;;  %6685 = vpow2.f32 %v3036_v18  ;;  %v3084_v51 = vadd.f32 %v9581_v50, %v9575_v48  ;;  %v3052_v53 = vmul.f32 1.442695, %v3001_v13  ;;  %v3005_v1 = vsub.f32 %v11419_v61, %v2969_v38  ;;  %v11420_v18 = vld [vmem:[#allocation121_spill] sm:$0xff]  ;;  %v11425_v60 = vld [vmem:[#allocation126_spill] sm:$0xff] }
 0x58d   : > { %1874 = vmatmul.mubr.bf16.gmra.mrb[92].mxu0 %v1783_v44  ;;  %v9591_v57 = vpop.eup %6677  ;;  %6687 = vpow2.f32 %v2307_v6  ;;  %v3050_v4 = vmul.f32 1.442695, %v3000_v31  ;;  %v11418_v44 = vld [vmem:[#allocation117_spill] sm:$0xff] }
 0x58e   : > { %2371 = vadd.xlane.f32.xlu0 %v2370_v17  ;;  %6689 = vpow2.f32 %v3038_v47  ;;  %v9599_v17 = vpop.eup %6679  ;;  %v3087_v37 = vadd.f32 %v9591_v57, %v9585_v7  ;;  %v9605_v14 = vpop.xlane.xlu0 %2971  ;;  %v3004_v27 = vsub.f32 %v11418_v44, %v2969_v38  ;;  %v3060_v5 = vmul.f32 1.442695, %v3005_v1  ;;  %v11428_v1 = vld [vmem:[#allocation130_spill] sm:$0xff] }
 0x58f   : > { %6691 = vpow2.f32 %v3040_v52  ;;  %v9603_v36 = vpop.eup %6681 }
 0x590   : > { %6693 = vpow2.f32 %v2309_v12  ;;  %v3090_v10 = vadd.f32 %v9603_v36, %v9599_v17  ;;  %v3058_v23 = vmul.f32 1.442695, %v3004_v27  ;;  %v11424_v12 = vld [vmem:[#allocation125_spill] sm:$0xff] }
 0x591   : > { %6695 = vpow2.f32 %v3042_v26  ;;  %v9609_v22 = vpop.eup %6683  ;;  %v11427_v27 = vld [vmem:[#allocation129_spill] sm:$0xff] }
 0x592   : > { %2377 = vadd.xlane.f32.xlu0 %v2376_v21  ;;  %6697 = vpow2.f32 %v3044_v49  ;;  %v2975_v21 = vpop.xlane.xlu1 %2974  ;;  %v2981_v33 = vpop.xlane.xlu0 %2980 }
 0x593   : > { %6699 = vpow2.f32 %v3050_v4  ;;  %v3008_v0 = vsub.f32 %v11420_v18, %v2975_v21  ;;  %v3013_v31 = vsub.f32 %v11425_v60, %v2981_v33 }
 0x594   : > { %6701 = vpow2.f32 %v3052_v53 }
 0x595   : > { %6703 = vpow2.f32 %v3058_v23  ;;  %v3066_v59 = vmul.f32 1.442695, %v3008_v0  ;;  %v3076_v61 = vmul.f32 1.442695, %v3013_v31 }
 0x596   : > { %3082 = vadd.xlane.f32.xlu0 %v3081_v55  ;;  %v9613_v9 = vpop.eup %6685  ;;  %v3009_v55 = vsub.f32 %v11421_v25, %v2975_v21  ;;  %v9619_v6 = vpop.xlane.xlu1 %2977  ;;  %6705 = vpow2.f32 %v3060_v5  ;;  %v11431_v25 = vld [vmem:[#allocation131_spill] sm:$0xff] }
 0x597   : > { %v9616_v46 = vpop.eup %6687  ;;  %v3093_v8 = vadd.f32 %v9613_v9, %v9609_v22  ;;  %v3686_v52 = vpop.xlane.xlu0 %3685  ;;  %6707 = vpow2.f32 %v3066_v59  ;;  %v11432_v59 = vld [vmem:[#allocation132_spill] sm:$0xff] }
 0x598   : > { %v9621_v47 = vpop.eup %6689  ;;  %v3068_v26 = vmul.f32 1.442695, %v3009_v55  ;;  %v3731_v53 = vsub.f32 %v11427_v27, %v3686_v52  ;;  %v3732_v21 = vsub.f32 %v11428_v1, %v3686_v52 }
 0x599   : > { %11422 = vst [vmem:[#allocation42_spill] sm:$0xff] %v9621_v47  ;;  %v9625_v40 = vpop.eup %6691 }
 0x59a   : > { %3085 = vadd.xlane.f32.xlu0 %v3084_v51  ;;  %11423 = vst [vmem:[#allocation61_spill] sm:$0xff] %v9625_v40  ;;  %v9627_v24 = vpop.eup %6693  ;;  %v3012_v51 = vsub.f32 %v11424_v12, %v2981_v33  ;;  %v9631_v49 = vpop.xlane.xlu1 %3682  ;;  %v3096_v13 = vadd.f32 %v9625_v40, %v9621_v47  ;;  %6709 = vpow2.f32 %v3068_v26  ;;  %v3765_v5 = vmul.f32 1.442695, %v3731_v53 }
 0x59b   : > { %v9633_v11 = vpop.eup %6695  ;;  %v2361_v4 = vadd.f32 %v9627_v24, %v9616_v46 }
 0x59c   : > { %11426 = vst [vmem:[#allocation56_spill] sm:$0xff] %v9633_v11  ;;  %v9637_v38 = vpop.eup %6697  ;;  %v3074_v44 = vmul.f32 1.442695, %v3012_v51 }
 0x59d   : > { %v9645_v33 = vpop.eup %6699  ;;  %v3099_v23 = vadd.f32 %v9637_v38, %v9633_v11 }
 0x59e   : > { %3088 = vadd.xlane.f32.xlu0 %v3087_v37  ;;  %11429 = vst [vmem:[#allocation64_spill] sm:$0xff] %v9645_v33  ;;  %v9649_v18 = vpop.eup %6701  ;;  %6711 = vpow2.f32 %v3074_v44 }
 0x59f   : > { %v9639_v37 = vpop.xlane.xlu0 %3691  ;;  %11430 = vst [vmem:[#allocation59_spill] sm:$0xff] %v9649_v18  ;;  %6713 = vpow2.f32 %v3076_v61  ;;  %v9657_v51 = vpop.eup %6703  ;;  %v3105_v26 = vadd.f32 %v9649_v18, %v9645_v33 }
 0x5a0   : > { %11433 = vst [vmem:[#allocation35_spill] sm:$0xff] %v9657_v51  ;;  %v9661_v60 = vpop.eup %6705  ;;  %6715 = vpow2.f32 %v3765_v5 }
 0x5a1   : > { %11434 = vst [vmem:[#allocation49_spill] sm:$0xff] %v9661_v60  ;;  %v9667_v27 = vpop.eup %6707  ;;  %v3111_v53 = vadd.f32 %v9661_v60, %v9657_v51  ;;  %v11445_v60 = vld [vmem:[#allocation147_spill] sm:$0xff] }
 0x5a2   : > { %3091 = vadd.xlane.f32.xlu0 %v3090_v10  ;;  %v3689_v10 = vpop.xlane.xlu1 %3688  ;;  %11435 = vst [vmem:[#allocation62_spill] sm:$0xff] %v9667_v27 }
 0x5a3   : > { %v3733_v55 = vsub.f32 %v11431_v25, %v3689_v10  ;;  %v3734_v52 = vsub.f32 %v11432_v59, %v3689_v10 }
 0x5a4   : > { %v9671_v61 = vpop.eup %6709 }
 0x5a5   : > { %11436 = vst [vmem:[#allocation65_spill] sm:$0xff] %v9671_v61 }
 0x5a6   : > { %3094 = vadd.xlane.f32.xlu0 %v3093_v8  ;;  %v3767_v8 = vmul.f32 1.442695, %v3732_v21  ;;  %v9655_v12 = vpop.xlane.xlu1 %3694 }
 0x5a7   : > { %v9651_v0 = vpop.xlane.xlu0 %3697 }
 0x5a8   : > { %6717 = vpow2.f32 %v3767_v8  ;;  %v9675_v10 = vpop.eup %6711  ;;  %v11439_v8 = vld [vmem:[#allocation36_spill] sm:$0xff] }
 0x5a9   : > { %11437 = vst [vmem:[#allocation66_spill] sm:$0xff] %v9675_v10  ;;  %v9679_v5 = vpop.eup %6713 }
 0x5aa   : > { %3097 = vadd.xlane.f32.xlu0 %v3096_v13  ;;  %2362 = vadd.xlane.f32.xlu1 %v2361_v4  ;;  %v3769_v13 = vmul.f32 1.442695, %v3733_v55  ;;  %v3771_v4 = vmul.f32 1.442695, %v3734_v52  ;;  %11438 = vst [vmem:[#allocation50_spill] sm:$0xff] %v9679_v5  ;;  %v9681_v55 = vpop.eup %6715  ;;  %v3123_v59 = vadd.f32 %v9679_v5, %v9675_v10  ;;  %v11443_v5 = vld [vmem:[#allocation86_spill] sm:$0xff] }
 0x5ac   : > { %6719 = vpow2.f32 %v3769_v13 }
 0x5ad   : > { %v9665_v44 = vpop.xlane.xlu1 %3700  ;;  %6721 = vpow2.f32 %v3771_v4 }
 0x5ae   : > { %3100 = vadd.xlane.f32.xlu0 %v3099_v23  ;;  %v3117_v23 = vadd.f32 %v9671_v61, %v9667_v27  ;;  %v2259_v27 = vsub.f32 %v11443_v5, %v9398_v62  ;;  %v11444_v61 = vld [vmem:[#allocation144_spill] sm:$0xff] }
 0x5af   : > { %v9663_v31 = vpop.xlane.xlu0 %3703 }
 0x5b2   : > { %3106 = vadd.xlane.f32.xlu0 %v3105_v26  ;;  %v9687_v52 = vpop.eup %6717 }
 0x5b3   : > { %11440 = vst [vmem:[#allocation71_spill] sm:$0xff] %v9687_v52  ;;  %v3828_v4 = vadd.f32 %v9687_v52, %v9681_v55 }
 0x5b5   : > { %v2333_v21 = vpop.xlane.xlu1 %2332 }
 0x5b6   : > { %v9673_v1 = vpop.xlane.xlu0 %3706  ;;  %3112 = vadd.xlane.f32.xlu0 %v3111_v53  ;;  %6723 = vrcp.f32 %v2333_v21  ;;  %v9689_v13 = vpop.eup %6719 }
 0x5b7   : > { %11441 = vst [vmem:[#allocation68_spill] sm:$0xff] %v9689_v13  ;;  %v9693_v53 = vpop.eup %6721 }
 0x5b8   : > { %11442 = vst [vmem:[#allocation75_spill] sm:$0xff] %v9693_v53 }
 0x5ba   : > { %v2336_v25 = vpop.xlane.xlu0 %2335  ;;  %3118 = vadd.xlane.f32.xlu0 %v3117_v23 }
 0x5bb   : > { %6725 = vrcp.f32 %v2336_v25  ;;  %3957 = vrot.lane.b32.xlu1 %v11439_v8, %s7399_s19  ;;  %v3831_v25 = vadd.f32 %v9693_v53, %v9689_v13  ;;  %v11447_v13 = vld [vmem:[#allocation169_spill] sm:$0xff] }
 0x5bc   : > { %v11448_v53 = vld [vmem:[#allocation89_spill] sm:$0xff] }
 0x5bd   : > { %v2263_v47 = vsub.f32 %v11448_v53, %v11447_v13 }
 0x5be   : > { %v2339_v26 = vpop.xlane.xlu0 %2338  ;;  %3124 = vadd.xlane.f32.xlu0 %v3123_v59 }
 0x5bf   : > { %6727 = vrcp.f32 %v2339_v26  ;;  %v11449_v26 = vld [vmem:[#allocation90_spill] sm:$0xff] }
 0x5c0   : > { %v6724_v23 = vpop.eup %6723 }
 0x5c1   : > { %v2395_v59 = vmul.f32 %v6724_v23, %v9294_v43  ;;  %v2396_v51 = vmul.f32 %v6724_v23, %v11444_v61  ;;  %v2315_v43 = vmul.f32 1.442695, %v2259_v27  ;;  %v2323_v61 = vmul.f32 1.442695, %v2263_v47  ;;  %v11450_v23 = vld [vmem:[#allocation70_spill] sm:$0xff]  ;;  %v11453_v27 = vld [vmem:[#allocation79_spill] sm:$0xff] }
 0x5c2   : > { %v9695_v21 = vpop.xlane.xlu0 %3712  ;;  %3829 = vadd.xlane.f32.xlu0 %v3828_v4  ;;  %v11446_v4 = vld [vmem:[#allocation87_spill] sm:$0xff] }
 0x5c3   : > { %v2260_v18 = vsub.f32 %v11446_v4, %v9398_v62  ;;  %v11457_v4 = vld [vmem:[#allocation156_spill] sm:$0xff] }
 0x5c5   : > { %v6726_v10 = vpop.eup %6725 }
 0x5c6   : > { %v2342_v8 = vpop.xlane.xlu0 %2341  ;;  %3832 = vadd.xlane.f32.xlu0 %v3831_v25  ;;  %v2397_v52 = vmul.f32 %v6726_v10, %v9302_v30  ;;  %v2398_v33 = vmul.f32 %v6726_v10, %v11445_v60  ;;  %v2264_v25 = vsub.f32 %v11449_v26, %v11447_v13  ;;  %v2317_v30 = vmul.f32 1.442695, %v2260_v18  ;;  %v11451_v10 = vld [vmem:[#allocation57_spill] sm:$0xff]  ;;  %v11454_v18 = vld [vmem:[#allocation72_spill] sm:$0xff] }
 0x5c7   : > { %6729 = vrcp.f32 %v2342_v8  ;;  %v11456_v8 = vld [vmem:[#allocation151_spill] sm:$0xff]  ;;  %v11458_v26 = vld [vmem:[#allocation149_spill] sm:$0xff] }
 0x5c8   : > { %v2428_v11 = vpack.c.bf16 %v2398_v33, %v2396_v51  ;;  %v2427_v5 = vpack.c.bf16 %v2397_v52, %v2395_v59  ;;  %v2325_v62 = vmul.f32 1.442695, %v2264_v25  ;;  %6731 = vpow2.f32 %v2315_v43  ;;  %v11452_v33 = vld [vmem:[#allocation93_spill] sm:$0xff]  ;;  %v11455_v52 = vld [vmem:[#allocation60_spill] sm:$0xff]  ;;  %v11459_v43 = vld [vmem:[#allocation155_spill] sm:$0xff] }
 0x5c9   : > { %v6728_v53 = vpop.eup %6727  ;;  %6733 = vpow2.f32 %v2317_v30  ;;  %v2982_v51 = vsub.f32 %v11452_v33, %v9414_v2  ;;  %v11461_v33 = vld [vmem:[#allocation109_spill] sm:$0xff] }
 0x5ca   : > { %v2345_v40 = vpop.xlane.xlu0 %2344  ;;  %2539 = vmatprep.mubr.bf16.mxu0 %v2428_v11  ;;  %6735 = vpow2.f32 %v2323_v61  ;;  %v2983_v11 = vsub.f32 %v11453_v27, %v9414_v2  ;;  %v2400_v59 = vmul.f32 %v6728_v53, %v11456_v8  ;;  %v2399_v25 = vmul.f32 %v6728_v53, %v11458_v26  ;;  %v11460_v61 = vld [vmem:[#allocation108_spill] sm:$0xff]  ;;  %v11463_v8 = vld [vmem:[#allocation115_spill] sm:$0xff]  ;;  %v11466_v26 = vld [vmem:[#allocation74_spill] sm:$0xff] }
 0x5cb   : > { %2540 = vmatmul.mubr.bf16.vlgmr.msra.gmra.mrb[96].mxu0 %v2427_v5  ;;  %6737 = vpow2.f32 %v2325_v62  ;;  %v2999_v62 = vsub.f32 %v11461_v33, %v9500_v35  ;;  %v11462_v27 = vld [vmem:[#allocation52_spill] sm:$0xff]  ;;  %v11464_v53 = vld [vmem:[#allocation63_spill] sm:$0xff]  ;;  %v11471_v33 = vld [vmem:[#allocation53_spill] sm:$0xff] }
 0x5cc   : > { %5900 = vmatpush3.bf16.msra.mxu0 %v11450_v23  ;;  %v3014_v23 = vmul.f32 1.442695, %v2982_v51  ;;  %6739 = vrcp.f32 %v2345_v40  ;;  %v3016_v2 = vmul.f32 1.442695, %v2983_v11  ;;  %v11465_v51 = vld [vmem:[#allocation116_spill] sm:$0xff] }
 0x5cd   : > { %5901 = vmatprep.subr.bf16.mxu0 %v11451_v10  ;;  %v2998_v10 = vsub.f32 %v11460_v61, %v9500_v35  ;;  %v3048_v35 = vmul.f32 1.442695, %v2999_v62  ;;  %v11469_v61 = vld [vmem:[#allocation120_spill] sm:$0xff] }
 0x5ce   : > { %v9712_v60 = vpop.xlane.xlu0 %3718 }
 0x5cf   : > { %v3046_v40 = vmul.f32 1.442695, %v2998_v10  ;;  %v3007_v10 = vsub.f32 %v11469_v61, %v9605_v14 }
 0x5d0   : > { %5902 = vmatpush3.bf16.msra.mxu0 %v11454_v18 }
 0x5d1   : > { %v6730_v47 = vpop.eup %6729  ;;  %5903 = vmatprep.subr.bf16.mxu0 %v11455_v52 }
 0x5d2   : > { %v2348_v13 = vpop.xlane.xlu0 %2347  ;;  %v2402_v5 = vmul.f32 %v6730_v47, %v11457_v4  ;;  %v2401_v30 = vmul.f32 %v6730_v47, %v11459_v43  ;;  %v3002_v4 = vsub.f32 %v11463_v8, %v9593_v20  ;;  %v3003_v47 = vsub.f32 %v11465_v51, %v9593_v20  ;;  %v9735_v11 = vpop.eup %6731  ;;  %v11468_v20 = vld [vmem:[#allocation119_spill] sm:$0xff]  ;;  %v11474_v51 = vld [vmem:[#allocation124_spill] sm:$0xff] }
 0x5d3   : > { %6741 = vrcp.f32 %v2348_v13 }
 0x5d4   : > { %5904 = vmatpush3.bf16.msra.mxu0 %v11462_v27  ;;  %v2430_v18 = vpack.c.bf16 %v2402_v5, %v2400_v59  ;;  %v2429_v52 = vpack.c.bf16 %v2401_v30, %v2399_v25  ;;  %6743 = vpow2.f32 %v3014_v23  ;;  %v9738_v59 = vpop.eup %6733  ;;  %v3054_v5 = vmul.f32 1.442695, %v3002_v4  ;;  %v11467_v25 = vld [vmem:[#allocation67_spill] sm:$0xff]  ;;  %v11472_v27 = vld [vmem:[#allocation73_spill] sm:$0xff] }
 0x5d5   : > { %5905 = vmatprep.subr.bf16.mxu0 %v11464_v53  ;;  %6745 = vpow2.f32 %v3016_v2  ;;  %v9741_v13 = vpop.eup %6735  ;;  %v3056_v43 = vmul.f32 1.442695, %v3003_v47  ;;  %v3006_v23 = vsub.f32 %v11468_v20, %v9605_v14  ;;  %v11470_v2 = vld [vmem:[#allocation44_spill] sm:$0xff]  ;;  %v3064_v4 = vmul.f32 1.442695, %v3007_v10  ;;  %v11473_v53 = vld [vmem:[#allocation123_spill] sm:$0xff] }
 0x5d6   : > { %2547 = vmatprep.mubr.bf16.mxu0 %v2430_v18  ;;  %v9743_v30 = vpop.eup %6737  ;;  %6747 = vpow2.f32 %v3046_v40  ;;  %v2367_v18 = vadd.f32 %v9738_v59, %v9735_v11  ;;  %v3010_v14 = vsub.f32 %v11473_v53, %v9619_v6  ;;  %v3011_v47 = vsub.f32 %v11474_v51, %v9619_v6  ;;  %v11475_v40 = vld [vmem:[#allocation45_spill] sm:$0xff] }
 0x5d7   : > { %2548 = vmatmul.mubr.bf16.gmra.mrb[100].mxu0 %v2429_v52  ;;  %6749 = vpow2.f32 %v3048_v35  ;;  %v6740_v62 = vpop.eup %6739  ;;  %v3062_v8 = vmul.f32 1.442695, %v3006_v23  ;;  %v11476_v35 = vld [vmem:[#allocation76_spill] sm:$0xff]  ;;  %v11480_v23 = vld [vmem:[#allocation165_spill] sm:$0xff]  ;;  %v2373_v6 = vadd.f32 %v9743_v30, %v9741_v13 }
 0x5d8   : > { %5906 = vmatpush3.bf16.msra.mxu0 %v11466_v26  ;;  %6751 = vpow2.f32 %v3054_v5  ;;  %v11477_v26 = vld [vmem:[#allocation161_spill] sm:$0xff]  ;;  %v3070_v51 = vmul.f32 1.442695, %v3010_v14 }
 0x5d9   : > { %5907 = vmatprep.subr.bf16.mxu0 %v11467_v25  ;;  %6753 = vpow2.f32 %v3056_v43  ;;  %v2404_v5 = vmul.f32 %v6740_v62, %v11477_v26  ;;  %v11478_v25 = vld [vmem:[#allocation166_spill] sm:$0xff]  ;;  %v11479_v43 = vld [vmem:[#allocation159_spill] sm:$0xff] }
 0x5da   : > { %v2403_v61 = vmul.f32 %v6740_v62, %v11479_v43  ;;  %6755 = vpow2.f32 %v3062_v8  ;;  %v3072_v62 = vmul.f32 1.442695, %v3011_v47  ;;  %v11487_v8 = vld [vmem:[#allocation83_spill] sm:$0xff] }
 0x5db   : > { %6757 = vpow2.f32 %v3064_v4  ;;  %v11489_v4 = vld [vmem:[#allocation135_spill] sm:$0xff] }
 0x5dc   : > { %3975 = vrot.lane.b32.xlu0 %v11470_v2, %s7399_s19  ;;  %5908 = vmatpush3.bf16.msra.mxu0 %v11471_v33  ;;  %v11481_v33 = vld [vmem:[#allocation77_spill] sm:$0xff]  ;;  %v3737_v47 = vsub.f32 %v11489_v4, %v9655_v12  ;;  %6759 = vpow2.f32 %v3070_v51 }
 0x5dd   : > { %5909 = vmatprep.subr.bf16.mxu0 %v11472_v27  ;;  %v6742_v52 = vpop.eup %6741  ;;  %6761 = vpow2.f32 %v3072_v62 }
 0x5de   : > { %v2406_v20 = vmul.f32 %v6742_v52, %v11478_v25  ;;  %v2405_v10 = vmul.f32 %v6742_v52, %v11480_v23  ;;  %v9766_v2 = vpop.eup %6743  ;;  %v11483_v52 = vld [vmem:[#allocation128_spill] sm:$0xff]  ;;  %v11484_v25 = vld [vmem:[#allocation54_spill] sm:$0xff]  ;;  %v11486_v23 = vld [vmem:[#allocation133_spill] sm:$0xff] }
 0x5df   : > { %2368 = vadd.xlane.f32.xlu1 %v2367_v18  ;;  %v9771_v27 = vpop.eup %6745  ;;  %v3730_v26 = vsub.f32 %v11483_v52, %v9631_v49  ;;  %v11494_v52 = vld [vmem:[#allocation78_spill] sm:$0xff] }
 0x5e0   : > { %3977 = vrot.lane.b32.xlu0 %v11475_v40, %s7399_s19  ;;  %5910 = vmatpush3.bf16.msra.mxu0 %v11476_v35  ;;  %v2432_v18 = vpack.c.bf16 %v2406_v20, %v2404_v5  ;;  %v2431_v53 = vpack.c.bf16 %v2405_v10, %v2403_v61  ;;  %v11482_v40 = vld [vmem:[#allocation127_spill] sm:$0xff]  ;;  %v9778_v43 = vpop.eup %6747  ;;  %v3735_v5 = vsub.f32 %v11486_v23, %v9639_v37  ;;  %v11491_v10 = vld [vmem:[#allocation136_spill] sm:$0xff]  ;;  %v11495_v23 = vld [vmem:[#allocation58_spill] sm:$0xff] }
 0x5e1   : > { %5911 = vmatprep.subr.bf16.mxu0 %v11481_v33  ;;  %v3729_v35 = vsub.f32 %v11482_v40, %v9631_v49  ;;  %11485 = vst [vmem:[#allocation51_spill] sm:$0xff] %v9778_v43  ;;  %v3078_v14 = vadd.f32 %v9771_v27, %v9766_v2  ;;  %v9785_v20 = vpop.eup %6749  ;;  %v3738_v33 = vsub.f32 %v11491_v10, %v9655_v12 }
 0x5e2   : > { %2555 = vmatprep.mubr.bf16.mxu0 %v2432_v18  ;;  %11488 = vst [vmem:[#allocation88_spill] sm:$0xff] %v9785_v20  ;;  %v9789_v49 = vpop.eup %6751  ;;  %v3763_v18 = vmul.f32 1.442695, %v3730_v26  ;;  %v3102_v51 = vadd.f32 %v9785_v20, %v9778_v43 }
 0x5e3   : > { %2374 = vadd.xlane.f32.xlu1 %v2373_v6  ;;  %2556 = vmatmul.mubr.bf16.gmra.mrb[104].mxu0 %v2431_v53  ;;  %11490 = vst [vmem:[#allocation69_spill] sm:$0xff] %v9789_v49  ;;  %v3761_v61 = vmul.f32 1.442695, %v3729_v35  ;;  %v9793_v6 = vpop.eup %6753  ;;  %v11493_v53 = vld [vmem:[#allocation134_spill] sm:$0xff]  ;;  %v3777_v35 = vmul.f32 1.442695, %v3737_v47 }
 0x5e4   : > { %5912 = vmatpush3.bf16.msra.mxu0 %v11484_v25  ;;  %11492 = vst [vmem:[#allocation91_spill] sm:$0xff] %v9793_v6  ;;  %v3736_v40 = vsub.f32 %v11493_v53, %v9639_v37  ;;  %v3773_v25 = vmul.f32 1.442695, %v3735_v5  ;;  %v3108_v37 = vadd.f32 %v9793_v6, %v9789_v49 }
 0x5e5   : > { %5913 = vmatprep.subr.bf16.mxu0 %v11487_v8  ;;  %6763 = vpow2.f32 %v3761_v61  ;;  %v3779_v8 = vmul.f32 1.442695, %v3738_v33 }
 0x5e6   : > { %6765 = vpow2.f32 %v3763_v18  ;;  %v3775_v12 = vmul.f32 1.442695, %v3736_v40 }
 0x5e7   : > { %3079 = vadd.xlane.f32.xlu1 %v3078_v14  ;;  %v9801_v14 = vpop.eup %6755  ;;  %6767 = vpow2.f32 %v3773_v25  ;;  %v9829_v25 = vpop.xlane.xlu1 %3709 }
 0x5e8   : > { %5914 = vmatpush3.bf16.msra.mxu0 %v11494_v52  ;;  %11496 = vst [vmem:[#allocation55_spill] sm:$0xff] %v9801_v14  ;;  %v9805_v62 = vpop.eup %6757  ;;  %6769 = vpow2.f32 %v3777_v35 }
 0x5e9   : > { %5995 = vmatprep.subr.bf16.mxu0 %v11495_v23  ;;  %11497 = vst [vmem:[#allocation92_spill] sm:$0xff] %v9805_v62  ;;  %6771 = vpow2.f32 %v3779_v8  ;;  %v9807_v26 = vpop.eup %6759  ;;  %v3114_v5 = vadd.f32 %v9805_v62, %v9801_v14  ;;  %v2351_v8 = vpop.xlane.xlu0 %2350  ;;  %v11509_v14 = vld [vmem:[#allocation167_spill] sm:$0xff] }
 0x5ea   : > { %6773 = vpow2.f32 %v3775_v12  ;;  %11498 = vst [vmem:[#allocation94_spill] sm:$0xff] %v9807_v26  ;;  %v9811_v4 = vpop.eup %6761 }
 0x5eb   : > { %3103 = vadd.xlane.f32.xlu1 %v3102_v51  ;;  %11499 = vst [vmem:[#allocation80_spill] sm:$0xff] %v9811_v4  ;;  %v3120_v61 = vadd.f32 %v9811_v4, %v9807_v26  ;;  %v9835_v35 = vpop.xlane.xlu1 %3715  ;;  %6775 = vrcp.f32 %v2351_v8 }
 0x5ef   : > { %3109 = vadd.xlane.f32.xlu1 %v3108_v37  ;;  %v9813_v47 = vpop.eup %6763  ;;  %v9837_v12 = vpop.xlane.xlu1 %3721 }
 0x5f0   : > { %v9817_v10 = vpop.eup %6765 }
 0x5f1   : > { %11500 = vst [vmem:[#allocation95_spill] sm:$0xff] %v9817_v10  ;;  %v9819_v33 = vpop.eup %6767  ;;  %v3825_v40 = vadd.f32 %v9817_v10, %v9813_v47  ;;  %v11507_v10 = vld [vmem:[#allocation38_spill] sm:$0xff] }
 0x5f2   : > { %11501 = vst [vmem:[#allocation96_spill] sm:$0xff] %v9819_v33  ;;  %v9821_v18 = vpop.eup %6769 }
 0x5f3   : > { %3115 = vadd.xlane.f32.xlu1 %v3114_v5  ;;  %11502 = vst [vmem:[#allocation104_spill] sm:$0xff] %v9821_v18  ;;  %v9823_v53 = vpop.eup %6771  ;;  %v9839_v37 = vpop.xlane.xlu1 %3724 }
 0x5f4   : > { %11503 = vst [vmem:[#allocation107_spill] sm:$0xff] %v9823_v53  ;;  %v9827_v52 = vpop.eup %6773  ;;  %v3837_v23 = vadd.f32 %v9823_v53, %v9821_v18  ;;  %v9841_v5 = vpop.permute.xlu0 %3955 }
 0x5f5   : > { %11504 = vst [vmem:[#allocation97_spill] sm:$0xff] %v9827_v52  ;;  %v3834_v51 = vadd.f32 %v9827_v52, %v9819_v33  ;;  %v11505_v33 = vld [vmem:[#allocation37_spill] sm:$0xff]  ;;  %v11506_v52 = vld [vmem:[#allocation46_spill] sm:$0xff] }
 0x5f7   : > { %3121 = vadd.xlane.f32.xlu1 %v3120_v61 }
 0x5fb   : > { %3826 = vadd.xlane.f32.xlu1 %v3825_v40  ;;  %v9843_v40 = vpop.permute.xlu1 %3971 }
 0x5ff   : > { %3838 = vadd.xlane.f32.xlu0 %v3837_v23  ;;  %3835 = vadd.xlane.f32.xlu1 %v3834_v51  ;;  %v6776_v51 = vpop.eup %6775 }
 0x600   : > { %v2407_v62 = vmul.f32 %v6776_v51, %v11509_v14 }
 0x602   : > { %v2357_v53 = vpop.xlane.xlu1 %2356 }
 0x60b   : > { %v2354_v61 = vpop.xlane.xlu0 %2353 }
 0x60c   : > { %6777 = vrcp.f32 %v2354_v61  ;;  %v11508_v61 = vld [vmem:[#allocation168_spill] sm:$0xff] }
 0x60d   : > { %6779 = vrcp.f32 %v2357_v53  ;;  %v2408_v26 = vmul.f32 %v6776_v51, %v11508_v61  ;;  %v11512_v61 = vld [vmem:[#allocation139_spill] sm:$0xff] }
 0x60e   : > { %v3741_v20 = vsub.f32 %v11512_v61, %v9665_v44 }
 0x60f   : > { %v9845_v18 = vpop.xlane.xlu0 %3727 }
 0x610   : > { %3959 = vrot.lane.b32.xlu1 %v11505_v33, %s7399_s19  ;;  %v11510_v33 = vld [vmem:[#allocation47_spill] sm:$0xff] }
 0x613   : > { %v2360_v23 = vpop.xlane.xlu0 %2359 }
 0x614   : > { %3961 = vrot.lane.b32.xlu1 %v11507_v10, %s7399_s19  ;;  %6781 = vrcp.f32 %v2360_v23  ;;  %v11511_v10 = vld [vmem:[#allocation137_spill] sm:$0xff] }
 0x615   : > { %3979 = vrot.lane.b32.xlu0 %v11506_v52, %s7399_s19  ;;  %v3739_v43 = vsub.f32 %v11511_v10, %v9651_v0 }
 0x616   : > { %v6778_v8 = vpop.eup %6777 }
 0x617   : > { %v2410_v4 = vmul.f32 %v6778_v8, %v9494_v39  ;;  %v2409_v49 = vmul.f32 %v6778_v8, %v9489_v41  ;;  %v6780_v52 = vpop.eup %6779  ;;  %v11513_v39 = vld [vmem:[#allocation140_spill] sm:$0xff] }
 0x618   : > { %v3742_v14 = vsub.f32 %v11513_v39, %v9665_v44  ;;  %v2412_v41 = vmul.f32 %v6780_v52, %v9468_v63 }
 0x619   : > { %3981 = vrot.lane.b32.xlu0 %v11510_v33, %s7399_s19  ;;  %v2434_v53 = vpack.c.bf16 %v2410_v4, %v2408_v26  ;;  %v2433_v6 = vpack.c.bf16 %v2409_v49, %v2407_v62  ;;  %v2411_v26 = vmul.f32 %v6780_v52, %v9465_v15  ;;  %v3781_v4 = vmul.f32 1.442695, %v3739_v43  ;;  %v2366_v52 = vpop.xlane.xlu0 %2365 }
 0x61a   : > { %v3787_v10 = vmul.f32 1.442695, %v3742_v14 }
 0x61b   : > { %2563 = vmatprep.mubr.bf16.mxu0 %v2434_v53  ;;  %v3785_v53 = vmul.f32 1.442695, %v3741_v20  ;;  %6783 = vpow2.f32 %v3781_v4 }
 0x61c   : > { %2564 = vmatmul.mubr.bf16.gmra.mrb[108].mxu0 %v2433_v6  ;;  %v11514_v6 = vld [vmem:[#allocation138_spill] sm:$0xff] }
 0x61d   : > { %v3740_v62 = vsub.f32 %v11514_v6, %v9651_v0  ;;  %6785 = vpow2.f32 %v3785_v53 }
 0x61e   : > { %v6782_v23 = vpop.eup %6781  ;;  %6787 = vpow2.f32 %v3787_v10 }
 0x61f   : > { %v2414_v51 = vmul.f32 %v6782_v23, %v9512_v45  ;;  %v2413_v49 = vmul.f32 %v6782_v23, %v9508_v58  ;;  %v3783_v61 = vmul.f32 1.442695, %v3740_v62 }
 0x621   : > { %v2436_v8 = vpack.c.bf16 %v2414_v51, %v2412_v41  ;;  %v2435_v33 = vpack.c.bf16 %v2413_v49, %v2411_v26  ;;  %6789 = vpow2.f32 %v3783_v61  ;;  %v9880_v51 = vpop.permute.xlu1 %3973  ;;  %v9882_v49 = vpop.xlane.xlu0 %2371 }
 0x622   : > { %6791 = vrcp.f32 %v2366_v52 }
 0x623   : > { %2571 = vmatprep.mubr.bf16.mxu0 %v2436_v8 }
 0x624   : > { %2572 = vmatmul.mubr.bf16.gmra.mrb[112].mxu0 %v2435_v33 }
 0x625   : > { %v9871_v0 = vpop.eup %6783 }
 0x626   : > { %11515 = vst [vmem:[#allocation81_spill] sm:$0xff] %v9871_v0 }
 0x627   : > { %v5723_v63 = vpop.f32.mrb[64].mxu0  ;;  %v9873_v39 = vpop.eup %6785 }
 0x628   : > { %v5724_v45 = vpop.f32.mrb[65].mxu0  ;;  %11516 = vst [vmem:[#allocation43_spill] sm:$0xff] %v9873_v39  ;;  %v9875_v20 = vpop.eup %6787 }
 0x629   : > { %v5725_v15 = vadd.f32 %v5724_v45, %v5723_v63  ;;  %v5726_v44 = vpop.f32.mrb[66].mxu0  ;;  %11517 = vst [vmem:[#allocation98_spill] sm:$0xff] %v9875_v20  ;;  %v3843_v8 = vadd.f32 %v9875_v20, %v9873_v39  ;;  %v9888_v63 = vpop.xlane.xlu0 %2377 }
 0x62a   : > { %v5727_v58 = vpop.f32.mrb[67].mxu0 }
 0x62b   : > { %v5728_v23 = vadd.f32 %v5727_v58, %v5726_v44  ;;  %v9878_v41 = vpop.eup %6789 }
 0x62c   : > { %v3840_v53 = vadd.f32 %v9878_v41, %v9871_v0  ;;  %v6792_v52 = vpop.eup %6791 }
 0x62d   : > { %v1882_v43 = vpack.c.bf16 %v5728_v23, %v5725_v15 }
 0x62f   : > { %1890 = vst.msk [vmem:[#allocation3] sm:$0xff] %vm1343_vm0, %v1882_v43  ;;  %v5729_v14 = vpop.f32.mrb[68].mxu0 }
 0x630   : > { %v5730_v26 = vpop.f32.mrb[69].mxu0 }
 0x631   : > { %v5731_v6 = vadd.f32 %v5730_v26, %v5729_v14  ;;  %v5732_v62 = vpop.f32.mrb[70].mxu0  ;;  %v9891_v14 = vpop.xlane.xlu0 %3082 }
 0x632   : > { %v5733_v4 = vpop.f32.mrb[71].mxu0 }
 0x633   : > { %v5734_v33 = vadd.f32 %v5733_v4, %v5732_v62 }
 0x635   : > { %v1883_v61 = vpack.c.bf16 %v5734_v33, %v5731_v6  ;;  %v2418_v33 = vmul.f32 %v6792_v52, %v9531_v56  ;;  %v9898_v39 = vpop.xlane.xlu0 %3085 }
 0x637   : > { %v2363_v10 = vpop.xlane.xlu1 %2362  ;;  %1891 = vst.msk [vmem:[#allocation3 + $0x8] sm:$0xff] %vm1343_vm0, %v1883_v61  ;;  %v5735_v45 = vpop.f32.mrb[72].mxu0 }
 0x638   : > { %3844 = vadd.xlane.f32.xlu0 %v3843_v8  ;;  %6793 = vrcp.f32 %v2363_v10  ;;  %3841 = vadd.xlane.f32.xlu1 %v3840_v53  ;;  %v5736_v15 = vpop.f32.mrb[73].mxu0  ;;  %v2417_v10 = vmul.f32 %v6792_v52, %v9527_v28 }
 0x639   : > { %v5737_v44 = vadd.f32 %v5736_v15, %v5735_v45  ;;  %v5738_v58 = vpop.f32.mrb[74].mxu0 }
 0x63a   : > { %v5739_v23 = vpop.f32.mrb[75].mxu0 }
 0x63b   : > { %v5740_v43 = vadd.f32 %v5739_v23, %v5738_v58 }
 0x63d   : > { %v1884_v26 = vpack.c.bf16 %v5740_v43, %v5737_v44 }
 0x63f   : > { %1892 = vst.msk [vmem:[#allocation3 + $0x10] sm:$0xff] %vm1343_vm0, %v1884_v26  ;;  %v5741_v6 = vpop.f32.mrb[76].mxu0  ;;  %v11518_v26 = vld [vmem:[#allocation39_spill] sm:$0xff] }
 0x640   : > { %v5742_v4 = vpop.f32.mrb[77].mxu0 }
 0x641   : > { %v5743_v61 = vadd.f32 %v5742_v4, %v5741_v6  ;;  %v5744_v45 = vpop.f32.mrb[78].mxu0  ;;  %v11519_v6 = vld [vmem:[#allocation48_spill] sm:$0xff] }
 0x642   : > { %v6794_v62 = vpop.eup %6793  ;;  %v5745_v15 = vpop.f32.mrb[79].mxu0  ;;  %v11520_v4 = vld [vmem:[#allocation40_spill] sm:$0xff] }
 0x643   : > { %v2416_v8 = vmul.f32 %v6794_v62, %v9627_v24  ;;  %v2415_v53 = vmul.f32 %v6794_v62, %v9616_v46  ;;  %v5746_v44 = vadd.f32 %v5745_v15, %v5744_v45  ;;  %v9903_v24 = vpop.xlane.xlu0 %3088  ;;  %v11521_v45 = vld [vmem:[#allocation143_spill] sm:$0xff] }
 0x644   : > { %v3745_v15 = vsub.f32 %v11521_v45, %v9673_v1  ;;  %v11525_v45 = vld [vmem:[#allocation152_spill] sm:$0xff] }
 0x645   : > { %v2438_v58 = vpack.c.bf16 %v2418_v33, %v2416_v8  ;;  %v2437_v23 = vpack.c.bf16 %v2417_v10, %v2415_v53  ;;  %v1885_v43 = vpack.c.bf16 %v5746_v44, %v5743_v61  ;;  %v11522_v44 = vld [vmem:[#allocation145_spill] sm:$0xff] }
 0x647   : > { %2579 = vmatprep.mubr.bf16.mxu0 %v2438_v58  ;;  %1893 = vst.msk [vmem:[#allocation3 + $0x18] sm:$0xff] %vm1343_vm0, %v1885_v43  ;;  %v5747_v56 = vpop.f32.mrb[80].mxu0  ;;  %v9909_v53 = vpop.xlane.xlu0 %3091  ;;  %v3746_v43 = vsub.f32 %v11522_v44, %v9673_v1 }
 0x648   : > { %2580 = vmatmul.mubr.bf16.gmra.mrb[116].mxu0 %v2437_v23  ;;  %v5748_v46 = vpop.f32.mrb[81].mxu0 }
 0x649   : > { %3963 = vrot.lane.b32.xlu1 %v11518_v26, %s7399_s19  ;;  %v5749_v28 = vadd.f32 %v5748_v46, %v5747_v56  ;;  %v5750_v52 = vpop.f32.mrb[82].mxu0  ;;  %v11523_v46 = vld [vmem:[#allocation141_spill] sm:$0xff] }
 0x64a   : > { %v5751_v62 = vpop.f32.mrb[83].mxu0 }
 0x64b   : > { %v5752_v8 = vadd.f32 %v5751_v62, %v5750_v52  ;;  %v3743_v52 = vsub.f32 %v11523_v46, %v9663_v31  ;;  %v11524_v62 = vld [vmem:[#allocation150_spill] sm:$0xff] }
 0x64d   : > { %3965 = vrot.lane.b32.xlu1 %v11520_v4, %s7399_s19  ;;  %v1886_v33 = vpack.c.bf16 %v5752_v8, %v5749_v28  ;;  %v3793_v28 = vmul.f32 1.442695, %v3745_v15  ;;  %v9920_v4 = vpop.xlane.xlu0 %3094  ;;  %v11527_v15 = vld [vmem:[#allocation153_spill] sm:$0xff] }
 0x64e   : > { %3983 = vrot.lane.b32.xlu0 %v11519_v6, %s7399_s19  ;;  %v3749_v6 = vsub.f32 %v11524_v62, %v9695_v21 }
 0x64f   : > { %1894 = vst.msk [vmem:[#allocation3 + $0x20] sm:$0xff] %vm1343_vm0, %v1886_v33  ;;  %v5753_v10 = vpop.f32.mrb[84].mxu0  ;;  %v3795_v33 = vmul.f32 1.442695, %v3746_v43  ;;  %6795 = vpow2.f32 %v3793_v28  ;;  %v11529_v28 = vld [vmem:[#allocation160_spill] sm:$0xff] }
 0x650   : > { %v5754_v61 = vpop.f32.mrb[85].mxu0  ;;  %v3801_v46 = vmul.f32 1.442695, %v3749_v6 }
 0x651   : > { %v5755_v58 = vadd.f32 %v5754_v61, %v5753_v10  ;;  %v5756_v23 = vpop.f32.mrb[86].mxu0  ;;  %v3750_v10 = vsub.f32 %v11525_v45, %v9695_v21  ;;  %v11526_v61 = vld [vmem:[#allocation142_spill] sm:$0xff]  ;;  %6797 = vpow2.f32 %v3795_v33 }
 0x652   : > { %v5757_v26 = vpop.f32.mrb[87].mxu0  ;;  %v3744_v20 = vsub.f32 %v11526_v61, %v9663_v31  ;;  %v9931_v31 = vpop.xlane.xlu0 %3097  ;;  %v3755_v61 = vsub.f32 %v11529_v28, %v9837_v12  ;;  %v11530_v33 = vld [vmem:[#allocation162_spill] sm:$0xff] }
 0x653   : > { %v5758_v56 = vadd.f32 %v5757_v26, %v5756_v23  ;;  %v3789_v23 = vmul.f32 1.442695, %v3743_v52  ;;  %v3751_v26 = vsub.f32 %v11527_v15, %v9835_v35  ;;  %v3803_v21 = vmul.f32 1.442695, %v3750_v10 }
 0x654   : > { %v3791_v45 = vmul.f32 1.442695, %v3744_v20  ;;  %v3760_v10 = vsub.f32 %v9386_v54, %v9845_v18 }
 0x655   : > { %v1887_v8 = vpack.c.bf16 %v5758_v56, %v5755_v58  ;;  %v11528_v58 = vld [vmem:[#allocation154_spill] sm:$0xff]  ;;  %6799 = vpow2.f32 %v3789_v23  ;;  %v3805_v52 = vmul.f32 1.442695, %v3751_v26 }
 0x656   : > { %v3752_v43 = vsub.f32 %v11528_v58, %v9835_v35  ;;  %6801 = vpow2.f32 %v3801_v46  ;;  %v3759_v35 = vsub.f32 %v9382_v32, %v9845_v18  ;;  %v9942_v23 = vpop.xlane.xlu0 %3100 }
 0x657   : > { %1895 = vst.msk [vmem:[#allocation3 + $0x28] sm:$0xff] %vm1343_vm0, %v1887_v8  ;;  %v5759_v1 = vpop.f32.mrb[88].mxu0  ;;  %6803 = vpow2.f32 %v3803_v21 }
 0x658   : > { %v5760_v44 = vpop.f32.mrb[89].mxu0  ;;  %v3807_v6 = vmul.f32 1.442695, %v3752_v43  ;;  %6805 = vpow2.f32 %v3791_v45  ;;  %v3821_v58 = vmul.f32 1.442695, %v3759_v35  ;;  %v9948_v45 = vpop.permute.xlu1 %3957 }
 0x659   : > { %v5761_v62 = vadd.f32 %v5760_v44, %v5759_v1  ;;  %v5762_v0 = vpop.f32.mrb[90].mxu0  ;;  %v3756_v1 = vsub.f32 %v11530_v33, %v9837_v12  ;;  %6807 = vpow2.f32 %v3805_v52  ;;  %v9944_v12 = vpop.eup %6795 }
 0x65a   : > { %v5763_v56 = vpop.f32.mrb[91].mxu0  ;;  %6809 = vpow2.f32 %v3807_v6  ;;  %v9954_v52 = vpop.xlane.xlu0 %3106 }
 0x65b   : > { %v5764_v8 = vadd.f32 %v5763_v56, %v5762_v0  ;;  %v3813_v0 = vmul.f32 1.442695, %v3755_v61  ;;  %v3815_v26 = vmul.f32 1.442695, %v3756_v1  ;;  %v9946_v32 = vpop.eup %6797  ;;  %v3823_v56 = vmul.f32 1.442695, %v3760_v10 }
 0x65c   : > { %v3849_v28 = vadd.f32 %v9946_v32, %v9944_v12 }
 0x65d   : > { %v1888_v15 = vpack.c.bf16 %v5764_v8, %v5761_v62  ;;  %6811 = vpow2.f32 %v3813_v0 }
 0x65e   : > { %6813 = vpow2.f32 %v3815_v26 }
 0x65f   : > { %1896 = vst.msk [vmem:[#allocation3 + $0x30] sm:$0xff] %vm1343_vm0, %v1888_v15  ;;  %v9950_v8 = vpop.eup %6799  ;;  %6815 = vpow2.f32 %v3821_v58 }
 0x660   : > { %v5765_v20 = vpop.f32.mrb[92].mxu0  ;;  %v9952_v18 = vpop.eup %6801  ;;  %6817 = vrcp.f32 %v9882_v49 }
 0x661   : > { %v5766_v44 = vpop.f32.mrb[93].mxu0  ;;  %11531 = vst [vmem:[#allocation99_spill] sm:$0xff] %v9952_v18  ;;  %v9958_v61 = vpop.eup %6803  ;;  %6819 = vpow2.f32 %v3823_v56 }
 0x662   : > { %v5767_v46 = vadd.f32 %v5766_v44, %v5765_v20  ;;  %v5768_v62 = vpop.f32.mrb[94].mxu0  ;;  %v9962_v15 = vpop.eup %6805  ;;  %v3855_v1 = vadd.f32 %v9958_v61, %v9952_v18 }
 0x663   : > { %v5769_v43 = vpop.f32.mrb[95].mxu0  ;;  %v9964_v33 = vpop.eup %6807  ;;  %v3846_v49 = vadd.f32 %v9962_v15, %v9950_v8 }
 0x664   : > { %v5770_v21 = vadd.f32 %v5769_v43, %v5768_v62  ;;  %v9968_v35 = vpop.eup %6809  ;;  %v9973_v20 = vpop.xlane.xlu0 %3112 }
 0x665   : > { %v3858_v44 = vadd.f32 %v9968_v35, %v9964_v33 }
 0x666   : > { %v1889_v54 = vpack.c.bf16 %v5770_v21, %v5767_v46 }
 0x667   : > { %v9975_v10 = vpop.eup %6811 }
 0x668   : > { %1897 = vst.msk [vmem:[#allocation3 + $0x38] sm:$0xff] %vm1343_vm0, %v1889_v54  ;;  %11532 = vst [vmem:[#allocation110_spill] sm:$0xff] %v9975_v10  ;;  %v9979_v26 = vpop.eup %6813  ;;  %v9986_v43 = vpop.xlane.xlu0 %3118 }
 0x669   : > { %v9981_v46 = vpop.eup %6815  ;;  %v3864_v21 = vadd.f32 %v9979_v26, %v9975_v10 }
 0x66a   : > { %v6818_v62 = vpop.eup %6817 }
 0x66b   : > { %v9984_v58 = vpop.eup %6819 }
 0x66c   : > { %v2369_v6 = vpop.xlane.xlu1 %2368  ;;  %v9999_v10 = vpop.xlane.xlu0 %3124 }
 0x66d   : > { %3850 = vadd.xlane.f32.xlu0 %v3849_v28  ;;  %6821 = vrcp.f32 %v2369_v6  ;;  %v2422_v6 = vmul.f32 %v6818_v62, %v9539_v19 }
 0x66e   : > { %6823 = vrcp.f32 %v9888_v63 }
 0x670   : > { %v2375_v0 = vpop.xlane.xlu1 %2374 }
 0x671   : > { %3856 = vadd.xlane.f32.xlu0 %v3855_v1  ;;  %6825 = vrcp.f32 %v2375_v0  ;;  %3847 = vadd.xlane.f32.xlu1 %v3846_v49  ;;  %v2421_v1 = vmul.f32 %v6818_v62, %v9535_v34  ;;  %v3870_v0 = vadd.f32 %v9984_v58, %v9981_v46 }
 0x672   : > { %6827 = vrcp.f32 %v9891_v14 }
 0x674   : > { %v3080_v63 = vpop.xlane.xlu1 %3079 }
 0x675   : > { %3859 = vadd.xlane.f32.xlu0 %v3858_v44  ;;  %6829 = vrcp.f32 %v3080_v63 }
 0x676   : > { %6831 = vrcp.f32 %v9903_v24 }
 0x677   : > { %v6822_v56 = vpop.eup %6821  ;;  %6833 = vrcp.f32 %v9898_v39 }
 0x678   : > { %v9990_v54 = vpop.xlane.xlu1 %3103  ;;  %v2420_v28 = vmul.f32 %v6822_v56, %v9738_v59  ;;  %v2419_v14 = vmul.f32 %v6822_v56, %v9735_v11  ;;  %v6824_v49 = vpop.eup %6823  ;;  %6835 = vrcp.f32 %v9920_v4 }
 0x679   : > { %3865 = vadd.xlane.f32.xlu0 %v3864_v21  ;;  %v2426_v11 = vmul.f32 %v6824_v49, %v9547_v3  ;;  %6837 = vrcp.f32 %v9909_v53 }
 0x67a   : > { %v2440_v44 = vpack.c.bf16 %v2422_v6, %v2420_v28  ;;  %v2439_v63 = vpack.c.bf16 %v2421_v1, %v2419_v14  ;;  %v2425_v6 = vmul.f32 %v6824_v49, %v9543_v29  ;;  %v3830_v14 = vpop.xlane.xlu0 %3829 }
 0x67b   : > { %v6826_v18 = vpop.eup %6825  ;;  %6839 = vrcp.f32 %v3830_v14 }
 0x67c   : > { %v10001_v21 = vpop.xlane.xlu1 %3109  ;;  %2587 = vmatprep.mubr.bf16.mxu0 %v2440_v44  ;;  %v2424_v19 = vmul.f32 %v6826_v18, %v9743_v30  ;;  %v6828_v34 = vpop.eup %6827  ;;  %v2423_v56 = vmul.f32 %v6826_v18, %v9741_v13  ;;  %v11533_v30 = vld [vmem:[#allocation41_spill] sm:$0xff] }
 0x67d   : > { %3871 = vadd.xlane.f32.xlu0 %v3870_v0  ;;  %2588 = vmatmul.mubr.bf16.gmra.mrb[120].mxu0 %v2439_v63  ;;  %v3145_v3 = vmul.f32 %v6828_v34, %v9567_v42  ;;  %v3144_v4 = vmul.f32 %v6828_v34, %v9563_v16  ;;  %v11536_v16 = vld [vmem:[#allocation148_spill] sm:$0xff] }
 0x67e   : > { %v2442_v59 = vpack.c.bf16 %v2426_v11, %v2424_v19  ;;  %v2441_v39 = vpack.c.bf16 %v2425_v6, %v2423_v56  ;;  %v10019_v18 = vpop.xlane.xlu0 %3832  ;;  %v3748_v34 = vsub.f32 %v11536_v16, %v9829_v25  ;;  %v11542_v16 = vld [vmem:[#allocation56_spill] sm:$0xff] }
 0x67f   : > { %v6830_v62 = vpop.eup %6829 }
 0x680   : > { %v10007_v28 = vpop.xlane.xlu1 %3115  ;;  %2595 = vmatprep.mubr.bf16.mxu0 %v2442_v59  ;;  %v3143_v24 = vmul.f32 %v6830_v62, %v9771_v27  ;;  %v6832_v13 = vpop.eup %6831  ;;  %v3142_v29 = vmul.f32 %v6830_v62, %v9766_v2  ;;  %v11534_v2 = vld [vmem:[#allocation146_spill] sm:$0xff] }
 0x681   : > { %v6834_v27 = vpop.eup %6833  ;;  %v3149_v42 = vmul.f32 %v6832_v13, %v9591_v57  ;;  %v3747_v11 = vsub.f32 %v11534_v2, %v9829_v25  ;;  %v11535_v62 = vld [vmem:[#allocation82_spill] sm:$0xff] }
 0x682   : > { %3967 = vrot.lane.b32.xlu1 %v11533_v30, %s7399_s19  ;;  %v3175_v0 = vpack.c.bf16 %v3145_v3, %v3143_v24  ;;  %v3147_v44 = vmul.f32 %v6834_v27, %v9581_v50  ;;  %v3174_v63 = vpack.c.bf16 %v3144_v4, %v3142_v29  ;;  %v6836_v19 = vpop.eup %6835  ;;  %v3976_v59 = vpop.permute.xlu0 %3975  ;;  %v3148_v50 = vmul.f32 %v6832_v13, %v9585_v7  ;;  %v11538_v3 = vld [vmem:[#allocation158_spill] sm:$0xff] }
 0x683   : > { %v6838_v57 = vpop.eup %6837  ;;  %v3146_v14 = vmul.f32 %v6834_v27, %v9575_v48  ;;  %v3797_v30 = vmul.f32 1.442695, %v3747_v11 }
 0x684   : > { %v10015_v1 = vpop.xlane.xlu1 %3121  ;;  %v3177_v53 = vpack.c.bf16 %v3149_v42, %v3147_v44  ;;  %v3151_v25 = vmul.f32 %v6838_v57, %v9603_v36 }
 0x685   : > { %2596 = vmatmul.mubr.bf16.gmra.mrb[124].mxu0 %v2441_v39  ;;  %v10034_v56 = vpop.eup %6839  ;;  %v3754_v39 = vsub.f32 %v11538_v3, %v9712_v60 }
 0x686   : > { %3286 = vmatprep.mubr.bf16.mxu0 %v3175_v0  ;;  %v10051_v0 = vmul.f32 %v10034_v56, %v9681_v55  ;;  %v3978_v48 = vpop.permute.xlu0 %3977 }
 0x687   : > { %v3811_v27 = vmul.f32 1.442695, %v3754_v39 }
 0x688   : > { %v3827_v49 = vpop.xlane.xlu1 %3826 }
 0x689   : > { %6841 = vrcp.f32 %v3827_v49 }
 0x68a   : > { %6843 = vrcp.f32 %v9942_v23  ;;  %v3153_v23 = vmul.f32 %v6836_v19, %v9613_v9  ;;  %v3799_v9 = vmul.f32 1.442695, %v3748_v34 }
 0x68b   : > { %6845 = vrcp.f32 %v9931_v31  ;;  %v11537_v31 = vld [vmem:[#allocation157_spill] sm:$0xff] }
 0x68c   : > { %v3753_v24 = vsub.f32 %v11537_v31, %v9712_v60  ;;  %v10038_v6 = vpop.xlane.xlu1 %3835  ;;  %6847 = vrcp.f32 %v9990_v54  ;;  %v11539_v54 = vld [vmem:[#allocation163_spill] sm:$0xff]  ;;  %v10066_v4 = vpop.xlane.xlu0 %3838  ;;  %v11543_v31 = vld [vmem:[#allocation88_spill] sm:$0xff] }
 0x68d   : > { %3287 = vmatmul.mubr.bf16.vlgmr.msra.gmra.mrb[128].mxu0 %v3174_v63  ;;  %6849 = vrcp.f32 %v9954_v52  ;;  %v3152_v52 = vmul.f32 %v6836_v19, %v9609_v22 }
 0x68e   : > { %5996 = vmatpush3.bf16.msra.mxu0 %v11535_v62  ;;  %3294 = vmatprep.mubr.bf16.mxu0 %v3177_v53  ;;  %v3809_v36 = vmul.f32 1.442695, %v3753_v24  ;;  %6851 = vpow2.f32 %v3797_v30  ;;  %v11541_v53 = vld [vmem:[#allocation61_spill] sm:$0xff]  ;;  %v11544_v30 = vld [vmem:[#allocation42_spill] sm:$0xff] }
 0x68f   : > { %5997 = vmatprep.subr.bf16.mxu0 %v9843_v40  ;;  %v3176_v40 = vpack.c.bf16 %v3148_v50, %v3146_v14  ;;  %6853 = vpow2.f32 %v3799_v9 }
 0x690   : > { %v3960_v42 = vpop.permute.xlu1 %3959  ;;  %6855 = vpow2.f32 %v3809_v36 }
 0x691   : > { %6857 = vpow2.f32 %v3811_v27 }
 0x692   : > { %5998 = vmatpush3.bf16.msra.mxu0 %v9841_v5  ;;  %v3179_v5 = vpack.c.bf16 %v3153_v23, %v3151_v25  ;;  %6859 = vrcp.f32 %v10001_v21  ;;  %v11545_v25 = vld [vmem:[#allocation59_spill] sm:$0xff] }
 0x693   : > { %v10045_v7 = vpop.eup %6841  ;;  %5999 = vmatprep.subr.bf16.mxu0 %v9880_v51  ;;  %v3757_v51 = vsub.f32 %v11539_v54, %v9839_v37  ;;  %6861 = vrcp.f32 %v9973_v20 }
 0x694   : > { %v10055_v60 = vmul.f32 %v10045_v7, %v9813_v47  ;;  %v6844_v13 = vpop.eup %6843  ;;  %v11540_v47 = vld [vmem:[#allocation164_spill] sm:$0xff]  ;;  %v3962_v22 = vpop.permute.xlu1 %3961 }
 0x695   : > { %3295 = vmatmul.mubr.bf16.gmra.mrb[132].mxu0 %v3176_v40  ;;  %v6846_v29 = vpop.eup %6845  ;;  %v3758_v49 = vsub.f32 %v11540_v47, %v9839_v37  ;;  %v3157_v44 = vmul.f32 %v6844_v13, %v9637_v38  ;;  %v3817_v63 = vmul.f32 1.442695, %v3757_v51  ;;  %v3980_v38 = vpop.permute.xlu0 %3979  ;;  %v3156_v34 = vmul.f32 %v6844_v13, %v11542_v16 }
 0x696   : > { %6000 = vmatpush3.bf16.msra.mxu0 %v9948_v45  ;;  %3302 = vmatprep.mubr.bf16.mxu0 %v3179_v5  ;;  %v3921_v55 = vpack.c.bf16 %v10051_v0, %v10055_v60  ;;  %v3150_v45 = vmul.f32 %v6838_v57, %v9599_v17  ;;  %v3155_v2 = vmul.f32 %v6846_v29, %v11541_v53  ;;  %v6848_v62 = vpop.eup %6847  ;;  %v11567_v0 = vld [vmem:[#allocation81_spill] sm:$0xff] }
 0x697   : > { %6001 = vmatprep.subr.bf16.mxu0 %v3976_v59  ;;  %v3819_v11 = vmul.f32 1.442695, %v3758_v49  ;;  %6863 = vpow2.f32 %v3817_v63  ;;  %v6850_v17 = vpop.eup %6849  ;;  %v3159_v20 = vmul.f32 %v6848_v62, %v11543_v31  ;;  %v3154_v3 = vmul.f32 %v6846_v29, %v11544_v30  ;;  %v11546_v29 = vld [vmem:[#allocation51_spill] sm:$0xff]  ;;  %v11553_v30 = vld [vmem:[#allocation65_spill] sm:$0xff] }
 0x698   : > { %v3178_v37 = vpack.c.bf16 %v3152_v52, %v3150_v45  ;;  %v3181_v59 = vpack.c.bf16 %v3157_v44, %v3155_v2  ;;  %v10074_v21 = vpop.eup %6851  ;;  %v3161_v9 = vmul.f32 %v6850_v17, %v11545_v25  ;;  %v3158_v47 = vmul.f32 %v6848_v62, %v11546_v29  ;;  %v11548_v45 = vld [vmem:[#allocation64_spill] sm:$0xff] }
 0x699   : > { %6865 = vpow2.f32 %v3819_v11  ;;  %v10079_v24 = vpop.eup %6853  ;;  %v3160_v63 = vmul.f32 %v6850_v17, %v11548_v45  ;;  %v11555_v29 = vld [vmem:[#allocation80_spill] sm:$0xff]  ;;  %v11557_v45 = vld [vmem:[#allocation50_spill] sm:$0xff] }
 0x69a   : > { %6002 = vmatpush3.bf16.msra.mxu0 %v3960_v42  ;;  %v10085_v40 = vpop.eup %6855  ;;  %6867 = vrcp.f32 %v10007_v28  ;;  %v3852_v36 = vadd.f32 %v10079_v24, %v10074_v21  ;;  %v3183_v54 = vpack.c.bf16 %v3161_v9, %v3159_v20  ;;  %v11547_v42 = vld [vmem:[#allocation91_spill] sm:$0xff] }
 0x69b   : > { %6003 = vmatprep.subr.bf16.mxu0 %v3978_v48  ;;  %v3180_v48 = vpack.c.bf16 %v3156_v34, %v3154_v3  ;;  %v10088_v5 = vpop.eup %6857  ;;  %6869 = vrcp.f32 %v9986_v43  ;;  %v11549_v43 = vld [vmem:[#allocation49_spill] sm:$0xff]  ;;  %v11552_v20 = vld [vmem:[#allocation35_spill] sm:$0xff] }
 0x69c   : > { %v6860_v51 = vpop.eup %6859  ;;  %v3861_v49 = vadd.f32 %v10088_v5, %v10085_v40  ;;  %6871 = vrcp.f32 %v10015_v1  ;;  %v11550_v34 = vld [vmem:[#allocation69_spill] sm:$0xff] }
 0x69d   : > { %3303 = vmatmul.mubr.bf16.gmra.mrb[136].mxu0 %v3178_v37  ;;  %v6862_v27 = vpop.eup %6861  ;;  %v3163_v52 = vmul.f32 %v6860_v51, %v11547_v42  ;;  %v3182_v37 = vpack.c.bf16 %v3160_v63, %v3158_v47  ;;  %6873 = vrcp.f32 %v9999_v10 }
 0x69e   : > { %v5819_v19 = vpop.f32.mrb[96].mxu0  ;;  %6004 = vmatpush3.bf16.msra.mxu0 %v3962_v22  ;;  %3310 = vmatprep.mubr.bf16.mxu0 %v3181_v59  ;;  %v3165_v2 = vmul.f32 %v6862_v27, %v11549_v43  ;;  %6875 = vrcp.f32 %v10038_v6 }
 0x69f   : > { %v5820_v57 = vpop.f32.mrb[97].mxu0  ;;  %6005 = vmatprep.subr.bf16.mxu0 %v3980_v38  ;;  %6877 = vrcp.f32 %v10019_v18 }
 0x6a0   : > { %v10076_v50 = vadd.f32 %v5820_v57, %v5819_v19  ;;  %v5822_v23 = vpop.f32.mrb[98].mxu0  ;;  %v3185_v38 = vpack.c.bf16 %v3165_v2, %v3163_v52 }
 0x6a1   : > { %v5823_v14 = vpop.f32.mrb[99].mxu0  ;;  %v10096_v28 = vpop.eup %6863 }
 0x6a2   : > { %v10082_v39 = vadd.f32 %v5823_v14, %v5822_v23  ;;  %v11551_v23 = vld [vmem:[#allocation92_spill] sm:$0xff]  ;;  %v3164_v14 = vmul.f32 %v6862_v27, %v11552_v20 }
 0x6a3   : > { %v10101_v44 = vpop.eup %6865 }
 0x6a4   : > { %v2604_v13 = vpack.c.bf16 %v10082_v39, %v10076_v50  ;;  %v3867_v22 = vadd.f32 %v10101_v44, %v10096_v28  ;;  %v6868_v19 = vpop.eup %6867  ;;  %v3162_v50 = vmul.f32 %v6860_v51, %v11550_v34 }
 0x6a5   : > { %3311 = vmatmul.mubr.bf16.gmra.mrb[140].mxu0 %v3180_v48  ;;  %v6870_v16 = vpop.eup %6869  ;;  %v3167_v31 = vmul.f32 %v6868_v19, %v11551_v23  ;;  %v11554_v48 = vld [vmem:[#allocation55_spill] sm:$0xff] }
 0x6a6   : > { %3853 = vadd.xlane.f32.xlu1 %v3852_v36  ;;  %3318 = vmatprep.mubr.bf16.mxu0 %v3183_v54  ;;  %v3169_v3 = vmul.f32 %v6870_v16, %v11553_v30  ;;  %v3184_v39 = vpack.c.bf16 %v3164_v14, %v3162_v50  ;;  %v6872_v10 = vpop.eup %6871  ;;  %v3166_v36 = vmul.f32 %v6868_v19, %v11554_v48  ;;  %v11560_v19 = vld [vmem:[#allocation66_spill] sm:$0xff]  ;;  %v3982_v50 = vpop.permute.xlu0 %3981 }
 0x6a7   : > { %v6874_v9 = vpop.eup %6873  ;;  %v3171_v51 = vmul.f32 %v6872_v10, %v11555_v29 }
 0x6a8   : > { %v3187_v25 = vpack.c.bf16 %v3169_v3, %v3167_v31  ;;  %v3173_v63 = vmul.f32 %v6874_v9, %v11557_v45 }
 0x6aa   : > { %v5825_v53 = vpop.f32.mrb[100].mxu0  ;;  %3862 = vadd.xlane.f32.xlu1 %v3861_v49  ;;  %v11556_v49 = vld [vmem:[#allocation62_spill] sm:$0xff] }
 0x6ab   : > { %v5826_v11 = vpop.f32.mrb[101].mxu0  ;;  %v3168_v42 = vmul.f32 %v6870_v16, %v11556_v49 }
 0x6ac   : > { %v5827_v59 = vadd.f32 %v5826_v11, %v5825_v53  ;;  %v5828_v62 = vpop.f32.mrb[102].mxu0  ;;  %v3189_v11 = vpack.c.bf16 %v3173_v63, %v3171_v51  ;;  %v11563_v63 = vld [vmem:[#allocation75_spill] sm:$0xff] }
 0x6ad   : > { %v5829_v57 = vpop.f32.mrb[103].mxu0  ;;  %3319 = vmatmul.mubr.bf16.gmra.mrb[144].mxu0 %v3182_v37  ;;  %v3186_v43 = vpack.c.bf16 %v3168_v42, %v3166_v36 }
 0x6ae   : > { %v5830_v17 = vadd.f32 %v5829_v57, %v5828_v62  ;;  %3868 = vadd.xlane.f32.xlu1 %v3867_v22  ;;  %3326 = vmatprep.mubr.bf16.mxu0 %v3185_v38  ;;  %v11559_v22 = vld [vmem:[#allocation95_spill] sm:$0xff]  ;;  %v3172_v57 = vmul.f32 %v6874_v9, %v11560_v19  ;;  %v11565_v19 = vld [vmem:[#allocation68_spill] sm:$0xff] }
 0x6af   : > { %v3890_v38 = vmul.f32 %v10045_v7, %v11559_v22 }
 0x6b0   : > { %v2605_v1 = vpack.c.bf16 %v5830_v17, %v5827_v59  ;;  %v11558_v59 = vld [vmem:[#allocation94_spill] sm:$0xff]  ;;  %v11561_v17 = vld [vmem:[#allocation71_spill] sm:$0xff] }
 0x6b1   : > { %v3170_v62 = vmul.f32 %v6872_v10, %v11558_v59  ;;  %v3892_v16 = vmul.f32 %v10034_v56, %v11561_v17  ;;  %v11566_v17 = vld [vmem:[#allocation107_spill] sm:$0xff] }
 0x6b2   : > { %2622 = vrot.lane.b32.xlu0 %v2605_v1, %s7399_s19 }
 0x6b3   : > { %v3188_v34 = vpack.c.bf16 %v3172_v57, %v3170_v62  ;;  %v3922_v1 = vpack.c.bf16 %v3892_v16, %v3890_v38  ;;  %v11564_v62 = vld [vmem:[#allocation96_spill] sm:$0xff] }
 0x6b5   : > { %3327 = vmatmul.mubr.bf16.gmra.mrb[148].mxu0 %v3184_v39 }
 0x6b6   : > { %3334 = vmatprep.mubr.bf16.mxu0 %v3187_v25  ;;  %v5831_v54 = vpop.f32.mrb[104].mxu0 }
 0x6b7   : > { %v5832_v47 = vpop.f32.mrb[105].mxu0 }
 0x6b8   : > { %v10117_v52 = vadd.f32 %v5832_v47, %v5831_v54  ;;  %v5834_v27 = vpop.f32.mrb[106].mxu0  ;;  %v6876_v47 = vpop.eup %6875 }
 0x6b9   : > { %v5835_v53 = vpop.f32.mrb[107].mxu0  ;;  %v6878_v42 = vpop.eup %6877  ;;  %v3895_v22 = vmul.f32 %v6876_v47, %v11564_v62 }
 0x6ba   : > { %v10120_v2 = vadd.f32 %v5835_v53, %v5834_v27  ;;  %v11562_v27 = vld [vmem:[#allocation97_spill] sm:$0xff]  ;;  %v3894_v53 = vmul.f32 %v6878_v42, %v11563_v63  ;;  %v3893_v57 = vmul.f32 %v6878_v42, %v11565_v19 }
 0x6bb   : > { %v3896_v45 = vmul.f32 %v6876_v47, %v11562_v27 }
 0x6bc   : > { %v2606_v37 = vpack.c.bf16 %v10120_v2, %v10117_v52 }
 0x6bd   : > { %3335 = vmatmul.mubr.bf16.gmra.mrb[152].mxu0 %v3186_v43  ;;  %v3924_v43 = vpack.c.bf16 %v3896_v45, %v3894_v53 }
 0x6be   : > { %3342 = vmatprep.mubr.bf16.mxu0 %v3189_v11 }
 0x6bf   : > { %2620 = vrot.lane.b32.xlu1 %v2604_v13, %s7399_s19 }
 0x6c5   : > { %v3842_v23 = vpop.xlane.xlu1 %3841  ;;  %3343 = vmatmul.mubr.bf16.gmra.mrb[156].mxu0 %v3188_v34  ;;  %v3845_v31 = vpop.xlane.xlu0 %3844  ;;  %v3923_v34 = vpack.c.bf16 %v3895_v22, %v3893_v57 }
 0x6c6   : > { %4033 = vmatprep.mubr.bf16.mxu0 %v3922_v1  ;;  %6879 = vrcp.f32 %v3842_v23 }
 0x6c7   : > { %6881 = vrcp.f32 %v10066_v4 }
 0x6c9   : > { %v3964_v20 = vpop.permute.xlu1 %3963  ;;  %v3984_v14 = vpop.permute.xlu0 %3983 }
 0x6ca   : > { %6006 = vmatpush3.bf16.msra.mxu0 %v3964_v20  ;;  %v11568_v20 = vld [vmem:[#allocation104_spill] sm:$0xff] }
 0x6cb   : > { %6007 = vmatprep.subr.bf16.mxu0 %v3982_v50 }
 0x6cd   : > { %v3966_v13 = vpop.permute.xlu1 %3965 }
 0x6ce   : > { %6008 = vmatpush3.bf16.msra.mxu0 %v3966_v13 }
 0x6cf   : > { %6009 = vmatprep.subr.bf16.mxu0 %v3984_v14  ;;  %v11569_v14 = vld [vmem:[#allocation98_spill] sm:$0xff] }
 0x6d0   : > { %v6880_v11 = vpop.eup %6879 }
 0x6d1   : > { %v6882_v4 = vpop.eup %6881  ;;  %v3900_v38 = vmul.f32 %v6880_v11, %v9878_v41  ;;  %v3899_v60 = vmul.f32 %v6880_v11, %v11567_v0 }
 0x6d2   : > { %v3898_v16 = vmul.f32 %v6882_v4, %v11566_v17  ;;  %v3897_v13 = vmul.f32 %v6882_v4, %v11568_v20 }
 0x6d4   : > { %v3926_v50 = vpack.c.bf16 %v3900_v38, %v3898_v16 }
 0x6ef   : > { %v5837_v7 = vpop.f32.mrb[108].mxu0 }
 0x6f0   : > { %v5838_v30 = vpop.f32.mrb[109].mxu0 }
 0x6f1   : > { %v10131_v3 = vadd.f32 %v5838_v30, %v5837_v7  ;;  %v5840_v39 = vpop.f32.mrb[110].mxu0  ;;  %v3925_v30 = vpack.c.bf16 %v3899_v60, %v3897_v13 }
 0x6f2   : > { %v5841_v56 = vpop.f32.mrb[111].mxu0 }
 0x6f3   : > { %v10133_v25 = vadd.f32 %v5841_v56, %v5840_v39 }
 0x6f5   : > { %v2607_v10 = vpack.c.bf16 %v10133_v25, %v10131_v3 }
 0x6f7   : > { %v5843_v9 = vpop.f32.mrb[112].mxu0 }
 0x6f8   : > { %v5844_v48 = vpop.f32.mrb[113].mxu0 }
 0x6f9   : > { %v10139_v36 = vadd.f32 %v5844_v48, %v5843_v9  ;;  %v5846_v54 = vpop.f32.mrb[114].mxu0  ;;  %v11570_v48 = vld [vmem:[#allocation43_spill] sm:$0xff] }
 0x6fa   : > { %v5847_v29 = vpop.f32.mrb[115].mxu0  ;;  %v3851_v59 = vpop.xlane.xlu0 %3850 }
 0x6fb   : > { %v10141_v51 = vadd.f32 %v5847_v29, %v5846_v54 }
 0x6fd   : > { %v2608_v6 = vpack.c.bf16 %v10141_v51, %v10139_v36 }
 0x6fe   : > { %v3848_v49 = vpop.xlane.xlu1 %3847  ;;  %v3857_v23 = vpop.xlane.xlu0 %3856 }
 0x6ff   : > { %6883 = vrcp.f32 %v3848_v49 }
 0x700   : > { %6885 = vrcp.f32 %v3845_v31 }
 0x701   : > { %6887 = vrcp.f32 %v3851_v59 }
 0x702   : > { %v3968_v18 = vpop.permute.xlu1 %3967  ;;  %v3860_v41 = vpop.xlane.xlu0 %3859 }
 0x703   : > { %6010 = vmatpush3.bf16.msra.mxu0 %v3968_v18  ;;  %6889 = vrcp.f32 %v3860_v41 }
 0x704   : > { %6891 = vrcp.f32 %v3857_v23 }
 0x706   : > { %4034 = vmatmul.mubr.bf16.vlgmr.msra.gmra.mrb[160].mxu0 %v3921_v55  ;;  %v3866_v9 = vpop.xlane.xlu0 %3865 }
 0x707   : > { %4041 = vmatprep.mubr.bf16.mxu0 %v3924_v43 }
 0x709   : > { %v6884_v1 = vpop.eup %6883 }
 0x70a   : > { %v6886_v31 = vpop.eup %6885  ;;  %v3904_v55 = vmul.f32 %v6884_v1, %v9962_v15  ;;  %v3903_v56 = vmul.f32 %v6884_v1, %v9950_v8  ;;  %v3872_v18 = vpop.xlane.xlu0 %3871 }
 0x70b   : > { %v3902_v7 = vmul.f32 %v6886_v31, %v11569_v14  ;;  %v3901_v54 = vmul.f32 %v6886_v31, %v11570_v48  ;;  %v6888_v11 = vpop.eup %6887 }
 0x70c   : > { %v3906_v19 = vmul.f32 %v6888_v11, %v9946_v32  ;;  %v3905_v16 = vmul.f32 %v6888_v11, %v9944_v12 }
 0x70d   : > { %v3928_v39 = vpack.c.bf16 %v3904_v55, %v3902_v7  ;;  %v3927_v49 = vpack.c.bf16 %v3903_v56, %v3901_v54  ;;  %v6890_v62 = vpop.eup %6889 }
 0x70e   : > { %4042 = vmatmul.mubr.bf16.gmra.mrb[164].mxu0 %v3923_v34  ;;  %v6892_v22 = vpop.eup %6891  ;;  %v3912_v34 = vmul.f32 %v6890_v62, %v9968_v35  ;;  %v3911_v12 = vmul.f32 %v6890_v62, %v9964_v33 }
 0x70f   : > { %4049 = vmatprep.mubr.bf16.mxu0 %v3926_v50  ;;  %v3910_v23 = vmul.f32 %v6892_v22, %v9958_v61 }
 0x711   : > { %v3932_v31 = vpack.c.bf16 %v3912_v34, %v3910_v23 }
 0x716   : > { %4050 = vmatmul.mubr.bf16.gmra.mrb[168].mxu0 %v3925_v30  ;;  %v11572_v30 = vld [vmem:[#allocation110_spill] sm:$0xff] }
 0x717   : > { %4057 = vmatprep.mubr.bf16.mxu0 %v3928_v39 }
 0x71b   : > { %v5849_v29 = vpop.f32.mrb[116].mxu0 }
 0x71c   : > { %v5850_v47 = vpop.f32.mrb[117].mxu0 }
 0x71d   : > { %v10161_v42 = vadd.f32 %v5850_v47, %v5849_v29  ;;  %v5852_v15 = vpop.f32.mrb[118].mxu0 }
 0x71e   : > { %v5853_v27 = vpop.f32.mrb[119].mxu0  ;;  %4058 = vmatmul.mubr.bf16.gmra.mrb[172].mxu0 %v3927_v49 }
 0x71f   : > { %v10163_v45 = vadd.f32 %v5853_v27, %v5852_v15 }
 0x721   : > { %v2609_v63 = vpack.c.bf16 %v10163_v45, %v10161_v42 }
 0x724   : > { %v2623_v53 = vpop.permute.xlu0 %2622 }
 0x725   : > { %2646 = vst.msk [vmem:[#allocation3 + $0x8] sm:$0xff] %vm2644_vm1, %v2623_v53 }
 0x733   : > { %v3854_v8 = vpop.xlane.xlu1 %3853 }
 0x734   : > { %6893 = vrcp.f32 %v3854_v8 }
 0x737   : > { %v3863_v43 = vpop.xlane.xlu1 %3862 }
 0x738   : > { %6895 = vrcp.f32 %v3863_v43 }
 0x739   : > { %6897 = vrcp.f32 %v3866_v9 }
 0x73b   : > { %v3869_v4 = vpop.xlane.xlu1 %3868 }
 0x73c   : > { %6899 = vrcp.f32 %v3869_v4 }
 0x73d   : > { %6901 = vrcp.f32 %v3872_v18 }
 0x73e   : > { %v6894_v38 = vpop.eup %6893 }
 0x73f   : > { %v2621_v57 = vpop.permute.xlu1 %2620  ;;  %v3908_v17 = vmul.f32 %v6894_v38, %v10079_v24  ;;  %v3907_v59 = vmul.f32 %v6894_v38, %v10074_v21  ;;  %v11571_v24 = vld [vmem:[#allocation99_spill] sm:$0xff] }
 0x740   : > { %2645 = vst.msk [vmem:[#allocation3] sm:$0xff] %vm2644_vm1, %v2621_v57  ;;  %v3909_v35 = vmul.f32 %v6892_v22, %v11571_v24 }
 0x741   : > { %v3930_v50 = vpack.c.bf16 %v3908_v17, %v3906_v19  ;;  %v3929_v1 = vpack.c.bf16 %v3907_v59, %v3905_v16 }
 0x742   : > { %v6896_v0 = vpop.eup %6895  ;;  %v3931_v55 = vpack.c.bf16 %v3911_v12, %v3909_v35 }
 0x743   : > { %4065 = vmatprep.mubr.bf16.mxu0 %v3930_v50  ;;  %v6898_v32 = vpop.eup %6897  ;;  %v3914_v21 = vmul.f32 %v6896_v0, %v10088_v5  ;;  %v3913_v14 = vmul.f32 %v6896_v0, %v10085_v40 }
 0x744   : > { %4066 = vmatmul.mubr.bf16.gmra.mrb[176].mxu0 %v3929_v1  ;;  %v3916_v60 = vmul.f32 %v6898_v32, %v9979_v26  ;;  %v3915_v39 = vmul.f32 %v6898_v32, %v11572_v30 }
 0x745   : > { %4073 = vmatprep.mubr.bf16.mxu0 %v3932_v31 }
 0x746   : > { %v3934_v20 = vpack.c.bf16 %v3916_v60, %v3914_v21  ;;  %v6900_v13 = vpop.eup %6899  ;;  %v3933_v26 = vpack.c.bf16 %v3915_v39, %v3913_v14 }
 0x747   : > { %v6902_v61 = vpop.eup %6901  ;;  %v3918_v7 = vmul.f32 %v6900_v13, %v10101_v44  ;;  %v3917_v44 = vmul.f32 %v6900_v13, %v10096_v28 }
 0x748   : > { %v3920_v5 = vmul.f32 %v6902_v61, %v9984_v58  ;;  %v3919_v49 = vmul.f32 %v6902_v61, %v9981_v46 }
 0x74a   : > { %v3936_v54 = vpack.c.bf16 %v3920_v5, %v3918_v7  ;;  %v3935_v18 = vpack.c.bf16 %v3919_v49, %v3917_v44 }
 0x74c   : > { %4074 = vmatmul.mubr.bf16.gmra.mrb[180].mxu0 %v3931_v55 }
 0x74d   : > { %4081 = vmatprep.mubr.bf16.mxu0 %v3934_v20 }
 0x750   : > { %v5855_v41 = vpop.f32.mrb[120].mxu0 }
 0x751   : > { %v5856_v33 = vpop.f32.mrb[121].mxu0 }
 0x752   : > { %v10183_v56 = vadd.f32 %v5856_v33, %v5855_v41  ;;  %v5858_v9 = vpop.f32.mrb[122].mxu0 }
 0x753   : > { %v5859_v48 = vpop.f32.mrb[123].mxu0 }
 0x754   : > { %v10185_v29 = vadd.f32 %v5859_v48, %v5858_v9  ;;  %4082 = vmatmul.mubr.bf16.gmra.mrb[184].mxu0 %v3933_v26 }
 0x755   : > { %4089 = vmatprep.mubr.bf16.mxu0 %v3936_v54 }
 0x756   : > { %v2610_v40 = vpack.c.bf16 %v10185_v29, %v10183_v56 }
 0x758   : > { %v5861_v47 = vpop.f32.mrb[124].mxu0 }
 0x759   : > { %v5862_v15 = vpop.f32.mrb[125].mxu0 }
 0x75a   : > { %v10191_v58 = vadd.f32 %v5862_v15, %v5861_v47  ;;  %v5864_v27 = vpop.f32.mrb[126].mxu0 }
 0x75b   : > { %v5865_v53 = vpop.f32.mrb[127].mxu0 }
 0x75c   : > { %v10193_v8 = vadd.f32 %v5865_v53, %v5864_v27  ;;  %4090 = vmatmul.mubr.bf16.gmra.mrb[188].mxu0 %v3935_v18 }
 0x75e   : > { %v2611_v43 = vpack.c.bf16 %v10193_v8, %v10191_v58 }
 0x760   : > { %v5915_v11 = vpop.f32.mrb[128].mxu0 }
 0x761   : > { %v5916_v4 = vpop.f32.mrb[129].mxu0 }
 0x762   : > { %v5917_v62 = vadd.f32 %v5916_v4, %v5915_v11  ;;  %v5918_v22 = vpop.f32.mrb[130].mxu0 }
 0x763   : > { %v5919_v28 = vpop.f32.mrb[131].mxu0 }
 0x764   : > { %v5920_v38 = vadd.f32 %v5919_v28, %v5918_v22 }
 0x766   : > { %v3351_v19 = vpack.c.bf16 %v5920_v38, %v5917_v62 }
 0x768   : > { %3367 = vrot.lane.b32.xlu1 %v3351_v19, %s7397_s28  ;;  %v5921_v46 = vpop.f32.mrb[132].mxu0 }
 0x769   : > { %v5922_v57 = vpop.f32.mrb[133].mxu0 }
 0x76a   : > { %v5923_v17 = vadd.f32 %v5922_v57, %v5921_v46  ;;  %v5924_v16 = vpop.f32.mrb[134].mxu0 }
 0x76b   : > { %v5925_v59 = vpop.f32.mrb[135].mxu0 }
 0x76c   : > { %v5926_v34 = vadd.f32 %v5925_v59, %v5924_v16  ;;  %v6471_v16 = vld [vmem:[#allocation12] sm:$0xff]   ;;  %v6472_v59 = vld [vmem:[#allocation12 + $0x8] sm:$0xff]  }
 0x76d   : > { %6171 = vmatprep.subr.bf16.mxu1 %v6471_v16 }
 0x76e   : > { %v3352_v50 = vpack.c.bf16 %v5926_v34, %v5923_v17  ;;  %6172 = vmatpush3.bf16.msra.mxu1 %v6471_v16  ;;  %v6473_v34 = vld [vmem:[#allocation12 + $0x10] sm:$0xff]  }
 0x76f   : > { %6173 = vmatprep.subr.bf16.mxu1 %v6472_v59 }
 0x770   : > { %3369 = vrot.lane.b32.xlu1 %v3352_v50, %s7397_s28  ;;  %v5927_v1 = vpop.f32.mrb[136].mxu0  ;;  %v6474_v50 = vld [vmem:[#allocation12 + $0x18] sm:$0xff]  }
 0x771   : > { %v5928_v23 = vpop.f32.mrb[137].mxu0 }
 0x772   : > { %v10199_v31 = vadd.f32 %v5928_v23, %v5927_v1  ;;  %v5930_v0 = vpop.f32.mrb[138].mxu0  ;;  %6174 = vmatpush3.bf16.msra.mxu1 %v6472_v59  ;;  %v6475_v1 = vld [vmem:[#allocation12 + $0x20] sm:$0xff]   ;;  %v6476_v23 = vld [vmem:[#allocation12 + $0x28] sm:$0xff]  }
 0x773   : > { %v5931_v32 = vpop.f32.mrb[139].mxu0  ;;  %6175 = vmatprep.subr.bf16.mxu1 %v6473_v34 }
 0x774   : > { %v10201_v12 = vadd.f32 %v5931_v32, %v5930_v0 }
 0x776   : > { %v3353_v21 = vpack.c.bf16 %v10201_v12, %v10199_v31  ;;  %6176 = vmatpush3.bf16.msra.mxu1 %v6473_v34 }
 0x777   : > { %6177 = vmatprep.subr.bf16.mxu1 %v6474_v50 }
 0x778   : > { %v5933_v24 = vpop.f32.mrb[140].mxu0 }
 0x779   : > { %v5934_v35 = vpop.f32.mrb[141].mxu0 }
 0x77a   : > { %v10205_v60 = vadd.f32 %v5934_v35, %v5933_v24  ;;  %v5936_v55 = vpop.f32.mrb[142].mxu0  ;;  %6178 = vmatpush3.bf16.msra.mxu1 %v6474_v50 }
 0x77b   : > { %v5937_v20 = vpop.f32.mrb[143].mxu0  ;;  %6179 = vmatprep.subr.bf16.mxu1 %v6475_v1 }
 0x77c   : > { %v10207_v13 = vadd.f32 %v5937_v20, %v5936_v55 }
 0x77e   : > { %v3354_v61 = vpack.c.bf16 %v10207_v13, %v10205_v60  ;;  %6180 = vmatpush3.bf16.msra.mxu1 %v6475_v1 }
 0x77f   : > { %6181 = vmatprep.subr.bf16.mxu1 %v6476_v23 }
 0x780   : > { %v5939_v14 = vpop.f32.mrb[144].mxu0 }
 0x781   : > { %v5940_v7 = vpop.f32.mrb[145].mxu0 }
 0x782   : > { %v10211_v41 = vadd.f32 %v5940_v7, %v5939_v14  ;;  %v5942_v30 = vpop.f32.mrb[146].mxu0  ;;  %6182 = vmatpush3.bf16.msra.mxu1 %v6476_v23  ;;  %v6477_v14 = vld [vmem:[#allocation12 + $0x30] sm:$0xff]  }
 0x783   : > { %v5943_v39 = vpop.f32.mrb[147].mxu0  ;;  %6183 = vmatprep.subr.bf16.mxu1 %v6477_v14 }
 0x784   : > { %v10213_v33 = vadd.f32 %v5943_v39, %v5942_v30  ;;  %v6478_v39 = vld [vmem:[#allocation12 + $0x38] sm:$0xff]  }
 0x786   : > { %v3355_v5 = vpack.c.bf16 %v10213_v33, %v10211_v41  ;;  %6184 = vmatpush3.bf16.msra.mxu1 %v6477_v14 }
 0x787   : > { %6185 = vmatprep.subr.bf16.mxu1 %v6478_v39 }
 0x788   : > { %v5945_v9 = vpop.f32.mrb[148].mxu0 }
 0x789   : > { %v5946_v26 = vpop.f32.mrb[149].mxu0 }
 0x78a   : > { %v10217_v48 = vadd.f32 %v5946_v26, %v5945_v9  ;;  %v5948_v54 = vpop.f32.mrb[150].mxu0  ;;  %6186 = vmatpush3.bf16.msra.mxu1 %v6478_v39 }
 0x78b   : > { %v5949_v44 = vpop.f32.mrb[151].mxu0 }
 0x78c   : > { %v10219_v47 = vadd.f32 %v5949_v44, %v5948_v54 }
 0x78e   : > { %v3356_v49 = vpack.c.bf16 %v10219_v47, %v10217_v48 }
 0x790   : > { %v5951_v15 = vpop.f32.mrb[152].mxu0 }
 0x791   : > { %v5952_v27 = vpop.f32.mrb[153].mxu0 }
 0x792   : > { %v10223_v18 = vadd.f32 %v5952_v27, %v5951_v15  ;;  %v5954_v53 = vpop.f32.mrb[154].mxu0 }
 0x793   : > { %v5955_v11 = vpop.f32.mrb[155].mxu0 }
 0x794   : > { %v10225_v4 = vadd.f32 %v5955_v11, %v5954_v53 }
 0x796   : > { %v3357_v62 = vpack.c.bf16 %v10225_v4, %v10223_v18 }
 0x798   : > { %v5957_v22 = vpop.f32.mrb[156].mxu0 }
 0x799   : > { %v5958_v28 = vpop.f32.mrb[157].mxu0 }
 0x79a   : > { %v10229_v38 = vadd.f32 %v5958_v28, %v5957_v22  ;;  %v5960_v19 = vpop.f32.mrb[158].mxu0 }
 0x79b   : > { %v5961_v46 = vpop.f32.mrb[159].mxu0 }
 0x79c   : > { %v10231_v57 = vadd.f32 %v5961_v46, %v5960_v19 }
 0x79e   : > { %v3358_v17 = vpack.c.bf16 %v10231_v57, %v10229_v38 }
 0x7d9   : > { %v6011_v0 = vpop.f32.mrb[160].mxu0 }
 0x7da   : > { %v3368_v32 = vpop.permute.xlu1 %3367  ;;  %v6012_v24 = vpop.f32.mrb[161].mxu0 }
 0x7db   : > { %3392 = vst.msk [vmem:[#allocation3] sm:$0xff] %vm3391_vm2, %v3368_v32  ;;  %v6013_v35 = vadd.f32 %v6012_v24, %v6011_v0  ;;  %v6014_v55 = vpop.f32.mrb[162].mxu0 }
 0x7dc   : > { %v6015_v20 = vpop.f32.mrb[163].mxu0 }
 0x7dd   : > { %v6016_v7 = vadd.f32 %v6015_v20, %v6014_v55 }
 0x7df   : > { %v4098_v30 = vpack.c.bf16 %v6016_v7, %v6013_v35 }
 0x7e1   : > { %v6017_v9 = vpop.f32.mrb[164].mxu0  ;;  %4114 = vrot.lane.b32.xlu0 %v4098_v30, %s7398_s27 }
 0x7e2   : > { %v3370_v26 = vpop.permute.xlu1 %3369  ;;  %v6018_v54 = vpop.f32.mrb[165].mxu0 }
 0x7e3   : > { %3393 = vst.msk [vmem:[#allocation3 + $0x8] sm:$0xff] %vm3391_vm2, %v3370_v26  ;;  %v6019_v44 = vadd.f32 %v6018_v54, %v6017_v9  ;;  %v6020_v15 = vpop.f32.mrb[166].mxu0 }
 0x7e4   : > { %v6021_v27 = vpop.f32.mrb[167].mxu0 }
 0x7e5   : > { %v6022_v53 = vadd.f32 %v6021_v27, %v6020_v15  ;;  %2624 = vrot.lane.b32.xlu0 %v2606_v37, %s7399_s19 }
 0x7e7   : > { %v4099_v11 = vpack.c.bf16 %v6022_v53, %v6019_v44 }
 0x7e9   : > { %v6023_v22 = vpop.f32.mrb[168].mxu0  ;;  %4116 = vrot.lane.b32.xlu1 %v4099_v11, %s7398_s27  ;;  %3371 = vrot.lane.b32.xlu0 %v3353_v21, %s7397_s28 }
 0x7ea   : > { %v6024_v28 = vpop.f32.mrb[169].mxu0 }
 0x7eb   : > { %v6025_v19 = vadd.f32 %v6024_v28, %v6023_v22  ;;  %v6026_v46 = vpop.f32.mrb[170].mxu0 }
 0x7ec   : > { %v6027_v16 = vpop.f32.mrb[171].mxu0 }
 0x7ed   : > { %v6028_v59 = vadd.f32 %v6027_v16, %v6026_v46  ;;  %2626 = vrot.lane.b32.xlu1 %v2607_v10, %s7399_s19 }
 0x7ef   : > { %v4100_v52 = vpack.c.bf16 %v6028_v59, %v6025_v19 }
 0x7f1   : > { %v6029_v2 = vpop.f32.mrb[172].mxu0  ;;  %3373 = vrot.lane.b32.xlu1 %v3354_v61, %s7397_s28  ;;  %4118 = vrot.lane.b32.xlu0 %v4100_v52, %s7398_s27  ;;  %v11573_v52 = vmov 0  }
 0x7f2   : > { %v6030_v37 = vpop.f32.mrb[173].mxu0 }
 0x7f3   : > { %v6031_v31 = vadd.f32 %v6030_v37, %v6029_v2  ;;  %v6032_v12 = vpop.f32.mrb[174].mxu0  ;;  %v10317_v2 = vld [vmem:[%s11574_s13] ss:$0 sm:$0xff]  ;;  %s5654_s13 = sshll.u32 %s11583_s21, 5 }
 0x7f4   : > { %v6033_v21 = vpop.f32.mrb[175].mxu0 }
 0x7f5   : > { %v6034_v34 = vadd.f32 %v6033_v21, %v6032_v12  ;;  %2628 = vrot.lane.b32.xlu0 %v2608_v6, %s7399_s19 }
 0x7f7   : > { %v4101_v3 = vpack.c.bf16 %v6034_v34, %v6031_v31 }
 0x7f9   : > { %4120 = vrot.lane.b32.xlu1 %v4101_v3, %s7398_s27  ;;  %3375 = vrot.lane.b32.xlu0 %v3355_v5, %s7397_s28 }
 0x7fd   : > { %2630 = vrot.lane.b32.xlu1 %v2609_v63, %s7399_s19 }
 0x801   : > { %3377 = vrot.lane.b32.xlu1 %v3356_v49, %s7397_s28 }
 0x817   : > { %v6035_v25 = vpop.f32.mrb[176].mxu0 }
 0x818   : > { %v6036_v10 = vpop.f32.mrb[177].mxu0 }
 0x819   : > { %v6037_v36 = vadd.f32 %v6036_v10, %v6035_v25  ;;  %v6038_v51 = vpop.f32.mrb[178].mxu0  ;;  %v6967_v25 = vld [vmem:[%s7899_s7] sm:$0xff] }
 0x81a   : > { %v6039_v6 = vpop.f32.mrb[179].mxu0 }
 0x81b   : > { %v6040_v60 = vadd.f32 %v6039_v6, %v6038_v51  ;;  %v6968_v51 = vld [vmem:[%s7899_s7 + $0x8] sm:$0xff] }
 0x81d   : > { %v4102_v13 = vpack.c.bf16 %v6040_v60, %v6037_v36  ;;  %v6969_v60 = vld [vmem:[%s7899_s7 + $0x10] sm:$0xff] }
 0x81f   : > { %4122 = vrot.lane.b32.xlu0 %v4102_v13, %s7398_s27  ;;  %v6041_v61 = vpop.f32.mrb[180].mxu0 }
 0x820   : > { %v6042_v41 = vpop.f32.mrb[181].mxu0 }
 0x821   : > { %v6043_v33 = vadd.f32 %v6042_v41, %v6041_v61  ;;  %v6044_v5 = vpop.f32.mrb[182].mxu0  ;;  %v6970_v41 = vld [vmem:[%s7899_s7 + $0x18] sm:$0xff] }
 0x822   : > { %v6045_v42 = vpop.f32.mrb[183].mxu0 }
 0x823   : > { %v6046_v45 = vadd.f32 %v6045_v42, %v6044_v5  ;;  %2632 = vrot.lane.b32.xlu0 %v2610_v40, %s7399_s19 }
 0x825   : > { %v4103_v63 = vpack.c.bf16 %v6046_v45, %v6043_v33 }
 0x827   : > { %3379 = vrot.lane.b32.xlu0 %v3357_v62, %s7397_s28  ;;  %4124 = vrot.lane.b32.xlu1 %v4103_v63, %s7398_s27  ;;  %v6047_v48 = vpop.f32.mrb[184].mxu0 }
 0x828   : > { %v6048_v47 = vpop.f32.mrb[185].mxu0 }
 0x829   : > { %v6049_v49 = vadd.f32 %v6048_v47, %v6047_v48  ;;  %v6050_v50 = vpop.f32.mrb[186].mxu0 }
 0x82a   : > { %v6051_v1 = vpop.f32.mrb[187].mxu0 }
 0x82b   : > { %v6052_v23 = vadd.f32 %v6051_v1, %v6050_v50  ;;  %2634 = vrot.lane.b32.xlu1 %v2611_v43, %s7399_s19  ;;  %s10851_s19 = scalar_lea.vmem [#allocation19], %s5539_s20  ;;  %s11582_s20 = sld [smem:[#allocation28_spill]] }
 0x82c   : > { %s5341_s3 = sshll.u32 %s10851_s19, 4  ;;  %s10912_s3 = int_to_ptr.vmem [resolvable:$true] %s5341_s3 }
 0x82d   : > { %v4104_v56 = vpack.c.bf16 %v6052_v23, %v6049_v49  ;;  %v6971_v49 = vld [vmem:[%s7899_s7 + $0x20] sm:$0xff] }
 0x82f   : > { %3381 = vrot.lane.b32.xlu1 %v3358_v17, %s7397_s28  ;;  %4126 = vrot.lane.b32.xlu0 %v4104_v56, %s7398_s27  ;;  %v6053_v29 = vpop.f32.mrb[188].mxu0  ;;  %v6972_v56 = vld [vmem:[%s7899_s7 + $0x28] sm:$0xff]  ;;  %s7243_s28 = sshll.u32 %s7400_s5, 4  ;;  %s7244_s28 = int_to_ptr.vmem [resolvable:$false] %s7243_s28 }
 0x830   : > { %v6054_v40 = vpop.f32.mrb[189].mxu0  ;;  %p7246_p6 = scmp.lt.s32.totalorder %s10912_s3, %s7244_s28 }
 0x831   : > { %v6055_v18 = vadd.f32 %v6054_v40, %v6053_v29  ;;  %v6056_v4 = vpop.f32.mrb[190].mxu0  ;;  %v6973_v40 = vld [vmem:[%s7899_s7 + $0x30] sm:$0xff]  ;;  %s5653_s2 = sshll.u32 %s11582_s20, 4 }
 0x832   : > { %v6057_v62 = vpop.f32.mrb[191].mxu0 }
 0x833   : > { %v6058_v0 = vadd.f32 %v6057_v62, %v6056_v4  ;;  %v6974_v4 = vld [vmem:[%s7899_s7 + $0x38] sm:$0xff] }
 0x835   : > { %v4105_v32 = vpack.c.bf16 %v6058_v0, %v6055_v18 }
 0x837   : > { %4128 = vrot.lane.b32.xlu1 %v4105_v32, %s7398_s27  ;;  %s11581_s27 = sld [smem:[#allocation184_spill]] }
 0x853   : > { %v4115_v58 = vpop.permute.xlu0 %4114 }
 0x854   : > { %4139 = vst.msk [vmem:[#allocation3] sm:$0xff] %vm4138_vm3, %v4115_v58 }
 0x857   : > { %v2625_v8 = vpop.permute.xlu0 %2624 }
 0x858   : > { %2647 = vst.msk [vmem:[#allocation3 + $0x10] sm:$0xff] %vm2644_vm1, %v2625_v8 }
 0x85b   : > { %v4117_v43 = vpop.permute.xlu1 %4116  ;;  %v3372_v38 = vpop.permute.xlu0 %3371  ;;  %v4147_v57 = vld [vmem:[#allocation3] sm:$0xff] }
 0x85c   : > { %4140 = vst.msk [vmem:[#allocation3 + $0x8] sm:$0xff] %vm4138_vm3, %v4117_v43  ;;  %6187 = vmatprep.mubr.bf16.mxu1 %v4147_v57  ;;  %v6975_v57 = vld [vmem:[%s7899_s7 + $0x40] sm:$0xff] }
 0x85d   : > { %3394 = vst.msk [vmem:[#allocation3 + $0x10] sm:$0xff] %vm3391_vm2, %v3372_v38 }
 0x85f   : > { %v2627_v17 = vpop.permute.xlu1 %2626 }
 0x860   : > { %2648 = vst.msk [vmem:[#allocation3 + $0x18] sm:$0xff] %vm2644_vm1, %v2627_v17 }
 0x863   : > { %v3374_v24 = vpop.permute.xlu1 %3373  ;;  %v4119_v35 = vpop.permute.xlu0 %4118  ;;  %v4148_v55 = vld [vmem:[#allocation3 + $0x8] sm:$0xff] }
 0x864   : > { %3395 = vst.msk [vmem:[#allocation3 + $0x18] sm:$0xff] %vm3391_vm2, %v3374_v24  ;;  %6188 = vmatmul.mubr.bf16.vlgmr.msra.gmra.mrb[144].mxu1 %v4148_v55  ;;  %v6976_v55 = vld [vmem:[%s7899_s7 + $0x48] sm:$0xff] }
 0x865   : > { %4141 = vst.msk [vmem:[#allocation3 + $0x10] sm:$0xff] %vm4138_vm3, %v4119_v35 }
 0x867   : > { %v2629_v20 = vpop.permute.xlu0 %2628 }
 0x868   : > { %2649 = vst.msk [vmem:[#allocation3 + $0x20] sm:$0xff] %vm2644_vm1, %v2629_v20 }
 0x86b   : > { %v4121_v14 = vpop.permute.xlu1 %4120  ;;  %v3376_v7 = vpop.permute.xlu0 %3375 }
 0x86c   : > { %v4149_v30 = vld [vmem:[#allocation3 + $0x10] sm:$0xff]  ;;  %4142 = vst.msk [vmem:[#allocation3 + $0x18] sm:$0xff] %vm4138_vm3, %v4121_v14 }
 0x86d   : > { %3396 = vst.msk [vmem:[#allocation3 + $0x20] sm:$0xff] %vm3391_vm2, %v3376_v7  ;;  %6191 = vmatprep.mubr.bf16.mxu1 %v4149_v30  ;;  %v6977_v14 = vld [vmem:[%s7899_s7 + $0x50] sm:$0xff]  ;;  %v6978_v30 = vld [vmem:[%s7899_s7 + $0x58] sm:$0xff] }
 0x86f   : > { %v2631_v39 = vpop.permute.xlu1 %2630 }
 0x870   : > { %2650 = vst.msk [vmem:[#allocation3 + $0x28] sm:$0xff] %vm2644_vm1, %v2631_v39 }
 0x873   : > { %v3378_v9 = vpop.permute.xlu1 %3377  ;;  %v4150_v26 = vld [vmem:[#allocation3 + $0x18] sm:$0xff] }
 0x874   : > { %3397 = vst.msk [vmem:[#allocation3 + $0x28] sm:$0xff] %vm3391_vm2, %v3378_v9  ;;  %6192 = vmatmul.mubr.bf16.gmra.mrb[148].mxu1 %v4150_v26 }
 0x891   : > { %v4123_v54 = vpop.permute.xlu0 %4122 }
 0x892   : > { %4143 = vst.msk [vmem:[#allocation3 + $0x20] sm:$0xff] %vm4138_vm3, %v4123_v54 }
 0x895   : > { %v2633_v44 = vpop.permute.xlu0 %2632 }
 0x896   : > { %2651 = vst.msk [vmem:[#allocation3 + $0x30] sm:$0xff] %vm2644_vm1, %v2633_v44 }
 0x899   : > { %v4125_v15 = vpop.permute.xlu1 %4124  ;;  %v3380_v27 = vpop.permute.xlu0 %3379  ;;  %v4151_v53 = vld [vmem:[#allocation3 + $0x20] sm:$0xff] }
 0x89a   : > { %4144 = vst.msk [vmem:[#allocation3 + $0x28] sm:$0xff] %vm4138_vm3, %v4125_v15  ;;  %6195 = vmatprep.mubr.bf16.mxu1 %v4151_v53  ;;  %v6979_v53 = vld [vmem:[%s7899_s7 + $0x60] sm:$0xff] }
 0x89b   : > { %3398 = vst.msk [vmem:[#allocation3 + $0x30] sm:$0xff] %vm3391_vm2, %v3380_v27 }
 0x89d   : > { %v2635_v11 = vpop.permute.xlu1 %2634 }
 0x89e   : > { %2652 = vst.msk [vmem:[#allocation3 + $0x38] sm:$0xff] %vm2644_vm1, %v2635_v11 }
 0x8a1   : > { %v3382_v22 = vpop.permute.xlu1 %3381  ;;  %v4127_v28 = vpop.permute.xlu0 %4126  ;;  %v4152_v19 = vld [vmem:[#allocation3 + $0x28] sm:$0xff] }
 0x8a2   : > { %3399 = vst.msk [vmem:[#allocation3 + $0x38] sm:$0xff] %vm3391_vm2, %v3382_v22  ;;  %6196 = vmatmul.mubr.bf16.gmra.mrb[152].mxu1 %v4152_v19  ;;  %v6980_v19 = vld [vmem:[%s7899_s7 + $0x68] sm:$0xff] }
 0x8a3   : > { %4145 = vst.msk [vmem:[#allocation3 + $0x30] sm:$0xff] %vm4138_vm3, %v4127_v28 }
 0x8a9   : > { %v4129_v46 = vpop.permute.xlu1 %4128 }
 0x8aa   : > { %v4153_v16 = vld [vmem:[#allocation3 + $0x30] sm:$0xff]  ;;  %4146 = vst.msk [vmem:[#allocation3 + $0x38] sm:$0xff] %vm4138_vm3, %v4129_v46 }
 0x8ab   : > { %6199 = vmatprep.mubr.bf16.mxu1 %v4153_v16  ;;  %v6981_v16 = vld [vmem:[%s7899_s7 + $0x70] sm:$0xff] }
 0x8b1   : > { %v4154_v59 = vld [vmem:[#allocation3 + $0x38] sm:$0xff] }
 0x8b2   : > { %6200 = vmatmul.mubr.bf16.gmra.mrb[156].mxu1 %v4154_v59 }
 0x8b3   : > { %4710 = vmatprep.mubr.bf16.mxu1 %v11573_v52 }
 0x937   : > { %v6189_v37 = vpop.f32.mrb[144].mxu1 }
 0x938   : > { %v4260_v31 = vpop.f32.mrb[145].mxu1  ;;  %v4269_v3 = vadd.f32 %v6189_v37, %v10317_v2  ;;  %v6982_v37 = vld [vmem:[%s7899_s7 + $0x78] sm:$0xff]  ;;  %s5338_s7 = sadd.s32 %s5654_s13, %s5653_s2 }
 0x939   : > { %v4261_v12 = vadd.f32 %v10317_v2, %v4260_v31  ;;  %v6190_v21 = vpop.f32.mrb[146].mxu1 }
 0x93a   : > { %v4263_v34 = vpop.f32.mrb[147].mxu1  ;;  %v10330_v13 = vadd.f32 %v6969_v60, %v4269_v3  ;;  %v4272_v61 = vadd.f32 %v6190_v21, %v10317_v2  ;;  %v6481_v21 = vld [vmem:[#allocation15 + $0x4] ss:$8 sps:$4 sm:$0xff]  }
 0x93b   : > { %v10322_v10 = vadd.f32 %v6967_v25, %v4261_v12  ;;  %v4264_v36 = vadd.f32 %v10317_v2, %v4263_v34  ;;  %v6479_v12 = vld [vmem:[#allocation15] ss:$8 sps:$4 sm:$0xff]   ;;  %4678 = vmatprep.subr.bf16.mxu1 %v6481_v21  ;;  %v6482_v34 = vld [vmem:[#allocation15 + $0x10] ss:$8 sps:$4 sm:$0xff]  }
 0x93c   : > { %v10336_v33 = vadd.f32 %v6970_v41, %v4272_v61  ;;  %4679 = vmatpush1.bf16.msra.mxu1 %v6479_v12 }
 0x93d   : > { %v10326_v6 = vadd.f32 %v6968_v51, %v4264_v36  ;;  %4341 = vadd.xlane.f32.xlu0 %v10322_v10 }
 0x93f   : > { %4343 = vadd.xlane.f32.xlu1 %v10326_v6 }
 0x941   : > { %4345 = vadd.xlane.f32.xlu0 %v10330_v13 }
 0x945   : > { %4347 = vadd.xlane.f32.xlu0 %v10336_v33 }
 0x947   : > { %v6193_v5 = vpop.f32.mrb[148].mxu1 }
 0x948   : > { %v4276_v42 = vpop.f32.mrb[149].mxu1  ;;  %v4285_v47 = vadd.f32 %v6193_v5, %v10317_v2 }
 0x949   : > { %v4277_v45 = vadd.f32 %v10317_v2, %v4276_v42  ;;  %v6194_v63 = vpop.f32.mrb[150].mxu1 }
 0x94a   : > { %v4279_v48 = vpop.f32.mrb[151].mxu1  ;;  %v4288_v23 = vadd.f32 %v6194_v63, %v10317_v2  ;;  %v10351_v18 = vadd.f32 %v6973_v40, %v4285_v47 }
 0x94b   : > { %v10342_v50 = vadd.f32 %v6971_v49, %v4277_v45  ;;  %v4280_v1 = vadd.f32 %v10317_v2, %v4279_v48 }
 0x94c   : > { %v10355_v62 = vadd.f32 %v6974_v4, %v4288_v23 }
 0x94d   : > { %v10347_v29 = vadd.f32 %v6972_v56, %v4280_v1  ;;  %4349 = vadd.xlane.f32.xlu1 %v10342_v50 }
 0x94f   : > { %4351 = vadd.xlane.f32.xlu0 %v10347_v29 }
 0x951   : > { %4353 = vadd.xlane.f32.xlu1 %v10351_v18 }
 0x953   : > { %4355 = vadd.xlane.f32.xlu0 %v10355_v62 }
 0x975   : > { %v6197_v0 = vpop.f32.mrb[152].mxu1 }
 0x976   : > { %v4292_v32 = vpop.f32.mrb[153].mxu1  ;;  %v4301_v38 = vadd.f32 %v6197_v0, %v10317_v2 }
 0x977   : > { %v4293_v58 = vadd.f32 %v10317_v2, %v4292_v32  ;;  %v6198_v8 = vpop.f32.mrb[154].mxu1 }
 0x978   : > { %v4295_v43 = vpop.f32.mrb[155].mxu1  ;;  %v4304_v35 = vadd.f32 %v6198_v8, %v10317_v2  ;;  %v10371_v7 = vadd.f32 %v6977_v14, %v4301_v38  ;;  %v6493_v14 = vld [vmem:[#allocation15 + $0x44] ss:$8 sps:$4 sm:$0xff]  }
 0x979   : > { %v10362_v17 = vadd.f32 %v6975_v57, %v4293_v58  ;;  %v4296_v24 = vadd.f32 %v10317_v2, %v4295_v43 }
 0x97a   : > { %v10375_v39 = vadd.f32 %v6978_v30, %v4304_v35  ;;  %v6490_v35 = vld [vmem:[#allocation15 + $0x34] ss:$8 sps:$4 sm:$0xff]   ;;  %v6491_v30 = vld [vmem:[#allocation15 + $0x40] ss:$8 sps:$4 sm:$0xff]  }
 0x97b   : > { %v10367_v20 = vadd.f32 %v6976_v55, %v4296_v24  ;;  %4357 = vadd.xlane.f32.xlu1 %v10362_v17  ;;  %v6485_v24 = vld [vmem:[#allocation15 + $0x20] ss:$8 sps:$4 sm:$0xff]   ;;  %v6488_v55 = vld [vmem:[#allocation15 + $0x30] ss:$8 sps:$4 sm:$0xff]  }
 0x97d   : > { %4359 = vadd.xlane.f32.xlu0 %v10367_v20 }
 0x97f   : > { %4361 = vadd.xlane.f32.xlu1 %v10371_v7 }
 0x981   : > { %4363 = vadd.xlane.f32.xlu0 %v10375_v39 }
 0x985   : > { %v6201_v9 = vpop.f32.mrb[156].mxu1 }
 0x986   : > { %v4308_v26 = vpop.f32.mrb[157].mxu1  ;;  %v4317_v27 = vadd.f32 %v6201_v9, %v10317_v2  ;;  %v6494_v9 = vld [vmem:[#allocation15 + $0x50] ss:$8 sps:$4 sm:$0xff]  }
 0x987   : > { %v4309_v54 = vadd.f32 %v10317_v2, %v4308_v26  ;;  %v6202_v44 = vpop.f32.mrb[158].mxu1  ;;  %v6499_v26 = vld [vmem:[#allocation15 + $0x64] ss:$8 sps:$4 sm:$0xff]  }
 0x988   : > { %v4311_v15 = vpop.f32.mrb[159].mxu1  ;;  %v4320_v28 = vadd.f32 %v6202_v44, %v10317_v2  ;;  %v10391_v59 = vadd.f32 %v6981_v16, %v4317_v27  ;;  %v6502_v44 = vld [vmem:[#allocation15 + $0x74] ss:$8 sps:$4 sm:$0xff]  }
 0x989   : > { %v10382_v11 = vadd.f32 %v6979_v53, %v4309_v54  ;;  %v4312_v22 = vadd.f32 %v10317_v2, %v4311_v15  ;;  %v6484_v2 = vld [vmem:[#allocation15 + $0x14] ss:$8 sps:$4 sm:$0xff]   ;;  %v6497_v54 = vld [vmem:[#allocation15 + $0x60] ss:$8 sps:$4 sm:$0xff]   ;;  %v6500_v15 = vld [vmem:[#allocation15 + $0x70] ss:$8 sps:$4 sm:$0xff]  }
 0x98a   : > { %v10395_v31 = vadd.f32 %v6982_v37, %v4320_v28  ;;  %4680 = vmatprep.subr.bf16.mxu1 %v6484_v2 }
 0x98b   : > { %v10387_v46 = vadd.f32 %v6980_v19, %v4312_v22  ;;  %4365 = vadd.xlane.f32.xlu1 %v10382_v11  ;;  %4681 = vmatpush1.bf16.msra.mxu1 %v6482_v34 }
 0x98d   : > { %4367 = vadd.xlane.f32.xlu0 %v10387_v46 }
 0x98f   : > { %4369 = vadd.xlane.f32.xlu1 %v10391_v59 }
 0x991   : > { %4371 = vadd.xlane.f32.xlu0 %v10395_v31 }
 0x9ca   : > { %v4342_v3 = vpop.xlane.xlu0 %4341 }
 0x9cb   : > { %v4374_v25 = vmul.f32 0.0078125, %v4342_v3 }
 0x9cc   : > { %v4344_v36 = vpop.xlane.xlu1 %4343 }
 0x9cd   : > { %v10400_v51 = vsub.f32 %v10322_v10, %v4374_v25  ;;  %v4375_v60 = vmul.f32 0.0078125, %v4344_v36 }
 0x9ce   : > { %v4346_v61 = vpop.xlane.xlu0 %4345 }
 0x9cf   : > { %v10403_v41 = vsub.f32 %v10326_v6, %v4375_v60  ;;  %v4376_v5 = vmul.f32 0.0078125, %v4346_v61  ;;  %v4406_v42 = vmul.f32 %v10400_v51, %v10400_v51 }
 0x9d1   : > { %v10408_v45 = vsub.f32 %v10330_v13, %v4376_v5  ;;  %4422 = vadd.xlane.f32.xlu1 %v4406_v42  ;;  %v4407_v63 = vmul.f32 %v10403_v41, %v10403_v41 }
 0x9d2   : > { %v4348_v48 = vpop.xlane.xlu0 %4347 }
 0x9d3   : > { %v4377_v47 = vmul.f32 0.0078125, %v4348_v48  ;;  %4424 = vadd.xlane.f32.xlu0 %v4407_v63  ;;  %v4408_v10 = vmul.f32 %v10408_v45, %v10408_v45 }
 0x9d5   : > { %v10415_v6 = vsub.f32 %v10336_v33, %v4377_v47  ;;  %4426 = vadd.xlane.f32.xlu1 %v4408_v10 }
 0x9d7   : > { %v4409_v49 = vmul.f32 %v10415_v6, %v10415_v6 }
 0x9d9   : > { %4428 = vadd.xlane.f32.xlu0 %v4409_v49 }
 0x9da   : > { %v4350_v13 = vpop.xlane.xlu1 %4349 }
 0x9db   : > { %v4378_v1 = vmul.f32 0.0078125, %v4350_v13 }
 0x9dc   : > { %v4352_v23 = vpop.xlane.xlu0 %4351 }
 0x9dd   : > { %v10420_v56 = vsub.f32 %v10342_v50, %v4378_v1  ;;  %v4379_v40 = vmul.f32 0.0078125, %v4352_v23  ;;  %v6487_v50 = vld [vmem:[#allocation15 + $0x24] ss:$8 sps:$4 sm:$0xff]  }
 0x9de   : > { %v4354_v4 = vpop.xlane.xlu1 %4353  ;;  %4682 = vmatprep.subr.bf16.mxu1 %v6487_v50  ;;  %v10502_v50 = vld [vmem:[#allocation16 + $0x20] sm:$0xff]  }
 0x9df   : > { %v10423_v0 = vsub.f32 %v10347_v29, %v4379_v40  ;;  %v4380_v32 = vmul.f32 0.0078125, %v4354_v4  ;;  %v4410_v33 = vmul.f32 %v10420_v56, %v10420_v56  ;;  %4683 = vmatpush1.bf16.msra.mxu1 %v6485_v24  ;;  %v6503_v40 = vld [vmem:[#allocation16 + $0x40] sm:$0xff]   ;;  %v10481_v4 = vld [vmem:[#allocation16 + $0x48] sm:$0xff]  }
 0x9e0   : > { %v4356_v58 = vpop.xlane.xlu0 %4355  ;;  %4684 = vmatprep.subr.bf16.mxu1 %v6490_v35  ;;  %6075 = vmatprep.subr.bf16.mxu0 %v6503_v40  ;;  %v10505_v24 = vld [vmem:[#allocation16 + $0x68] sm:$0xff]  }
 0x9e1   : > { %v10428_v8 = vsub.f32 %v10351_v18, %v4380_v32  ;;  %v4381_v43 = vmul.f32 0.0078125, %v4356_v58  ;;  %4430 = vadd.xlane.f32.xlu1 %v4410_v33  ;;  %v4411_v38 = vmul.f32 %v10423_v0, %v10423_v0  ;;  %v10487_v32 = vld [vmem:[#allocation16 + $0x50] sm:$0xff]   ;;  %v10493_v58 = vld [vmem:[#allocation16 + $0x58] sm:$0xff]  }
 0x9e2   : > { %v10490_v33 = vld [vmem:[#allocation16 + $0x10] sm:$0xff]  }
 0x9e3   : > { %v10433_v57 = vsub.f32 %v10355_v62, %v4381_v43  ;;  %4432 = vadd.xlane.f32.xlu0 %v4411_v38  ;;  %v4412_v29 = vmul.f32 %v10428_v8, %v10428_v8  ;;  %4685 = vmatpush1.bf16.msra.mxu1 %v6488_v55  ;;  %v6496_v62 = vld [vmem:[#allocation15 + $0x54] ss:$8 sps:$4 sm:$0xff]   ;;  %v10499_v38 = vld [vmem:[#allocation16 + $0x60] sm:$0xff]  }
 0x9e4   : > { %4686 = vmatprep.subr.bf16.mxu1 %v6493_v14  ;;  %v10496_v43 = vld [vmem:[#allocation16 + $0x18] sm:$0xff]  }
 0x9e5   : > { %4434 = vadd.xlane.f32.xlu1 %v4412_v29  ;;  %v4413_v18 = vmul.f32 %v10433_v57, %v10433_v57 }
 0x9e7   : > { %4436 = vadd.xlane.f32.xlu0 %v4413_v18  ;;  %4687 = vmatpush1.bf16.msra.mxu1 %v6491_v30 }
 0x9e8   : > { %4688 = vmatprep.subr.bf16.mxu1 %v6496_v62 }
 0x9eb   : > { %4689 = vmatpush1.bf16.msra.mxu1 %v6494_v9 }
 0x9ec   : > { %4690 = vmatprep.subr.bf16.mxu1 %v6499_v26 }
 0x9ef   : > { %4691 = vmatpush1.bf16.msra.mxu1 %v6497_v54 }
 0x9f0   : > { %4692 = vmatprep.subr.bf16.mxu1 %v6502_v44 }
 0x9f3   : > { %4693 = vmatpush1.bf16.msra.mxu1 %v6500_v15 }
 0x9f4   : > { %6203 = vmatprep.subr.bf16.mxu1 %v6503_v40 }
 0xa08   : > { %v4358_v27 = vpop.xlane.xlu1 %4357 }
 0xa09   : > { %v4382_v53 = vmul.f32 0.0078125, %v4358_v27 }
 0xa0a   : > { %v4360_v22 = vpop.xlane.xlu0 %4359 }
 0xa0b   : > { %v10440_v28 = vsub.f32 %v10362_v17, %v4382_v53  ;;  %v4383_v19 = vmul.f32 0.0078125, %v4360_v22  ;;  %v10512_v53 = vld [vmem:[%s11575_s4] ss:$0 sm:$0xff]  ;;  %s5655_s4 = sshll.u32 %s5338_s7, 7 }
 0xa0c   : > { %v4362_v16 = vpop.xlane.xlu1 %4361 }
 0xa0d   : > { %v10443_v37 = vsub.f32 %v10367_v20, %v4383_v19  ;;  %v4384_v12 = vmul.f32 0.0078125, %v4362_v16  ;;  %v4414_v21 = vmul.f32 %v10440_v28, %v10440_v28 }
 0xa0e   : > { %v4364_v2 = vpop.xlane.xlu0 %4363 }
 0xa0f   : > { %v10448_v34 = vsub.f32 %v10371_v7, %v4384_v12  ;;  %v4385_v3 = vmul.f32 0.0078125, %v4364_v2  ;;  %4438 = vadd.xlane.f32.xlu1 %v4414_v21  ;;  %v4415_v25 = vmul.f32 %v10443_v37, %v10443_v37 }
 0xa11   : > { %v10453_v17 = vsub.f32 %v10375_v39, %v4385_v3  ;;  %4440 = vadd.xlane.f32.xlu0 %v4415_v25  ;;  %v4416_v20 = vmul.f32 %v10448_v34, %v10448_v34 }
 0xa13   : > { %4442 = vadd.xlane.f32.xlu1 %v4416_v20  ;;  %v4417_v36 = vmul.f32 %v10453_v17, %v10453_v17 }
 0xa15   : > { %4444 = vadd.xlane.f32.xlu0 %v4417_v36 }
 0xa18   : > { %v4366_v60 = vpop.xlane.xlu1 %4365 }
 0xa19   : > { %v4386_v7 = vmul.f32 0.0078125, %v4366_v60  ;;  %v10517_v60 = vld [vmem:[#allocation13] ss:$0 sm:$0xff] }
 0xa1a   : > { %v4368_v61 = vpop.xlane.xlu0 %4367 }
 0xa1b   : > { %v10460_v5 = vsub.f32 %v10382_v11, %v4386_v7  ;;  %v4387_v42 = vmul.f32 0.0078125, %v4368_v61 }
 0xa1c   : > { %v4370_v63 = vpop.xlane.xlu1 %4369 }
 0xa1d   : > { %v10463_v39 = vsub.f32 %v10387_v46, %v4387_v42  ;;  %v4388_v48 = vmul.f32 0.0078125, %v4370_v63  ;;  %v4418_v47 = vmul.f32 %v10460_v5, %v10460_v5 }
 0xa1e   : > { %v4372_v10 = vpop.xlane.xlu0 %4371 }
 0xa1f   : > { %v10468_v49 = vsub.f32 %v10391_v59, %v4388_v48  ;;  %v4389_v13 = vmul.f32 0.0078125, %v4372_v10  ;;  %4446 = vadd.xlane.f32.xlu1 %v4418_v47  ;;  %v4419_v1 = vmul.f32 %v10463_v39, %v10463_v39  ;;  %v10479_v59 = vld [vmem:[#allocation16] sm:$0xff]  }
 0xa20   : > { %6076 = vmatpush3.bf16.msra.mxu0 %v10479_v59 }
 0xa21   : > { %v10473_v11 = vsub.f32 %v10395_v31, %v4389_v13  ;;  %4448 = vadd.xlane.f32.xlu0 %v4419_v1  ;;  %v4420_v46 = vmul.f32 %v10468_v49, %v10468_v49  ;;  %v10484_v31 = vld [vmem:[#allocation16 + $0x8] sm:$0xff]   ;;  %6077 = vmatprep.subr.bf16.mxu0 %v10481_v4 }
 0xa23   : > { %4450 = vadd.xlane.f32.xlu1 %v4420_v46  ;;  %v4421_v23 = vmul.f32 %v10473_v11, %v10473_v11 }
 0xa24   : > { %6078 = vmatpush3.bf16.msra.mxu0 %v10484_v31 }
 0xa25   : > { %4452 = vadd.xlane.f32.xlu0 %v4421_v23  ;;  %6079 = vmatprep.subr.bf16.mxu0 %v10487_v32 }
 0xa28   : > { %6080 = vmatpush3.bf16.msra.mxu0 %v10490_v33 }
 0xa29   : > { %6081 = vmatprep.subr.bf16.mxu0 %v10493_v58 }
 0xa2c   : > { %6082 = vmatpush3.bf16.msra.mxu0 %v10496_v43 }
 0xa2d   : > { %6083 = vmatprep.subr.bf16.mxu0 %v10499_v38 }
 0xa30   : > { %6084 = vmatpush3.bf16.msra.mxu0 %v10502_v50 }
 0xa31   : > { %6085 = vmatprep.subr.bf16.mxu0 %v10505_v24 }
 0xa5e   : > { %v4423_v29 = vpop.xlane.xlu1 %4422 }
 0xa5f   : > { %v4454_v18 = vmul.f32 0.0078125, %v4423_v29 }
 0xa60   : > { %v4425_v35 = vpop.xlane.xlu0 %4424 }
 0xa61   : > { %v4470_v55 = vadd.f32 1e-05, %v4454_v18  ;;  %v4455_v14 = vmul.f32 0.0078125, %v4425_v35 }
 0xa62   : > { %v4427_v30 = vpop.xlane.xlu1 %4426 }
 0xa63   : > { %6903 = vrsqrt.f32 %v4470_v55  ;;  %v4471_v62 = vadd.f32 1e-05, %v4455_v14  ;;  %v4456_v9 = vmul.f32 0.0078125, %v4427_v30 }
 0xa65   : > { %6905 = vrsqrt.f32 %v4471_v62  ;;  %v4472_v26 = vadd.f32 1e-05, %v4456_v9 }
 0xa66   : > { %v4429_v54 = vpop.xlane.xlu0 %4428 }
 0xa67   : > { %6907 = vrsqrt.f32 %v4472_v26  ;;  %v4457_v44 = vmul.f32 0.0078125, %v4429_v54 }
 0xa69   : > { %v4473_v15 = vadd.f32 1e-05, %v4457_v44 }
 0xa6b   : > { %6909 = vrsqrt.f32 %v4473_v15 }
 0xa6d   : > { %v6904_v27 = vpop.eup %6903 }
 0xa6e   : > { %v4502_v22 = vmul.f32 %v6904_v27, %v10400_v51  ;;  %v4431_v19 = vpop.xlane.xlu1 %4430 }
 0xa6f   : > { %v6906_v16 = vpop.eup %6905  ;;  %v4458_v12 = vmul.f32 0.0078125, %v4431_v19 }
 0xa70   : > { %v4524_v21 = vmul.f32 %v10512_v53, %v4502_v22  ;;  %v4503_v2 = vmul.f32 %v6906_v16, %v10403_v41  ;;  %v4433_v3 = vpop.xlane.xlu0 %4432 }
 0xa71   : > { %v6908_v25 = vpop.eup %6907  ;;  %v4474_v20 = vadd.f32 1e-05, %v4458_v12  ;;  %v4459_v36 = vmul.f32 0.0078125, %v4433_v3 }
 0xa72   : > { %v4525_v7 = vmul.f32 %v10512_v53, %v4503_v2  ;;  %v4435_v61 = vpop.xlane.xlu1 %4434  ;;  %v10521_v48 = vadd.f32 %v10517_v60, %v4524_v21  ;;  %v4504_v41 = vmul.f32 %v6908_v25, %v10408_v45 }
 0xa73   : > { %6911 = vrsqrt.f32 %v4474_v20  ;;  %v4475_v42 = vadd.f32 1e-05, %v4459_v36  ;;  %v4460_v63 = vmul.f32 0.0078125, %v4435_v61 }
 0xa74   : > { %v4437_v51 = vpop.xlane.xlu0 %4436  ;;  %v10524_v47 = vadd.f32 %v10517_v60, %v4525_v7  ;;  %v4526_v29 = vmul.f32 %v10512_v53, %v4504_v41 }
 0xa75   : > { %v6910_v10 = vpop.eup %6909  ;;  %6913 = vrsqrt.f32 %v4475_v42  ;;  %v4476_v13 = vadd.f32 1e-05, %v4460_v63  ;;  %v4461_v1 = vmul.f32 0.0078125, %v4437_v51 }
 0xa76   : > { %v4562_v46 = vpack.c.bf16 %v10524_v47, %v10521_v48  ;;  %v4505_v23 = vmul.f32 %v6910_v10, %v10415_v6  ;;  %v10539_v35 = vadd.f32 %v10517_v60, %v4526_v29 }
 0xa77   : > { %6915 = vrsqrt.f32 %v4476_v13  ;;  %v4477_v40 = vadd.f32 1e-05, %v4461_v1 }
 0xa78   : > { %4711 = vmatmul.mubr.bf16.vlgmr.msra.gmra.mrb[160].mxu1 %v4562_v46  ;;  %v4527_v18 = vmul.f32 %v10512_v53, %v4505_v23 }
 0xa79   : > { %6917 = vrsqrt.f32 %v4477_v40  ;;  %4720 = vmatprep.mubr.bf16.mxu1 %v11573_v52  ;;  %6211 = vmatpush3.bf16.msra.mxu1 %v10479_v59 }
 0xa7a   : > { %v10535_v45 = vadd.f32 %v10517_v60, %v4527_v18  ;;  %6204 = vmatprep.subr.bf16.mxu1 %v10481_v4 }
 0xa7c   : > { %v4563_v55 = vpack.c.bf16 %v10535_v45, %v10539_v35 }
 0xa7d   : > { %v6912_v6 = vpop.eup %6911  ;;  %6212 = vmatpush3.bf16.msra.mxu1 %v10484_v31 }
 0xa7e   : > { %v4506_v14 = vmul.f32 %v6912_v6, %v10420_v56  ;;  %6205 = vmatprep.subr.bf16.mxu1 %v10487_v32 }
 0xa7f   : > { %v6914_v30 = vpop.eup %6913 }
 0xa80   : > { %4721 = vmatmul.mubr.bf16.gmra.mrb[164].mxu1 %v4563_v55  ;;  %v4507_v59 = vmul.f32 %v6914_v30, %v10423_v0  ;;  %v4528_v62 = vmul.f32 %v10512_v53, %v4506_v14 }
 0xa81   : > { %v6916_v4 = vpop.eup %6915  ;;  %4730 = vmatprep.mubr.bf16.mxu1 %v11573_v52  ;;  %6213 = vmatpush3.bf16.msra.mxu1 %v10490_v33 }
 0xa82   : > { %v4529_v31 = vmul.f32 %v10512_v53, %v4507_v59  ;;  %6206 = vmatprep.subr.bf16.mxu1 %v10493_v58  ;;  %v10553_v56 = vadd.f32 %v10517_v60, %v4528_v62  ;;  %v4508_v0 = vmul.f32 %v6916_v4, %v10428_v8 }
 0xa83   : > { %v6918_v9 = vpop.eup %6917 }
 0xa84   : > { %v10556_v32 = vadd.f32 %v10517_v60, %v4529_v31  ;;  %v4509_v26 = vmul.f32 %v6918_v9, %v10433_v57  ;;  %v4530_v58 = vmul.f32 %v10512_v53, %v4508_v0 }
 0xa85   : > { %6214 = vmatpush3.bf16.msra.mxu1 %v10496_v43 }
 0xa86   : > { %v4564_v33 = vpack.c.bf16 %v10556_v32, %v10553_v56  ;;  %v4531_v54 = vmul.f32 %v10512_v53, %v4509_v26  ;;  %6207 = vmatprep.subr.bf16.mxu1 %v10499_v38  ;;  %v10573_v57 = vadd.f32 %v10517_v60, %v4530_v58 }
 0xa88   : > { %4731 = vmatmul.mubr.bf16.gmra.mrb[168].mxu1 %v4564_v33  ;;  %v10569_v8 = vadd.f32 %v10517_v60, %v4531_v54 }
 0xa89   : > { %4740 = vmatprep.mubr.bf16.mxu1 %v11573_v52  ;;  %6215 = vmatpush3.bf16.msra.mxu1 %v10502_v50 }
 0xa8a   : > { %6208 = vmatprep.subr.bf16.mxu1 %v10505_v24  ;;  %v4565_v43 = vpack.c.bf16 %v10569_v8, %v10573_v57 }
 0xa90   : > { %4741 = vmatmul.mubr.bf16.gmra.mrb[172].mxu1 %v4565_v43 }
 0xa91   : > { %4750 = vmatprep.mubr.bf16.mxu1 %v11573_v52 }
 0xa9c   : > { %v4439_v38 = vpop.xlane.xlu1 %4438 }
 0xa9d   : > { %v4462_v44 = vmul.f32 0.0078125, %v4439_v38 }
 0xa9e   : > { %v4441_v15 = vpop.xlane.xlu0 %4440 }
 0xa9f   : > { %v4478_v27 = vadd.f32 1e-05, %v4462_v44  ;;  %v4463_v22 = vmul.f32 0.0078125, %v4441_v15 }
 0xaa0   : > { %v4443_v50 = vpop.xlane.xlu1 %4442 }
 0xaa1   : > { %6919 = vrsqrt.f32 %v4478_v27  ;;  %v4479_v19 = vadd.f32 1e-05, %v4463_v22  ;;  %v4464_v16 = vmul.f32 0.0078125, %v4443_v50 }
 0xaa2   : > { %v4445_v12 = vpop.xlane.xlu0 %4444 }
 0xaa3   : > { %6921 = vrsqrt.f32 %v4479_v19  ;;  %v4480_v24 = vadd.f32 1e-05, %v4464_v16  ;;  %v4465_v21 = vmul.f32 0.0078125, %v4445_v12  ;;  %v6515_v12 = vld [vmem:[#allocation16 + $0x70] sm:$0xff]  }
 0xaa5   : > { %6923 = vrsqrt.f32 %v4480_v24  ;;  %v4481_v2 = vadd.f32 1e-05, %v4465_v21  ;;  %v6516_v24 = vld [vmem:[#allocation16 + $0x30] sm:$0xff]   ;;  %v11577_v21 = vld [vmem:[#allocation34_spill] sm:$0xff] }
 0xaa7   : > { %6925 = vrsqrt.f32 %v4481_v2  ;;  %v11578_v2 = vsub.s32 0, %v11577_v21 }
 0xaab   : > { %v6920_v3 = vpop.eup %6919 }
 0xaac   : > { %v4447_v25 = vpop.xlane.xlu1 %4446  ;;  %v4510_v20 = vmul.f32 %v6920_v3, %v10440_v28 }
 0xaad   : > { %v6922_v36 = vpop.eup %6921  ;;  %v4466_v7 = vmul.f32 0.0078125, %v4447_v25  ;;  %v11579_v25 = vsub.s32 1, %v11577_v21 }
 0xaae   : > { %v4449_v61 = vpop.xlane.xlu0 %4448  ;;  %v4511_v42 = vmul.f32 %v6922_v36, %v10443_v37  ;;  %v4532_v63 = vmul.f32 %v10512_v53, %v4510_v20 }
 0xaaf   : > { %v6924_v51 = vpop.eup %6923  ;;  %v4482_v41 = vadd.f32 1e-05, %v4466_v7  ;;  %v4467_v10 = vmul.f32 0.0078125, %v4449_v61 }
 0xab0   : > { %v4451_v13 = vpop.xlane.xlu1 %4450  ;;  %v4533_v1 = vmul.f32 %v10512_v53, %v4511_v42  ;;  %v10583_v28 = vadd.f32 %v10517_v60, %v4532_v63  ;;  %v4512_v37 = vmul.f32 %v6924_v51, %v10448_v34 }
 0xab1   : > { %v6926_v46 = vpop.eup %6925  ;;  %6927 = vrsqrt.f32 %v4482_v41  ;;  %v4483_v23 = vadd.f32 1e-05, %v4467_v10  ;;  %v4468_v40 = vmul.f32 0.0078125, %v4451_v13 }
 0xab2   : > { %v4453_v29 = vpop.xlane.xlu0 %4452  ;;  %v10586_v18 = vadd.f32 %v10517_v60, %v4533_v1  ;;  %v4513_v6 = vmul.f32 %v6926_v46, %v10453_v17  ;;  %v4534_v4 = vmul.f32 %v10512_v53, %v4512_v37 }
 0xab3   : > { %6929 = vrsqrt.f32 %v4483_v23  ;;  %v4484_v55 = vadd.f32 1e-05, %v4468_v40  ;;  %v4469_v14 = vmul.f32 0.0078125, %v4453_v29 }
 0xab4   : > { %v4566_v30 = vpack.c.bf16 %v10586_v18, %v10583_v28  ;;  %v4535_v59 = vmul.f32 %v10512_v53, %v4513_v6  ;;  %v10599_v17 = vadd.f32 %v10517_v60, %v4534_v4 }
 0xab5   : > { %6931 = vrsqrt.f32 %v4484_v55  ;;  %v4485_v62 = vadd.f32 1e-05, %v4469_v14 }
 0xab6   : > { %4751 = vmatmul.mubr.bf16.gmra.mrb[176].mxu1 %v4566_v30  ;;  %v10596_v34 = vadd.f32 %v10517_v60, %v4535_v59 }
 0xab7   : > { %6933 = vrsqrt.f32 %v4485_v62  ;;  %4760 = vmatprep.mubr.bf16.mxu1 %v11573_v52 }
 0xab8   : > { %v4567_v9 = vpack.c.bf16 %v10596_v34, %v10599_v17 }
 0xabb   : > { %v6928_v31 = vpop.eup %6927 }
 0xabc   : > { %v4514_v0 = vmul.f32 %v6928_v31, %v10460_v5 }
 0xabd   : > { %v6930_v26 = vpop.eup %6929 }
 0xabe   : > { %4761 = vmatmul.mubr.bf16.gmra.mrb[180].mxu1 %v4567_v9  ;;  %v4515_v33 = vmul.f32 %v6930_v26, %v10463_v39  ;;  %v4536_v54 = vmul.f32 %v10512_v53, %v4514_v0 }
 0xabf   : > { %v6932_v58 = vpop.eup %6931  ;;  %4770 = vmatprep.mubr.bf16.mxu1 %v11573_v52 }
 0xac0   : > { %v4537_v43 = vmul.f32 %v10512_v53, %v4515_v33  ;;  %v10609_v44 = vadd.f32 %v10517_v60, %v4536_v54  ;;  %v4516_v5 = vmul.f32 %v6932_v58, %v10468_v49 }
 0xac1   : > { %v6934_v38 = vpop.eup %6933 }
 0xac2   : > { %v10612_v15 = vadd.f32 %v10517_v60, %v4537_v43  ;;  %v4517_v27 = vmul.f32 %v6934_v38, %v10473_v11  ;;  %v4538_v50 = vmul.f32 %v10512_v53, %v4516_v5  ;;  %v6514_v11 = vld [vmem:[#allocation16 + $0x28] sm:$0xff]  }
 0xac3   : > { %6086 = vmatpush3.bf16.msra.mxu0 %v6514_v11  ;;  %6216 = vmatpush3.bf16.msra.mxu1 %v6514_v11 }
 0xac4   : > { %v4568_v39 = vpack.c.bf16 %v10612_v15, %v10609_v44  ;;  %v4539_v22 = vmul.f32 %v10512_v53, %v4517_v27  ;;  %v10625_v16 = vadd.f32 %v10517_v60, %v4538_v50  ;;  %6087 = vmatprep.subr.bf16.mxu0 %v6515_v12  ;;  %6209 = vmatprep.subr.bf16.mxu1 %v6515_v12  ;;  %v6517_v53 = vld [vmem:[#allocation16 + $0x78] sm:$0xff]  }
 0xac6   : > { %4771 = vmatmul.mubr.bf16.gmra.mrb[184].mxu1 %v4568_v39  ;;  %v10622_v19 = vadd.f32 %v10517_v60, %v4539_v22  ;;  %v4586_v60 = vld [vmem:[%s11576_s11] sm:$0x3]  ;;  %s11584_s11 = sld [smem:[#allocation186_spill]] }
 0xac7   : > { %4780 = vmatprep.mubr.bf16.mxu1 %v11573_v52  ;;  %6088 = vmatpush3.bf16.msra.mxu0 %v6516_v24  ;;  %v6518_v52 = vld [vmem:[#allocation16 + $0x38] sm:$0xff]   ;;  %v10634_v3 = vrot.slane %v4586_v60, %v11578_v2  ;;  %v10638_v20 = vrot.slane %v4586_v60, %v11579_v25 }
 0xac8   : > { %v4569_v49 = vpack.c.bf16 %v10622_v19, %v10625_v16  ;;  %6217 = vmatpush3.bf16.msra.mxu1 %v6516_v24  ;;  %6089 = vmatprep.subr.bf16.mxu0 %v6517_v53 }
 0xac9   : > { %6210 = vmatprep.subr.bf16.mxu1 %v6517_v53 }
 0xacb   : > { %6090 = vmatpush3.bf16.msra.mxu0 %v6518_v52 }
 0xacc   : > { %6218 = vmatpush3.bf16.msra.mxu1 %v6518_v52  ;;  %s10919_s15 = scalar_lea.hbm %s11584_s11, %s5655_s4 }
 0xace   : > { %4781 = vmatmul.mubr.bf16.gmra.mrb[188].mxu1 %v4569_v49 }
 0xb4b   : > { %v4712_v36 = vpop.f32.mrb[160].mxu1 }
 0xb4c   : > { %v4713_v7 = vadd.f32 %v4712_v36, %v10634_v3  ;;  %v4714_v61 = vpop.f32.mrb[161].mxu1 }
 0xb4d   : > { %v4715_v42 = vadd.f32 %v4714_v61, %v10638_v20  ;;  %v4716_v63 = vpop.f32.mrb[162].mxu1 }
 0xb4e   : > { %v4717_v51 = vadd.f32 %v4716_v63, %v10634_v3  ;;  %v4718_v41 = vpop.f32.mrb[163].mxu1  ;;  %v4791_v13 = vmax.f32 %v4713_v7, 0.0 }
 0xb4f   : > { %v4719_v10 = vadd.f32 %v4718_v41, %v10638_v20  ;;  %v4792_v46 = vmax.f32 %v4715_v42, 0.0 }
 0xb50   : > { %v4793_v1 = vmax.f32 %v4717_v51, 0.0 }
 0xb51   : > { %v4794_v23 = vmax.f32 %v4719_v10, 0.0 }
 0xb52   : > { %v4823_v40 = vpack.c.bf16 %v4793_v1, %v4791_v13 }
 0xb53   : > { %v4824_v29 = vpack.c.bf16 %v4794_v23, %v4792_v46  ;;  %v4722_v37 = vpop.f32.mrb[164].mxu1 }
 0xb54   : > { %v4723_v6 = vadd.f32 %v4722_v37, %v10634_v3  ;;  %v4724_v55 = vpop.f32.mrb[165].mxu1 }
 0xb55   : > { %v4725_v14 = vadd.f32 %v4724_v55, %v10638_v20  ;;  %v4726_v30 = vpop.f32.mrb[166].mxu1  ;;  %5006 = vmatprep.mubr.bf16.mxu0 %v4824_v29 }
 0xb56   : > { %v4727_v59 = vadd.f32 %v4726_v30, %v10634_v3  ;;  %v4728_v62 = vpop.f32.mrb[167].mxu1  ;;  %5007 = vmatmul.mubr.bf16.vlgmr.msra.gmra.mrb[192].mxu0 %v4823_v40  ;;  %v4795_v31 = vmax.f32 %v4723_v6, 0.0 }
 0xb57   : > { %v4729_v4 = vadd.f32 %v4728_v62, %v10638_v20  ;;  %v4796_v0 = vmax.f32 %v4725_v14, 0.0 }
 0xb58   : > { %v4797_v9 = vmax.f32 %v4727_v59, 0.0 }
 0xb59   : > { %v4798_v26 = vmax.f32 %v4729_v4, 0.0 }
 0xb5a   : > { %v4825_v33 = vpack.c.bf16 %v4797_v9, %v4795_v31 }
 0xb5b   : > { %v4826_v54 = vpack.c.bf16 %v4798_v26, %v4796_v0  ;;  %v4732_v58 = vpop.f32.mrb[168].mxu1 }
 0xb5c   : > { %v4733_v43 = vadd.f32 %v4732_v58, %v10634_v3  ;;  %v4734_v38 = vpop.f32.mrb[169].mxu1 }
 0xb5d   : > { %v4735_v5 = vadd.f32 %v4734_v38, %v10638_v20  ;;  %v4736_v27 = vpop.f32.mrb[170].mxu1  ;;  %5014 = vmatprep.mubr.bf16.mxu0 %v4826_v54 }
 0xb5e   : > { %v4737_v39 = vadd.f32 %v4736_v27, %v10634_v3  ;;  %v4738_v22 = vpop.f32.mrb[171].mxu1  ;;  %5015 = vmatmul.mubr.bf16.gmra.mrb[196].mxu0 %v4825_v33  ;;  %v4799_v49 = vmax.f32 %v4733_v43, 0.0 }
 0xb5f   : > { %v4739_v50 = vadd.f32 %v4738_v22, %v10638_v20  ;;  %v4800_v12 = vmax.f32 %v4735_v5, 0.0 }
 0xb60   : > { %v4801_v11 = vmax.f32 %v4737_v39, 0.0 }
 0xb61   : > { %v4802_v24 = vmax.f32 %v4739_v50, 0.0 }
 0xb62   : > { %v4827_v53 = vpack.c.bf16 %v4801_v11, %v4799_v49 }
 0xb63   : > { %v4828_v52 = vpack.c.bf16 %v4802_v24, %v4800_v12  ;;  %v4742_v60 = vpop.f32.mrb[172].mxu1 }
 0xb64   : > { %v4743_v21 = vadd.f32 %v4742_v60, %v10634_v3  ;;  %v4744_v2 = vpop.f32.mrb[173].mxu1 }
 0xb65   : > { %v4745_v25 = vadd.f32 %v4744_v2, %v10638_v20  ;;  %v4746_v36 = vpop.f32.mrb[174].mxu1  ;;  %5022 = vmatprep.mubr.bf16.mxu0 %v4828_v52 }
 0xb66   : > { %v4747_v7 = vadd.f32 %v4746_v36, %v10634_v3  ;;  %v4748_v61 = vpop.f32.mrb[175].mxu1  ;;  %5023 = vmatmul.mubr.bf16.gmra.mrb[200].mxu0 %v4827_v53  ;;  %v4803_v63 = vmax.f32 %v4743_v21, 0.0 }
 0xb67   : > { %v4749_v42 = vadd.f32 %v4748_v61, %v10638_v20  ;;  %v4804_v41 = vmax.f32 %v4745_v25, 0.0 }
 0xb68   : > { %v4805_v51 = vmax.f32 %v4747_v7, 0.0 }
 0xb69   : > { %v4806_v10 = vmax.f32 %v4749_v42, 0.0 }
 0xb6a   : > { %v4829_v13 = vpack.c.bf16 %v4805_v51, %v4803_v63 }
 0xb6b   : > { %v4830_v1 = vpack.c.bf16 %v4806_v10, %v4804_v41 }
 0xb6d   : > { %5030 = vmatprep.mubr.bf16.mxu0 %v4830_v1 }
 0xb6e   : > { %5031 = vmatmul.mubr.bf16.gmra.mrb[204].mxu0 %v4829_v13 }
 0xb89   : > { %v4752_v46 = vpop.f32.mrb[176].mxu1 }
 0xb8a   : > { %v4753_v23 = vadd.f32 %v4752_v46, %v10634_v3  ;;  %v4754_v40 = vpop.f32.mrb[177].mxu1 }
 0xb8b   : > { %v4755_v29 = vadd.f32 %v4754_v40, %v10638_v20  ;;  %v4756_v37 = vpop.f32.mrb[178].mxu1 }
 0xb8c   : > { %v4757_v6 = vadd.f32 %v4756_v37, %v10634_v3  ;;  %v4758_v55 = vpop.f32.mrb[179].mxu1  ;;  %v4807_v30 = vmax.f32 %v4753_v23, 0.0 }
 0xb8d   : > { %v4759_v14 = vadd.f32 %v4758_v55, %v10638_v20  ;;  %v4808_v62 = vmax.f32 %v4755_v29, 0.0 }
 0xb8e   : > { %v4809_v59 = vmax.f32 %v4757_v6, 0.0 }
 0xb8f   : > { %v4810_v4 = vmax.f32 %v4759_v14, 0.0 }
 0xb90   : > { %v4831_v31 = vpack.c.bf16 %v4809_v59, %v4807_v30 }
 0xb91   : > { %v4832_v9 = vpack.c.bf16 %v4810_v4, %v4808_v62  ;;  %v4762_v0 = vpop.f32.mrb[180].mxu1  ;;  %v10675_v4 = vld [vmem:[%s11580_s9] ss:$0 sm:$0xff]  ;;  %s7239_s9 = scalar_lea.vmem %s10912_s3, 2048 }
 0xb92   : > { %v4763_v26 = vadd.f32 %v4762_v0, %v10634_v3  ;;  %v4764_v33 = vpop.f32.mrb[181].mxu1  ;;  %p7240_p11 = scmp.ne.s32.totalorder %s10912_s3, %s7239_s9 }
 0xb93   : > { %v4765_v54 = vadd.f32 %v4764_v33, %v10638_v20  ;;  %v4766_v58 = vpop.f32.mrb[182].mxu1  ;;  %5038 = vmatprep.mubr.bf16.mxu0 %v4832_v9 }
 0xb94   : > { %v4767_v43 = vadd.f32 %v4766_v58, %v10634_v3  ;;  %v4768_v38 = vpop.f32.mrb[183].mxu1  ;;  %5039 = vmatmul.mubr.bf16.gmra.mrb[208].mxu0 %v4831_v31  ;;  %v4811_v27 = vmax.f32 %v4763_v26, 0.0  ;;  %p7241_p13 = pnand %p7240_p11, %p11585_p3 }
 0xb95   : > { %v4769_v5 = vadd.f32 %v4768_v38, %v10638_v20  ;;  %v4812_v22 = vmax.f32 %v4765_v54, 0.0 }
 0xb96   : > { %v4813_v39 = vmax.f32 %v4767_v43, 0.0  ;;  %p7242_p0 = pneg %p7241_p13 }
 0xb97   : > { %v4814_v50 = vmax.f32 %v4769_v5, 0.0 }
 0xb98   : > { %v4833_v49 = vpack.c.bf16 %v4813_v39, %v4811_v27 }
 0xb99   : > { %v4834_v11 = vpack.c.bf16 %v4814_v50, %v4812_v22  ;;  %v4772_v12 = vpop.f32.mrb[184].mxu1 }
 0xb9a   : > { %v4773_v24 = vadd.f32 %v4772_v12, %v10634_v3  ;;  %v4774_v53 = vpop.f32.mrb[185].mxu1 }
 0xb9b   : > { %v4775_v52 = vadd.f32 %v4774_v53, %v10638_v20  ;;  %v4776_v60 = vpop.f32.mrb[186].mxu1  ;;  %5046 = vmatprep.mubr.bf16.mxu0 %v4834_v11 }
 0xb9c   : > { %v4777_v21 = vadd.f32 %v4776_v60, %v10634_v3  ;;  %v4778_v2 = vpop.f32.mrb[187].mxu1  ;;  %5047 = vmatmul.mubr.bf16.gmra.mrb[212].mxu0 %v4833_v49  ;;  %v4815_v36 = vmax.f32 %v4773_v24, 0.0 }
 0xb9d   : > { %v4779_v25 = vadd.f32 %v4778_v2, %v10638_v20  ;;  %v4816_v61 = vmax.f32 %v4775_v52, 0.0 }
 0xb9e   : > { %v4817_v7 = vmax.f32 %v4777_v21, 0.0 }
 0xb9f   : > { %v4818_v42 = vmax.f32 %v4779_v25, 0.0 }
 0xba0   : > { %v4835_v63 = vpack.c.bf16 %v4817_v7, %v4815_v36 }
 0xba1   : > { %v4836_v51 = vpack.c.bf16 %v4818_v42, %v4816_v61  ;;  %v4782_v41 = vpop.f32.mrb[188].mxu1 }
 0xba2   : > { %v4783_v10 = vadd.f32 %v4782_v41, %v10634_v3  ;;  %v4784_v13 = vpop.f32.mrb[189].mxu1 }
 0xba3   : > { %v4785_v1 = vadd.f32 %v4784_v13, %v10638_v20  ;;  %v4786_v46 = vpop.f32.mrb[190].mxu1  ;;  %5054 = vmatprep.mubr.bf16.mxu1 %v4836_v51 }
 0xba4   : > { %v4787_v23 = vadd.f32 %v4786_v46, %v10634_v3  ;;  %v4788_v40 = vpop.f32.mrb[191].mxu1  ;;  %5055 = vmatmul.mubr.bf16.vlgmr.msra.gmra.mrb[192].mxu1 %v4835_v63  ;;  %v4819_v37 = vmax.f32 %v4783_v10, 0.0 }
 0xba5   : > { %v4789_v29 = vadd.f32 %v4788_v40, %v10638_v20  ;;  %v4820_v55 = vmax.f32 %v4785_v1, 0.0 }
 0xba6   : > { %v4821_v6 = vmax.f32 %v4787_v23, 0.0 }
 0xba7   : > { %v4822_v14 = vmax.f32 %v4789_v29, 0.0 }
 0xba8   : > { %v4837_v30 = vpack.c.bf16 %v4821_v6, %v4819_v37 }
 0xba9   : > { %v4838_v59 = vpack.c.bf16 %v4822_v14, %v4820_v55 }
 0xbab   : > { %5062 = vmatprep.mubr.bf16.mxu1 %v4838_v59 }
 0xbac   : > { %5063 = vmatmul.mubr.bf16.gmra.mrb[196].mxu1 %v4837_v30 }
 0xc29   : > { %v6091_v62 = vpop.f32.mrb[192].mxu0 }
 0xc2a   : > { %v6092_v31 = vpop.f32.mrb[193].mxu0 }
 0xc2b   : > { %v6093_v3 = vadd.f32 %v6092_v31, %v6091_v62  ;;  %v6094_v9 = vpop.f32.mrb[194].mxu0 }
 0xc2c   : > { %v6095_v0 = vpop.f32.mrb[195].mxu0 }
 0xc2d   : > { %v5009_v20 = vadd.f32 %v6093_v3, %v10675_v4  ;;  %v6096_v26 = vadd.f32 %v6095_v0, %v6094_v9 }
 0xc2f   : > { %v5012_v33 = vadd.f32 %v6096_v26, %v10675_v4  ;;  %v10680_v54 = vadd.f32 %v5009_v20, %v10521_v48 }
 0xc31   : > { %5089 = vadd.xlane.f32.xlu1 %v10680_v54  ;;  %v6097_v58 = vpop.f32.mrb[196].mxu0  ;;  %v10684_v43 = vadd.f32 %v5012_v33, %v10524_v47 }
 0xc32   : > { %v6098_v38 = vpop.f32.mrb[197].mxu0 }
 0xc33   : > { %v6099_v5 = vadd.f32 %v6098_v38, %v6097_v58  ;;  %5091 = vadd.xlane.f32.xlu0 %v10684_v43  ;;  %v6100_v27 = vpop.f32.mrb[198].mxu0 }
 0xc34   : > { %v6101_v39 = vpop.f32.mrb[199].mxu0 }
 0xc35   : > { %v5017_v22 = vadd.f32 %v6099_v5, %v10675_v4  ;;  %v6102_v50 = vadd.f32 %v6101_v39, %v6100_v27 }
 0xc37   : > { %v5020_v49 = vadd.f32 %v6102_v50, %v10675_v4  ;;  %v10690_v48 = vadd.f32 %v5017_v22, %v10539_v35 }
 0xc39   : > { %5093 = vadd.xlane.f32.xlu1 %v10690_v48  ;;  %v6103_v11 = vpop.f32.mrb[200].mxu0  ;;  %v10694_v47 = vadd.f32 %v5020_v49, %v10535_v45 }
 0xc3a   : > { %v6104_v12 = vpop.f32.mrb[201].mxu0 }
 0xc3b   : > { %v6105_v24 = vadd.f32 %v6104_v12, %v6103_v11  ;;  %5095 = vadd.xlane.f32.xlu0 %v10694_v47  ;;  %v6106_v53 = vpop.f32.mrb[202].mxu0 }
 0xc3c   : > { %v6107_v52 = vpop.f32.mrb[203].mxu0 }
 0xc3d   : > { %v5025_v60 = vadd.f32 %v6105_v24, %v10675_v4  ;;  %v6108_v21 = vadd.f32 %v6107_v52, %v6106_v53 }
 0xc3f   : > { %v5028_v2 = vadd.f32 %v6108_v21, %v10675_v4  ;;  %v10700_v35 = vadd.f32 %v5025_v60, %v10553_v56 }
 0xc41   : > { %5097 = vadd.xlane.f32.xlu1 %v10700_v35  ;;  %v6109_v25 = vpop.f32.mrb[204].mxu0  ;;  %v10704_v45 = vadd.f32 %v5028_v2, %v10556_v32 }
 0xc42   : > { %v6110_v36 = vpop.f32.mrb[205].mxu0 }
 0xc43   : > { %v6111_v7 = vadd.f32 %v6110_v36, %v6109_v25  ;;  %5099 = vadd.xlane.f32.xlu0 %v10704_v45  ;;  %v6112_v61 = vpop.f32.mrb[206].mxu0 }
 0xc44   : > { %v6113_v42 = vpop.f32.mrb[207].mxu0 }
 0xc45   : > { %v5033_v63 = vadd.f32 %v6111_v7, %v10675_v4  ;;  %v6114_v51 = vadd.f32 %v6113_v42, %v6112_v61 }
 0xc47   : > { %v5036_v41 = vadd.f32 %v6114_v51, %v10675_v4  ;;  %v10710_v56 = vadd.f32 %v5033_v63, %v10573_v57 }
 0xc49   : > { %5101 = vadd.xlane.f32.xlu1 %v10710_v56  ;;  %v10714_v10 = vadd.f32 %v5036_v41, %v10569_v8 }
 0xc4b   : > { %5103 = vadd.xlane.f32.xlu0 %v10714_v10 }
 0xc67   : > { %v6115_v32 = vpop.f32.mrb[208].mxu0 }
 0xc68   : > { %v6116_v13 = vpop.f32.mrb[209].mxu0 }
 0xc69   : > { %v6117_v1 = vadd.f32 %v6116_v13, %v6115_v32  ;;  %v6118_v46 = vpop.f32.mrb[210].mxu0 }
 0xc6a   : > { %v6119_v23 = vpop.f32.mrb[211].mxu0 }
 0xc6b   : > { %v5041_v40 = vadd.f32 %v6117_v1, %v10675_v4  ;;  %v6120_v29 = vadd.f32 %v6119_v23, %v6118_v46 }
 0xc6d   : > { %v5044_v37 = vadd.f32 %v6120_v29, %v10675_v4  ;;  %v10720_v57 = vadd.f32 %v5041_v40, %v10583_v28 }
 0xc6f   : > { %5105 = vadd.xlane.f32.xlu1 %v10720_v57  ;;  %v6121_v6 = vpop.f32.mrb[212].mxu0  ;;  %v10724_v8 = vadd.f32 %v5044_v37, %v10586_v18 }
 0xc70   : > { %v6122_v55 = vpop.f32.mrb[213].mxu0 }
 0xc71   : > { %v6123_v14 = vadd.f32 %v6122_v55, %v6121_v6  ;;  %5107 = vadd.xlane.f32.xlu0 %v10724_v8  ;;  %v6124_v30 = vpop.f32.mrb[214].mxu0 }
 0xc72   : > { %v6125_v59 = vpop.f32.mrb[215].mxu0 }
 0xc73   : > { %v5049_v62 = vadd.f32 %v6123_v14, %v10675_v4  ;;  %v6126_v31 = vadd.f32 %v6125_v59, %v6124_v30 }
 0xc75   : > { %v5052_v3 = vadd.f32 %v6126_v31, %v10675_v4  ;;  %v10730_v28 = vadd.f32 %v5049_v62, %v10599_v17 }
 0xc77   : > { %5109 = vadd.xlane.f32.xlu1 %v10730_v28  ;;  %v6127_v9 = vpop.f32.mrb[192].mxu1  ;;  %v10734_v18 = vadd.f32 %v5052_v3, %v10596_v34 }
 0xc78   : > { %v6128_v0 = vpop.f32.mrb[193].mxu1 }
 0xc79   : > { %v6129_v20 = vadd.f32 %v6128_v0, %v6127_v9  ;;  %5111 = vadd.xlane.f32.xlu0 %v10734_v18  ;;  %v6130_v26 = vpop.f32.mrb[194].mxu1 }
 0xc7a   : > { %v6131_v33 = vpop.f32.mrb[195].mxu1 }
 0xc7b   : > { %v5057_v58 = vadd.f32 %v6129_v20, %v10675_v4  ;;  %v6132_v38 = vadd.f32 %v6131_v33, %v6130_v26 }
 0xc7d   : > { %v5060_v5 = vadd.f32 %v6132_v38, %v10675_v4  ;;  %v10740_v17 = vadd.f32 %v5057_v58, %v10609_v44 }
 0xc7f   : > { %5113 = vadd.xlane.f32.xlu1 %v10740_v17  ;;  %v6133_v27 = vpop.f32.mrb[196].mxu1  ;;  %v10744_v34 = vadd.f32 %v5060_v5, %v10612_v15 }
 0xc80   : > { %v6134_v39 = vpop.f32.mrb[197].mxu1 }
 0xc81   : > { %v6135_v22 = vadd.f32 %v6134_v39, %v6133_v27  ;;  %5115 = vadd.xlane.f32.xlu0 %v10744_v34  ;;  %v6136_v50 = vpop.f32.mrb[198].mxu1 }
 0xc82   : > { %v6137_v49 = vpop.f32.mrb[199].mxu1 }
 0xc83   : > { %v5065_v11 = vadd.f32 %v6135_v22, %v10675_v4  ;;  %v6138_v12 = vadd.f32 %v6137_v49, %v6136_v50 }
 0xc85   : > { %v5068_v24 = vadd.f32 %v6138_v12, %v10675_v4  ;;  %v10750_v44 = vadd.f32 %v5065_v11, %v10625_v16 }
 0xc87   : > { %5117 = vadd.xlane.f32.xlu1 %v10750_v44  ;;  %v10754_v53 = vadd.f32 %v5068_v24, %v10622_v19 }
 0xc89   : > { %5119 = vadd.xlane.f32.xlu0 %v10754_v53 }
 0xcbe   : > { %v5090_v15 = vpop.xlane.xlu1 %5089 }
 0xcbf   : > { %v5121_v52 = vmul.f32 0.0078125, %v5090_v15 }
 0xcc0   : > { %v5092_v60 = vpop.xlane.xlu0 %5091 }
 0xcc1   : > { %v10758_v21 = vsub.f32 %v10680_v54, %v5121_v52  ;;  %v5122_v2 = vmul.f32 0.0078125, %v5092_v60 }
 0xcc3   : > { %v10761_v25 = vsub.f32 %v10684_v43, %v5122_v2  ;;  %v5153_v16 = vmul.f32 %v10758_v21, %v10758_v21 }
 0xcc5   : > { %5169 = vadd.xlane.f32.xlu1 %v5153_v16  ;;  %v5154_v19 = vmul.f32 %v10761_v25, %v10761_v25 }
 0xcc6   : > { %v5094_v4 = vpop.xlane.xlu1 %5093 }
 0xcc7   : > { %v5123_v36 = vmul.f32 0.0078125, %v5094_v4  ;;  %5171 = vadd.xlane.f32.xlu0 %v5154_v19 }
 0xcc8   : > { %v5096_v7 = vpop.xlane.xlu0 %5095 }
 0xcc9   : > { %v10768_v61 = vsub.f32 %v10690_v48, %v5123_v36  ;;  %v5124_v54 = vmul.f32 0.0078125, %v5096_v7 }
 0xccb   : > { %v10771_v42 = vsub.f32 %v10694_v47, %v5124_v54  ;;  %v5155_v43 = vmul.f32 %v10768_v61, %v10768_v61 }
 0xccd   : > { %5173 = vadd.xlane.f32.xlu1 %v5155_v43  ;;  %v5156_v63 = vmul.f32 %v10771_v42, %v10771_v42 }
 0xcce   : > { %v5098_v51 = vpop.xlane.xlu1 %5097 }
 0xccf   : > { %v5125_v41 = vmul.f32 0.0078125, %v5098_v51  ;;  %5175 = vadd.xlane.f32.xlu0 %v5156_v63 }
 0xcd0   : > { %v5100_v32 = vpop.xlane.xlu0 %5099 }
 0xcd1   : > { %v10778_v13 = vsub.f32 %v10700_v35, %v5125_v41  ;;  %v5126_v48 = vmul.f32 0.0078125, %v5100_v32  ;;  %v10840_v41 = vld [vmem:[%s11581_s27] ss:$0 sm:$0xff]  ;;  %s7245_s27 = scalar_lea.vmem %s7244_s28, 4096 }
 0xcd2   : > { %p7247_p4 = scmp.lt.s32.totalorder %s7245_s27, %s7239_s9 }
 0xcd3   : > { %v10781_v1 = vsub.f32 %v10704_v45, %v5126_v48  ;;  %v5157_v47 = vmul.f32 %v10778_v13, %v10778_v13 }
 0xcd4   : > { %p7248_p5 = por %p7247_p4, %p7246_p6 }
 0xcd5   : > { %5177 = vadd.xlane.f32.xlu1 %v5157_v47  ;;  %v5158_v46 = vmul.f32 %v10781_v1, %v10781_v1 }
 0xcd6   : > { %v5102_v23 = vpop.xlane.xlu1 %5101  ;;  %p7249_p7 = pnand %p7248_p5, %p7242_p0 }
 0xcd7   : > { %v5127_v40 = vmul.f32 0.0078125, %v5102_v23  ;;  %5179 = vadd.xlane.f32.xlu0 %v5158_v46  ;;  %v10843_v46 = vld [vmem:[#allocation18] ss:$0 sm:$0xff] }
 0xcd8   : > { %v5104_v29 = vpop.xlane.xlu0 %5103 }
 0xcd9   : > { %v10788_v37 = vsub.f32 %v10710_v56, %v5127_v40  ;;  %v5128_v35 = vmul.f32 0.0078125, %v5104_v29 }
 0xcdb   : > { %v10791_v6 = vsub.f32 %v10714_v10, %v5128_v35  ;;  %v5159_v45 = vmul.f32 %v10788_v37, %v10788_v37 }
 0xcdd   : > { %5181 = vadd.xlane.f32.xlu1 %v5159_v45  ;;  %v5160_v55 = vmul.f32 %v10791_v6, %v10791_v6 }
 0xcdf   : > { %5183 = vadd.xlane.f32.xlu0 %v5160_v55 }
 0xcfc   : > { %v5106_v14 = vpop.xlane.xlu1 %5105 }
 0xcfd   : > { %v5129_v30 = vmul.f32 0.0078125, %v5106_v14 }
 0xcfe   : > { %v5108_v59 = vpop.xlane.xlu0 %5107 }
 0xcff   : > { %v10798_v62 = vsub.f32 %v10720_v57, %v5129_v30  ;;  %v5130_v56 = vmul.f32 0.0078125, %v5108_v59 }
 0xd01   : > { %v10801_v31 = vsub.f32 %v10724_v8, %v5130_v56  ;;  %v5161_v10 = vmul.f32 %v10798_v62, %v10798_v62 }
 0xd03   : > { %5185 = vadd.xlane.f32.xlu1 %v5161_v10  ;;  %v5162_v3 = vmul.f32 %v10801_v31, %v10801_v31 }
 0xd04   : > { %v5110_v9 = vpop.xlane.xlu1 %5109 }
 0xd05   : > { %v5131_v0 = vmul.f32 0.0078125, %v5110_v9  ;;  %5187 = vadd.xlane.f32.xlu0 %v5162_v3 }
 0xd06   : > { %v5112_v20 = vpop.xlane.xlu0 %5111 }
 0xd07   : > { %v10808_v26 = vsub.f32 %v10730_v28, %v5131_v0  ;;  %v5132_v57 = vmul.f32 0.0078125, %v5112_v20 }
 0xd09   : > { %v10811_v33 = vsub.f32 %v10734_v18, %v5132_v57  ;;  %v5163_v8 = vmul.f32 %v10808_v26, %v10808_v26 }
 0xd0b   : > { %5189 = vadd.xlane.f32.xlu1 %v5163_v8  ;;  %v5164_v58 = vmul.f32 %v10811_v33, %v10811_v33 }
 0xd0c   : > { %v5114_v38 = vpop.xlane.xlu1 %5113 }
 0xd0d   : > { %v5133_v5 = vmul.f32 0.0078125, %v5114_v38  ;;  %5191 = vadd.xlane.f32.xlu0 %v5164_v58 }
 0xd0e   : > { %v5116_v27 = vpop.xlane.xlu0 %5115 }
 0xd0f   : > { %v10818_v39 = vsub.f32 %v10740_v17, %v5133_v5  ;;  %v5134_v28 = vmul.f32 0.0078125, %v5116_v27 }
 0xd11   : > { %v10821_v22 = vsub.f32 %v10744_v34, %v5134_v28  ;;  %v5165_v18 = vmul.f32 %v10818_v39, %v10818_v39 }
 0xd13   : > { %5193 = vadd.xlane.f32.xlu1 %v5165_v18  ;;  %v5166_v50 = vmul.f32 %v10821_v22, %v10821_v22 }
 0xd14   : > { %v5118_v49 = vpop.xlane.xlu1 %5117 }
 0xd15   : > { %v5135_v11 = vmul.f32 0.0078125, %v5118_v49  ;;  %5195 = vadd.xlane.f32.xlu0 %v5166_v50 }
 0xd16   : > { %v5120_v12 = vpop.xlane.xlu0 %5119 }
 0xd17   : > { %v10828_v24 = vsub.f32 %v10750_v44, %v5135_v11  ;;  %v5136_v17 = vmul.f32 0.0078125, %v5120_v12 }
 0xd19   : > { %v10831_v15 = vsub.f32 %v10754_v53, %v5136_v17  ;;  %v5167_v34 = vmul.f32 %v10828_v24, %v10828_v24 }
 0xd1b   : > { %5197 = vadd.xlane.f32.xlu1 %v5167_v34  ;;  %v5168_v52 = vmul.f32 %v10831_v15, %v10831_v15 }
 0xd1d   : > { %5199 = vadd.xlane.f32.xlu0 %v5168_v52 }
 0xd52   : > { %v5170_v60 = vpop.xlane.xlu1 %5169 }
 0xd53   : > { %v5201_v2 = vmul.f32 0.0078125, %v5170_v60 }
 0xd54   : > { %v5172_v16 = vpop.xlane.xlu0 %5171 }
 0xd55   : > { %v5217_v19 = vadd.f32 1e-05, %v5201_v2  ;;  %v5202_v4 = vmul.f32 0.0078125, %v5172_v16 }
 0xd57   : > { %6935 = vrsqrt.f32 %v5217_v19  ;;  %v5218_v44 = vadd.f32 1e-05, %v5202_v4 }
 0xd59   : > { %6937 = vrsqrt.f32 %v5218_v44 }
 0xd5a   : > { %v5174_v36 = vpop.xlane.xlu1 %5173 }
 0xd5b   : > { %v5203_v7 = vmul.f32 0.0078125, %v5174_v36 }
 0xd5c   : > { %v5176_v53 = vpop.xlane.xlu0 %5175 }
 0xd5d   : > { %v5219_v54 = vadd.f32 1e-05, %v5203_v7  ;;  %v5204_v43 = vmul.f32 0.0078125, %v5176_v53 }
 0xd5f   : > { %6939 = vrsqrt.f32 %v5219_v54  ;;  %v5220_v63 = vadd.f32 1e-05, %v5204_v43 }
 0xd61   : > { %v6936_v51 = vpop.eup %6935  ;;  %6941 = vrsqrt.f32 %v5220_v63 }
 0xd62   : > { %v5249_v32 = vmul.f32 %v6936_v51, %v10758_v21  ;;  %v5178_v48 = vpop.xlane.xlu1 %5177 }
 0xd63   : > { %v6938_v47 = vpop.eup %6937  ;;  %v5205_v23 = vmul.f32 0.0078125, %v5178_v48 }
 0xd64   : > { %v5271_v40 = vmul.f32 %v10840_v41, %v5249_v32  ;;  %v5250_v29 = vmul.f32 %v6938_v47, %v10761_v25  ;;  %v5180_v35 = vpop.xlane.xlu0 %5179 }
 0xd65   : > { %v5221_v45 = vadd.f32 1e-05, %v5205_v23  ;;  %v5206_v55 = vmul.f32 0.0078125, %v5180_v35 }
 0xd66   : > { %v5293_v14 = vadd.f32 %v10843_v46, %v5271_v40  ;;  %v5272_v30 = vmul.f32 %v10840_v41, %v5250_v29 }
 0xd67   : > { %6943 = vrsqrt.f32 %v5221_v45  ;;  %v5222_v59 = vadd.f32 1e-05, %v5206_v55 }
 0xd68   : > { %5309 = vst [vmem:[%s10851_s19] sm:$0xff] %v5293_v14  ;;  %v5294_v21 = vadd.f32 %v10843_v46, %v5272_v30 }
 0xd69   : > { %v6940_v56 = vpop.eup %6939  ;;  %6945 = vrsqrt.f32 %v5222_v59 }
 0xd6a   : > { %5310 = vst [vmem:[%s10851_s19 + $0x8] sm:$0xff] %v5294_v21  ;;  %v5251_v25 = vmul.f32 %v6940_v56, %v10768_v61  ;;  %v5182_v10 = vpop.xlane.xlu1 %5181 }
 0xd6b   : > { %v6942_v3 = vpop.eup %6941  ;;  %v5207_v9 = vmul.f32 0.0078125, %v5182_v10 }
 0xd6c   : > { %v5273_v0 = vmul.f32 %v10840_v41, %v5251_v25  ;;  %v5252_v20 = vmul.f32 %v6942_v3, %v10771_v42  ;;  %v5184_v57 = vpop.xlane.xlu0 %5183 }
 0xd6d   : > { %v5223_v8 = vadd.f32 1e-05, %v5207_v9  ;;  %v5208_v58 = vmul.f32 0.0078125, %v5184_v57 }
 0xd6e   : > { %v5295_v38 = vadd.f32 %v10843_v46, %v5273_v0  ;;  %v5274_v5 = vmul.f32 %v10840_v41, %v5252_v20 }
 0xd6f   : > { %6947 = vrsqrt.f32 %v5223_v8  ;;  %v5224_v27 = vadd.f32 1e-05, %v5208_v58 }
 0xd70   : > { %5311 = vst [vmem:[%s10851_s19 + $0x10] sm:$0xff] %v5295_v38  ;;  %v5296_v61 = vadd.f32 %v10843_v46, %v5274_v5 }
 0xd71   : > { %v6944_v28 = vpop.eup %6943  ;;  %6949 = vrsqrt.f32 %v5224_v27 }
 0xd72   : > { %5312 = vst [vmem:[%s10851_s19 + $0x18] sm:$0xff] %v5296_v61  ;;  %v5253_v18 = vmul.f32 %v6944_v28, %v10778_v13 }
 0xd73   : > { %v6946_v42 = vpop.eup %6945 }
 0xd74   : > { %v5275_v50 = vmul.f32 %v10840_v41, %v5253_v18  ;;  %v5254_v49 = vmul.f32 %v6946_v42, %v10781_v1 }
 0xd76   : > { %v5297_v11 = vadd.f32 %v10843_v46, %v5275_v50  ;;  %v5276_v12 = vmul.f32 %v10840_v41, %v5254_v49 }
 0xd78   : > { %5313 = vst [vmem:[%s10851_s19 + $0x20] sm:$0xff] %v5297_v11  ;;  %v5298_v17 = vadd.f32 %v10843_v46, %v5276_v12 }
 0xd79   : > { %v6948_v34 = vpop.eup %6947 }
 0xd7a   : > { %5314 = vst [vmem:[%s10851_s19 + $0x28] sm:$0xff] %v5298_v17  ;;  %v5255_v52 = vmul.f32 %v6948_v34, %v10788_v37 }
 0xd7b   : > { %v6950_v60 = vpop.eup %6949 }
 0xd7c   : > { %v5277_v13 = vmul.f32 %v10840_v41, %v5255_v52  ;;  %v5256_v2 = vmul.f32 %v6950_v60, %v10791_v6 }
 0xd7e   : > { %v5299_v16 = vadd.f32 %v10843_v46, %v5277_v13  ;;  %v5278_v1 = vmul.f32 %v10840_v41, %v5256_v2 }
 0xd80   : > { %5315 = vst [vmem:[%s10851_s19 + $0x30] sm:$0xff] %v5299_v16  ;;  %v5300_v19 = vadd.f32 %v10843_v46, %v5278_v1 }
 0xd82   : > { %5316 = vst [vmem:[%s10851_s19 + $0x38] sm:$0xff] %v5300_v19 }
 0xd90   : > { %v5186_v4 = vpop.xlane.xlu1 %5185 }
 0xd91   : > { %v5209_v44 = vmul.f32 0.0078125, %v5186_v4 }
 0xd92   : > { %v5188_v36 = vpop.xlane.xlu0 %5187 }
 0xd93   : > { %v5225_v7 = vadd.f32 1e-05, %v5209_v44  ;;  %v5210_v53 = vmul.f32 0.0078125, %v5188_v36 }
 0xd95   : > { %6951 = vrsqrt.f32 %v5225_v7  ;;  %v5226_v37 = vadd.f32 1e-05, %v5210_v53 }
 0xd97   : > { %6953 = vrsqrt.f32 %v5226_v37 }
 0xd98   : > { %v5190_v54 = vpop.xlane.xlu1 %5189 }
 0xd99   : > { %v5211_v43 = vmul.f32 0.0078125, %v5190_v54 }
 0xd9a   : > { %v5192_v63 = vpop.xlane.xlu0 %5191 }
 0xd9b   : > { %v5227_v6 = vadd.f32 1e-05, %v5211_v43  ;;  %v5212_v51 = vmul.f32 0.0078125, %v5192_v63 }
 0xd9d   : > { %6955 = vrsqrt.f32 %v5227_v6  ;;  %v5228_v32 = vadd.f32 1e-05, %v5212_v51 }
 0xd9f   : > { %v6952_v48 = vpop.eup %6951  ;;  %6957 = vrsqrt.f32 %v5228_v32 }
 0xda0   : > { %v5257_v47 = vmul.f32 %v6952_v48, %v10798_v62  ;;  %v5194_v23 = vpop.xlane.xlu1 %5193 }
 0xda1   : > { %v6954_v40 = vpop.eup %6953  ;;  %v5213_v29 = vmul.f32 0.0078125, %v5194_v23 }
 0xda2   : > { %v5279_v35 = vmul.f32 %v10840_v41, %v5257_v47  ;;  %v5258_v45 = vmul.f32 %v6954_v40, %v10801_v31  ;;  %v5196_v55 = vpop.xlane.xlu0 %5195 }
 0xda3   : > { %v5229_v14 = vadd.f32 1e-05, %v5213_v29  ;;  %v5214_v30 = vmul.f32 0.0078125, %v5196_v55 }
 0xda4   : > { %v5301_v59 = vadd.f32 %v10843_v46, %v5279_v35  ;;  %v5280_v21 = vmul.f32 %v10840_v41, %v5258_v45 }
 0xda5   : > { %6959 = vrsqrt.f32 %v5229_v14  ;;  %v5230_v56 = vadd.f32 1e-05, %v5214_v30 }
 0xda6   : > { %5317 = vst [vmem:[%s10851_s19 + $0x40] sm:$0xff] %v5301_v59  ;;  %v5302_v62 = vadd.f32 %v10843_v46, %v5280_v21 }
 0xda7   : > { %v6956_v25 = vpop.eup %6955  ;;  %6961 = vrsqrt.f32 %v5230_v56 }
 0xda8   : > { %5318 = vst [vmem:[%s10851_s19 + $0x48] sm:$0xff] %v5302_v62  ;;  %v5259_v10 = vmul.f32 %v6956_v25, %v10808_v26  ;;  %v5198_v3 = vpop.xlane.xlu1 %5197 }
 0xda9   : > { %v6958_v31 = vpop.eup %6957  ;;  %v5215_v9 = vmul.f32 0.0078125, %v5198_v3 }
 0xdaa   : > { %v5281_v0 = vmul.f32 %v10840_v41, %v5259_v10  ;;  %v5260_v20 = vmul.f32 %v6958_v31, %v10811_v33  ;;  %v5200_v57 = vpop.xlane.xlu0 %5199 }
 0xdab   : > { %v5231_v8 = vadd.f32 1e-05, %v5215_v9  ;;  %v5216_v58 = vmul.f32 0.0078125, %v5200_v57 }
 0xdac   : > { %v5303_v38 = vadd.f32 %v10843_v46, %v5281_v0  ;;  %v5282_v5 = vmul.f32 %v10840_v41, %v5260_v20 }
 0xdad   : > { %6963 = vrsqrt.f32 %v5231_v8  ;;  %v5232_v26 = vadd.f32 1e-05, %v5216_v58 }
 0xdae   : > { %5319 = vst [vmem:[%s10851_s19 + $0x50] sm:$0xff] %v5303_v38  ;;  %v5304_v27 = vadd.f32 %v10843_v46, %v5282_v5 }
 0xdaf   : > { %v6960_v61 = vpop.eup %6959  ;;  %6965 = vrsqrt.f32 %v5232_v26 }
 0xdb0   : > { %5320 = vst [vmem:[%s10851_s19 + $0x58] sm:$0xff] %v5304_v27  ;;  %v5261_v33 = vmul.f32 %v6960_v61, %v10818_v39 }
 0xdb1   : > { %v6962_v28 = vpop.eup %6961 }
 0xdb2   : > { %v5283_v18 = vmul.f32 %v10840_v41, %v5261_v33  ;;  %v5262_v42 = vmul.f32 %v6962_v28, %v10821_v22 }
 0xdb4   : > { %v5305_v50 = vadd.f32 %v10843_v46, %v5283_v18  ;;  %v5284_v49 = vmul.f32 %v10840_v41, %v5262_v42 }
 0xdb6   : > { %5321 = vst [vmem:[%s10851_s19 + $0x60] sm:$0xff] %v5305_v50  ;;  %v5306_v11 = vadd.f32 %v10843_v46, %v5284_v49 }
 0xdb7   : > { %v6964_v12 = vpop.eup %6963 }
 0xdb8   : > { %5322 = vst [vmem:[%s10851_s19 + $0x68] sm:$0xff] %v5306_v11  ;;  %v5263_v39 = vmul.f32 %v6964_v12, %v10828_v24 }
 0xdb9   : > { %v6966_v17 = vpop.eup %6965 }
 0xdba   : > { %v5285_v22 = vmul.f32 %v10840_v41, %v5263_v39  ;;  %v5264_v34 = vmul.f32 %v6966_v17, %v10831_v15 }
 0xdbc   : > { %v5307_v52 = vadd.f32 %v10843_v46, %v5285_v22  ;;  %v5286_v60 = vmul.f32 %v10840_v41, %v5264_v34 }
 0xdbe   : > { %5323 = vst [vmem:[%s10851_s19 + $0x70] sm:$0xff] %v5307_v52  ;;  %v5308_v24 = vadd.f32 %v10843_v46, %v5286_v60 }
 0xdc0   : > { %5324 = vst [vmem:[%s10851_s19 + $0x78] sm:$0xff] %v5308_v24 }
 0xdc1   : > { %7252 = shalt.err (!%p7249_p7)
}
 0xdc2   : > { %s7253_s19 = scalar_lea.hbm %s10919_s15, 2048  ;;  %s7257_s2 = scalar_lea.hbm %s11584_s11, 8192 }
 0xdc3   : > { %p7254_p12 = scmp.ne.s32.totalorder %s10919_s15, %s7253_s19  ;;  %p7258_p10 = scmp.lt.u32.totalorder %s10919_s15, %s11584_s11 }
 0xdc4   : > { %p7259_p1 = scmp.lt.u32.totalorder %s7257_s2, %s7253_s19  ;;  %p7261_p11 = scmp.lt.u32.totalorder %s7253_s19, %s10919_s15 }
 0xdc5   : > { %p7255_p2 = pnand %p7254_p12, %p11585_p3 }
 0xdc6   : > { %p7260_p9 = por %p7259_p1, %p7258_p10 }
 0xdc7   : > { %p7256_p8 = pneg %p7255_p2 }
 0xdc8   : > { %p7262_p13 = por %p7261_p11, %p7260_p9 }
 0xdca   : > { %p7263_p0 = pnand %p7262_p13, %p7256_p8 }
 0xdcc   : > { %7266 = shalt.err (!%p7263_p0)
}
 0xdcd   : > { %s7401_s4 = smov 128   ;;  %s7402_s18 = smov 8  }
 0xdce   : > { %6283 = dma.vmem_to_hbm [thread:$0]  (%p11585_p3), %s10912_s3, 2048, %s10919_s15, %s5326_s14, %s7401_s4, %s7401_s4, %s7402_s18  }
 0xdcf PF: > { %s11586_s17 = sld [smem:[#allocation33_spill]]  ;;  %p6333_p6 = scmp.ge.s32.totalorder %s7381_s0, 2 }
 0xdd0   : > { %s5356_s9 = sand.u32 1, %s7353_s24  }
 0xdd1   : > { %s5357_s5 = scalar_lea.sflag [#allocation6], %s5356_s9 }
 0xdd5   : > { %p11587_p4 = scmp.ne.s32.totalorder %s11586_s17, 0 }
 0xdd7   : > { %p6315_p5 = pnand %p6333_p6, %p11587_p4 }
 0xdd9   : > { %7336 = dma.done.wait (!%p6315_p5), %s5357_s5, 2048  }
 0xdda   : > { %7338 = vsyncadd (!%p6315_p5), %s5357_s5, 4294965248  ;;  %s38_s0 = sadd.s32 1, %s7381_s0   ;;  %s11588_s8 = sld [smem:[#allocation31_spill]] }
 0xddb   : > { %p35_p7 = scmp.ge.s32.totalorder %s38_s0, 6   ;;  %s11589_s12 = sld [smem:[#allocation32_spill]] }
 0xddc   : > { %s11590_s21 = smov %s7345_s22  ;;  %s11591_s22 = smov %s7349_s23 }
 0xddd   : > { %s11592_s23 = smov %s7829_s6  ;;  %s11593_s24 = smov %s7357_s25 }
 0xdde   : > { %s11594_s25 = smov %s7361_s26  ;;  %s11595_s26 = smov %s7776_s1 }
 0xddf   : > { %s11596_s27 = smov %s7373_s29  ;;  %s11597_s28 = smov %s7377_s30 }
 0xde0   : > { %s11598_s29 = smov %s11588_s8  ;;  %37 = sbr.rel (!%p35_p7) target bundleno = 32 (0x20), region = 170 }
 0xde1   : > { %s11599_s30 = smov %s11589_s12 }
 0xde7   :  { %5362 = vsyncpa [#allocation5], 1 }
 0xde8   :  { %5364 = vsyncpa [#allocation5 + $0x1], 1 }
 0xde9   :  { %5365 = vsyncpa [#allocation8], 1 }
 0xdea   :  { %5367 = vsyncpa [#allocation8 + $0x1], 1 }
 0xdeb   :  { %5368 = vsyncpa [#allocation11], 1 }
 0xdec   :  { %5369 = vsyncpa [#allocation14], 1 }
 0xded   :  { %5370 = vsyncpa [#allocation17], 1 }
 0xdee   :  { %5371 = vsyncpa [#allocation6], 1 }
 0xdef   :  { %5373 = vsyncpa [#allocation6 + $0x1], 1 }

</bundles_post_ra>
